<compile_context>
chip_gen: v6e
topology: v6e:2x2x1
jax: 0.10.0
libtpu: 0.0.40
codegen_flags: <defaults>
</compile_context>

<pallas_src>
from functools import partial

import jax
import jax.numpy as jnp
from jax.experimental import pallas as pl
from jax.experimental.pallas import tpu as pltpu


def convlstm_kernel(xh_ref, c_ref, w_ref, wci_ref, wcf_ref, wco_ref,
                    ch_ref, cc_ref, *, H, W, K, Cpad, Ch, Bb):
    """One block of Bb batch elements per grid step.

    xh_ref : (Bb, H+K-1, W+K-1, Cpad) bf16  padded [x | h | 1 | 0...], NHWC
    c_ref  : (Bb, H*W, Ch)            f32   previous cell state
    w_ref  : (K*K, Cpad, 4*Ch)        bf16  fused conv weights (gate-major
                                            columns, i/f/o columns pre-scaled
                                            by 0.5, bias in centre-tap row)
    wci/wcf/wco_ref : (1, H*W, Ch)    f32   peephole weights, pre-scaled by 0.5
    ch_ref, cc_ref  : (Bb, H*W, Ch)   f32   outputs
    """
    NG = 4 * Ch
    HW = H * W
    rows = Bb * HW

    # ---- fused gate pre-activations: K*K tap matmuls, f32 MXU accumulation --
    # acc lanes hold [0.5*pre_i | 0.5*pre_f | pre_g | 0.5*pre_o] (bias folded
    # in via the always-one channel of the centre tap).
    def tap(t):
        dy, dx = divmod(t, K)
        patch = xh_ref[:, dy:dy + H, dx:dx + W, :].reshape(rows, Cpad)
        return jnp.dot(patch, w_ref[t], preferred_element_type=jnp.float32)

    acc = tap(0)
    for t in range(1, K * K):
        acc = acc + tap(t)
    acc = acc.reshape(Bb, HW, NG)

    c = c_ref[...]            # (Bb, HW, Ch) f32
    hwci = wci_ref[...]       # (1, HW, Ch)  = 0.5 * Wci
    hwcf = wcf_ref[...]       # (1, HW, Ch)  = 0.5 * Wcf
    hwco = wco_ref[...]       # (1, HW, Ch)  = 0.5 * Wco

    # ---- pass 1: one lane-dense tanh covers sigmoid(i), sigmoid(f), tanh(g) --
    # sigmoid(z) = 0.5*tanh(z/2) + 0.5 ; z/2 already baked into acc/peepholes.
    u1 = jnp.concatenate(
        [acc[..., 0:Ch] + c * hwci,
         acc[..., Ch:2 * Ch] + c * hwcf,
         acc[..., 2 * Ch:3 * Ch]], axis=-1)
    t1 = jnp.tanh(u1)
    ci = 0.5 * t1[..., 0:Ch] + 0.5
    cf = 0.5 * t1[..., Ch:2 * Ch] + 0.5
    g = t1[..., 2 * Ch:3 * Ch]
    cc = cf * c + ci * g

    # ---- pass 2: one lane-dense tanh covers sigmoid(o) and tanh(cc) ---------
    u2 = jnp.concatenate([acc[..., 3 * Ch:4 * Ch] + cc * hwco, cc], axis=-1)
    t2 = jnp.tanh(u2)
    co = 0.5 * t2[..., 0:Ch] + 0.5
    ch = co * t2[..., Ch:2 * Ch]

    ch_ref[...] = ch
    cc_ref[...] = cc


def _pick_batch_block(B, cap=8):
    """Largest divisor of B <= cap, preferring to keep >= 2 grid steps."""
    divs = [d for d in range(1, B + 1) if B % d == 0 and d <= cap]
    pref = [d for d in divs if B // d >= 2]
    return max(pref) if pref else max(divs)


def conv_lstm_cell(x, h, c, wx, wh, bx, wci, wcf, wco, *, kernel_size,
                   batch_block=None):
    """ConvLSTMCell forward.  NCHW in / NCHW out (PyTorch convention).

    x   : (B, Cin, H, W)
    h,c : (B, Ch, H, W)
    wx  : (4, Ch, Cin, K, K)   OIHW per gate, gate order i, f, c, o
    wh  : (4, Ch, Ch, K, K)    (no bias, as in the PyTorch module)
    bx  : (4, Ch)              biases of the x-convs only
    wci, wcf, wco : (1, Ch, H, W)   peephole weights
    Returns (ch, cc), each (B, Ch, H, W) float32.
    """
    B, Cin, H, W = x.shape
    Ch = wx.shape[1]
    K = kernel_size
    assert K % 2 == 1, "padding (K-1)//2 only matches the module for odd K"
    p = (K - 1) // 2
    CinCh = Cin + Ch
    NG = 4 * Ch
    HW = H * W
    Hp, Wp = H + K - 1, W + K - 1
    # Contraction channels padded to a full 128-lane tile; channel CinCh is an
    # always-one bias channel, the remainder are zeros.
    Cpad = max(128, ((CinCh + 1 + 127) // 128) * 128)

    Bb = batch_block if batch_block is not None else _pick_batch_block(B)
    assert B % Bb == 0

    # ---------------- wrapper glue: layout conversion -----------------------
    x_nhwc = jnp.transpose(x, (0, 2, 3, 1))
    h_nhwc = jnp.transpose(h, (0, 2, 3, 1))
    ones = jnp.ones((B, H, W, 1), x.dtype)
    xh = jnp.concatenate([x_nhwc, h_nhwc, ones], axis=-1)       # (B,H,W,CinCh+1)
    xh = jnp.pad(xh, ((0, 0), (p, p), (p, p), (0, Cpad - CinCh - 1)))
    xh = xh.astype(jnp.bfloat16)                                # (B,Hp,Wp,Cpad)

    c_l = jnp.transpose(c, (0, 2, 3, 1)).reshape(B, HW, Ch).astype(jnp.float32)

    def peep(wp):  # (1, Ch, H, W) -> 0.5 * (1, H*W, Ch)  (sigmoid-as-tanh scale)
        return (0.5 * jnp.transpose(wp, (0, 2, 3, 1))
                ).reshape(1, HW, Ch).astype(jnp.float32)

    wci_l, wcf_l, wco_l = peep(wci), peep(wcf), peep(wco)

    # Fused conv weight (K*K, Cpad, 4*Ch): rows = [x-ch | h-ch | bias | 0...],
    # columns gate-major (g*Ch + c_out), gate order i, f, c, o.  Bias only in
    # the centre tap's bias row.  Columns of gates i/f/o (incl. their bias)
    # are pre-scaled by 0.5 (exact in bf16) for sigmoid(z)=0.5*tanh(z/2)+0.5.
    wx_f = jnp.transpose(wx, (3, 4, 2, 0, 1)).reshape(K, K, Cin, NG)
    wh_f = jnp.transpose(wh, (3, 4, 2, 0, 1)).reshape(K, K, Ch, NG)
    w_full = jnp.zeros((K, K, Cpad, NG), jnp.float32)
    w_full = w_full.at[:, :, 0:Cin, :].set(wx_f)
    w_full = w_full.at[:, :, Cin:CinCh, :].set(wh_f)
    w_full = w_full.at[p, p, CinCh, :].set(bx.reshape(NG))
    gate_scale = jnp.repeat(jnp.array([0.5, 0.5, 1.0, 0.5], jnp.float32), Ch)
    w_f = (w_full * gate_scale[None, None, None, :]
           ).reshape(K * K, Cpad, NG).astype(jnp.bfloat16)

    kernel = partial(convlstm_kernel, H=H, W=W, K=K, Cpad=Cpad, Ch=Ch, Bb=Bb)

    flops = 2 * B * HW * K * K * Cpad * NG
    transcendentals = 5 * B * HW * Ch
    bytes_accessed = (xh.size * 2 + w_f.size * 2 + c_l.size * 4
                      + 3 * HW * Ch * 4 + 2 * B * HW * Ch * 4)
    cost = pl.CostEstimate(flops=flops, transcendentals=transcendentals,
                           bytes_accessed=bytes_accessed)

    grid_spec = pltpu.PrefetchScalarGridSpec(
        num_scalar_prefetch=0,
        grid=(B // Bb,),
        in_specs=[
            pl.BlockSpec((Bb, Hp, Wp, Cpad), lambda b: (b, 0, 0, 0)),
            pl.BlockSpec((Bb, HW, Ch), lambda b: (b, 0, 0)),
            pl.BlockSpec((K * K, Cpad, NG), lambda b: (0, 0, 0)),
            pl.BlockSpec((1, HW, Ch), lambda b: (0, 0, 0)),
            pl.BlockSpec((1, HW, Ch), lambda b: (0, 0, 0)),
            pl.BlockSpec((1, HW, Ch), lambda b: (0, 0, 0)),
        ],
        out_specs=(
            pl.BlockSpec((Bb, HW, Ch), lambda b: (b, 0, 0)),
            pl.BlockSpec((Bb, HW, Ch), lambda b: (b, 0, 0)),
        ),
    )

    # NOTE: VMEM footprint at the default batch_block cap (8) stays well under
    # the 16/32 MiB scoped defaults on v5e/v6e/v7x; set vmem_limit_bytes in
    # CompilerParams if batch_block is pushed higher.
    ch_l, cc_l = pl.pallas_call(
        kernel,
        out_shape=(jax.ShapeDtypeStruct((B, HW, Ch), jnp.float32),
                   jax.ShapeDtypeStruct((B, HW, Ch), jnp.float32)),
        grid_spec=grid_spec,
        compiler_params=pltpu.CompilerParams(
            dimension_semantics=("parallel",)),
        cost_estimate=cost,
    )(xh, c_l, w_f, wci_l, wcf_l, wco_l)

    ch_out = jnp.transpose(ch_l.reshape(B, H, W, Ch), (0, 3, 1, 2))
    cc_out = jnp.transpose(cc_l.reshape(B, H, W, Ch), (0, 3, 1, 2))
    return ch_out, cc_out


def _reference(x, h, c, wx, wh, bx, wci, wcf, wco, *, quantize_matmul_operands):
    """Pure-JAX NCHW reference replicating the PyTorch forward.

    With quantize_matmul_operands=True the conv operands are quantized to bf16
    (exactly what the kernel feeds the MXU) but accumulated in f32 at HIGHEST
    precision — the apples-to-apples reference for the bf16 kernel.
    """
    def q(a):
        if quantize_matmul_operands:
            return a.astype(jnp.bfloat16).astype(jnp.float32)
        return a

    def conv(inp, w_oihw, bias=None):
        out = jax.lax.conv_general_dilated(
            q(inp), q(jnp.transpose(w_oihw, (2, 3, 1, 0))),   # OIHW -> HWIO
            window_strides=(1, 1), padding="SAME",
            dimension_numbers=("NCHW", "HWIO", "NCHW"),
            precision=jax.lax.Precision.HIGHEST)
        if bias is not None:
            out = out + bias[None, :, None, None]
        return out

    ci = jax.nn.sigmoid(conv(x, wx[0], bx[0]) + conv(h, wh[0]) + c * wci)
    cf = jax.nn.sigmoid(conv(x, wx[1], bx[1]) + conv(h, wh[1]) + c * wcf)
    cc = cf * c + ci * jnp.tanh(conv(x, wx[2], bx[2]) + conv(h, wh[2]))
    co = jax.nn.sigmoid(conv(x, wx[3], bx[3]) + conv(h, wh[3]) + cc * wco)
    ch = co * jnp.tanh(cc)
    return ch, cc


if __name__ == "__main__":
    B, Cin, Ch, H, W, K = 2, 4, 32, 16, 16, 3

    key = jax.random.PRNGKey(0)
    keys = jax.random.split(key, 9)
    x = jax.random.normal(keys[0], (B, Cin, H, W), jnp.float32)
    h = jax.random.normal(keys[1], (B, Ch, H, W), jnp.float32)
    c = jax.random.normal(keys[2], (B, Ch, H, W), jnp.float32)

    # Synthetic parameters in PyTorch layouts (gate order i, f, c, o).
    wx = jax.random.normal(keys[3], (4, Ch, Cin, K, K), jnp.float32) * 0.1
    wh = jax.random.normal(keys[4], (4, Ch, Ch, K, K), jnp.float32) * 0.1
    bx = jax.random.normal(keys[5], (4, Ch), jnp.float32) * 0.1
    # Peephole weights (PyTorch keeps them as (1, Ch, H, W) after init_hidden).
    wci = jax.random.normal(keys[6], (1, Ch, H, W), jnp.float32) * 0.1
    wcf = jax.random.normal(keys[7], (1, Ch, H, W), jnp.float32) * 0.1
    wco = jax.random.normal(keys[8], (1, Ch, H, W), jnp.float32) * 0.1

    fwd = jax.jit(partial(conv_lstm_cell, kernel_size=K))
    ch_k, cc_k = fwd(x, h, c, wx, wh, bx, wci, wcf, wco)
    jax.block_until_ready((ch_k, cc_k))

    # Tight check vs. a reference using the same bf16 matmul-operand
    # quantization as the kernel (f32 accumulation in both).
    ch_q, cc_q = _reference(x, h, c, wx, wh, bx, wci, wcf, wco,
                            quantize_matmul_operands=True)
    assert jnp.allclose(ch_k, ch_q, atol=2e-3, rtol=2e-3)
    assert jnp.allclose(cc_k, cc_q, atol=2e-3, rtol=2e-3)

    # Coarse sanity check vs. the full-f32 reference (bf16 operand
    # quantization is the only systematic difference).
    ch_f, cc_f = _reference(x, h, c, wx, wh, bx, wci, wcf, wco,
                            quantize_matmul_operands=False)
    assert jnp.allclose(ch_k, ch_f, atol=1e-1, rtol=1e-1)
    assert jnp.allclose(cc_k, cc_f, atol=1e-1, rtol=1e-1)

    print("KERNEL_OK")
</pallas_src>

<mosaic_0001>
module attributes {stable_mosaic.version = 11 : i64} {
  func.func @convlstm_kernel(%arg0: i32, %arg1: memref<1x18x18x128xbf16, #tpu.memory_space<vmem>>, %arg2: memref<1x256x32xf32, #tpu.memory_space<vmem>>, %arg3: memref<9x128x128xbf16, #tpu.memory_space<vmem>>, %arg4: memref<1x256x32xf32, #tpu.memory_space<vmem>>, %arg5: memref<1x256x32xf32, #tpu.memory_space<vmem>>, %arg6: memref<1x256x32xf32, #tpu.memory_space<vmem>>, %arg7: memref<1x256x32xf32, #tpu.memory_space<vmem>>, %arg8: memref<1x256x32xf32, #tpu.memory_space<vmem>>) attributes {dimension_semantics = [#tpu.dimension_semantics<parallel>], iteration_bounds = array<i64: 2>, scalar_prefetch = 0 : i64, scratch_operands = 0 : i64, tpu.core_type = #tpu.core_type<tc>, window_params = [{transform_indices = @transform_0, window_bounds = array<i64: 1, 18, 18, 128>}, {transform_indices = @transform_1, window_bounds = array<i64: 1, 256, 32>}, {pipeline_mode = #tpu.pipeline_mode<synchronous>, transform_indices = @transform_2, window_bounds = array<i64: 9, 128, 128>}, {pipeline_mode = #tpu.pipeline_mode<synchronous>, transform_indices = @transform_3, window_bounds = array<i64: 1, 256, 32>}, {pipeline_mode = #tpu.pipeline_mode<synchronous>, transform_indices = @transform_4, window_bounds = array<i64: 1, 256, 32>}, {pipeline_mode = #tpu.pipeline_mode<synchronous>, transform_indices = @transform_5, window_bounds = array<i64: 1, 256, 32>}, {transform_indices = @transform_6, window_bounds = array<i64: 1, 256, 32>}, {transform_indices = @transform_7, window_bounds = array<i64: 1, 256, 32>}]} {
    %c0 = arith.constant 0 : index
    %c0_0 = arith.constant 0 : index
    %c0_1 = arith.constant 0 : index
    %c0_2 = arith.constant 0 : index
    %0 = vector.load %arg1[%c0, %c0_0, %c0_1, %c0_2] : memref<1x18x18x128xbf16, #tpu.memory_space<vmem>>, vector<1x16x16x128xbf16>
    %1 = vector.shape_cast %0 : vector<1x16x16x128xbf16> to vector<256x128xbf16>
    %c0_3 = arith.constant 0 : index
    %c0_4 = arith.constant 0 : index
    %c0_5 = arith.constant 0 : index
    %2 = vector.load %arg3[%c0_3, %c0_4, %c0_5] : memref<9x128x128xbf16, #tpu.memory_space<vmem>>, vector<1x128x128xbf16>
    %3 = vector.shape_cast %2 : vector<1x128x128xbf16> to vector<128x128xbf16>
    %cst = arith.constant dense<0.000000e+00> : vector<256x128xf32>
    %4 = tpu.matmul %1, %3, %cst {dimension_numbers = #tpu.dot_dimension_numbers<[1], [0], [0], [1], [0, 0, 1, 1], [], []>} : vector<256x128xbf16>, vector<128x128xbf16>, vector<256x128xf32> -> vector<256x128xf32>
    %c0_6 = arith.constant 0 : index
    %c0_7 = arith.constant 0 : index
    %c1 = arith.constant 1 : index
    %c0_8 = arith.constant 0 : index
    %5 = vector.load %arg1[%c0_6, %c0_7, %c1, %c0_8] : memref<1x18x18x128xbf16, #tpu.memory_space<vmem>>, vector<1x16x16x128xbf16>
    %6 = vector.shape_cast %5 : vector<1x16x16x128xbf16> to vector<256x128xbf16>
    %c1_9 = arith.constant 1 : index
    %c0_10 = arith.constant 0 : index
    %c0_11 = arith.constant 0 : index
    %7 = vector.load %arg3[%c1_9, %c0_10, %c0_11] : memref<9x128x128xbf16, #tpu.memory_space<vmem>>, vector<1x128x128xbf16>
    %8 = vector.shape_cast %7 : vector<1x128x128xbf16> to vector<128x128xbf16>
    %cst_12 = arith.constant dense<0.000000e+00> : vector<256x128xf32>
    %9 = tpu.matmul %6, %8, %cst_12 {dimension_numbers = #tpu.dot_dimension_numbers<[1], [0], [0], [1], [0, 0, 1, 1], [], []>} : vector<256x128xbf16>, vector<128x128xbf16>, vector<256x128xf32> -> vector<256x128xf32>
    %10 = arith.addf %4, %9 : vector<256x128xf32>
    %c0_13 = arith.constant 0 : index
    %c0_14 = arith.constant 0 : index
    %c2 = arith.constant 2 : index
    %c0_15 = arith.constant 0 : index
    %11 = vector.load %arg1[%c0_13, %c0_14, %c2, %c0_15] : memref<1x18x18x128xbf16, #tpu.memory_space<vmem>>, vector<1x16x16x128xbf16>
    %12 = vector.shape_cast %11 : vector<1x16x16x128xbf16> to vector<256x128xbf16>
    %c2_16 = arith.constant 2 : index
    %c0_17 = arith.constant 0 : index
    %c0_18 = arith.constant 0 : index
    %13 = vector.load %arg3[%c2_16, %c0_17, %c0_18] : memref<9x128x128xbf16, #tpu.memory_space<vmem>>, vector<1x128x128xbf16>
    %14 = vector.shape_cast %13 : vector<1x128x128xbf16> to vector<128x128xbf16>
    %cst_19 = arith.constant dense<0.000000e+00> : vector<256x128xf32>
    %15 = tpu.matmul %12, %14, %cst_19 {dimension_numbers = #tpu.dot_dimension_numbers<[1], [0], [0], [1], [0, 0, 1, 1], [], []>} : vector<256x128xbf16>, vector<128x128xbf16>, vector<256x128xf32> -> vector<256x128xf32>
    %16 = arith.addf %10, %15 : vector<256x128xf32>
    %c0_20 = arith.constant 0 : index
    %c1_21 = arith.constant 1 : index
    %c0_22 = arith.constant 0 : index
    %c0_23 = arith.constant 0 : index
    %17 = vector.load %arg1[%c0_20, %c1_21, %c0_22, %c0_23] : memref<1x18x18x128xbf16, #tpu.memory_space<vmem>>, vector<1x16x16x128xbf16>
    %18 = vector.shape_cast %17 : vector<1x16x16x128xbf16> to vector<256x128xbf16>
    %c3 = arith.constant 3 : index
    %c0_24 = arith.constant 0 : index
    %c0_25 = arith.constant 0 : index
    %19 = vector.load %arg3[%c3, %c0_24, %c0_25] : memref<9x128x128xbf16, #tpu.memory_space<vmem>>, vector<1x128x128xbf16>
    %20 = vector.shape_cast %19 : vector<1x128x128xbf16> to vector<128x128xbf16>
    %cst_26 = arith.constant dense<0.000000e+00> : vector<256x128xf32>
    %21 = tpu.matmul %18, %20, %cst_26 {dimension_numbers = #tpu.dot_dimension_numbers<[1], [0], [0], [1], [0, 0, 1, 1], [], []>} : vector<256x128xbf16>, vector<128x128xbf16>, vector<256x128xf32> -> vector<256x128xf32>
    %22 = arith.addf %16, %21 : vector<256x128xf32>
    %c0_27 = arith.constant 0 : index
    %c1_28 = arith.constant 1 : index
    %c1_29 = arith.constant 1 : index
    %c0_30 = arith.constant 0 : index
    %23 = vector.load %arg1[%c0_27, %c1_28, %c1_29, %c0_30] : memref<1x18x18x128xbf16, #tpu.memory_space<vmem>>, vector<1x16x16x128xbf16>
    %24 = vector.shape_cast %23 : vector<1x16x16x128xbf16> to vector<256x128xbf16>
    %c4 = arith.constant 4 : index
    %c0_31 = arith.constant 0 : index
    %c0_32 = arith.constant 0 : index
    %25 = vector.load %arg3[%c4, %c0_31, %c0_32] : memref<9x128x128xbf16, #tpu.memory_space<vmem>>, vector<1x128x128xbf16>
    %26 = vector.shape_cast %25 : vector<1x128x128xbf16> to vector<128x128xbf16>
    %cst_33 = arith.constant dense<0.000000e+00> : vector<256x128xf32>
    %27 = tpu.matmul %24, %26, %cst_33 {dimension_numbers = #tpu.dot_dimension_numbers<[1], [0], [0], [1], [0, 0, 1, 1], [], []>} : vector<256x128xbf16>, vector<128x128xbf16>, vector<256x128xf32> -> vector<256x128xf32>
    %28 = arith.addf %22, %27 : vector<256x128xf32>
    %c0_34 = arith.constant 0 : index
    %c1_35 = arith.constant 1 : index
    %c2_36 = arith.constant 2 : index
    %c0_37 = arith.constant 0 : index
    %29 = vector.load %arg1[%c0_34, %c1_35, %c2_36, %c0_37] : memref<1x18x18x128xbf16, #tpu.memory_space<vmem>>, vector<1x16x16x128xbf16>
    %30 = vector.shape_cast %29 : vector<1x16x16x128xbf16> to vector<256x128xbf16>
    %c5 = arith.constant 5 : index
    %c0_38 = arith.constant 0 : index
    %c0_39 = arith.constant 0 : index
    %31 = vector.load %arg3[%c5, %c0_38, %c0_39] : memref<9x128x128xbf16, #tpu.memory_space<vmem>>, vector<1x128x128xbf16>
    %32 = vector.shape_cast %31 : vector<1x128x128xbf16> to vector<128x128xbf16>
    %cst_40 = arith.constant dense<0.000000e+00> : vector<256x128xf32>
    %33 = tpu.matmul %30, %32, %cst_40 {dimension_numbers = #tpu.dot_dimension_numbers<[1], [0], [0], [1], [0, 0, 1, 1], [], []>} : vector<256x128xbf16>, vector<128x128xbf16>, vector<256x128xf32> -> vector<256x128xf32>
    %34 = arith.addf %28, %33 : vector<256x128xf32>
    %c0_41 = arith.constant 0 : index
    %c2_42 = arith.constant 2 : index
    %c0_43 = arith.constant 0 : index
    %c0_44 = arith.constant 0 : index
    %35 = vector.load %arg1[%c0_41, %c2_42, %c0_43, %c0_44] : memref<1x18x18x128xbf16, #tpu.memory_space<vmem>>, vector<1x16x16x128xbf16>
    %36 = vector.shape_cast %35 : vector<1x16x16x128xbf16> to vector<256x128xbf16>
    %c6 = arith.constant 6 : index
    %c0_45 = arith.constant 0 : index
    %c0_46 = arith.constant 0 : index
    %37 = vector.load %arg3[%c6, %c0_45, %c0_46] : memref<9x128x128xbf16, #tpu.memory_space<vmem>>, vector<1x128x128xbf16>
    %38 = vector.shape_cast %37 : vector<1x128x128xbf16> to vector<128x128xbf16>
    %cst_47 = arith.constant dense<0.000000e+00> : vector<256x128xf32>
    %39 = tpu.matmul %36, %38, %cst_47 {dimension_numbers = #tpu.dot_dimension_numbers<[1], [0], [0], [1], [0, 0, 1, 1], [], []>} : vector<256x128xbf16>, vector<128x128xbf16>, vector<256x128xf32> -> vector<256x128xf32>
    %40 = arith.addf %34, %39 : vector<256x128xf32>
    %c0_48 = arith.constant 0 : index
    %c2_49 = arith.constant 2 : index
    %c1_50 = arith.constant 1 : index
    %c0_51 = arith.constant 0 : index
    %41 = vector.load %arg1[%c0_48, %c2_49, %c1_50, %c0_51] : memref<1x18x18x128xbf16, #tpu.memory_space<vmem>>, vector<1x16x16x128xbf16>
    %42 = vector.shape_cast %41 : vector<1x16x16x128xbf16> to vector<256x128xbf16>
    %c7 = arith.constant 7 : index
    %c0_52 = arith.constant 0 : index
    %c0_53 = arith.constant 0 : index
    %43 = vector.load %arg3[%c7, %c0_52, %c0_53] : memref<9x128x128xbf16, #tpu.memory_space<vmem>>, vector<1x128x128xbf16>
    %44 = vector.shape_cast %43 : vector<1x128x128xbf16> to vector<128x128xbf16>
    %cst_54 = arith.constant dense<0.000000e+00> : vector<256x128xf32>
    %45 = tpu.matmul %42, %44, %cst_54 {dimension_numbers = #tpu.dot_dimension_numbers<[1], [0], [0], [1], [0, 0, 1, 1], [], []>} : vector<256x128xbf16>, vector<128x128xbf16>, vector<256x128xf32> -> vector<256x128xf32>
    %46 = arith.addf %40, %45 : vector<256x128xf32>
    %c0_55 = arith.constant 0 : index
    %c2_56 = arith.constant 2 : index
    %c2_57 = arith.constant 2 : index
    %c0_58 = arith.constant 0 : index
    %47 = vector.load %arg1[%c0_55, %c2_56, %c2_57, %c0_58] : memref<1x18x18x128xbf16, #tpu.memory_space<vmem>>, vector<1x16x16x128xbf16>
    %48 = vector.shape_cast %47 : vector<1x16x16x128xbf16> to vector<256x128xbf16>
    %c8 = arith.constant 8 : index
    %c0_59 = arith.constant 0 : index
    %c0_60 = arith.constant 0 : index
    %49 = vector.load %arg3[%c8, %c0_59, %c0_60] : memref<9x128x128xbf16, #tpu.memory_space<vmem>>, vector<1x128x128xbf16>
    %50 = vector.shape_cast %49 : vector<1x128x128xbf16> to vector<128x128xbf16>
    %cst_61 = arith.constant dense<0.000000e+00> : vector<256x128xf32>
    %51 = tpu.matmul %48, %50, %cst_61 {dimension_numbers = #tpu.dot_dimension_numbers<[1], [0], [0], [1], [0, 0, 1, 1], [], []>} : vector<256x128xbf16>, vector<128x128xbf16>, vector<256x128xf32> -> vector<256x128xf32>
    %52 = arith.addf %46, %51 : vector<256x128xf32>
    %53 = vector.shape_cast %52 : vector<256x128xf32> to vector<1x256x128xf32>
    %c0_62 = arith.constant 0 : index
    %c0_63 = arith.constant 0 : index
    %c0_64 = arith.constant 0 : index
    %54 = vector.load %arg2[%c0_62, %c0_63, %c0_64] : memref<1x256x32xf32, #tpu.memory_space<vmem>>, vector<1x256x32xf32>
    %c0_65 = arith.constant 0 : index
    %c0_66 = arith.constant 0 : index
    %c0_67 = arith.constant 0 : index
    %55 = vector.load %arg4[%c0_65, %c0_66, %c0_67] : memref<1x256x32xf32, #tpu.memory_space<vmem>>, vector<1x256x32xf32>
    %c0_68 = arith.constant 0 : index
    %c0_69 = arith.constant 0 : index
    %c0_70 = arith.constant 0 : index
    %56 = vector.load %arg5[%c0_68, %c0_69, %c0_70] : memref<1x256x32xf32, #tpu.memory_space<vmem>>, vector<1x256x32xf32>
    %c0_71 = arith.constant 0 : index
    %c0_72 = arith.constant 0 : index
    %c0_73 = arith.constant 0 : index
    %57 = vector.load %arg6[%c0_71, %c0_72, %c0_73] : memref<1x256x32xf32, #tpu.memory_space<vmem>>, vector<1x256x32xf32>
    %58 = vector.extract_strided_slice %53 {offsets = [0, 0, 0], sizes = [1, 256, 32], strides = [1, 1, 1]} : vector<1x256x128xf32> to vector<1x256x32xf32>
    %59 = arith.mulf %54, %55 : vector<1x256x32xf32>
    %60 = arith.addf %58, %59 : vector<1x256x32xf32>
    %61 = vector.extract_strided_slice %53 {offsets = [0, 0, 32], sizes = [1, 256, 32], strides = [1, 1, 1]} : vector<1x256x128xf32> to vector<1x256x32xf32>
    %62 = arith.mulf %54, %56 : vector<1x256x32xf32>
    %63 = arith.addf %61, %62 : vector<1x256x32xf32>
    %64 = vector.extract_strided_slice %53 {offsets = [0, 0, 64], sizes = [1, 256, 32], strides = [1, 1, 1]} : vector<1x256x128xf32> to vector<1x256x32xf32>
    %65 = tpu.concatenate %60, %63, %64 in 2 : vector<1x256x32xf32>, vector<1x256x32xf32>, vector<1x256x32xf32> -> vector<1x256x96xf32>
    %66 = math.tanh %65 : vector<1x256x96xf32>
    %67 = vector.extract_strided_slice %66 {offsets = [0, 0, 0], sizes = [1, 256, 32], strides = [1, 1, 1]} : vector<1x256x96xf32> to vector<1x256x32xf32>
    %cst_74 = arith.constant 5.000000e-01 : f32
    %68 = vector.broadcast %cst_74 : f32 to vector<1x256x32xf32>
    %69 = arith.mulf %68, %67 : vector<1x256x32xf32>
    %cst_75 = arith.constant 5.000000e-01 : f32
    %70 = vector.broadcast %cst_75 : f32 to vector<1x256x32xf32>
    %71 = arith.addf %69, %70 : vector<1x256x32xf32>
    %72 = vector.extract_strided_slice %66 {offsets = [0, 0, 32], sizes = [1, 256, 32], strides = [1, 1, 1]} : vector<1x256x96xf32> to vector<1x256x32xf32>
    %cst_76 = arith.constant 5.000000e-01 : f32
    %73 = vector.broadcast %cst_76 : f32 to vector<1x256x32xf32>
    %74 = arith.mulf %73, %72 : vector<1x256x32xf32>
    %cst_77 = arith.constant 5.000000e-01 : f32
    %75 = vector.broadcast %cst_77 : f32 to vector<1x256x32xf32>
    %76 = arith.addf %74, %75 : vector<1x256x32xf32>
    %77 = vector.extract_strided_slice %66 {offsets = [0, 0, 64], sizes = [1, 256, 32], strides = [1, 1, 1]} : vector<1x256x96xf32> to vector<1x256x32xf32>
    %78 = arith.mulf %76, %54 : vector<1x256x32xf32>
    %79 = arith.mulf %71, %77 : vector<1x256x32xf32>
    %80 = arith.addf %78, %79 : vector<1x256x32xf32>
    %81 = vector.extract_strided_slice %53 {offsets = [0, 0, 96], sizes = [1, 256, 32], strides = [1, 1, 1]} : vector<1x256x128xf32> to vector<1x256x32xf32>
    %82 = arith.mulf %80, %57 : vector<1x256x32xf32>
    %83 = arith.addf %81, %82 : vector<1x256x32xf32>
    %84 = tpu.concatenate %83, %80 in 2 : vector<1x256x32xf32>, vector<1x256x32xf32> -> vector<1x256x64xf32>
    %85 = math.tanh %84 : vector<1x256x64xf32>
    %86 = vector.extract_strided_slice %85 {offsets = [0, 0, 0], sizes = [1, 256, 32], strides = [1, 1, 1]} : vector<1x256x64xf32> to vector<1x256x32xf32>
    %cst_78 = arith.constant 5.000000e-01 : f32
    %87 = vector.broadcast %cst_78 : f32 to vector<1x256x32xf32>
    %88 = arith.mulf %87, %86 : vector<1x256x32xf32>
    %cst_79 = arith.constant 5.000000e-01 : f32
    %89 = vector.broadcast %cst_79 : f32 to vector<1x256x32xf32>
    %90 = arith.addf %88, %89 : vector<1x256x32xf32>
    %91 = vector.extract_strided_slice %85 {offsets = [0, 0, 32], sizes = [1, 256, 32], strides = [1, 1, 1]} : vector<1x256x64xf32> to vector<1x256x32xf32>
    %92 = arith.mulf %90, %91 : vector<1x256x32xf32>
    %c0_80 = arith.constant 0 : index
    %c0_81 = arith.constant 0 : index
    %c0_82 = arith.constant 0 : index
    %93 = vector.load %arg7[%c0_80, %c0_81, %c0_82] : memref<1x256x32xf32, #tpu.memory_space<vmem>>, vector<1x256x32xf32>
    tpu.vector_store %arg7[%c0_80, %c0_81, %c0_82], %92 {strides = array<i32>} : memref<1x256x32xf32, #tpu.memory_space<vmem>>, vector<1x256x32xf32>,
    %c0_83 = arith.constant 0 : index
    %c0_84 = arith.constant 0 : index
    %c0_85 = arith.constant 0 : index
    %94 = vector.load %arg8[%c0_83, %c0_84, %c0_85] : memref<1x256x32xf32, #tpu.memory_space<vmem>>, vector<1x256x32xf32>
    tpu.vector_store %arg8[%c0_83, %c0_84, %c0_85], %80 {strides = array<i32>} : memref<1x256x32xf32, #tpu.memory_space<vmem>>, vector<1x256x32xf32>,
    return
  }
  func.func @transform_0(%arg0: i32) -> (i32, i32, i32, i32) {
    %c0_i32 = arith.constant 0 : i32
    %c0_i32_0 = arith.constant 0 : i32
    %c0_i32_1 = arith.constant 0 : i32
    %c0_i32_2 = arith.constant 0 : i32
    return %arg0, %c0_i32, %c0_i32_0, %c0_i32_1 : i32, i32, i32, i32
  }
  func.func @transform_1(%arg0: i32) -> (i32, i32, i32) {
    %c0_i32 = arith.constant 0 : i32
    %c0_i32_0 = arith.constant 0 : i32
    %c0_i32_1 = arith.constant 0 : i32
    return %arg0, %c0_i32, %c0_i32_0 : i32, i32, i32
  }
  func.func @transform_2(%arg0: i32) -> (i32, i32, i32) {
    %c0_i32 = arith.constant 0 : i32
    %c0_i32_0 = arith.constant 0 : i32
    %c0_i32_1 = arith.constant 0 : i32
    %c0_i32_2 = arith.constant 0 : i32
    return %c0_i32, %c0_i32_0, %c0_i32_1 : i32, i32, i32
  }
  func.func @transform_3(%arg0: i32) -> (i32, i32, i32) {
    %c0_i32 = arith.constant 0 : i32
    %c0_i32_0 = arith.constant 0 : i32
    %c0_i32_1 = arith.constant 0 : i32
    %c0_i32_2 = arith.constant 0 : i32
    return %c0_i32, %c0_i32_0, %c0_i32_1 : i32, i32, i32
  }
  func.func @transform_4(%arg0: i32) -> (i32, i32, i32) {
    %c0_i32 = arith.constant 0 : i32
    %c0_i32_0 = arith.constant 0 : i32
    %c0_i32_1 = arith.constant 0 : i32
    %c0_i32_2 = arith.constant 0 : i32
    return %c0_i32, %c0_i32_0, %c0_i32_1 : i32, i32, i32
  }
  func.func @transform_5(%arg0: i32) -> (i32, i32, i32) {
    %c0_i32 = arith.constant 0 : i32
    %c0_i32_0 = arith.constant 0 : i32
    %c0_i32_1 = arith.constant 0 : i32
    %c0_i32_2 = arith.constant 0 : i32
    return %c0_i32, %c0_i32_0, %c0_i32_1 : i32, i32, i32
  }
  func.func @transform_6(%arg0: i32) -> (i32, i32, i32) {
    %c0_i32 = arith.constant 0 : i32
    %c0_i32_0 = arith.constant 0 : i32
    %c0_i32_1 = arith.constant 0 : i32
    return %arg0, %c0_i32, %c0_i32_0 : i32, i32, i32
  }
  func.func @transform_7(%arg0: i32) -> (i32, i32, i32) {
    %c0_i32 = arith.constant 0 : i32
    %c0_i32_0 = arith.constant 0 : i32
    %c0_i32_1 = arith.constant 0 : i32
    return %arg0, %c0_i32, %c0_i32_0 : i32, i32, i32
  }
}

</mosaic_0001>

<bundles_post_ra>
// kernel: mul.11
= control target key start
LH: loop header
LB: loop body
LE: loop exit
PB: predicated region body
PF: predicated region fallthrough
CT: control target
= control target key end

     0   :  { %vm8_vm0 = vcmask 261120   ;;  %s40_s8 = smov 32   ;;  %s41_s9 = smov 64   ;;  %vm14_vm1 = vcmask 1048320   ;;  %vm20_vm2 = vcmask 785920   ;;  %vm26_vm3 = vcmask 523520   ;;  %s58_s0 = inlined_call_operand.vmem [shape: f32[4,32], index: 0, kind: input, shape index: {}]   ;;  %s59_s1 = inlined_call_operand.vmem [shape: f32[128], index: 1, kind: output, shape index: {}]  }
   0x1   :  { %v5_v0 = vld [vmem:[%s58_s0] sm:$0xf]  ;;  %s39_s0 = smov 96  }
   0x2   :  { %6 = vst [vmem:[#allocation1] sm:$0xf] %v5_v0 }
   0x9   :  { %v11_v1 = vld [vmem:[#allocation1 + $0x3] sm:$0x1]   ;;  %v23_v2 = vld [vmem:[#allocation1 + $0x1] sm:$0x1]   ;;  %v7_v3 = vld [vmem:[#allocation1] sm:$0x1]  }
   0xa   :  { %12 = vrot.lane.b32.xlu0 %v11_v1, %s39_s0  ;;  %24 = vrot.lane.b32.xlu1 %v23_v2, %s40_s8  ;;  %v17_v4 = vld [vmem:[#allocation1 + $0x2] sm:$0x1]   ;;  %9 = vst.msk [vmem:[#allocation0] sm:$0x1] %vm8_vm0, %v7_v3  }
   0xe   :  { %18 = vrot.lane.b32.xlu0 %v17_v4, %s41_s9 }
  0x7c   :  { %v13_v5 = vpop.permute.xlu0 %12   ;;  %v25_v6 = vpop.permute.xlu1 %24  }
  0x7d   :  { %15 = vst.msk [vmem:[#allocation0] sm:$0x1] %vm14_vm1, %v13_v5  }
  0x80   :  { %v19_v7 = vpop.permute.xlu0 %18  }
  0x81   :  { %21 = vst.msk [vmem:[#allocation0] sm:$0x1] %vm20_vm2, %v19_v7  }
  0x82   :  { %27 = vst.msk [vmem:[#allocation0] sm:$0x1] %vm26_vm3, %v25_v6  }
  0x89   :  { %v32_v8 = vld [vmem:[#allocation0] sm:$0x1] }
  0x8a   :  { %35 = vst [vmem:[%s59_s1] sm:$0x1] %v32_v8 }

// kernel: conv_lstm_cell.1
= control target key start
LH: loop header
LB: loop body
LE: loop exit
PB: predicated region body
PF: predicated region fallthrough
CT: control target
= control target key end

     0   :  { %13 = vsyncpa [#allocation3], 0  ;;  %s13936_s0 = inlined_call_operand.vmem [shape: bf16[2,18,18,128], index: 0, kind: input, shape index: {}]   ;;  %s13937_s1 = inlined_call_operand.vmem [shape: f32[2,256,32], index: 1, kind: input, shape index: {}]   ;;  %s13938_s2 = inlined_call_operand.vmem [shape: bf16[9,128,128], index: 2, kind: input, shape index: {}]   ;;  %s13939_s3 = inlined_call_operand.vmem [shape: f32[1,256,32], index: 3, kind: input, shape index: {}]   ;;  %s13940_s4 = inlined_call_operand.vmem [shape: f32[1,256,32], index: 4, kind: input, shape index: {}]   ;;  %s13941_s5 = inlined_call_operand.vmem [shape: f32[1,256,32], index: 5, kind: input, shape index: {}]   ;;  %s13942_s6 = inlined_call_operand.hbm [shape: f32[2,256,32], index: 6, kind: output, shape index: {0}]   ;;  %s13943_s7 = inlined_call_operand.hbm [shape: f32[2,256,32], index: 7, kind: output, shape index: {1}]  }
   0x1   :  { %15 = vsyncpa [#allocation3 + $0x1], 0 }
   0x2   :  { %16 = vsyncpa [#allocation5], 0 }
   0x3   :  { %18 = vsyncpa [#allocation5 + $0x1], 0  ;;  %s8959_s24 = smov 0   ;;  %s8961_s25 = smov 0  }
   0x4   :  { %s8963_s26 = smov 0   ;;  %s8965_s27 = smov 0  }
   0x5 LB: > { %s8980_s28 = sadd.s32 4294967295, %s8910_s27   ;;  %s7213_s29 = sadd.s32 4294967294, %s8910_s27   ;;  %s8910_s27 = sphi %s8965_s27, %s14449_s27   ;;  %s8906_s26 = sphi %s8963_s26, %s14448_s26   ;;  %s8902_s25 = sphi %s8961_s25, %s14447_s25   ;;  %s8898_s24 = sphi %s8959_s24, %s14446_s24  }
   0x6   : > { %s8984_s30 = sadd.s32 1, %s8910_s27   ;;  %s167_s8 = sadd.s32 1, %s8906_s26 }
   0x7   : > { %s164_s9 = ssub.s32 %s8910_s27, %s8984_s30  ;;  %p177_p0 = scmp.ne.s32.totalorder %s8906_s26, %s8902_s25 }
   0x8   : > { %p165_p1 = scmp.eq.s32.totalorder %s164_s9, 0  ;;  %p178_p2 = scmp.eq.s32.totalorder %s8980_s28, 1 }
   0x9   : > { %p183_p3 = scmp.ne.s32.totalorder %s8902_s25, %s8898_s24  ;;  %p184_p4 = scmp.eq.s32.totalorder %s7213_s29, 1 }
   0xa   : > { %s8995_s10 = scalar_select %p165_p1, %s8906_s26, %s167_s8  }
   0xb   : > { %p8997_p5 = por %p178_p2, %p177_p0  ;;  %p9001_p6 = por %p184_p4, %p183_p3 }
   0xc   : > { %p7216_p7 = scmp.ge.s32.totalorder %s8910_s27, 1  ;;  %p256_p8 = scmp.lt.s32.totalorder %s8910_s27, 3 }
   0xe   : > { %p257_p9 = pnand %p7216_p7, %p256_p8 }
  0x10   : > { %260 = sbr.rel (%p257_p9) target bundleno = 1270 (0x4f6), region = 44 }
  0x15   : > { %v8531_v0 = vld [vmem:[%s13938_s2 + $0x78] sm:$0xff]   ;;  %p298_p10 = scmp.lt.s32.totalorder %s8980_s28, 1  ;;  %v8532_v1 = vld [vmem:[%s13938_s2 + $0x70] sm:$0xff]   ;;  %v8533_v2 = vld [vmem:[%s13938_s2 + $0x68] sm:$0xff]   ;;  %vm373_vm0 = vsmask.f32 3328 }
  0x16   : > { %8033 = vmatprep.subr.bf16.mxu0 %v8531_v0  ;;  %8465 = vmatprep.subr.bf16.mxu1 %v8531_v0  ;;  %v8534_v3 = vld [vmem:[%s13938_s2 + $0x60] sm:$0xff]   ;;  %vm374_vm1 = vsmask.f32 7440  ;;  %v8535_v17 = vld [vmem:[%s13938_s2 + $0x58] sm:$0xff]   ;;  %v8536_v33 = vld [vmem:[%s13938_s2 + $0x50] sm:$0xff]   ;;  %vm1403_vm3 = vcmask 1042432  }
  0x17   : > { %s9015_s17 = scalar_select %p298_p10, %s8980_s28, 1  ;;  %8034 = vmatpush3.bf16.msra.mxu0 %v8531_v0  ;;  %8473 = vmatpush3.bf16.msra.mxu1 %v8531_v0  ;;  %vm9055_vm2 = vmor %vm373_vm0, %vm374_vm1  ;;  %v8537_v58 = vld [vmem:[%s13938_s2 + $0x48] sm:$0xff]   ;;  %vm1404_vm4 = vcmask 1046532   ;;  %vm5502_vm6 = vcmask 261120   ;;  %vm5535_vm7 = vcmask 523264  }
  0x18   : > { %8035 = vmatprep.subr.bf16.mxu0 %v8532_v1  ;;  %8466 = vmatprep.subr.bf16.mxu1 %v8532_v1  ;;  %vm9366_vm5 = vmor %vm1403_vm3, %vm1404_vm4  ;;  %s8912_s22 = smov 32   ;;  %s8913_s19 = smov 64  }
  0x19   : > { %s8481_s20 = smul.u32 216, %s9015_s17  ;;  %s7814_s16 = sshll.u32 %s9015_s17, 8 }
  0x1a   : > { %s13398_s14 = sand.u32 1, %s8902_s25  }
  0x1b   : > { %s9024_s23 = scalar_lea.vmem %s13936_s0, %s8481_s20  ;;  %8036 = vmatpush3.bf16.msra.mxu0 %v8532_v1  ;;  %8474 = vmatpush3.bf16.msra.mxu1 %v8532_v1  ;;  %s10723_s20 = scalar_lea.vmem %s13937_s1, %s7814_s16 }
  0x1c   : > { %8037 = vmatprep.subr.bf16.mxu0 %v8533_v2  ;;  %8467 = vmatprep.subr.bf16.mxu1 %v8533_v2  ;;  %v9030_v4 = vld [vmem:[%s9024_s23] sm:$0xf]  ;;  %v9033_v5 = vld [vmem:[%s9024_s23 + $0x4] sm:$0xf]  ;;  %v9036_v6 = vld [vmem:[%s9024_s23 + $0x8] sm:$0x1] }
  0x1d   : > { %v377_v7 = vshrl.u32 %v9030_v4, 16  ;;  %v380_v8 = vshll.u32 %v9030_v4, 16  ;;  %v386_v9 = vshll.u32 %v9033_v5, 16  ;;  %v390_v10 = vshrl.u32 %v9033_v5, 16  ;;  %v325_v12 = vld [vmem:[%s9024_s23 + $0x60] sm:$0xf] }
  0x1e   : > { %v396_v11 = vshll.u32 %v9036_v6, 16  ;;  %v326_v15 = vld [vmem:[%s9024_s23 + $0x64] sm:$0xf]  ;;  %v365_v16 = vld [vmem:[%s9024_s23 + $0x68] sm:$0x1]  ;;  %v569_v21 = vshrl.u32 %v325_v12, 16 }
  0x1f   : > { %8038 = vmatpush3.bf16.msra.mxu0 %v8533_v2  ;;  %8475 = vmatpush3.bf16.msra.mxu1 %v8533_v2  ;;  %v379_v13 = vrot.slane %v377_v7, 4  ;;  %v382_v14 = vrot.slane %v380_v8, 5  ;;  %v388_v18 = vrot.slane %v386_v9, 5  ;;  %v392_v19 = vrot.slane %v390_v10, 4  ;;  %v9051_v26 = vld [vmem:[%s9024_s23 + $0xc] sm:$0xf] }
  0x20   : > { %8039 = vmatprep.subr.bf16.mxu0 %v8534_v3  ;;  %8468 = vmatprep.subr.bf16.mxu1 %v8534_v3  ;;  %v572_v23 = vshll.u32 %v325_v12, 16  ;;  %v578_v24 = vshll.u32 %v326_v15, 16  ;;  %v582_v25 = vshrl.u32 %v326_v15, 16  ;;  %v398_v29 = vrot.slane %v396_v11, 5  ;;  %v9060_v32 = vld [vmem:[%s9024_s23 + $0x10] sm:$0xf] }
  0x21   : > { %v383_v22 = vor.u32 %v382_v14, %v379_v13  ;;  %v393_v28 = vor.u32 %v392_v19, %v388_v18  ;;  %v571_v30 = vrot.slane %v569_v21, 4  ;;  %v588_v31 = vshll.u32 %v365_v16, 16  ;;  %v9066_v40 = vld [vmem:[%s9024_s23 + $0x14] sm:$0x1]  ;;  %v327_v47 = vld [vmem:[%s9024_s23 + $0x6c] sm:$0xf] }
  0x22   : > { %v574_v35 = vrot.slane %v572_v23, 5  ;;  %v580_v36 = vrot.slane %v578_v24, 5  ;;  %v584_v37 = vrot.slane %v582_v25, 4  ;;  %v401_v41 = vshrl.u32 %v9051_v26, 16  ;;  %v328_v52 = vld [vmem:[%s9024_s23 + $0x70] sm:$0xf] }
  0x23   : > { %8040 = vmatpush3.bf16.msra.mxu0 %v8534_v3  ;;  %8476 = vmatpush3.bf16.msra.mxu1 %v8534_v3  ;;  %v384_v34 = vrot.slane %v383_v22, 4  ;;  %v394_v38 = vrot.slane %v393_v28, 4  ;;  %v590_v39 = vrot.slane %v588_v31, 5  ;;  %v404_v42 = vshll.u32 %v9051_v26, 16  ;;  %v366_v57 = vld [vmem:[%s9024_s23 + $0x74] sm:$0x1] }
  0x24   : > { %8041 = vmatprep.subr.bf16.mxu0 %v8535_v17  ;;  %8469 = vmatprep.subr.bf16.mxu1 %v8535_v17  ;;  %v575_v44 = vor.u32 %v574_v35, %v571_v30  ;;  %v585_v45 = vor.u32 %v584_v37, %v580_v36  ;;  %v410_v46 = vshll.u32 %v9060_v32, 16  ;;  %v403_v49 = vrot.slane %v401_v41, 4  ;;  %v9089_v14 = vld [vmem:[%s9024_s23 + $0x18] sm:$0xf]  ;;  %v8538_v15 = vld [vmem:[%s13938_s2 + $0x40] sm:$0xff]   ;;  %s7217_s15 = sshll.u32 %s13398_s14, 8 }
  0x25   : > { %v389_v43 = vsel %vm9055_vm2, %v384_v34, %v388_v18  ;;  %v399_v48 = vsel %vm9055_vm2, %v394_v38, %v398_v29  ;;  %v406_v50 = vrot.slane %v404_v42, 5  ;;  %v414_v51 = vshrl.u32 %v9060_v32, 16  ;;  %v9097_v19 = vld [vmem:[%s9024_s23 + $0x1c] sm:$0xf]  ;;  %v9102_v25 = vld [vmem:[%s9024_s23 + $0x20] sm:$0x1] }
  0x26   : > { %v7238_v53 = vcombine.low %v389_v43, %v399_v48  ;;  %v576_v54 = vrot.slane %v575_v44, 4  ;;  %v586_v55 = vrot.slane %v585_v45, 4  ;;  %v412_v56 = vrot.slane %v410_v46, 5  ;;  %v329_v34 = vld [vmem:[%s9024_s23 + $0x78] sm:$0xf]  ;;  %s13417_s16 = scalar_lea.vmem [#allocation4], %s7217_s15 }
  0x27   : > { %8042 = vmatpush3.bf16.msra.mxu0 %v8535_v17  ;;  %8477 = vmatpush3.bf16.msra.mxu1 %v8535_v17  ;;  %v407_v59 = vor.u32 %v406_v50, %v403_v49  ;;  %v416_v60 = vrot.slane %v414_v51, 4  ;;  %v420_v61 = vshll.u32 %v9066_v40, 16  ;;  %v593_v1 = vshrl.u32 %v327_v47, 16  ;;  %v8539_v41 = vld [vmem:[%s13938_s2 + $0x38] sm:$0xff]   ;;  %v367_v49 = vld [vmem:[%s9024_s23 + $0x80] sm:$0x1] }
  0x28   : > { %8043 = vmatprep.subr.bf16.mxu0 %v8536_v33  ;;  %8470 = vmatprep.subr.bf16.mxu1 %v8536_v33  ;;  %v581_v63 = vsel %vm9055_vm2, %v576_v54, %v580_v36  ;;  %v591_v0 = vsel %vm9055_vm2, %v586_v55, %v590_v39  ;;  %v596_v2 = vshll.u32 %v327_v47, 16  ;;  %v602_v12 = vshll.u32 %v328_v52, 16  ;;  %v9111_v39 = vld [vmem:[%s9024_s23 + $0x7c] sm:$0xf] }
  0x29   : > { %8049 = vmatprep.mubr.bf16.mxu0 %v7238_v53  ;;  %v7246_v3 = vcombine.low %v581_v63, %v591_v0  ;;  %v408_v7 = vrot.slane %v407_v59, 4  ;;  %v417_v8 = vor.u32 %v416_v60, %v412_v56  ;;  %v422_v9 = vrot.slane %v420_v61, 5  ;;  %v8540_v42 = vld [vmem:[%s13938_s2 + $0xb8] sm:$0xff]   ;;  %v8542_v59 = vld [vmem:[%s13938_s2 + $0xb0] sm:$0xff]   ;;  %v9138_v0 = vld [vmem:[%s9024_s23 + $0x28] sm:$0xf] }
  0x2a   : > { %v595_v10 = vrot.slane %v593_v1, 4  ;;  %v598_v11 = vrot.slane %v596_v2, 5  ;;  %v606_v13 = vshrl.u32 %v328_v52, 16  ;;  %v612_v18 = vshll.u32 %v366_v57, 16  ;;  %v8541_v52 = vld [vmem:[%s13938_s2 + $0x30] sm:$0xff]  }
  0x2b   : > { %8044 = vmatpush3.bf16.msra.mxu0 %v8536_v33  ;;  %8478 = vmatpush3.bf16.msra.mxu1 %v8536_v33  ;;  %v413_v16 = vsel %vm9055_vm2, %v408_v7, %v412_v56  ;;  %v418_v17 = vrot.slane %v417_v8, 4  ;;  %v604_v23 = vrot.slane %v602_v12, 5  ;;  %v425_v28 = vshrl.u32 %v9089_v14, 16  ;;  %v9129_v57 = vld [vmem:[%s9024_s23 + $0x24] sm:$0xf] }
  0x2c   : > { %8045 = vmatprep.subr.bf16.mxu0 %v8537_v58  ;;  %8471 = vmatprep.subr.bf16.mxu1 %v8537_v58  ;;  %v599_v22 = vor.u32 %v598_v11, %v595_v10  ;;  %v608_v24 = vrot.slane %v606_v13, 4  ;;  %v614_v30 = vrot.slane %v612_v18, 5  ;;  %v428_v31 = vshll.u32 %v9089_v14, 16  ;;  %v9141_v8 = vld [vmem:[%s9024_s23 + $0x2c] sm:$0x1] }
  0x2d   : > { %8065 = vmatprep.mubr.bf16.mxu1 %v7246_v3  ;;  %v423_v29 = vsel %vm9055_vm2, %v418_v17, %v422_v9  ;;  %v434_v33 = vshll.u32 %v9097_v19, 16  ;;  %v427_v38 = vrot.slane %v425_v28, 4  ;;  %v438_v45 = vshrl.u32 %v9097_v19, 16  ;;  %v9145_v13 = vld [vmem:[%s9024_s23 + $0x84] sm:$0xf] }
  0x2e   : > { %v7239_v35 = vcombine.low %v413_v16, %v423_v29  ;;  %v600_v36 = vrot.slane %v599_v22, 4  ;;  %v609_v37 = vor.u32 %v608_v24, %v604_v23  ;;  %v430_v43 = vrot.slane %v428_v31, 5  ;;  %v9152_v22 = vld [vmem:[%s9024_s23 + $0x88] sm:$0xf] }
  0x2f   : > { %8046 = vmatpush3.bf16.msra.mxu0 %v8537_v58  ;;  %8479 = vmatpush3.bf16.msra.mxu1 %v8537_v58  ;;  %v436_v44 = vrot.slane %v434_v33, 5  ;;  %v444_v46 = vshll.u32 %v9102_v25, 16  ;;  %v617_v50 = vshrl.u32 %v329_v34, 16  ;;  %v620_v51 = vshll.u32 %v329_v34, 16 }
  0x30   : > { %8047 = vmatprep.subr.bf16.mxu0 %v8538_v15  ;;  %8472 = vmatprep.subr.bf16.mxu1 %v8538_v15  ;;  %v605_v47 = vsel %vm9055_vm2, %v600_v36, %v604_v23  ;;  %v610_v48 = vrot.slane %v609_v37, 4  ;;  %v431_v53 = vor.u32 %v430_v43, %v427_v38  ;;  %v440_v54 = vrot.slane %v438_v45, 4  ;;  %v9161_v36 = vld [vmem:[%s9024_s23 + $0x8c] sm:$0x1] }
  0x31   : > { %v446_v55 = vrot.slane %v444_v46, 5  ;;  %v626_v56 = vshll.u32 %v9111_v39, 16  ;;  %v619_v60 = vrot.slane %v617_v50, 4  ;;  %v622_v61 = vrot.slane %v620_v51, 5  ;;  %v8544_v37 = vld [vmem:[%s13938_s2 + $0xa8] sm:$0xff]  }
  0x32   : > { %v615_v58 = vsel %vm9055_vm2, %v610_v48, %v614_v30  ;;  %v630_v63 = vshrl.u32 %v9111_v39, 16  ;;  %v432_v2 = vrot.slane %v431_v53, 4  ;;  %v441_v3 = vor.u32 %v440_v54, %v436_v44  ;;  %v8543_v30 = vld [vmem:[%s13938_s2 + $0x28] sm:$0xff]   ;;  %v9176_v53 = vld [vmem:[%s9024_s23 + $0x30] sm:$0xf] }
  0x33   : > { %8048 = vmatpush3.bf16.msra.mxu0 %v8538_v15  ;;  %8480 = vmatpush3.bf16.msra.mxu1 %v8538_v15  ;;  %v7247_v1 = vcombine.low %v605_v47, %v615_v58  ;;  %v628_v7 = vrot.slane %v626_v56, 5  ;;  %v623_v9 = vor.u32 %v622_v61, %v619_v60  ;;  %v636_v11 = vshll.u32 %v367_v49, 16  ;;  %v9185_v60 = vld [vmem:[%s9024_s23 + $0x34] sm:$0xf] }
  0x34   : > { %8081 = vmatprep.subr.bf16.mxu1 %v8539_v41  ;;  %8129 = vmatprep.subr.bf16.mxu0 %v8540_v42  ;;  %v632_v10 = vrot.slane %v630_v63, 4  ;;  %v449_v12 = vshrl.u32 %v9129_v57, 16  ;;  %v437_v15 = vsel %vm9055_vm2, %v432_v2, %v436_v44  ;;  %v442_v16 = vrot.slane %v441_v3, 4 }
  0x35   : > { %v452_v17 = vshll.u32 %v9129_v57, 16  ;;  %v458_v18 = vshll.u32 %v9138_v0, 16  ;;  %v624_v23 = vrot.slane %v623_v9, 4  ;;  %v638_v28 = vrot.slane %v636_v11, 5 }
  0x36   : > { %8050 = vmatmul.mubr.bf16.vlgmr.msra.gmra.mxu0 %v7239_v35  ;;  %8066 = vmatmul.mubr.bf16.vlgmr.msra.gmra.mxu1 %v7247_v1  ;;  %v633_v24 = vor.u32 %v632_v10, %v628_v7  ;;  %v451_v29 = vrot.slane %v449_v12, 4  ;;  %v447_v31 = vsel %vm9055_vm2, %v442_v16, %v446_v55  ;;  %v462_v35 = vshrl.u32 %v9138_v0, 16  ;;  %v9193_v16 = vld [vmem:[%s9024_s23 + $0x38] sm:$0x1] }
  0x37   : > { %8082 = vmatpush3.bf16.msra.mxu1 %v8539_v41  ;;  %8130 = vmatpush3.bf16.msra.mxu0 %v8540_v42  ;;  %v454_v33 = vrot.slane %v452_v17, 5  ;;  %v460_v34 = vrot.slane %v458_v18, 5  ;;  %v7240_v38 = vcombine.low %v437_v15, %v447_v31  ;;  %v629_v41 = vsel %vm9055_vm2, %v624_v23, %v628_v7  ;;  %v9197_v18 = vld [vmem:[%s9024_s23 + $0x90] sm:$0xf]  ;;  %v9203_v31 = vld [vmem:[%s9024_s23 + $0x94] sm:$0xf] }
  0x38   : > { %8083 = vmatprep.subr.bf16.mxu1 %v8541_v52  ;;  %8131 = vmatprep.subr.bf16.mxu0 %v8542_v59  ;;  %v634_v42 = vrot.slane %v633_v24, 4  ;;  %v468_v43 = vshll.u32 %v9141_v8, 16  ;;  %v464_v45 = vrot.slane %v462_v35, 4  ;;  %v641_v46 = vshrl.u32 %v9145_v13, 16 }
  0x39   : > { %v455_v44 = vor.u32 %v454_v33, %v451_v29  ;;  %v644_v47 = vshll.u32 %v9145_v13, 16  ;;  %v650_v50 = vshll.u32 %v9152_v22, 16  ;;  %v654_v51 = vshrl.u32 %v9152_v22, 16  ;;  %8053 = vmatprep.mubr.bf16.mxu0 %v7240_v38  ;;  %v8548_v38 = vld [vmem:[%s13938_s2 + $0x98] sm:$0xff]  }
  0x3a   : > { %v639_v48 = vsel %vm9055_vm2, %v634_v42, %v638_v28  ;;  %v470_v49 = vrot.slane %v468_v43, 5  ;;  %v465_v56 = vor.u32 %v464_v45, %v460_v34  ;;  %v643_v58 = vrot.slane %v641_v46, 4  ;;  %v8549_v46 = vld [vmem:[%s13938_s2 + $0x10] sm:$0xff]  }
  0x3b   : > { %8084 = vmatpush3.bf16.msra.mxu1 %v8541_v52  ;;  %8132 = vmatpush3.bf16.msra.mxu0 %v8542_v59  ;;  %v7248_v54 = vcombine.low %v629_v41, %v639_v48  ;;  %v456_v55 = vrot.slane %v455_v44, 4  ;;  %v8545_v52 = vld [vmem:[%s13938_s2 + $0x20] sm:$0xff]   ;;  %v646_v61 = vrot.slane %v644_v47, 5  ;;  %v652_v63 = vrot.slane %v650_v50, 5  ;;  %v9213_v44 = vld [vmem:[%s9024_s23 + $0x98] sm:$0x1] }
  0x3c   : > { %8085 = vmatprep.subr.bf16.mxu1 %v8543_v30  ;;  %v8546_v59 = vld [vmem:[%s13938_s2 + $0xa0] sm:$0xff]   ;;  %v656_v1 = vrot.slane %v654_v51, 4  ;;  %v660_v2 = vshll.u32 %v9161_v36, 16  ;;  %8133 = vmatprep.subr.bf16.mxu0 %v8544_v37  ;;  %v466_v7 = vrot.slane %v465_v56, 4  ;;  %v473_v9 = vshrl.u32 %v9176_v53, 16 }
  0x3d   : > { %8069 = vmatprep.mubr.bf16.mxu1 %v7248_v54  ;;  %v461_v3 = vsel %vm9055_vm2, %v456_v55, %v460_v34  ;;  %v476_v10 = vshll.u32 %v9176_v53, 16  ;;  %v647_v11 = vor.u32 %v646_v61, %v643_v58  ;;  %v482_v17 = vshll.u32 %v9185_v60, 16  ;;  %v9226_v51 = vld [vmem:[%s9024_s23 + $0x3c] sm:$0xf]  ;;  %v9229_v54 = vld [vmem:[%s9024_s23 + $0x40] sm:$0xf] }
  0x3e   : > { %v657_v12 = vor.u32 %v656_v1, %v652_v63  ;;  %v662_v15 = vrot.slane %v660_v2, 5  ;;  %v471_v23 = vsel %vm9055_vm2, %v466_v7, %v470_v49  ;;  %v475_v24 = vrot.slane %v473_v9, 4  ;;  %v8550_v55 = vld [vmem:[%s13938_s2 + $0x90] sm:$0xff]   ;;  %v9236_v7 = vld [vmem:[%s9024_s23 + $0x44] sm:$0x1] }
  0x3f   : > { %8086 = vmatpush3.bf16.msra.mxu1 %v8543_v30  ;;  %8134 = vmatpush3.bf16.msra.mxu0 %v8544_v37  ;;  %v478_v28 = vrot.slane %v476_v10, 5  ;;  %v486_v29 = vshrl.u32 %v9185_v60, 16  ;;  %v8547_v30 = vld [vmem:[%s13938_s2 + $0x18] sm:$0xff]   ;;  %v7241_v33 = vcombine.low %v461_v3, %v471_v23  ;;  %v648_v34 = vrot.slane %v647_v11, 4 }
  0x40   : > { %8087 = vmatprep.subr.bf16.mxu1 %v8545_v52  ;;  %8135 = vmatprep.subr.bf16.mxu0 %v8546_v59  ;;  %v658_v35 = vrot.slane %v657_v12, 4  ;;  %v484_v37 = vrot.slane %v482_v17, 5  ;;  %v492_v43 = vshll.u32 %v9193_v16, 16  ;;  %v665_v45 = vshrl.u32 %v9197_v18, 16  ;;  %v9239_v9 = vld [vmem:[%s9024_s23 + $0x9c] sm:$0xf] }
  0x41   : > { %v479_v41 = vor.u32 %v478_v28, %v475_v24  ;;  %v488_v42 = vrot.slane %v486_v29, 4  ;;  %8054 = vmatmul.mubr.bf16.gmra.mxu0 %v7241_v33  ;;  %v653_v47 = vsel %vm9055_vm2, %v648_v34, %v652_v63  ;;  %v668_v49 = vshll.u32 %v9197_v18, 16  ;;  %v9248_v28 = vld [vmem:[%s9024_s23 + $0xa0] sm:$0xf]  ;;  %v8551_v29 = vld [vmem:[%s13938_s2 + $0x8] sm:$0xff]  }
  0x42   : > { %v663_v48 = vsel %vm9055_vm2, %v658_v35, %v662_v15  ;;  %v674_v50 = vshll.u32 %v9203_v31, 16  ;;  %v494_v63 = vrot.slane %v492_v43, 5  ;;  %v678_v3 = vshrl.u32 %v9203_v31, 16 }
  0x43   : > { %8088 = vmatpush3.bf16.msra.mxu1 %v8545_v52  ;;  %v7249_v56 = vcombine.low %v653_v47, %v663_v48  ;;  %8136 = vmatpush3.bf16.msra.mxu0 %v8546_v59  ;;  %v480_v58 = vrot.slane %v479_v41, 4  ;;  %v489_v61 = vor.u32 %v488_v42, %v484_v37  ;;  %v667_v52 = vrot.slane %v665_v45, 4  ;;  %v8552_v41 = vld [vmem:[%s13938_s2 + $0x88] sm:$0xff]  }
  0x44   : > { %8089 = vmatprep.subr.bf16.mxu1 %v8547_v30  ;;  %v670_v1 = vrot.slane %v668_v49, 5  ;;  %v676_v2 = vrot.slane %v674_v50, 5  ;;  %8137 = vmatprep.subr.bf16.mxu0 %v8548_v38  ;;  %v684_v11 = vshll.u32 %v9213_v44, 16  ;;  %v497_v12 = vshrl.u32 %v9226_v51, 16 }
  0x45   : > { %8070 = vmatmul.mubr.bf16.gmra.mxu1 %v7249_v56  ;;  %v485_v10 = vsel %vm9055_vm2, %v480_v58, %v484_v37  ;;  %v490_v59 = vrot.slane %v489_v61, 4  ;;  %v680_v17 = vrot.slane %v678_v3, 4  ;;  %v500_v23 = vshll.u32 %v9226_v51, 16  ;;  %v9264_v61 = vld [vmem:[%s9024_s23 + $0xa4] sm:$0x1] }
  0x46   : > { %v671_v15 = vor.u32 %v670_v1, %v667_v52  ;;  %v506_v24 = vshll.u32 %v9229_v54, 16  ;;  %v686_v34 = vrot.slane %v684_v11, 5  ;;  %v499_v35 = vrot.slane %v497_v12, 4 }
  0x47   : > { %8090 = vmatpush3.bf16.msra.mxu1 %v8547_v30  ;;  %v495_v33 = vsel %vm9055_vm2, %v490_v59, %v494_v63  ;;  %v510_v37 = vshrl.u32 %v9229_v54, 16  ;;  %8138 = vmatpush3.bf16.msra.mxu0 %v8548_v38  ;;  %v681_v43 = vor.u32 %v680_v17, %v676_v2  ;;  %v502_v45 = vrot.slane %v500_v23, 5  ;;  %v9269_v59 = vld [vmem:[%s9024_s23 + $0x48] sm:$0xf]  ;;  %v9278_v17 = vld [vmem:[%s9024_s23 + $0x4c] sm:$0xf] }
  0x48   : > { %8091 = vmatprep.subr.bf16.mxu1 %v8549_v46  ;;  %v7242_v42 = vcombine.low %v485_v10, %v495_v33  ;;  %v672_v30 = vrot.slane %v671_v15, 4  ;;  %8139 = vmatprep.subr.bf16.mxu0 %v8550_v55  ;;  %v508_v47 = vrot.slane %v506_v24, 5  ;;  %v516_v49 = vshll.u32 %v9236_v7, 16 }
  0x49   : > { %v512_v48 = vrot.slane %v510_v37, 4  ;;  %v689_v50 = vshrl.u32 %v9239_v9, 16  ;;  %v682_v56 = vrot.slane %v681_v43, 4  ;;  %v503_v58 = vor.u32 %v502_v45, %v499_v35 }
  0x4a   : > { %8057 = vmatprep.mubr.bf16.mxu0 %v7242_v42  ;;  %v677_v38 = vsel %vm9055_vm2, %v672_v30, %v676_v2  ;;  %v692_v63 = vshll.u32 %v9239_v9, 16  ;;  %v518_v1 = vrot.slane %v516_v49, 5  ;;  %v698_v10 = vshll.u32 %v9248_v28, 16  ;;  %v8553_v2 = vld [vmem:[%s13938_s2] sm:$0xff]   ;;  %v9287_v30 = vld [vmem:[%s9024_s23 + $0x50] sm:$0x1] }
  0x4b   : > { %8092 = vmatpush3.bf16.msra.mxu1 %v8549_v46  ;;  %v513_v52 = vor.u32 %v512_v48, %v508_v47  ;;  %v691_v3 = vrot.slane %v689_v50, 4  ;;  %8140 = vmatpush3.bf16.msra.mxu0 %v8550_v55  ;;  %v687_v11 = vsel %vm9055_vm2, %v682_v56, %v686_v34  ;;  %v504_v12 = vrot.slane %v503_v58, 4  ;;  %v8554_v55 = vld [vmem:[%s13938_s2 + $0x80] sm:$0xff]  }
  0x4c   : > { %8093 = vmatprep.subr.bf16.mxu1 %v8551_v29  ;;  %v694_v15 = vrot.slane %v692_v63, 5  ;;  %v702_v46 = vshrl.u32 %v9248_v28, 16  ;;  %8141 = vmatprep.subr.bf16.mxu0 %v8552_v41  ;;  %v7250_v23 = vcombine.low %v677_v38, %v687_v11  ;;  %v700_v33 = vrot.slane %v698_v10, 5  ;;  %v9295_v38 = vld [vmem:[%s9024_s23 + $0xa8] sm:$0xf] }
  0x4d   : > { %v514_v24 = vrot.slane %v513_v52, 4  ;;  %v708_v35 = vshll.u32 %v9264_v61, 16  ;;  %v509_v34 = vsel %vm9055_vm2, %v504_v12, %v508_v47  ;;  %v521_v43 = vshrl.u32 %v9269_v59, 16  ;;  %14012 = vst [vmem:[#allocation8_spill] sm:$0xff] %v9295_v38  ;;  %v9300_v47 = vld [vmem:[%s13938_s2 + $0xf8] sm:$0xff]  }
  0x4e   : > { %v695_v37 = vor.u32 %v694_v15, %v691_v3  ;;  %v704_v42 = vrot.slane %v702_v46, 4  ;;  %8073 = vmatprep.mubr.bf16.mxu1 %v7250_v23  ;;  %v524_v49 = vshll.u32 %v9269_v59, 16  ;;  %v530_v50 = vshll.u32 %v9278_v17, 16  ;;  %v9303_v52 = vld [vmem:[%s9024_s23 + $0xac] sm:$0xf] }
  0x4f   : > { %8094 = vmatpush3.bf16.msra.mxu1 %v8551_v29  ;;  %v519_v45 = vsel %vm9055_vm2, %v514_v24, %v518_v1  ;;  %v710_v48 = vrot.slane %v708_v35, 5  ;;  %8142 = vmatpush3.bf16.msra.mxu0 %v8552_v41  ;;  %v523_v63 = vrot.slane %v521_v43, 4  ;;  %v9308_v1 = vld [vmem:[%s13938_s2 + $0x138] sm:$0xff]   ;;  %v534_v10 = vshrl.u32 %v9278_v17, 16  ;;  %v9313_v12 = vld [vmem:[%s9024_s23 + $0xb0] sm:$0x1] }
  0x50   : > { %v7243_v29 = vcombine.low %v509_v34, %v519_v45  ;;  %v696_v56 = vrot.slane %v695_v37, 4  ;;  %v705_v58 = vor.u32 %v704_v42, %v700_v33  ;;  %8095 = vmatprep.subr.bf16.mxu1 %v8553_v2  ;;  %8143 = vmatprep.subr.bf16.mxu0 %v8554_v55  ;;  %v526_v41 = vrot.slane %v524_v49, 5  ;;  %14013 = vst [vmem:[#allocation9_spill] sm:$0xff] %v9313_v12  ;;  %v9316_v15 = vld [vmem:[%s9024_s23 + $0x54] sm:$0xf] }
  0x51   : > { %v532_v3 = vrot.slane %v530_v50, 5  ;;  %v540_v11 = vshll.u32 %v9287_v30, 16  ;;  %v713_v24 = vshrl.u32 %v9295_v38, 16  ;;  %v716_v35 = vshll.u32 %v9295_v38, 16  ;;  %v9323_v34 = vld [vmem:[%s9024_s23 + $0x58] sm:$0xf] }
  0x52   : > { %8058 = vmatmul.mubr.bf16.gmra.mxu0 %v7243_v29  ;;  %v701_v46 = vsel %vm9055_vm2, %v696_v56, %v700_v33  ;;  %v706_v23 = vrot.slane %v705_v58, 4  ;;  %v527_v37 = vor.u32 %v526_v41, %v523_v63  ;;  %v536_v42 = vrot.slane %v534_v10, 4 }
  0x53   : > { %8096 = vmatpush3.bf16.msra.mxu1 %v8553_v2  ;;  %v542_v43 = vrot.slane %v540_v11, 5  ;;  %v722_v45 = vshll.u32 %v9303_v52, 16  ;;  %8144 = vmatpush3.bf16.msra.mxu0 %v8554_v55  ;;  %v715_v49 = vrot.slane %v713_v24, 4  ;;  %v718_v50 = vrot.slane %v716_v35, 5  ;;  %v9332_v55 = vld [vmem:[%s9024_s23 + $0x5c] sm:$0x1] }
  0x54   : > { %8177 = vmatprep.subr.bf16.mxu1 %v9300_v47  ;;  %v711_v33 = vsel %vm9055_vm2, %v706_v23, %v710_v48  ;;  %v726_v29 = vshrl.u32 %v9303_v52, 16  ;;  %8225 = vmatprep.subr.bf16.mxu0 %v9308_v1  ;;  %v528_v56 = vrot.slane %v527_v37, 4  ;;  %v537_v58 = vor.u32 %v536_v42, %v532_v3  ;;  %v9337_v48 = vld [vmem:[%s9024_s23 + $0xb4] sm:$0xf]  ;;  %v9344_v37 = vld [vmem:[%s9024_s23 + $0xb8] sm:$0xf] }
  0x55   : > { %v7251_v2 = vcombine.low %v701_v46, %v711_v33  ;;  %v724_v63 = vrot.slane %v722_v45, 5  ;;  %v719_v41 = vor.u32 %v718_v50, %v715_v49  ;;  %v732_v11 = vshll.u32 %v9313_v12, 16  ;;  %14014 = vst [vmem:[#allocation10_spill] sm:$0xff] %v9337_v48  ;;  %14015 = vst [vmem:[#allocation11_spill] sm:$0xff] %v9344_v37 }
  0x56   : > { %v728_v10 = vrot.slane %v726_v29, 4  ;;  %v545_v21 = vshrl.u32 %v9316_v15, 16  ;;  %v533_v23 = vsel %vm9055_vm2, %v528_v56, %v532_v3  ;;  %v538_v24 = vrot.slane %v537_v58, 4  ;;  %v9350_v3 = vld [vmem:[%s9024_s23 + $0xbc] sm:$0x1] }
  0x57   : > { %8074 = vmatmul.mubr.bf16.gmra.mxu1 %v7251_v2  ;;  %v548_v46 = vshll.u32 %v9316_v15, 16  ;;  %v554_v35 = vshll.u32 %v9323_v34, 16  ;;  %v720_v42 = vrot.slane %v719_v41, 4  ;;  %v734_v33 = vrot.slane %v732_v11, 5  ;;  %14016 = vst [vmem:[#allocation12_spill] sm:$0xff] %v9350_v3 }
  0x58   : > { %v729_v45 = vor.u32 %v728_v10, %v724_v63  ;;  %v547_v49 = vrot.slane %v545_v21, 4  ;;  %v543_v50 = vsel %vm9055_vm2, %v538_v24, %v542_v43  ;;  %v558_v62 = vshrl.u32 %v9323_v34, 16  ;;  %v1355_v10 = vld [vmem:[%s9024_s23] sm:$0xe] }
  0x59   : > { %v550_v29 = vrot.slane %v548_v46, 5  ;;  %v556_v2 = vrot.slane %v554_v35, 5  ;;  %v7244_v56 = vcombine.low %v533_v23, %v543_v50  ;;  %v725_v58 = vsel %vm9055_vm2, %v720_v42, %v724_v63 }
  0x5a   : > { %v730_v20 = vrot.slane %v729_v45, 4  ;;  %v564_v41 = vshll.u32 %v9332_v55, 16  ;;  %v560_v21 = vrot.slane %v558_v62, 4  ;;  %v737_v12 = vshrl.u32 %v9337_v48, 16 }
  0x5b   : > { %v551_v11 = vor.u32 %v550_v29, %v547_v49  ;;  %v740_v43 = vshll.u32 %v9337_v48, 16  ;;  %8061 = vmatprep.mubr.bf16.mxu0 %v7244_v56  ;;  %v746_v46 = vshll.u32 %v9344_v37, 16  ;;  %v750_v63 = vshrl.u32 %v9344_v37, 16  ;;  %v1356_v49 = vld [vmem:[%s9024_s23 + $0xc] sm:$0xe] }
  0x5c   : > { %v735_v24 = vsel %vm9055_vm2, %v730_v20, %v734_v33  ;;  %v566_v23 = vrot.slane %v564_v41, 5  ;;  %v561_v45 = vor.u32 %v560_v21, %v556_v2  ;;  %v739_v50 = vrot.slane %v737_v12, 4  ;;  %v1357_v20 = vld [vmem:[%s9024_s23 + $0x18] sm:$0xe] }
  0x5d   : > { %v7252_v35 = vcombine.low %v725_v58, %v735_v24  ;;  %v552_v42 = vrot.slane %v551_v11, 4  ;;  %v742_v62 = vrot.slane %v740_v43, 5  ;;  %v748_v29 = vrot.slane %v746_v46, 5 }
  0x5e   : > { %v752_v38 = vrot.slane %v750_v63, 4  ;;  %v756_v48 = vshll.u32 %v9350_v3, 16  ;;  %v562_v58 = vrot.slane %v561_v45, 4  ;;  %v7286_v41 = vrot.slane %v1355_v10, 9 }
  0x5f   : > { %8077 = vmatprep.mubr.bf16.mxu1 %v7252_v35  ;;  %v557_v33 = vsel %vm9055_vm2, %v552_v42, %v556_v2  ;;  %v1408_v12 = vrot.slane %v9033_v5, 5  ;;  %v743_v11 = vor.u32 %v742_v62, %v739_v50  ;;  %v7287_v24 = vrot.slane %v1356_v49, 9 }
  0x60   : > { %v753_v21 = vor.u32 %v752_v38, %v748_v29  ;;  %v758_v43 = vrot.slane %v756_v48, 5  ;;  %v567_v46 = vsel %vm9055_vm2, %v562_v58, %v566_v23  ;;  %v1415_v35 = vrot.slane %v9060_v32, 5 }
  0x61   : > { %v1409_v63 = vsel %vm9366_vm5, %v7286_v41, %v1408_v12  ;;  %v1410_v3 = vrot.slane %v1408_v12, 4  ;;  %v7245_v37 = vcombine.low %v557_v33, %v567_v46  ;;  %v744_v2 = vrot.slane %v743_v11, 4  ;;  %v1359_v12 = vld [vmem:[%s9024_s23 + $0x30] sm:$0xe]  ;;  %v1361_v46 = vld [vmem:[%s9024_s23 + $0x48] sm:$0xe] }
  0x62   : > { %v754_v42 = vrot.slane %v753_v21, 4  ;;  %v7262_v10 = vcombine.low %v9030_v4, %v9033_v5  ;;  %v14019_v38 = vrot.slane %v9036_v6, 5  ;;  %v1417_v45 = vrot.slane %v1415_v35, 4 }
  0x63   : > { %v7288_v23 = vrot.slane %v1357_v20, 9  ;;  %8062 = vmatmul.mubr.bf16.gmra.mxu0 %v7245_v37  ;;  %v749_v50 = vsel %vm9055_vm2, %v744_v2, %v748_v29  ;;  %v1422_v33 = vrot.slane %v9097_v19, 5  ;;  %v1416_v4 = vsel %vm9366_vm5, %v7287_v24, %v1415_v35  ;;  %v1360_v24 = vld [vmem:[%s9024_s23 + $0x3c] sm:$0xe] }
  0x64   : > { %v1412_v48 = vsel %vm9366_vm5, %v1410_v3, %v14019_v38  ;;  %v759_v49 = vsel %vm9055_vm2, %v754_v42, %v758_v43  ;;  %v14020_v5 = vrot.slane %v9066_v40, 5  ;;  %v1425_v37 = vrot.slane %v9102_v25, 5  ;;  %v1358_v3 = vld [vmem:[%s9024_s23 + $0x24] sm:$0xe]  ;;  %v8562_v25 = vld [vmem:[%s13938_s2 + $0x130] sm:$0xff]  }
  0x65   : > { %v7318_v62 = vcombine.low %v1409_v63, %v1412_v48  ;;  %v7253_v58 = vcombine.low %v749_v50, %v759_v49  ;;  %v1423_v29 = vsel %vm9366_vm5, %v7288_v23, %v1422_v33  ;;  %v1424_v20 = vrot.slane %v1422_v33, 4  ;;  %v8561_v23 = vld [vmem:[%s13938_s2 + $0xf0] sm:$0xff]  }
  0x66   : > { %v1419_v6 = vsel %vm9366_vm5, %v1417_v45, %v14020_v5  ;;  %v1429_v41 = vrot.slane %v9138_v0, 5  ;;  %v7289_v21 = vrot.slane %v1358_v3, 9  ;;  %v1436_v43 = vrot.slane %v9185_v60, 5  ;;  %v9441_v3 = vld [vmem:[%s9024_s23 + $0x68] sm:$0x1] }
  0x67   : > { %8145 = vmatprep.mubr.bf16.mxu0 %v7318_v62  ;;  %8078 = vmatmul.mubr.bf16.gmra.mxu1 %v7253_v58  ;;  %v7319_v11 = vcombine.low %v1416_v4, %v1419_v6  ;;  %v1426_v40 = vsel %vm9366_vm5, %v1424_v20, %v1425_v37  ;;  %v1432_v2 = vrot.slane %v9141_v8, 5  ;;  %v7290_v42 = vrot.slane %v1359_v12, 9  ;;  %v1362_v37 = vld [vmem:[%s9024_s23 + $0x54] sm:$0xe]  ;;  %v9465_v12 = vld [vmem:[%s9024_s23 + $0x60] sm:$0xe] }
  0x68   : > { %8097 = vmatprep.mubr.bf16.mxu1 %v7262_v10  ;;  %v7320_v63 = vcombine.low %v1423_v29, %v1426_v40  ;;  %v1431_v35 = vrot.slane %v1429_v41, 4  ;;  %v1438_v38 = vrot.slane %v1436_v43, 4  ;;  %v1439_v10 = vrot.slane %v9193_v16, 5 }
  0x69   : > { %v1443_v48 = vrot.slane %v9229_v54, 5  ;;  %v7264_v45 = vcombine.low %v9089_v14, %v9097_v19  ;;  %v1450_v50 = vrot.slane %v9278_v17, 5  ;;  %v7291_v49 = vrot.slane %v1360_v24, 9  ;;  %v8570_v24 = vld [vmem:[%s13938_s2 + $0x120] sm:$0xff]  }
  0x6a   : > { %v1446_v8 = vrot.slane %v9236_v7, 5  ;;  %v7292_v33 = vrot.slane %v1361_v46, 9  ;;  %v1430_v14 = vsel %vm9366_vm5, %v7289_v21, %v1429_v41  ;;  %v1433_v19 = vsel %vm9366_vm5, %v1431_v35, %v1432_v2  ;;  %v9477_v46 = vld [vmem:[%s9024_s23 + $0x78] sm:$0xe]  ;;  %v8569_v2 = vld [vmem:[%s13938_s2 + $0xe0] sm:$0xff]  }
  0x6b   : > { %8146 = vmatmul.mubr.bf16.vlgmr.msra.gmra.mxu0 %v7319_v11  ;;  %v1445_v62 = vrot.slane %v1443_v48, 4  ;;  %v1452_v16 = vrot.slane %v1450_v50, 4  ;;  %v1453_v58 = vrot.slane %v9287_v30, 5  ;;  %v1437_v4 = vsel %vm9366_vm5, %v7290_v42, %v1436_v43  ;;  %v9468_v11 = vld [vmem:[%s9024_s23 + $0x6c] sm:$0xe] }
  0x6c   : > { %8226 = vmatpush3.bf16.msra.mxu0 %v9308_v1  ;;  %8149 = vmatprep.mubr.bf16.mxu0 %v7320_v63  ;;  %v1440_v7 = vsel %vm9366_vm5, %v1438_v38, %v1439_v10  ;;  %v8566_v1 = vld [vmem:[%s13938_s2 + $0x128] sm:$0xff]   ;;  %v1457_v5 = vrot.slane %v9323_v34, 5  ;;  %v14021_v6 = vcombine.low %v9051_v26, %v9060_v32  ;;  %v7265_v30 = vcombine.low %v9129_v57, %v9138_v0  ;;  %v1366_v63 = vld [vmem:[%s9024_s23 + $0x84] sm:$0xe]  ;;  %v1367_v42 = vld [vmem:[%s9024_s23 + $0x90] sm:$0xe] }
  0x6d   : > { %8227 = vmatprep.subr.bf16.mxu0 %v8562_v25  ;;  %v1467_v29 = vrot.slane %v9441_v3, 5  ;;  %v7321_v20 = vcombine.low %v1430_v14, %v1433_v19  ;;  %v9447_v41 = vsel %vm9366_vm5, %v7291_v49, %v1443_v48  ;;  %v9451_v26 = vsel %vm9366_vm5, %v1445_v62, %v1446_v8  ;;  %v8565_v32 = vld [vmem:[%s13938_s2 + $0xe8] sm:$0xff]   ;;  %v9496_v48 = vld [vmem:[%s9024_s23 + $0x64] sm:$0xf]  ;;  %v1368_v49 = vld [vmem:[%s9024_s23 + $0x9c] sm:$0xe] }
  0x6e   : > { %v7322_v57 = vcombine.low %v1437_v4, %v1440_v7  ;;  %v9458_v0 = vsel %vm9366_vm5, %v7292_v33, %v1450_v50  ;;  %v7266_v40 = vcombine.low %v9176_v53, %v9185_v60  ;;  %v7293_v21 = vrot.slane %v1362_v37, 9  ;;  %v9518_v4 = vld [vmem:[%s9024_s23 + $0x74] sm:$0x1] }
  0x6f   : > { %8098 = vmatmul.mubr.bf16.vlgmr.msra.gmra.mxu1 %v14021_v6  ;;  %v1460_v43 = vrot.slane %v9332_v55, 5  ;;  %v7267_v35 = vcombine.low %v9226_v51, %v9229_v54  ;;  %v7323_v53 = vcombine.low %v9447_v41, %v9451_v26  ;;  %v7268_v60 = vcombine.low %v9269_v59, %v9278_v17  ;;  %v8783_v54 = vld [vmem:[%s9024_s23 + $0x80] sm:$0x1] }
  0x70   : > { %8178 = vmatpush3.bf16.msra.mxu1 %v9300_v47  ;;  %8101 = vmatprep.mubr.bf16.mxu1 %v7264_v45  ;;  %v9462_v47 = vsel %vm9366_vm5, %v1452_v16, %v1453_v58  ;;  %v7269_v55 = vcombine.low %v9316_v15, %v9323_v34  ;;  %v7294_v10 = vrot.slane %v9465_v12, 9  ;;  %v1464_v45 = vrot.slane %v9496_v48, 5  ;;  %v9514_v16 = vld [vmem:[%s9024_s23 + $0x70] sm:$0xf]  ;;  %v8784_v17 = vld [vmem:[%s9024_s23 + $0x60] sm:$0xf] }
  0x71   : > { %8179 = vmatprep.subr.bf16.mxu1 %v8561_v23  ;;  %8228 = vmatpush3.bf16.msra.mxu0 %v8562_v25  ;;  %v1459_v25 = vrot.slane %v1457_v5, 4  ;;  %v7324_v38 = vcombine.low %v9458_v0, %v9462_v47  ;;  %v7295_v62 = vrot.slane %v9468_v11, 9  ;;  %v1485_v8 = vrot.slane %v9152_v22, 5  ;;  %v1369_v0 = vld [vmem:[%s9024_s23 + $0xa8] sm:$0xe]  ;;  %v9698_v15 = vld [vmem:[%s13938_s2 + $0x1b8] sm:$0xff]  }
  0x72   : > { %8229 = vmatprep.subr.bf16.mxu0 %v8566_v1  ;;  %v1488_v33 = vrot.slane %v9161_v36, 5  ;;  %v9507_v14 = vsel %vm9366_vm5, %v7293_v21, %v1457_v5  ;;  %v1471_v58 = vrot.slane %v9514_v16, 5  ;;  %v1474_v7 = vrot.slane %v9518_v4, 5  ;;  %v8573_v36 = vld [vmem:[%s13938_s2 + $0xd8] sm:$0xff]  }
  0x73   : > { %8150 = vmatmul.mubr.bf16.gmra.mxu0 %v7321_v20  ;;  %v9511_v19 = vsel %vm9366_vm5, %v1459_v25, %v1460_v43  ;;  %v7296_v5 = vrot.slane %v9477_v46, 9  ;;  %v1487_v37 = vrot.slane %v1485_v8, 4  ;;  %v7298_v41 = vrot.slane %v1367_v42, 9  ;;  %v7414_v42 = vld [vmem:[%s9024_s23 + $0xc] sm:$0xf] }
  0x74   : > { %8180 = vmatpush3.bf16.msra.mxu1 %v8561_v23  ;;  %8153 = vmatprep.mubr.bf16.mxu0 %v7322_v57  ;;  %v7297_v23 = vrot.slane %v1366_v63, 9  ;;  %v1492_v26 = vrot.slane %v9203_v31, 5  ;;  %v1495_v57 = vrot.slane %v9213_v44, 5  ;;  %v1478_v47 = vrot.slane %v9111_v39, 5 }
  0x75   : > { %8181 = vmatprep.subr.bf16.mxu1 %v8565_v32  ;;  %8230 = vmatpush3.bf16.msra.mxu0 %v8566_v1  ;;  %v8574_v1 = vld [vmem:[%s13938_s2 + $0x118] sm:$0xff]   ;;  %v9542_v21 = vsel %vm9366_vm5, %v1487_v37, %v1488_v33  ;;  %v1499_v63 = vrot.slane %v9248_v28, 5  ;;  %v7300_v33 = vrot.slane %v1369_v0, 9  ;;  %v1506_v37 = vrot.slane %v9303_v52, 5  ;;  %v8577_v0 = vld [vmem:[%s13938_s2 + $0xd0] sm:$0xff]  }
  0x76   : > { %8231 = vmatprep.subr.bf16.mxu0 %v8570_v24  ;;  %v9530_v6 = vsel %vm9366_vm5, %v7297_v23, %v1485_v8  ;;  %v9550_v44 = vsel %vm9366_vm5, %v7298_v41, %v1492_v26  ;;  %v1494_v43 = vrot.slane %v1492_v26, 4  ;;  %v8578_v23 = vld [vmem:[%s13938_s2 + $0x110] sm:$0xff]   ;;  %v1502_v8 = vrot.slane %v9264_v61, 5  ;;  %v14023_v61 = vld [vmem:[#allocation9_spill] sm:$0xff] }
  0x77   : > { %8102 = vmatmul.mubr.bf16.gmra.mxu1 %v7265_v30  ;;  %v1466_v30 = vrot.slane %v1464_v45, 4  ;;  %v1501_v20 = vrot.slane %v1499_v63, 4  ;;  %v1509_v50 = vrot.slane %v14023_v61, 5  ;;  %v1465_v61 = vsel %vm9366_vm5, %v7294_v10, %v1464_v45  ;;  %v7417_v45 = vld [vmem:[%s9024_s23 + $0x18] sm:$0xf] }
  0x78   : > { %8105 = vmatprep.mubr.bf16.mxu1 %v7266_v40  ;;  %8182 = vmatpush3.bf16.msra.mxu1 %v8565_v32  ;;  %v7299_v40 = vrot.slane %v1368_v49, 9  ;;  %v9562_v32 = vld [vmem:[%s9024_s23 + $0x10] sm:$0xf]  ;;  %v9566_v41 = vsel %vm9366_vm5, %v1494_v43, %v1495_v57  ;;  %v1508_v57 = vrot.slane %v1506_v37, 4  ;;  %v2276_v12 = vshrl.u32 %v7414_v42, 16 }
  0x79   : > { %8183 = vmatprep.subr.bf16.mxu1 %v8569_v2  ;;  %8232 = vmatpush3.bf16.msra.mxu0 %v8570_v24  ;;  %v14022_v24 = vld [vmem:[#allocation8_spill] sm:$0xff]  ;;  %v14025_v43 = vld [vmem:[#allocation10_spill] sm:$0xff]  ;;  %v2279_v10 = vshll.u32 %v7414_v42, 16  ;;  %v1473_v51 = vrot.slane %v1471_v58, 4  ;;  %v2285_v59 = vshll.u32 %v9562_v32, 16  ;;  %v1479_v4 = vsel %vm9366_vm5, %v7296_v5, %v1478_v47 }
  0x7a   : > { %8233 = vmatprep.subr.bf16.mxu0 %v8574_v1  ;;  %v9570_v26 = vsel %vm9366_vm5, %v7299_v40, %v1499_v63  ;;  %v14024_v40 = vld [vmem:[#allocation11_spill] sm:$0xff]  ;;  %v9636_v42 = vld [vmem:[%s9024_s23 + $0x14] sm:$0x1]  ;;  %v2278_v63 = vrot.slane %v2276_v12, 4  ;;  %v14027_v5 = vld [vmem:[#allocation12_spill] sm:$0xff] }
  0x7b   : > { %8154 = vmatmul.mubr.bf16.gmra.mxu0 %v7323_v53  ;;  %v2281_v49 = vrot.slane %v2279_v10, 5  ;;  %v7420_v53 = vld [vmem:[%s9024_s23 + $0x24] sm:$0xf]  ;;  %v1475_v11 = vsel %vm9366_vm5, %v1473_v51, %v1474_v7 }
  0x7c   : > { %8184 = vmatpush3.bf16.msra.mxu1 %v8569_v2  ;;  %8157 = vmatprep.mubr.bf16.mxu0 %v7324_v38  ;;  %v9580_v2 = vsel %vm9366_vm5, %v7300_v33, %v1506_v37  ;;  %v7325_v38 = vcombine.low %v9507_v14, %v9511_v19  ;;  %v1468_v33 = vsel %vm9366_vm5, %v1466_v30, %v1467_v29  ;;  %v8582_v14 = vld [vmem:[%s13938_s2 + $0x108] sm:$0xff]   ;;  %v8586_v30 = vld [vmem:[%s13938_s2 + $0x100] sm:$0xff]   ;;  %v9655_v19 = vrot.slane %v2285_v59, 5 }
  0x7d   : > { %8185 = vmatprep.subr.bf16.mxu1 %v8573_v36  ;;  %8234 = vmatpush3.bf16.msra.mxu0 %v8574_v1  ;;  %v9598_v37 = vsel %vm9366_vm5, %v1501_v20, %v1502_v8  ;;  %v9610_v29 = vsel %vm9366_vm5, %v1508_v57, %v1509_v50  ;;  %v8581_v50 = vld [vmem:[%s13938_s2 + $0xc8] sm:$0xff]   ;;  %v9625_v1 = vld [vmem:[%s9024_s23 + $0xb4] sm:$0xe]  ;;  %v7326_v20 = vcombine.low %v1465_v61, %v1468_v33  ;;  %v2289_v8 = vshrl.u32 %v9562_v32, 16  ;;  %v9653_v61 = vld [vmem:[%s9024_s23 + $0x1c] sm:$0xf] }
  0x7e   : > { %8235 = vmatprep.subr.bf16.mxu0 %v8578_v23  ;;  %v9640_v57 = vld [vmem:[%s9024_s23 + $0x6c] sm:$0xf]  ;;  %v2300_v33 = vshrl.u32 %v7417_v45, 16  ;;  %v2309_v51 = vshll.u32 %v9653_v61, 16  ;;  %v2313_v39 = vshrl.u32 %v9653_v61, 16  ;;  %v2324_v59 = vshrl.u32 %v7420_v53, 16 }
  0x7f   : > { %8106 = vmatmul.mubr.bf16.gmra.mxu1 %v7267_v35  ;;  %v1481_v35 = vrot.slane %v8783_v54, 5  ;;  %v7271_v54 = vcombine.low %v9640_v57, %v9514_v16  ;;  %v2291_v3 = vrot.slane %v2289_v8, 4  ;;  %v2327_v46 = vshll.u32 %v7420_v53, 16  ;;  %v8787_v8 = vld [vmem:[%s9024_s23 + $0x7c] sm:$0xf] }
  0x80   : > { %8109 = vmatprep.mubr.bf16.mxu1 %v7268_v60  ;;  %8186 = vmatpush3.bf16.msra.mxu1 %v8573_v36  ;;  %v7270_v60 = vcombine.low %v8784_v17, %v9496_v48  ;;  %v1480_v36 = vrot.slane %v1478_v47, 4  ;;  %v9650_v48 = vsel %vm9366_vm5, %v7295_v62, %v1471_v58  ;;  %v2303_v17 = vshll.u32 %v7417_v45, 16  ;;  %v8585_v58 = vld [vmem:[%s13938_s2 + $0xc0] sm:$0xff]   ;;  %v9680_v45 = vld [vmem:[%s9024_s23 + $0x28] sm:$0xf] }
  0x81   : > { %8187 = vmatprep.subr.bf16.mxu1 %v8577_v0  ;;  %8236 = vmatpush3.bf16.msra.mxu0 %v8578_v23  ;;  %v13953_v62 = vrot.slane %v14024_v40, 5  ;;  %v9667_v23 = vld [vmem:[%s9024_s23 + $0x20] sm:$0x1]  ;;  %v2302_v12 = vrot.slane %v2300_v33, 4  ;;  %14026 = vst [vmem:[#allocation8_spill] sm:$0xff] %v9680_v45  ;;  %v7327_v34 = vcombine.low %v9650_v48, %v1475_v11  ;;  %v2333_v53 = vshll.u32 %v9680_v45, 16 }
  0x82   : > { %8237 = vmatprep.subr.bf16.mxu0 %v8582_v14  ;;  %v2305_v10 = vrot.slane %v2303_v17, 5  ;;  %v1482_v7 = vsel %vm9366_vm5, %v1480_v36, %v1481_v35  ;;  %v2282_v35 = vor.u32 %v2281_v49, %v2278_v63  ;;  %v9693_v36 = vld [vmem:[%s13938_s2 + $0x178] sm:$0xff]   ;;  %v7423_v63 = vld [vmem:[%s9024_s23 + $0x30] sm:$0xf]  ;;  %v9714_v48 = vld [vmem:[%s9024_s23 + $0x34] sm:$0xf] }
  0x83   : > { %8158 = vmatmul.mubr.bf16.gmra.mxu0 %v7325_v38  ;;  %v2295_v38 = vshll.u32 %v9636_v42, 16  ;;  %v7328_v17 = vcombine.low %v1479_v4, %v1482_v7  ;;  %14029 = vst [vmem:[#allocation11_spill] sm:$0xff] %v9714_v48  ;;  %v9716_v11 = vrot.slane %v2309_v51, 5  ;;  %v2329_v47 = vrot.slane %v2327_v46, 5  ;;  %v9735_v46 = vld [vmem:[%s9024_s23 + $0x40] sm:$0xf] }
  0x84   : > { %8188 = vmatpush3.bf16.msra.mxu1 %v8577_v0  ;;  %8161 = vmatprep.mubr.bf16.mxu0 %v7326_v20  ;;  %v2292_v20 = vor.u32 %v2291_v3, %v9655_v19  ;;  %v2306_v49 = vor.u32 %v2305_v10, %v2302_v12  ;;  %v8786_v3 = vld [vmem:[%s9024_s23 + $0x78] sm:$0xf]  ;;  %v2315_v12 = vrot.slane %v2313_v39, 4  ;;  %v2326_v10 = vrot.slane %v2324_v59, 4  ;;  %14030 = vst [vmem:[#allocation10_spill] sm:$0xff] %v9735_v46 }
  0x85   : > { %8189 = vmatprep.subr.bf16.mxu1 %v8581_v50  ;;  %8238 = vmatpush3.bf16.msra.mxu0 %v8582_v14  ;;  %v2319_v14 = vshll.u32 %v9667_v23, 16  ;;  %v7272_v33 = vcombine.low %v8786_v3, %v8787_v8  ;;  %v9707_v25 = vrot.slane %v2295_v38, 5  ;;  %v9719_v0 = vld [vmem:[%s9024_s23 + $0x38] sm:$0x1]  ;;  %v9721_v4 = vrot.slane %v2282_v35, 4 }
  0x86   : > { %8239 = vmatprep.subr.bf16.mxu0 %v8586_v30  ;;  %v9723_v7 = vrot.slane %v2292_v20, 4  ;;  %v2348_v3 = vshrl.u32 %v7423_v63, 16  ;;  %v7426_v8 = vld [vmem:[%s9024_s23 + $0x3c] sm:$0xf]  ;;  %v9731_v51 = vrot.slane %v2333_v53, 5  ;;  %v2351_v39 = vshll.u32 %v7423_v63, 16 }
  0x87   : > { %8110 = vmatmul.mubr.bf16.gmra.mxu1 %v7269_v55  ;;  %v1515_v55 = vrot.slane %v13953_v62, 4  ;;  %v9725_v38 = vrot.slane %v2319_v14, 5  ;;  %v2357_v59 = vshll.u32 %v9714_v48, 16  ;;  %v2361_v20 = vshrl.u32 %v9714_v48, 16 }
  0x88   : > { %8113 = vmatprep.mubr.bf16.mxu1 %v7270_v60  ;;  %8190 = vmatpush3.bf16.msra.mxu1 %v8581_v50  ;;  %v9710_v60 = vld [vmem:[%s9024_s23 + $0x2c] sm:$0x1]  ;;  %v2337_v50 = vshrl.u32 %v9680_v45, 16  ;;  %v2316_v14 = vor.u32 %v2315_v12, %v9716_v11  ;;  %v2350_v53 = vrot.slane %v2348_v3, 4  ;;  %v2353_v63 = vrot.slane %v2351_v39, 5 }
  0x89   : > { %8191 = vmatprep.subr.bf16.mxu1 %v8585_v58  ;;  %14028 = vst [vmem:[#allocation9_spill] sm:$0xff] %v9710_v60  ;;  %8240 = vmatpush3.bf16.msra.mxu0 %v8586_v30  ;;  %v9729_v30 = vrot.slane %v2306_v49, 4  ;;  %v2372_v49 = vshrl.u32 %v7426_v8, 16  ;;  %v2375_v62 = vshll.u32 %v7426_v8, 16  ;;  %v2363_v48 = vrot.slane %v2361_v20, 4 }
  0x8a   : > { %8321 = vmatprep.subr.bf16.mxu0 %v9698_v15  ;;  %v2339_v35 = vrot.slane %v2337_v50, 4  ;;  %v9745_v50 = vrot.slane %v2357_v59, 5  ;;  %v9748_v45 = vld [vmem:[%s9024_s23 + $0x44] sm:$0x1]  ;;  %v2385_v12 = vshrl.u32 %v9735_v46, 16  ;;  %v14031_v16 = vrot.slane %v14024_v40, 5 }
  0x8b   : > { %8162 = vmatmul.mubr.bf16.gmra.mxu0 %v7327_v34  ;;  %v2343_v34 = vshll.u32 %v9710_v60, 16  ;;  %v14032_v57 = vrot.slane %v9625_v1, 9  ;;  %v9769_v39 = vld [vmem:[%s9024_s23 + $0x4c] sm:$0xf]  ;;  %v2374_v59 = vrot.slane %v2372_v49, 4  ;;  %v2377_v20 = vrot.slane %v2375_v62, 5 }
  0x8c   : > { %8192 = vmatpush3.bf16.msra.mxu1 %v8585_v58  ;;  %8165 = vmatprep.mubr.bf16.mxu0 %v7328_v17  ;;  %v2330_v58 = vor.u32 %v2329_v47, %v2326_v10  ;;  %v2367_v17 = vshll.u32 %v9719_v0, 16  ;;  %v2381_v47 = vshll.u32 %v9735_v46, 16  ;;  %v7429_v10 = vld [vmem:[%s9024_s23 + $0x48] sm:$0xf]  ;;  %v2340_v8 = vor.u32 %v2339_v35, %v9731_v51 }
  0x8d   : > { %8273 = vmatprep.subr.bf16.mxu1 %v9693_v36  ;;  %v2387_v1 = vrot.slane %v2385_v12, 4  ;;  %v9773_v46 = vrot.slane %v2316_v14, 4  ;;  %v2288_v62 = vsel %vm9055_vm2, %v9721_v4, %v9655_v19  ;;  %v2298_v35 = vsel %vm9055_vm2, %v9723_v7, %v9707_v25  ;;  %v7432_v4 = vld [vmem:[%s9024_s23 + $0x54] sm:$0xf] }
  0x8e   : > { %v9771_v60 = vrot.slane %v2381_v47, 5  ;;  %v2399_v14 = vshll.u32 %v7429_v10, 16  ;;  %v2391_v49 = vshll.u32 %v9748_v45, 16  ;;  %v2409_v19 = vshrl.u32 %v9769_v39, 16 }
  0x8f   : > { %8114 = vmatmul.mubr.bf16.gmra.mxu1 %v7271_v54  ;;  %v9759_v54 = vsel %vm9366_vm5, %v14032_v57, %v14031_v16  ;;  %v9775_v16 = vrot.slane %v2330_v58, 4  ;;  %v9777_v57 = vrot.slane %v2343_v34, 5  ;;  %v2405_v58 = vshll.u32 %v9769_v39, 16 }
  0x90   : > { %8117 = vmatprep.mubr.bf16.mxu1 %v7272_v33  ;;  %v14033_v33 = vrot.slane %v14027_v5, 5  ;;  %v2396_v5 = vshrl.u32 %v7429_v10, 16  ;;  %v14035_v34 = vcombine.low %v9550_v44, %v9566_v41  ;;  %v9798_v47 = vrot.slane %v2340_v8, 4  ;;  %v9804_v10 = vld [vmem:[%s9024_s23 + $0x58] sm:$0xf] }
  0x91   : > { %v9800_v12 = vrot.slane %v2367_v17, 5  ;;  %v2378_v25 = vor.u32 %v2377_v20, %v2374_v59  ;;  %v2388_v7 = vor.u32 %v2387_v1, %v9771_v60  ;;  %v14036_v44 = vcombine.low %v9145_v13, %v9152_v22  ;;  %v9810_v41 = vld [vmem:[%s9024_s23 + $0x50] sm:$0x1] }
  0x92   : > { %v9765_v3 = vsel %vm9366_vm5, %v1515_v55, %v14033_v33  ;;  %v14034_v55 = vcombine.low %v9530_v6, %v9542_v21  ;;  %v2354_v6 = vor.u32 %v2353_v63, %v2350_v53  ;;  %v2364_v21 = vor.u32 %v2363_v48, %v9745_v50 }
  0x93   : > { %v2398_v48 = vrot.slane %v2396_v5, 4  ;;  %v2401_v53 = vrot.slane %v2399_v14, 5  ;;  %v9812_v63 = vrot.slane %v2405_v58, 5  ;;  %v2411_v17 = vrot.slane %v2409_v19, 4  ;;  %v7435_v5 = vld [vmem:[%s9024_s23 + $0x60] sm:$0xf] }
  0x94   : > { %8166 = vmatmul.mubr.bf16.gmra.mxu0 %v14034_v55  ;;  %v14037_v33 = vcombine.low %v9197_v18, %v9203_v31  ;;  %v2420_v8 = vshrl.u32 %v7432_v4, 16  ;;  %v2423_v59 = vshll.u32 %v7432_v4, 16  ;;  %v9817_v20 = vrot.slane %v2354_v6, 4  ;;  %v9834_v31 = vld [vmem:[%s9024_s23 + $0x64] sm:$0xf] }
  0x95   : > { %8169 = vmatprep.mubr.bf16.mxu0 %v14035_v34  ;;  %v9819_v1 = vrot.slane %v2364_v21, 4  ;;  %v9821_v13 = vrot.slane %v2391_v49, 5  ;;  %v2429_v22 = vshll.u32 %v9804_v10, 16  ;;  %v7333_v55 = vcombine.low %v9759_v54, %v9765_v3  ;;  %v9830_v34 = vld [vmem:[%s9024_s23 + $0x5c] sm:$0x1] }
  0x96   : > { %v7478_v14 = vcombine.low %v2288_v62, %v2298_v35  ;;  %v9827_v58 = vrot.slane %v2378_v25, 4  ;;  %v2433_v18 = vshrl.u32 %v9804_v10, 16  ;;  %v9836_v6 = vrot.slane %v2388_v7, 4 }
  0x97   : > { %8118 = vmatmul.mubr.bf16.gmra.mxu1 %v14036_v44  ;;  %v2415_v21 = vshll.u32 %v9810_v41, 16  ;;  %v2444_v49 = vshrl.u32 %v7435_v5, 16  ;;  %v2447_v19 = vshll.u32 %v7435_v5, 16  ;;  %v14038_v4 = vcombine.low %v9570_v26, %v9598_v37 }
  0x98   : > { %8121 = vmatprep.mubr.bf16.mxu1 %v14037_v33  ;;  %v2402_v54 = vor.u32 %v2401_v53, %v2398_v48  ;;  %v2412_v3 = vor.u32 %v2411_v17, %v9812_v63  ;;  %v2422_v62 = vrot.slane %v2420_v8, 4  ;;  %v2425_v35 = vrot.slane %v2423_v59, 5  ;;  %v9874_v8 = vld [vmem:[%s9024_s23 + $0x70] sm:$0xf] }
  0x99   : > { %v14039_v25 = vcombine.low %v9580_v2, %v9610_v29  ;;  %v9846_v7 = vrot.slane %v2429_v22, 5  ;;  %v2435_v44 = vrot.slane %v2433_v18, 4  ;;  %v2439_v33 = vshll.u32 %v9830_v34, 16 }
  0x9a   : > { %v2453_v26 = vshll.u32 %v9834_v31, 16  ;;  %v2312_v37 = vsel %vm9055_vm2, %v9729_v30, %v9716_v11  ;;  %v2322_v2 = vsel %vm9055_vm2, %v9773_v46, %v9725_v38  ;;  %v2446_v29 = vrot.slane %v2444_v49, 4  ;;  %v7438_v46 = vld [vmem:[%s9024_s23 + $0x6c] sm:$0xf] }
  0x9b   : > { %v2449_v48 = vrot.slane %v2447_v19, 5  ;;  %v14040_v53 = vcombine.low %v9239_v9, %v9248_v28  ;;  %v2336_v17 = vsel %vm9055_vm2, %v9775_v16, %v9731_v51  ;;  %v2346_v11 = vsel %vm9055_vm2, %v9798_v47, %v9777_v57  ;;  %v9882_v16 = vld [vmem:[%s9024_s23 + $0x68] sm:$0x1] }
  0x9c   : > { %8170 = vmatmul.mubr.bf16.gmra.mxu0 %v14038_v4  ;;  %v9869_v30 = vrot.slane %v2415_v21, 5  ;;  %v2457_v38 = vshrl.u32 %v9834_v31, 16  ;;  %v14041_v9 = vcombine.low %v14022_v24, %v9303_v52  ;;  %v9879_v28 = vrot.slane %v2402_v54, 4  ;;  %v8587_v52 = vld [vmem:[%s9024_s23 + $0xc] sm:$0xff]  }
  0x9d   : > { %8173 = vmatprep.mubr.bf16.mxu0 %v14039_v25  ;;  %v2426_v51 = vor.u32 %v2425_v35, %v2422_v62  ;;  %v2468_v59 = vshrl.u32 %v7438_v46, 16  ;;  %v2471_v57 = vshll.u32 %v7438_v46, 16  ;;  %v9884_v47 = vrot.slane %v2412_v3, 4  ;;  %v9895_v62 = vld [vmem:[%s9024_s23 + $0x74] sm:$0x1] }
  0x9e   : > { %v2436_v22 = vor.u32 %v2435_v44, %v9846_v7  ;;  %v9887_v5 = vrot.slane %v2439_v33, 5  ;;  %v2477_v18 = vshll.u32 %v9874_v8, 16  ;;  %v2450_v24 = vor.u32 %v2449_v48, %v2446_v29  ;;  %v7441_v25 = vld [vmem:[%s9024_s23 + $0x78] sm:$0xf]  ;;  %v9899_v44 = vld [vmem:[%s9024_s23 + $0x7c] sm:$0xf] }
  0x9f   : > { %8122 = vmatmul.mubr.bf16.gmra.mxu1 %v14040_v53  ;;  %v9891_v21 = vrot.slane %v2453_v26, 5  ;;  %v2459_v49 = vrot.slane %v2457_v38, 4  ;;  %v2481_v19 = vshrl.u32 %v9874_v8, 16  ;;  %v7479_v4 = vcombine.low %v2312_v37, %v2322_v2  ;;  %v9906_v26 = vld [vmem:[%s9024_s23 + $0x80] sm:$0x1] }
  0xa0   : > { %8125 = vmatprep.mubr.bf16.mxu1 %v14041_v9  ;;  %v7480_v54 = vcombine.low %v2336_v17, %v2346_v11  ;;  %v2470_v3 = vrot.slane %v2468_v59, 4  ;;  %v2473_v35 = vrot.slane %v2471_v57, 5  ;;  %v9901_v33 = vrot.slane %v2426_v51, 4 }
  0xa1   : > { %v9903_v53 = vrot.slane %v2477_v18, 5  ;;  %v2483_v29 = vrot.slane %v2481_v19, 4  ;;  %v2492_v48 = vshrl.u32 %v7441_v25, 16  ;;  %v2463_v37 = vshll.u32 %v9882_v16, 16  ;;  %v7444_v19 = vld [vmem:[%s9024_s23 + $0x84] sm:$0xf] }
  0xa2   : > { %v2495_v2 = vshll.u32 %v7441_v25, 16  ;;  %v2501_v17 = vshll.u32 %v9899_v44, 16  ;;  %v2505_v11 = vshrl.u32 %v9899_v44, 16  ;;  %v9911_v38 = vrot.slane %v2436_v22, 4  ;;  %v8591_v25 = vld [vmem:[%s9024_s23 + $0x24] sm:$0xff]  }
  0xa3   : > { %v9913_v46 = vrot.slane %v2450_v24, 4  ;;  %v2494_v9 = vrot.slane %v2492_v48, 4  ;;  %v14042_v51 = vcombine.low %v14025_v43, %v14024_v40  ;;  %v2360_v22 = vsel %vm9055_vm2, %v9817_v20, %v9745_v50 }
  0xa4   : > { %8174 = vmatmul.mubr.bf16.gmra.mxu0 %v7333_v55  ;;  %v2460_v55 = vor.u32 %v2459_v49, %v9891_v21  ;;  %v2497_v59 = vrot.slane %v2495_v2, 5  ;;  %v9919_v57 = vrot.slane %v2501_v17, 5  ;;  %v2507_v18 = vrot.slane %v2505_v11, 4  ;;  %v9968_v17 = vld [vmem:[%s9024_s23 + $0x8c] sm:$0x1] }
  0xa5   : > { %8241 = vmatprep.mubr.bf16.mxu0 %v7478_v14  ;;  %v2474_v14 = vor.u32 %v2473_v35, %v2470_v3  ;;  %v2484_v24 = vor.u32 %v2483_v29, %v9903_v53  ;;  %v2487_v49 = vshll.u32 %v9895_v62, 16  ;;  %v2511_v40 = vshll.u32 %v9906_v26, 16  ;;  %v9942_v3 = vld [vmem:[%s9024_s23 + $0x88] sm:$0xf]  ;;  %v8588_v35 = vld [vmem:[%s9024_s23 + $0x18] sm:$0xff]  }
  0xa6   : > { %v2370_v43 = vsel %vm9055_vm2, %v9819_v1, %v9800_v12  ;;  %v2394_v50 = vsel %vm9055_vm2, %v9836_v6, %v9821_v13  ;;  %v2498_v20 = vor.u32 %v2497_v59, %v2494_v9  ;;  %v8594_v12 = vld [vmem:[%s13938_s2 + $0x1b0] sm:$0xff]   ;;  %v9949_v1 = vrot.slane %v2463_v37, 5  ;;  %v9973_v11 = vld [vmem:[%s13938_s2 + $0x1a8] sm:$0xff]  }
  0xa7   : > { %8126 = vmatmul.mubr.bf16.gmra.mxu1 %v14042_v51  ;;  %v2519_v29 = vshll.u32 %v7444_v19, 16  ;;  %v8593_v13 = vld [vmem:[%s13938_s2 + $0x170] sm:$0xff]   ;;  %v2408_v6 = vsel %vm9055_vm2, %v9879_v28, %v9812_v63  ;;  %v2418_v48 = vsel %vm9055_vm2, %v9884_v47, %v9869_v30  ;;  %v9963_v37 = vrot.slane %v2460_v55, 4 }
  0xa8   : > { %8193 = vmatprep.mubr.bf16.mxu1 %v8587_v52  ;;  %v2384_v52 = vsel %vm9055_vm2, %v9827_v58, %v9771_v60  ;;  %v2508_v60 = vor.u32 %v2507_v18, %v9919_v57  ;;  %v2516_v58 = vshrl.u32 %v7444_v19, 16  ;;  %v9965_v2 = vrot.slane %v2474_v14, 4  ;;  %v7447_v14 = vld [vmem:[%s9024_s23 + $0x90] sm:$0xf]  ;;  %v9996_v59 = vld [vmem:[%s9024_s23 + $0x94] sm:$0xf] }
  0xa9   : > { %v9975_v63 = vrot.slane %v2484_v24, 4  ;;  %v9977_v28 = vrot.slane %v2487_v49, 5  ;;  %v2525_v30 = vshll.u32 %v9942_v3, 16  ;;  %v2529_v47 = vshrl.u32 %v9942_v3, 16  ;;  %14043 = vst [vmem:[#allocation12_spill] sm:$0xff] %v9996_v59 }
  0xaa   : > { %v2442_v55 = vsel %vm9055_vm2, %v9911_v38, %v9887_v5  ;;  %v9990_v9 = vrot.slane %v2498_v20, 4  ;;  %v9992_v51 = vrot.slane %v2511_v40, 5  ;;  %v2521_v18 = vrot.slane %v2519_v29, 5  ;;  %v8597_v5 = vld [vmem:[%s13938_s2 + $0x168] sm:$0xff]  }
  0xab   : > { %v2543_v38 = vshll.u32 %v7447_v14, 16  ;;  %v2549_v24 = vshll.u32 %v9996_v59, 16  ;;  %v2553_v49 = vshrl.u32 %v9996_v59, 16  ;;  %v7481_v40 = vcombine.low %v2360_v22, %v2370_v43 }
  0xac   : > { %8242 = vmatmul.mubr.bf16.vlgmr.msra.gmra.mxu0 %v7479_v4  ;;  %v2432_v4 = vsel %vm9055_vm2, %v9901_v33, %v9846_v7  ;;  %v2535_v7 = vshll.u32 %v9968_v17, 16  ;;  %v2540_v33 = vshrl.u32 %v7447_v14, 16  ;;  %v7482_v20 = vcombine.low %v2384_v52, %v2394_v50 }
  0xad   : > { %8322 = vmatpush3.bf16.msra.mxu0 %v9698_v15  ;;  %8245 = vmatprep.mubr.bf16.mxu0 %v7480_v54  ;;  %v9998_v15 = vrot.slane %v2508_v60, 4  ;;  %v2518_v54 = vrot.slane %v2516_v58, 4  ;;  %v10007_v19 = vrot.slane %v2525_v30, 5  ;;  %v8592_v60 = vld [vmem:[%s9024_s23 + $0x30] sm:$0xff]   ;;  %v8602_v58 = vld [vmem:[%s13938_s2 + $0x1a0] sm:$0xff]   ;;  %v2545_v14 = vrot.slane %v2543_v38, 5 }
  0xae   : > { %8323 = vmatprep.subr.bf16.mxu0 %v8594_v12  ;;  %v2542_v29 = vrot.slane %v2540_v33, 4  ;;  %v2555_v22 = vrot.slane %v2553_v49, 4  ;;  %v10015_v43 = vcombine.low %v2408_v6, %v2418_v48  ;;  %v10018_v52 = vcombine.low %v2432_v4, %v2442_v55  ;;  %v7450_v30 = vld [vmem:[%s9024_s23 + $0x9c] sm:$0xf]  ;;  %v10040_v4 = vld [vmem:[%s9024_s23 + $0xa4] sm:$0x1] }
  0xaf   : > { %8194 = vmatmul.mubr.bf16.vlgmr.msra.gmra.mxu1 %v8588_v35  ;;  %v2531_v35 = vrot.slane %v2529_v47, 4  ;;  %v2522_v48 = vor.u32 %v2521_v18, %v2518_v54  ;;  %v10037_v47 = vld [vmem:[%s9024_s23 + $0xa0] sm:$0xf]  ;;  %14046 = vst [vmem:[#allocation15_spill] sm:$0xff] %v10040_v4  ;;  %v2564_v55 = vshrl.u32 %v7450_v30, 16  ;;  %v2567_v33 = vshll.u32 %v7450_v30, 16 }
  0xb0   : > { %8274 = vmatpush3.bf16.msra.mxu1 %v9693_v36  ;;  %8197 = vmatprep.mubr.bf16.mxu1 %v8591_v25  ;;  %v10013_v36 = vrot.slane %v2549_v24, 5  ;;  %v2466_v25 = vsel %vm9055_vm2, %v9963_v37, %v9949_v1  ;;  %14045 = vst [vmem:[#allocation14_spill] sm:$0xff] %v10037_v47  ;;  %v8595_v38 = vld [vmem:[%s9024_s23 + $0x3c] sm:$0xff]   ;;  %v2573_v37 = vshll.u32 %v10037_v47, 16  ;;  %v2577_v24 = vshrl.u32 %v10037_v47, 16 }
  0xb1   : > { %8275 = vmatprep.subr.bf16.mxu1 %v8593_v13  ;;  %8324 = vmatpush3.bf16.msra.mxu0 %v8594_v12  ;;  %v10029_v12 = vld [vmem:[%s9024_s23 + $0x98] sm:$0x1]  ;;  %v2532_v1 = vor.u32 %v2531_v35, %v10007_v19  ;;  %v8601_v54 = vld [vmem:[%s13938_s2 + $0x160] sm:$0xff]   ;;  %v2546_v18 = vor.u32 %v2545_v14, %v2542_v29  ;;  %v2566_v30 = vrot.slane %v2564_v55, 4  ;;  %v2569_v49 = vrot.slane %v2567_v33, 5 }
  0xb2   : > { %8325 = vmatprep.subr.bf16.mxu0 %v9973_v11  ;;  %14044 = vst [vmem:[#allocation13_spill] sm:$0xff] %v10029_v12  ;;  %v2559_v35 = vshll.u32 %v10029_v12, 16  ;;  %v2579_v6 = vrot.slane %v2577_v24, 4  ;;  %v2583_v50 = vshll.u32 %v10040_v4, 16  ;;  %v7453_v47 = vld [vmem:[%s9024_s23 + $0xa8] sm:$0xf] }
  0xb3   : > { %v8605_v29 = vld [vmem:[%s13938_s2 + $0x158] sm:$0xff]   ;;  %v10063_v14 = vrot.slane %v2522_v48, 4  ;;  %v2588_v55 = vshrl.u32 %v7453_v47, 16  ;;  %v2591_v33 = vshll.u32 %v7453_v47, 16  ;;  %v10076_v4 = vld [vmem:[%s9024_s23 + $0xb0] sm:$0x1] }
  0xb4   : > { %8246 = vmatmul.mubr.bf16.gmra.mxu0 %v7481_v40  ;;  %8276 = vmatpush3.bf16.msra.mxu1 %v8593_v13  ;;  %v8606_v13 = vld [vmem:[%s13938_s2 + $0x198] sm:$0xff]   ;;  %v2556_v40 = vor.u32 %v2555_v22, %v10013_v36  ;;  %v10065_v22 = vrot.slane %v2535_v7, 5  ;;  %v8596_v48 = vld [vmem:[%s9024_s23 + $0x48] sm:$0xff]   ;;  %v10079_v7 = vrot.slane %v2532_v1, 4  ;;  %v10081_v12 = vrot.slane %v2546_v18, 4 }
  0xb5   : > { %8249 = vmatprep.mubr.bf16.mxu0 %v7482_v20  ;;  %8277 = vmatprep.subr.bf16.mxu1 %v8597_v5  ;;  %v10056_v20 = vrot.slane %v2573_v37, 5  ;;  %v2570_v37 = vor.u32 %v2569_v49, %v2566_v30  ;;  %v10083_v59 = vrot.slane %v2559_v35, 5  ;;  %v8609_v49 = vld [vmem:[%s13938_s2 + $0x150] sm:$0xff]   ;;  %v10100_v18 = vrot.slane %v2591_v33, 5 }
  0xb6   : > { %8326 = vmatpush3.bf16.msra.mxu0 %v9973_v11  ;;  %v10068_v11 = vld [vmem:[%s9024_s23 + $0xac] sm:$0xf]  ;;  %v2607_v35 = vshll.u32 %v10076_v4, 16 }
  0xb7   : > { %8198 = vmatmul.mubr.bf16.gmra.mxu1 %v8592_v60  ;;  %8327 = vmatprep.subr.bf16.mxu0 %v8602_v58  ;;  %14047 = vst [vmem:[#allocation16_spill] sm:$0xff] %v10068_v11  ;;  %v2490_v60 = vsel %vm9055_vm2, %v9975_v63, %v9977_v28  ;;  %v2580_v24 = vor.u32 %v2579_v6, %v10056_v20  ;;  %v2597_v47 = vshll.u32 %v10068_v11, 16  ;;  %v8599_v63 = vld [vmem:[%s9024_s23 + $0x54] sm:$0xff]   ;;  %v10090_v28 = vrot.slane %v2556_v40, 4 }
  0xb8   : > { %8201 = vmatprep.mubr.bf16.mxu1 %v8595_v38  ;;  %8278 = vmatpush3.bf16.msra.mxu1 %v8597_v5  ;;  %v8610_v5 = vld [vmem:[%s13938_s2 + $0x190] sm:$0xff]   ;;  %v10092_v6 = vrot.slane %v2583_v50, 5  ;;  %v10094_v38 = vrot.slane %v2588_v55, 4  ;;  %v2601_v1 = vshrl.u32 %v10068_v11, 16  ;;  %v10109_v40 = vrot.slane %v2570_v37, 4 }
  0xb9   : > { %8279 = vmatprep.subr.bf16.mxu1 %v8601_v54  ;;  %v10111_v30 = vrot.slane %v2580_v24, 4  ;;  %v7456_v55 = vld [vmem:[%s9024_s23 + $0xb4] sm:$0xf]  ;;  %v10115_v11 = vld [vmem:[%s9024_s23 + $0xb8] sm:$0xf]  ;;  %v8613_v24 = vld [vmem:[%s13938_s2 + $0x148] sm:$0xff]  }
  0xba   : > { %8328 = vmatpush3.bf16.msra.mxu0 %v8602_v58  ;;  %v14048_v58 = vsel %vm9055_vm2, %v9913_v46, %v9891_v21  ;;  %14049 = vst [vmem:[#allocation17_spill] sm:$0xff] %v10115_v11  ;;  %v2504_v21 = vsel %vm9055_vm2, %v9990_v9, %v9919_v57  ;;  %v10127_v46 = vrot.slane %v2597_v47, 5  ;;  %v7459_v37 = vld [vmem:[%s9024_s23 + $0xc0] sm:$0xf]  ;;  %v2514_v57 = vsel %vm9055_vm2, %v9998_v15, %v9992_v51  ;;  %v10154_v47 = vld [vmem:[%s9024_s23 + $0xc4] sm:$0xf] }
  0xbb   : > { %8329 = vmatprep.subr.bf16.mxu0 %v8606_v13  ;;  %v7485_v50 = vcombine.low %v14048_v58, %v2466_v25  ;;  %v2612_v25 = vshrl.u32 %v7456_v55, 16  ;;  %v2528_v9 = vsel %vm9055_vm2, %v10063_v14, %v10007_v19  ;;  %14052 = vst [vmem:[#allocation19_spill] sm:$0xff] %v10154_v47  ;;  %v10157_v51 = vld [vmem:[%s9024_s23 + $0xc8] sm:$0x1]  ;;  %v2645_v58 = vshll.u32 %v10154_v47, 16 }
  0xbc   : > { %8250 = vmatmul.mubr.bf16.gmra.mxu0 %v10015_v43  ;;  %8280 = vmatpush3.bf16.msra.mxu1 %v8601_v54  ;;  %v14050_v43 = vsel %vm9055_vm2, %v9965_v2, %v9903_v53  ;;  %v2603_v54 = vrot.slane %v2601_v1, 4  ;;  %v2615_v53 = vshll.u32 %v7456_v55, 16  ;;  %v2621_v2 = vshll.u32 %v10115_v11, 16 }
  0xbd   : > { %8253 = vmatprep.mubr.bf16.mxu0 %v10018_v52  ;;  %v7486_v33 = vcombine.low %v14050_v43, %v2490_v60  ;;  %8281 = vmatprep.subr.bf16.mxu1 %v8605_v29  ;;  %v8614_v52 = vld [vmem:[%s13938_s2 + $0x188] sm:$0xff]   ;;  %v2625_v60 = vshrl.u32 %v10115_v11, 16  ;;  %v2614_v15 = vrot.slane %v2612_v25, 4  ;;  %v14053_v55 = vrot.slane %v9562_v32, 5 }
  0xbe   : > { %8330 = vmatpush3.bf16.msra.mxu0 %v8606_v13  ;;  %v2538_v13 = vsel %vm9055_vm2, %v10079_v7, %v10065_v22  ;;  %v2617_v19 = vrot.slane %v2615_v53, 5  ;;  %v10159_v14 = vrot.slane %v2621_v2, 5  ;;  %v2636_v22 = vshrl.u32 %v7459_v37, 16  ;;  %v8600_v2 = vld [vmem:[%s9024_s23 + $0x60] sm:$0xff]  }
  0xbf   : > { %8202 = vmatmul.mubr.bf16.gmra.mxu1 %v8596_v48  ;;  %8331 = vmatprep.subr.bf16.mxu0 %v8610_v5  ;;  %v10151_v48 = vld [vmem:[%s9024_s23 + $0xbc] sm:$0x1]  ;;  %v2627_v1 = vrot.slane %v2625_v60, 4  ;;  %v2639_v7 = vshll.u32 %v7459_v37, 16  ;;  %v10164_v43 = vrot.slane %v14053_v55, 4  ;;  %v10169_v25 = vrot.slane %v2607_v35, 5 }
  0xc0   : > { %14051 = vst [vmem:[#allocation18_spill] sm:$0xff] %v10151_v48  ;;  %8205 = vmatprep.mubr.bf16.mxu1 %v8599_v63  ;;  %8282 = vmatpush3.bf16.msra.mxu1 %v8605_v29  ;;  %v2594_v63 = vor.u32 %v10100_v18, %v10094_v38  ;;  %v2604_v29 = vor.u32 %v2603_v54, %v10127_v46  ;;  %v2649_v53 = vshrl.u32 %v10154_v47, 16  ;;  %v2631_v60 = vshll.u32 %v10151_v48, 16  ;;  %v8603_v38 = vld [vmem:[%s9024_s23 + $0x6c] sm:$0xff]   ;;  %v10189_v48 = vld [vmem:[%s9024_s23 + $0x18] sm:$0xe] }
  0xc1   : > { %8283 = vmatprep.subr.bf16.mxu1 %v8609_v49  ;;  %v2638_v37 = vrot.slane %v2636_v22, 4  ;;  %v2641_v11 = vrot.slane %v2639_v7, 5  ;;  %v10174_v55 = vrot.slane %v2645_v58, 5  ;;  %v2618_v18 = vor.u32 %v2617_v19, %v2614_v15  ;;  %v8617_v22 = vld [vmem:[%s13938_s2 + $0x140] sm:$0xff]   ;;  %v10186_v58 = vld [vmem:[%s9024_s23 + $0xc] sm:$0xe] }
  0xc2   : > { %8332 = vmatpush3.bf16.msra.mxu0 %v8610_v5  ;;  %v8618_v5 = vld [vmem:[%s13938_s2 + $0x180] sm:$0xff]   ;;  %v2628_v35 = vor.u32 %v2627_v1, %v10159_v14  ;;  %v2651_v54 = vrot.slane %v2649_v53, 4  ;;  %v2655_v47 = vshll.u32 %v10157_v51, 16  ;;  %v7487_v15 = vcombine.low %v2504_v21, %v2514_v57 }
  0xc3   : > { %8333 = vmatprep.subr.bf16.mxu0 %v8614_v52  ;;  %v2642_v7 = vor.u32 %v2641_v11, %v2638_v37  ;;  %v7488_v19 = vcombine.low %v2528_v9, %v2538_v13  ;;  %v10197_v1 = vrot.slane %v2594_v63, 4  ;;  %v10199_v11 = vrot.slane %v2604_v29, 4  ;;  %v8604_v9 = vld [vmem:[%s9024_s23 + $0x78] sm:$0xff]   ;;  %v8607_v37 = vld [vmem:[%s9024_s23 + $0x84] sm:$0xff]  }
  0xc4   : > { %8254 = vmatmul.mubr.bf16.gmra.mxu0 %v7485_v50  ;;  %8284 = vmatpush3.bf16.msra.mxu1 %v8609_v49  ;;  %v10194_v49 = vld [vmem:[%s13938_s2 + $0x238] sm:$0xff]   ;;  %v2652_v50 = vor.u32 %v2651_v54, %v10174_v55  ;;  %v10208_v53 = vrot.slane %v2628_v35, 4  ;;  %v10210_v21 = vrot.slane %v2631_v60, 5  ;;  %v10216_v63 = vrot.slane %v2655_v47, 5  ;;  %v7505_v60 = vld [vmem:[%s9024_s23 + $0x30] sm:$0xe] }
  0xc5   : > { %8257 = vmatprep.mubr.bf16.mxu0 %v7486_v33  ;;  %8285 = vmatprep.subr.bf16.mxu1 %v8613_v24  ;;  %v10204_v33 = vld [vmem:[%s13938_s2 + $0x1f8] sm:$0xff]   ;;  %v10214_v13 = vrot.slane %v2642_v7, 4  ;;  %v3050_v29 = vrot.slane %v9636_v42, 5  ;;  %v14054_v35 = vld [vmem:[#allocation8_spill] sm:$0xff]  ;;  %v7521_v47 = vrot.slane %v7505_v60, 9  ;;  %v14057_v60 = vld [vmem:[#allocation9_spill] sm:$0xff] }
  0xc6   : > { %8334 = vmatpush3.bf16.msra.mxu0 %v8614_v52  ;;  %v10206_v52 = vrot.slane %v2618_v18, 4  ;;  %v14055_v7 = vld [vmem:[#allocation11_spill] sm:$0xff]  ;;  %v3071_v18 = vrot.slane %v9719_v0, 5  ;;  %v2586_v0 = vsel %vm9055_vm2, %v10111_v30, %v10092_v6  ;;  %v3085_v30 = vrot.slane %v9810_v41, 5 }
  0xc7   : > { %8206 = vmatmul.mubr.bf16.gmra.mxu1 %v8600_v2  ;;  %8335 = vmatprep.subr.bf16.mxu0 %v8618_v5  ;;  %v3068_v57 = vrot.slane %v14055_v7, 5  ;;  %v14056_v2 = vld [vmem:[#allocation10_spill] sm:$0xff] }
  0xc8   : > { %8209 = vmatprep.mubr.bf16.mxu1 %v8603_v38  ;;  %8286 = vmatpush3.bf16.msra.mxu1 %v8613_v24  ;;  %v10221_v24 = vrot.slane %v2652_v50, 4  ;;  %v3054_v38 = vrot.slane %v9653_v61, 5  ;;  %v2552_v50 = vsel %vm9055_vm2, %v10081_v12, %v10013_v36  ;;  %v3075_v54 = vrot.slane %v14056_v2, 5  ;;  %v7506_v12 = vld [vmem:[%s9024_s23 + $0x3c] sm:$0xe] }
  0xc9   : > { %8287 = vmatprep.subr.bf16.mxu1 %v8617_v22  ;;  %v10243_v7 = vsel %vm9366_vm5, %v7521_v47, %v3068_v57  ;;  %v3070_v36 = vrot.slane %v3068_v57, 4  ;;  %v7522_v2 = vrot.slane %v7506_v12, 9  ;;  %v8608_v47 = vld [vmem:[%s9024_s23 + $0x90] sm:$0xff]   ;;  %v3092_v12 = vrot.slane %v9830_v34, 5 }
  0xca   : > { %8336 = vmatpush3.bf16.msra.mxu0 %v8618_v5  ;;  %v2562_v5 = vsel %vm9055_vm2, %v10090_v28, %v10083_v59  ;;  %v2576_v59 = vsel %vm9055_vm2, %v10109_v40, %v10056_v20  ;;  %v3077_v28 = vrot.slane %v3075_v54, 4  ;;  %v3082_v20 = vrot.slane %v9769_v39, 5 }
  0xcb   : > { %8417 = vmatprep.subr.bf16.mxu0 %v10194_v49  ;;  %v10257_v57 = vsel %vm9366_vm5, %v3070_v36, %v3071_v18  ;;  %v7490_v18 = vcombine.low %v2576_v59, %v2586_v0  ;;  %v10272_v39 = vsel %vm9366_vm5, %v7522_v2, %v3075_v54  ;;  %v2600_v36 = vsel %vm9055_vm2, %v10197_v1, %v10127_v46  ;;  %v7508_v54 = vld [vmem:[%s9024_s23 + $0x54] sm:$0xe] }
  0xcc   : > { %8258 = vmatmul.mubr.bf16.gmra.mxu0 %v7487_v15  ;;  %8288 = vmatpush3.bf16.msra.mxu1 %v8617_v22  ;;  %v3064_v15 = vrot.slane %v14057_v60, 5  ;;  %v3078_v22 = vrot.slane %v9748_v45, 5  ;;  %v7553_v40 = vcombine.low %v10243_v7, %v10257_v57  ;;  %v7507_v45 = vld [vmem:[%s9024_s23 + $0x48] sm:$0xe]  ;;  %v2610_v46 = vsel %vm9055_vm2, %v10199_v11, %v10169_v25 }
  0xcd   : > { %8261 = vmatprep.mubr.bf16.mxu0 %v7488_v19  ;;  %8369 = vmatprep.subr.bf16.mxu1 %v10204_v33  ;;  %v7489_v19 = vcombine.low %v2552_v50, %v2562_v5  ;;  %v3084_v50 = vrot.slane %v3082_v20, 4  ;;  %v8611_v5 = vld [vmem:[%s9024_s23 + $0x9c] sm:$0xff]   ;;  %v3096_v2 = vrot.slane %v9834_v31, 5  ;;  %v2624_v34 = vsel %vm9055_vm2, %v10206_v52, %v10159_v14 }
  0xce   : > { %v10264_v6 = vsel %vm9366_vm5, %v3077_v28, %v3078_v22  ;;  %v7524_v28 = vrot.slane %v7508_v54, 9  ;;  %v7509_v22 = vld [vmem:[%s9024_s23 + $0x60] sm:$0xe]  ;;  %v3099_v25 = vrot.slane %v9882_v16, 5  ;;  %v2634_v11 = vsel %vm9055_vm2, %v10208_v53, %v10210_v21 }
  0xcf   : > { %8210 = vmatmul.mubr.bf16.gmra.mxu1 %v8604_v9  ;;  %v3089_v9 = vrot.slane %v9804_v10, 5  ;;  %v7554_v41 = vcombine.low %v10272_v39, %v10264_v6  ;;  %v10287_v59 = vsel %vm9366_vm5, %v3084_v50, %v3085_v30  ;;  %v3103_v14 = vrot.slane %v9874_v8, 5  ;;  %v7655_v39 = vld [vmem:[%s9024_s23 + $0x3c] sm:$0xf] }
  0xd0   : > { %8213 = vmatprep.mubr.bf16.mxu1 %v8607_v37  ;;  %v7523_v37 = vrot.slane %v7507_v45, 9  ;;  %v3098_v45 = vrot.slane %v3096_v2, 4  ;;  %v7491_v52 = vcombine.low %v2600_v36, %v2610_v46  ;;  %v3106_v8 = vrot.slane %v9895_v62, 5  ;;  %v7511_v36 = vld [vmem:[%s9024_s23 + $0x78] sm:$0xe] }
  0xd1   : > { %v3091_v0 = vrot.slane %v3089_v9, 4  ;;  %v10314_v31 = vsel %vm9366_vm5, %v7524_v28, %v3089_v9  ;;  %v3105_v9 = vrot.slane %v3103_v14, 4  ;;  %v3110_v54 = vrot.slane %v9899_v44, 5 }
  0xd2   : > { %v10283_v10 = vsel %vm9366_vm5, %v7523_v37, %v3082_v20  ;;  %v7525_v20 = vrot.slane %v7509_v22, 9  ;;  %v10326_v53 = vsel %vm9366_vm5, %v3098_v45, %v3099_v25  ;;  %v7492_v37 = vcombine.low %v2624_v34, %v2634_v11 }
  0xd3   : > { %v10342_v46 = vsel %vm9366_vm5, %v3105_v9, %v3106_v8  ;;  %v7527_v62 = vrot.slane %v7511_v36, 9  ;;  %v3117_v28 = vrot.slane %v9942_v3, 5  ;;  %v3112_v44 = vrot.slane %v3110_v54, 4  ;;  %v8619_v8 = vld [vmem:[%s9024_s23 + $0x18] sm:$0xff]   ;;  %v14062_v36 = vld [vmem:[#allocation14_spill] sm:$0xff] }
  0xd4   : > { %8262 = vmatmul.mubr.bf16.gmra.mxu0 %v7489_v19  ;;  %v10305_v19 = vsel %vm9366_vm5, %v3091_v0, %v3092_v12  ;;  %v10321_v16 = vsel %vm9366_vm5, %v7525_v20, %v3096_v2  ;;  %v3113_v0 = vrot.slane %v9906_v26, 5  ;;  %v3120_v26 = vrot.slane %v9968_v17, 5  ;;  %v7512_v20 = vld [vmem:[%s9024_s23 + $0x84] sm:$0xe] }
  0xd5   : > { %8265 = vmatprep.mubr.bf16.mxu0 %v7490_v18  ;;  %v7510_v18 = vld [vmem:[%s9024_s23 + $0x6c] sm:$0xe]  ;;  %v2648_v2 = vsel %vm9055_vm2, %v10214_v13, %v10174_v55  ;;  %v10354_v34 = vsel %vm9366_vm5, %v7527_v62, %v3110_v54  ;;  %v2658_v3 = vsel %vm9055_vm2, %v10221_v24, %v10216_v63  ;;  %v7528_v25 = vrot.slane %v7512_v20, 9  ;;  %v14060_v63 = vld [vmem:[#allocation12_spill] sm:$0xff] }
  0xd6   : > { %v7526_v21 = vrot.slane %v7510_v18, 9  ;;  %v10363_v17 = vsel %vm9366_vm5, %v3112_v44, %v3113_v0  ;;  %v3119_v11 = vrot.slane %v3117_v28, 4  ;;  %v14058_v45 = vrot.slane %v9562_v32, 5  ;;  %v7513_v18 = vld [vmem:[%s9024_s23 + $0x90] sm:$0xe] }
  0xd7   : > { %8214 = vmatmul.mubr.bf16.gmra.mxu1 %v8608_v47  ;;  %v8612_v47 = vld [vmem:[%s9024_s23 + $0xa8] sm:$0xff]   ;;  %v14059_v55 = vrot.slane %v10186_v58, 9  ;;  %v3124_v24 = vrot.slane %v14060_v63, 5  ;;  %v10380_v32 = vsel %vm9366_vm5, %v7528_v25, %v3117_v28  ;;  %v3131_v54 = vrot.slane %v14062_v36, 5 }
  0xd8   : > { %8217 = vmatprep.mubr.bf16.mxu1 %v8611_v5  ;;  %v8615_v5 = vld [vmem:[%s9024_s23 + $0xb4] sm:$0xff]   ;;  %v10338_v12 = vsel %vm9366_vm5, %v7526_v21, %v3103_v14  ;;  %v7504_v14 = vld [vmem:[%s9024_s23 + $0x24] sm:$0xe]  ;;  %v14061_v21 = vld [vmem:[#allocation13_spill] sm:$0xff]  ;;  %v10384_v58 = vsel %vm9366_vm5, %v3119_v11, %v3120_v26  ;;  %v7493_v0 = vcombine.low %v2648_v2, %v2658_v3  ;;  %v3051_v28 = vsel %vm9366_vm5, %v10164_v43, %v3050_v29 }
  0xd9   : > { %v3048_v13 = vsel %vm9366_vm5, %v14059_v55, %v14058_v45  ;;  %v3127_v9 = vrot.slane %v14061_v21, 5  ;;  %v3126_v44 = vrot.slane %v3124_v24, 4  ;;  %v8616_v45 = vld [vmem:[%s9024_s23 + $0xc0] sm:$0xff]   ;;  %v3056_v26 = vrot.slane %v3054_v38, 4  ;;  %v7514_v2 = vld [vmem:[%s9024_s23 + $0x9c] sm:$0xe] }
  0xda   : > { %v3133_v3 = vrot.slane %v3131_v54, 4  ;;  %v7530_v11 = vrot.slane %v7514_v2, 9  ;;  %v14064_v55 = vld [vmem:[#allocation16_spill] sm:$0xff]  ;;  %v7515_v63 = vld [vmem:[%s9024_s23 + $0xa8] sm:$0xe]  ;;  %v7550_v21 = vcombine.low %v3048_v13, %v3051_v28  ;;  %v14068_v28 = vrot.slane %v10189_v48, 9 }
  0xdb   : > { %v10405_v25 = vsel %vm9366_vm5, %v3126_v44, %v3127_v9  ;;  %v3138_v42 = vrot.slane %v14064_v55, 5  ;;  %v3990_v50 = vshll.u32 %v7655_v39, 16 }
  0xdc   : > { %8266 = vmatmul.mubr.bf16.gmra.mxu0 %v7491_v52  ;;  %v10418_v9 = vsel %vm9366_vm5, %v7530_v11, %v3131_v54  ;;  %v7516_v54 = vld [vmem:[%s9024_s23 + $0xb4] sm:$0xe]  ;;  %v7735_v52 = vld [vmem:[%s9024_s23 + $0x24] sm:$0xe] }
  0xdd   : > { %8269 = vmatprep.mubr.bf16.mxu0 %v7492_v37  ;;  %v7529_v37 = vrot.slane %v7513_v18, 9  ;;  %v7520_v18 = vrot.slane %v7504_v14, 9  ;;  %v3140_v36 = vrot.slane %v3138_v42, 4  ;;  %v14065_v14 = vrot.slane %v14054_v35, 5 }
  0xde   : > { %v7532_v55 = vrot.slane %v7516_v54, 9 }
  0xdf   : > { %8218 = vmatmul.mubr.bf16.gmra.mxu1 %v8612_v47  ;;  %v14063_v47 = vld [vmem:[#allocation15_spill] sm:$0xff]  ;;  %v3063_v44 = vrot.slane %v14065_v14, 4  ;;  %v14070_v61 = vmov %v14065_v14  ;;  %v3155_v14 = vrot.slane %v10157_v51, 5  ;;  %v10521_v51 = vld [vmem:[%s9024_s23 + $0x2c] sm:$0x1] }
  0xe0   : > { %8221 = vmatprep.mubr.bf16.mxu1 %v8615_v5  ;;  %v3134_v20 = vrot.slane %v14063_v47, 5  ;;  %v10400_v5 = vsel %vm9366_vm5, %v7529_v37, %v3124_v24  ;;  %v3141_v24 = vrot.slane %v10076_v4, 5  ;;  %v7531_v37 = vrot.slane %v7515_v63, 9 }
  0xe1   : > { %v14069_v63 = vrot.slane %v9667_v23, 5  ;;  %v3062_v48 = vsel %vm9366_vm5, %v7520_v18, %v14070_v61  ;;  %v3065_v23 = vsel %vm9366_vm5, %v3063_v44, %v3064_v15  ;;  %v7646_v44 = vld [vmem:[%s9024_s23 + $0x18] sm:$0xf]  ;;  %v3958_v62 = vshll.u32 %v10521_v51, 16 }
  0xe2   : > { %v10412_v29 = vsel %vm9366_vm5, %v3133_v3, %v3134_v20  ;;  %v14066_v20 = vld [vmem:[#allocation17_spill] sm:$0xff]  ;;  %v10427_v4 = vsel %vm9366_vm5, %v7531_v37, %v3138_v42  ;;  %v10431_v13 = vsel %vm9366_vm5, %v3140_v36, %v3141_v24  ;;  %v3055_v3 = vsel %vm9366_vm5, %v14068_v28, %v3054_v38  ;;  %v7517_v37 = vld [vmem:[%s9024_s23 + $0xc0] sm:$0xe]  ;;  %v14071_v38 = vld [vmem:[#allocation19_spill] sm:$0xff] }
  0xe3   : > { %v3145_v2 = vrot.slane %v14066_v20, 5  ;;  %v3058_v24 = vsel %vm9366_vm5, %v3056_v26, %v14069_v63  ;;  %v3152_v36 = vrot.slane %v14071_v38, 5  ;;  %v7533_v18 = vrot.slane %v7517_v37, 9  ;;  %v8626_v20 = vld [vmem:[%s13938_s2 + $0x230] sm:$0xff]   ;;  %v7649_v37 = vld [vmem:[%s9024_s23 + $0x24] sm:$0xf] }
  0xe4   : > { %8270 = vmatmul.mubr.bf16.gmra.mxu0 %v7493_v0  ;;  %v7551_v54 = vcombine.low %v3055_v3, %v3058_v24  ;;  %v3915_v28 = vshrl.u32 %v7646_v44, 16  ;;  %v8625_v3 = vld [vmem:[%s13938_s2 + $0x1f0] sm:$0xff]  }
  0xe5   : > { %8337 = vmatprep.mubr.bf16.mxu0 %v8619_v8  ;;  %v14067_v8 = vld [vmem:[#allocation18_spill] sm:$0xff]  ;;  %v3147_v42 = vrot.slane %v3145_v2, 4  ;;  %v10462_v26 = vsel %vm9366_vm5, %v7532_v55, %v3145_v2  ;;  %v3154_v60 = vrot.slane %v3152_v36, 4  ;;  %v10475_v15 = vsel %vm9366_vm5, %v7533_v18, %v3152_v36  ;;  %v8629_v18 = vld [vmem:[%s13938_s2 + $0x1e8] sm:$0xff]  }
  0xe6   : > { %v3148_v0 = vrot.slane %v14067_v8, 5  ;;  %v7552_v2 = vcombine.low %v3062_v48, %v3065_v23  ;;  %v3918_v55 = vshll.u32 %v7646_v44, 16  ;;  %v3917_v61 = vrot.slane %v3915_v28, 4  ;;  %v8624_v23 = vld [vmem:[%s9024_s23 + $0x3c] sm:$0xff]   ;;  %v7734_v28 = vld [vmem:[%s9024_s23 + $0x18] sm:$0xe] }
  0xe7   : > { %8222 = vmatmul.mubr.bf16.gmra.mxu1 %v8616_v45  ;;  %v8620_v45 = vld [vmem:[%s9024_s23 + $0x24] sm:$0xff]   ;;  %v10480_v8 = vsel %vm9366_vm5, %v3154_v60, %v3155_v14  ;;  %v3939_v44 = vshrl.u32 %v7649_v37, 16  ;;  %v7750_v11 = vrot.slane %v7734_v28, 9 }
  0xe8   : > { %8289 = vmatprep.mubr.bf16.mxu1 %v7550_v21  ;;  %v8623_v21 = vld [vmem:[%s9024_s23 + $0x30] sm:$0xff]   ;;  %v10466_v35 = vsel %vm9366_vm5, %v3147_v42, %v3148_v0  ;;  %v10483_v0 = vld [vmem:[%s9024_s23 + $0x1c] sm:$0xf]  ;;  %v8630_v42 = vld [vmem:[%s13938_s2 + $0x228] sm:$0xff]   ;;  %v3920_v48 = vrot.slane %v3918_v55, 5  ;;  %v3942_v55 = vshll.u32 %v7649_v37, 16 }
  0xe9   : > { %v3924_v24 = vshll.u32 %v10483_v0, 16  ;;  %v10503_v14 = vld [vmem:[%s9024_s23 + $0x28] sm:$0xf]  ;;  %v4686_v60 = vrot.slane %v10483_v0, 5  ;;  %v3941_v63 = vrot.slane %v3939_v44, 4  ;;  %v8633_v37 = vld [vmem:[%s13938_s2 + $0x1e0] sm:$0xff]  }
  0xeb   : > { %v10500_v38 = vrot.slane %v3924_v24, 5  ;;  %v3921_v24 = vor.u32 %v3920_v48, %v3917_v61  ;;  %v4688_v47 = vrot.slane %v4686_v60, 4  ;;  %v7652_v48 = vld [vmem:[%s9024_s23 + $0x30] sm:$0xf]  ;;  %v10561_v57 = vsel %vm9366_vm5, %v7750_v11, %v4686_v60 }
  0xec   : > { %8338 = vmatmul.mubr.bf16.vlgmr.msra.gmra.mxu0 %v8620_v45  ;;  %v3928_v45 = vshrl.u32 %v10483_v0, 16  ;;  %v8634_v0 = vld [vmem:[%s13938_s2 + $0x220] sm:$0xff]   ;;  %v4696_v60 = vrot.slane %v10521_v51, 5 }
  0xed   : > { %8418 = vmatpush3.bf16.msra.mxu0 %v10194_v49  ;;  %8341 = vmatprep.mubr.bf16.mxu0 %v8623_v21  ;;  %v10497_v49 = vld [vmem:[%s9024_s23 + $0x20] sm:$0x1]  ;;  %v8627_v21 = vld [vmem:[%s9024_s23 + $0x48] sm:$0xff]   ;;  %v10538_v28 = vrot.slane %v3921_v24, 4 }
  0xee   : > { %8419 = vmatprep.subr.bf16.mxu0 %v8626_v20  ;;  %v3930_v36 = vrot.slane %v3928_v45, 4  ;;  %v4689_v61 = vrot.slane %v10497_v49, 5 }
  0xef   : > { %8290 = vmatmul.mubr.bf16.vlgmr.msra.gmra.mxu1 %v7551_v54  ;;  %v3934_v54 = vshll.u32 %v10497_v49, 16 }
  0xf0   : > { %8370 = vmatpush3.bf16.msra.mxu1 %v10204_v33  ;;  %8293 = vmatprep.mubr.bf16.mxu1 %v7552_v2  ;;  %v3948_v33 = vshll.u32 %v10503_v14, 16  ;;  %v3952_v2 = vshrl.u32 %v10503_v14, 16  ;;  %v3931_v45 = vor.u32 %v3930_v36, %v10500_v38 }
  0xf1   : > { %8371 = vmatprep.subr.bf16.mxu1 %v8625_v3  ;;  %8420 = vmatpush3.bf16.msra.mxu0 %v8626_v20  ;;  %v3944_v20 = vrot.slane %v3942_v55, 5  ;;  %v10530_v44 = vrot.slane %v3934_v54, 5  ;;  %v10536_v55 = vld [vmem:[%s9024_s23 + $0x34] sm:$0xf] }
  0xf2   : > { %8421 = vmatprep.subr.bf16.mxu0 %v8630_v42  ;;  %v10532_v43 = vrot.slane %v3948_v33, 5  ;;  %v10540_v49 = vrot.slane %v3931_v45, 4  ;;  %v3966_v33 = vshll.u32 %v7652_v48, 16  ;;  %v3972_v24 = vshll.u32 %v10536_v55, 16 }
  0xf3   : > { %v3976_v6 = vshrl.u32 %v10536_v55, 16  ;;  %v7751_v45 = vrot.slane %v7735_v52, 9  ;;  %v10591_v52 = vld [vmem:[%s9024_s23 + $0x38] sm:$0x1] }
  0xf4   : > { %8342 = vmatmul.mubr.bf16.gmra.mxu0 %v8624_v23  ;;  %8372 = vmatpush3.bf16.msra.mxu1 %v8625_v3  ;;  %v3954_v23 = vrot.slane %v3952_v2, 4  ;;  %v4693_v3 = vrot.slane %v10503_v14, 5  ;;  %v3963_v14 = vshrl.u32 %v7652_v48, 16  ;;  %v8631_v2 = vld [vmem:[%s9024_s23 + $0x60] sm:$0xff]  }
  0xf5   : > { %8345 = vmatprep.mubr.bf16.mxu0 %v8627_v21  ;;  %8373 = vmatprep.subr.bf16.mxu1 %v8629_v18  ;;  %v3945_v21 = vor.u32 %v3944_v20, %v3941_v63  ;;  %v8628_v63 = vld [vmem:[%s9024_s23 + $0x54] sm:$0xff]   ;;  %v10576_v20 = vld [vmem:[%s9024_s23 + $0x40] sm:$0xf] }
  0xf6   : > { %v10528_v36 = vpop.f32.mrf.mxu0  ;;  %8422 = vmatpush3.bf16.msra.mxu0 %v8630_v42  ;;  %v10547_v54 = vpop.f32.mrf.mxu1  ;;  %v8638_v42 = vld [vmem:[%s13938_s2 + $0x218] sm:$0xff]   ;;  %v4695_v11 = vrot.slane %v4693_v3, 4  ;;  %v3965_v22 = vrot.slane %v3963_v14, 4  ;;  %v4000_v30 = vshrl.u32 %v10576_v20, 16  ;;  %v8641_v14 = vld [vmem:[%s13938_s2 + $0x1d0] sm:$0xff]  }
  0xf7   : > { %14072 = vst [vmem:[#allocation8_spill] sm:$0xff] %v10528_v36  ;;  %8294 = vmatmul.mubr.bf16.gmra.mxu1 %v7553_v40  ;;  %8423 = vmatprep.subr.bf16.mxu0 %v8634_v0  ;;  %14073 = vst [vmem:[#allocation11_spill] sm:$0xff] %v10547_v54  ;;  %v10565_v40 = vsel %vm9366_vm5, %v4688_v47, %v4689_v61  ;;  %v3927_v47 = vsel %vm9055_vm2, %v10538_v28, %v10500_v38  ;;  %v10586_v48 = vrot.slane %v3945_v21, 4 }
  0xf8   : > { %8297 = vmatprep.mubr.bf16.mxu1 %v7554_v41  ;;  %8374 = vmatpush3.bf16.msra.mxu1 %v8629_v18  ;;  %v10557_v7 = vpop.f32.mrf.mxu0  ;;  %v8637_v41 = vld [vmem:[%s13938_s2 + $0x1d8] sm:$0xff]   ;;  %v3955_v18 = vor.u32 %v3954_v23, %v10532_v43  ;;  %v3937_v61 = vsel %vm9055_vm2, %v10540_v49, %v10530_v44  ;;  %v10588_v23 = vrot.slane %v3958_v62, 5  ;;  %v10593_v51 = vpop.f32.mrf.mxu1  ;;  %v3968_v38 = vrot.slane %v3966_v33, 5 }
  0xf9   : > { %14074 = vst [vmem:[#allocation10_spill] sm:$0xff] %v10557_v7  ;;  %8375 = vmatprep.subr.bf16.mxu1 %v8633_v37  ;;  %14075 = vst [vmem:[#allocation9_spill] sm:$0xff] %v10593_v51  ;;  %v3987_v28 = vshrl.u32 %v7655_v39, 16  ;;  %v10600_v62 = vrot.slane %v3972_v24, 5  ;;  %v3978_v49 = vrot.slane %v3976_v6, 4  ;;  %v3996_v21 = vshll.u32 %v10576_v20, 16 }
  0xfa   : > { %8424 = vmatpush3.bf16.msra.mxu0 %v8634_v0  ;;  %v8642_v0 = vld [vmem:[%s13938_s2 + $0x210] sm:$0xff]   ;;  %v10598_v44 = vpop.f32.mrf.mxu0  ;;  %v10607_v33 = vrot.slane %v3955_v18, 4  ;;  %v3982_v24 = vshll.u32 %v10591_v52, 16  ;;  %v10619_v6 = vld [vmem:[%s9024_s23 + $0x44] sm:$0x1]  ;;  %v3992_v39 = vrot.slane %v3990_v50, 5 }
  0xfb   : > { %8425 = vmatprep.subr.bf16.mxu0 %v8638_v42  ;;  %14076 = vst [vmem:[#allocation12_spill] sm:$0xff] %v10598_v44  ;;  %v10621_v18 = vrot.slane %v3996_v21, 5  ;;  %v4002_v1 = vrot.slane %v4000_v30, 4  ;;  %v8632_v50 = vld [vmem:[%s9024_s23 + $0x6c] sm:$0xff]   ;;  %v7658_v21 = vld [vmem:[%s9024_s23 + $0x48] sm:$0xf] }
  0xfc   : > { %8346 = vmatmul.mubr.bf16.gmra.mxu0 %v8628_v63  ;;  %8376 = vmatpush3.bf16.msra.mxu1 %v8633_v37  ;;  %v10611_v37 = vsel %vm9366_vm5, %v7751_v45, %v4693_v3  ;;  %v10615_v63 = vsel %vm9366_vm5, %v4695_v11, %v4696_v60  ;;  %v14077_v3 = vcombine.low %v10283_v10, %v10287_v59  ;;  %v10626_v45 = vpop.f32.mrf.mxu1  ;;  %v8646_v11 = vld [vmem:[%s13938_s2 + $0x208] sm:$0xff]   ;;  %v10635_v30 = vpop.f32.mrf.mxu0  ;;  %v4700_v10 = vrot.slane %v10536_v55, 5  ;;  %v10691_v7 = vld [vmem:[%s9024_s23 + $0x58] sm:$0xf] }
  0xfd   : > { %8349 = vmatprep.mubr.bf16.mxu0 %v8631_v2  ;;  %8377 = vmatprep.subr.bf16.mxu1 %v8637_v41  ;;  %v3989_v2 = vrot.slane %v3987_v28, 4  ;;  %14078 = vst [vmem:[#allocation13_spill] sm:$0xff] %v10626_v45  ;;  %v3969_v60 = vor.u32 %v3968_v38, %v3965_v22  ;;  %14080 = vst [vmem:[#allocation14_spill] sm:$0xff] %v10635_v30  ;;  %v3979_v59 = vor.u32 %v3978_v49, %v10600_v62  ;;  %v8635_v22 = vld [vmem:[%s9024_s23 + $0x78] sm:$0xff]   ;;  %v10672_v49 = vld [vmem:[%s13938_s2 + $0x1c0] sm:$0xff]  }
  0xfe   : > { %8426 = vmatpush3.bf16.msra.mxu0 %v8638_v42  ;;  %v14079_v42 = vcombine.low %v10314_v31, %v10305_v19  ;;  %v4006_v28 = vshll.u32 %v10619_v6, 16  ;;  %v8645_v19 = vld [vmem:[%s13938_s2 + $0x1c8] sm:$0xff]   ;;  %v10646_v31 = vcombine.low %v3927_v47, %v3937_v61  ;;  %v4003_v61 = vor.u32 %v4002_v1, %v10621_v18  ;;  %v7737_v45 = vld [vmem:[%s9024_s23 + $0x3c] sm:$0xe]  ;;  %v10667_v51 = vpop.f32.mrf.mxu1 }
  0xff   : > { %8298 = vmatmul.mubr.bf16.gmra.mxu1 %v14077_v3  ;;  %8427 = vmatprep.subr.bf16.mxu0 %v8642_v0  ;;  %v7736_v3 = vld [vmem:[%s9024_s23 + $0x30] sm:$0xe]  ;;  %v3993_v47 = vor.u32 %v3992_v39, %v3989_v2  ;;  %14081 = vst [vmem:[#allocation15_spill] sm:$0xff] %v10667_v51  ;;  %v4707_v1 = vrot.slane %v10576_v20, 5  ;;  %v4011_v55 = vshrl.u32 %v7658_v21, 16  ;;  %v4014_v2 = vshll.u32 %v7658_v21, 16 }
 0x100   : > { %8301 = vmatprep.mubr.bf16.mxu1 %v14079_v42  ;;  %8378 = vmatpush3.bf16.msra.mxu1 %v8637_v41  ;;  %v10659_v42 = vrot.slane %v3982_v24, 5  ;;  %v10665_v41 = vld [vmem:[%s9024_s23 + $0x4c] sm:$0xf]  ;;  %v10677_v24 = vrot.slane %v3969_v60, 4  ;;  %v10683_v38 = vrot.slane %v3979_v59, 4  ;;  %v10685_v51 = vrot.slane %v4006_v28, 5 }
 0x101   : > { %8379 = vmatprep.subr.bf16.mxu1 %v8641_v14  ;;  %v10681_v39 = vpop.f32.mrf.mxu0  ;;  %v7752_v54 = vrot.slane %v7736_v3, 9  ;;  %v4703_v30 = vrot.slane %v10591_v52, 5  ;;  %v7661_v60 = vld [vmem:[%s9024_s23 + $0x54] sm:$0xf]  ;;  %v7753_v20 = vrot.slane %v7737_v45, 9  ;;  %v4013_v44 = vrot.slane %v4011_v55, 4 }
 0x102   : > { %8428 = vmatpush3.bf16.msra.mxu0 %v8642_v0  ;;  %v8650_v0 = vld [vmem:[%s13938_s2 + $0x200] sm:$0xff]   ;;  %14082 = vst [vmem:[#allocation16_spill] sm:$0xff] %v10681_v39  ;;  %v4016_v21 = vrot.slane %v4014_v2, 5  ;;  %v4004_v59 = vrot.slane %v4003_v61, 4  ;;  %v4702_v28 = vrot.slane %v4700_v10, 4  ;;  %v4024_v3 = vshrl.u32 %v10665_v41, 16 }
 0x103   : > { %8429 = vmatprep.subr.bf16.mxu0 %v8646_v11  ;;  %v14083_v52 = vcombine.low %v10321_v16, %v10326_v53  ;;  %v4710_v61 = vrot.slane %v10619_v6, 5  ;;  %v10706_v55 = vld [vmem:[%s9024_s23 + $0x50] sm:$0x1]  ;;  %v14085_v16 = vcombine.low %v10338_v12, %v10342_v46  ;;  %v10711_v53 = vpop.f32.mrf.mxu0  ;;  %v4038_v39 = vshll.u32 %v7661_v60, 16 }
 0x104   : > { %8350 = vmatmul.mubr.bf16.gmra.mxu0 %v8632_v50  ;;  %8380 = vmatpush3.bf16.msra.mxu1 %v8641_v14  ;;  %v4020_v50 = vshll.u32 %v10665_v41, 16  ;;  %v3994_v14 = vrot.slane %v3993_v47, 4  ;;  %v4709_v47 = vrot.slane %v4707_v1, 4  ;;  %v4017_v2 = vor.u32 %v4016_v21, %v4013_v44  ;;  %14086 = vst [vmem:[#allocation18_spill] sm:$0xff] %v10711_v53  ;;  %v8639_v44 = vld [vmem:[%s9024_s23 + $0x90] sm:$0xff]  }
 0x105   : > { %8353 = vmatprep.mubr.bf16.mxu0 %v8635_v22  ;;  %8381 = vmatprep.subr.bf16.mxu1 %v8645_v19  ;;  %v8636_v22 = vld [vmem:[%s9024_s23 + $0x84] sm:$0xff]   ;;  %v10698_v45 = vpop.f32.mrf.mxu1  ;;  %v4044_v36 = vshll.u32 %v10691_v7, 16  ;;  %v3985_v12 = vsel %vm9055_vm2, %v10683_v38, %v10659_v42  ;;  %v10733_v46 = vsel %vm9366_vm5, %v7752_v54, %v4700_v10  ;;  %v10745_v21 = vsel %vm9366_vm5, %v4702_v28, %v4703_v30  ;;  %v7742_v53 = vld [vmem:[%s9024_s23 + $0x78] sm:$0xe] }
 0x106   : > { %8430 = vmatpush3.bf16.msra.mxu0 %v8646_v11  ;;  %14084 = vst [vmem:[#allocation17_spill] sm:$0xff] %v10698_v45  ;;  %v3975_v11 = vsel %vm9055_vm2, %v10677_v24, %v10600_v62  ;;  %v4035_v45 = vshrl.u32 %v7661_v60, 16  ;;  %v4048_v62 = vshrl.u32 %v10691_v7, 16  ;;  %v10735_v6 = vrot.slane %v4020_v50, 5  ;;  %v5118_v30 = vld [vmem:[%s10723_s20] sm:$0xff] }
 0x107   : > { %8302 = vmatmul.mubr.bf16.gmra.mxu1 %v14083_v52  ;;  %8431 = vmatprep.subr.bf16.mxu0 %v8650_v0  ;;  %v10714_v52 = vld [vmem:[%s9024_s23 + $0x5c] sm:$0x1]  ;;  %v3999_v24 = vsel %vm9055_vm2, %v3994_v14, %v10621_v18  ;;  %v4009_v60 = vsel %vm9055_vm2, %v4004_v59, %v10685_v51  ;;  %v10749_v54 = vsel %vm9366_vm5, %v7753_v20, %v4707_v1  ;;  %v10751_v10 = vpop.f32.mrf.mxu1  ;;  %v10757_v18 = vrot.slane %v4017_v2, 4  ;;  %v10765_v1 = vpop.f32.mrf.mxu0  ;;  %v10771_v28 = vld [vmem:[%s9024_s23 + $0x48] sm:$0xe] }
 0x108   : > { %8305 = vmatprep.mubr.bf16.mxu1 %v14085_v16  ;;  %8382 = vmatpush3.bf16.msra.mxu1 %v8645_v19  ;;  %v4026_v19 = vrot.slane %v4024_v3, 4  ;;  %14087 = vst [vmem:[#allocation19_spill] sm:$0xff] %v10751_v10  ;;  %v10755_v38 = vsel %vm9366_vm5, %v4709_v47, %v4710_v61  ;;  %v4030_v42 = vshll.u32 %v10706_v55, 16  ;;  %v4054_v51 = vshll.u32 %v10714_v52, 16  ;;  %14088 = vst [vmem:[#allocation20_spill] sm:$0xff] %v10765_v1 }
 0x109   : > { %8383 = vmatprep.subr.bf16.mxu1 %v10672_v49  ;;  %v4037_v20 = vrot.slane %v4035_v45, 4  ;;  %v4040_v50 = vrot.slane %v4038_v39, 5  ;;  %v10768_v14 = vrot.slane %v4044_v36, 5  ;;  %v4050_v59 = vrot.slane %v4048_v62, 4  ;;  %v7664_v47 = vld [vmem:[%s9024_s23 + $0x60] sm:$0xf]  ;;  %v10802_v2 = vpop.f32.mrf.mxu1 }
 0x10a   : > { %8432 = vmatpush3.bf16.msra.mxu0 %v8650_v0  ;;  %v5182_v0 = vld [vmem:[%s13940_s4] sm:$0xff]  ;;  %v14089_v3 = vsel %vm9055_vm2, %v10607_v33, %v10588_v23  ;;  %v10785_v39 = vcombine.low %v3975_v11, %v3985_v12  ;;  %v4027_v45 = vor.u32 %v4026_v19, %v10735_v6  ;;  %v10791_v61 = vcombine.low %v3999_v24, %v4009_v60  ;;  %v7667_v19 = vld [vmem:[%s9024_s23 + $0x6c] sm:$0xf]  ;;  %v10838_v23 = vld [vmem:[%s9024_s23 + $0x68] sm:$0x1] }
 0x10b   : > { %v10797_v33 = vld [vmem:[%s9024_s23 + $0x64] sm:$0xf]  ;;  %v14091_v11 = vcombine.low %v10354_v34, %v10363_v17  ;;  %14092 = vst [vmem:[#allocation21_spill] sm:$0xff] %v10802_v2  ;;  %v10808_v62 = vrot.slane %v4030_v42, 5  ;;  %v7754_v12 = vrot.slane %v10771_v28, 9  ;;  %v14093_v24 = vcombine.low %v10380_v32, %v10384_v58  ;;  %v8640_v34 = vld [vmem:[%s9024_s23 + $0x9c] sm:$0xff]   ;;  %v10818_v17 = vpop.f32.mrf.mxu0 }
 0x10c   : > { %8354 = vmatmul.mubr.bf16.gmra.mxu0 %v8636_v22  ;;  %8384 = vmatpush3.bf16.msra.mxu1 %v10672_v49  ;;  %v14090_v22 = vsel %vm9055_vm2, %v10586_v48, %v10532_v43  ;;  %v13968_v43 = vrot.slane %v10665_v41, 5  ;;  %v5310_v48 = vmul.f32 %v5182_v0, %v5118_v30  ;;  %14094 = vst [vmem:[#allocation22_spill] sm:$0xff] %v10818_v17  ;;  %v8643_v60 = vld [vmem:[%s9024_s23 + $0xa8] sm:$0xff]   ;;  %v4717_v42 = vrot.slane %v10706_v55, 5  ;;  %v10978_v17 = vld [vmem:[%s9024_s23 + $0x80] sm:$0x1] }
 0x10d   : > { %8357 = vmatprep.mubr.bf16.mxu0 %v8639_v44  ;;  %v10783_v49 = vcombine.low %v14090_v22, %v14089_v3  ;;  %v10810_v44 = vrot.slane %v4054_v51, 5  ;;  %v4041_v30 = vor.u32 %v4040_v50, %v4037_v20  ;;  %v4051_v0 = vor.u32 %v4050_v59, %v10768_v14  ;;  %v10824_v51 = vld [vmem:[%s9024_s23 + $0x54] sm:$0xe] }
 0x10e   : > { %5374 = vrot.lane.b32.xlu0 %v5310_v48, %s8912_s22  ;;  %v4059_v28 = vshrl.u32 %v7664_v47, 16  ;;  %v4028_v3 = vrot.slane %v4027_v45, 4  ;;  %v4062_v32 = vshll.u32 %v7664_v47, 16  ;;  %v4068_v58 = vshll.u32 %v10797_v33, 16 }
 0x10f   : > { %8306 = vmatmul.mubr.bf16.gmra.mxu1 %v14091_v11  ;;  %v4072_v22 = vshrl.u32 %v10797_v33, 16  ;;  %v10830_v11 = vld [vmem:[%s9024_s23 + $0x70] sm:$0xf]  ;;  %v4716_v20 = vrot.slane %v13968_v43, 4  ;;  %v4083_v50 = vshrl.u32 %v7667_v19, 16  ;;  %v4086_v59 = vshll.u32 %v7667_v19, 16 }
 0x110   : > { %8309 = vmatprep.mubr.bf16.mxu1 %v14093_v24  ;;  %v4061_v55 = vrot.slane %v4059_v28, 4  ;;  %v10834_v24 = vpop.f32.mrf.mxu1  ;;  %v4721_v48 = vrot.slane %v10691_v7, 5  ;;  %v4064_v45 = vrot.slane %v4062_v32, 5  ;;  %v10840_v47 = vrot.slane %v4068_v58, 5  ;;  %v10846_v43 = vld [vmem:[%s9024_s23 + $0x74] sm:$0x1] }
 0x111   : > { %14095 = vst [vmem:[#allocation23_spill] sm:$0xff] %v10834_v24  ;;  %v4074_v36 = vrot.slane %v4072_v22, 4  ;;  %v7755_v2 = vrot.slane %v10824_v51, 9  ;;  %v4085_v28 = vrot.slane %v4083_v50, 4  ;;  %v4088_v19 = vrot.slane %v4086_v59, 5 }
 0x112   : > { %v10842_v16 = vpop.f32.mrf.mxu0  ;;  %v4092_v24 = vshll.u32 %v10830_v11, 16  ;;  %v10849_v7 = vrot.slane %v4041_v30, 4  ;;  %v10851_v10 = vrot.slane %v4051_v0, 4  ;;  %v4065_v32 = vor.u32 %v4064_v45, %v4061_v55 }
 0x113   : > { %14096 = vst [vmem:[#allocation24_spill] sm:$0xff] %v10842_v16  ;;  %v4096_v58 = vshrl.u32 %v10830_v11, 16  ;;  %v4033_v51 = vsel %vm9055_vm2, %v4028_v3, %v10808_v62  ;;  %v4075_v22 = vor.u32 %v4074_v36, %v10840_v47  ;;  %v4078_v50 = vshll.u32 %v10838_v23, 16  ;;  %v8644_v3 = vld [vmem:[%s9024_s23 + $0xb4] sm:$0xff]  }
 0x114   : > { %8358 = vmatmul.mubr.bf16.gmra.mxu0 %v8640_v34  ;;  %v7740_v34 = vld [vmem:[%s9024_s23 + $0x60] sm:$0xe]  ;;  %v10860_v59 = vrot.slane %v4092_v24, 5  ;;  %v4723_v0 = vrot.slane %v4721_v48, 4  ;;  %v4724_v55 = vrot.slane %v10714_v52, 5  ;;  %v4102_v62 = vshll.u32 %v10846_v43, 16  ;;  %v10873_v24 = vpop.f32.mrf.mxu0 }
 0x115   : > { %8361 = vmatprep.mubr.bf16.mxu0 %v8643_v60  ;;  %v14097_v60 = vcombine.low %v10400_v5, %v10405_v25  ;;  %v4098_v45 = vrot.slane %v4096_v58, 4  ;;  %v14099_v36 = vcombine.low %v10418_v9, %v10412_v29  ;;  %14100 = vst [vmem:[#allocation26_spill] sm:$0xff] %v10873_v24  ;;  %v14101_v16 = vrot.slane %v10665_v41, 5  ;;  %v5184_v29 = vld [vmem:[%s13940_s4 + $0x10] sm:$0xff]  ;;  %v8647_v9 = vld [vmem:[%s9024_s23 + $0xc0] sm:$0xff]  }
 0x116   : > { %v4089_v25 = vor.u32 %v4088_v19, %v4085_v28  ;;  %v7756_v52 = vrot.slane %v7740_v34, 9  ;;  %v4728_v58 = vrot.slane %v10797_v33, 5  ;;  %v14102_v41 = vsel %vm9055_vm2, %v10757_v18, %v10735_v6  ;;  %v5119_v34 = vld [vmem:[%s10723_s20 + $0x8] sm:$0xff]  ;;  %v5185_v6 = vld [vmem:[%s13940_s4 + $0x18] sm:$0xff] }
 0x117   : > { %8310 = vmatmul.mubr.bf16.gmra.mxu1 %v14097_v60  ;;  %v10865_v30 = vpop.f32.mrf.mxu1  ;;  %v10879_v5 = vsel %vm9366_vm5, %v7754_v12, %v14101_v16  ;;  %v5120_v60 = vld [vmem:[%s10723_s20 + $0x10] sm:$0xff]  ;;  %v10900_v33 = vsel %vm9366_vm5, %v4716_v20, %v4717_v42  ;;  %v10902_v12 = vrot.slane %v4065_v32, 4  ;;  %v10908_v18 = vrot.slane %v4075_v22, 4  ;;  %v7670_v42 = vld [vmem:[%s9024_s23 + $0x78] sm:$0xf] }
 0x118   : > { %14098 = vst [vmem:[#allocation25_spill] sm:$0xff] %v10865_v30  ;;  %8313 = vmatprep.mubr.bf16.mxu1 %v14099_v36  ;;  %v10892_v36 = vcombine.low %v14102_v41, %v4033_v51  ;;  %v10910_v28 = vrot.slane %v4078_v50, 5  ;;  %v4099_v19 = vor.u32 %v4098_v45, %v10860_v59  ;;  %v5183_v51 = vld [vmem:[%s13940_s4 + $0x8] sm:$0xff]  ;;  %v10922_v32 = vsel %vm9366_vm5, %v7755_v2, %v4721_v48  ;;  %v5121_v16 = vld [vmem:[%s10723_s20 + $0x18] sm:$0xff] }
 0x119   : > { %v10918_v20 = vpop.f32.mrf.mxu1  ;;  %v10926_v22 = vsel %vm9366_vm5, %v4723_v0, %v4724_v55  ;;  %v10928_v50 = vrot.slane %v4102_v62, 5  ;;  %v10931_v45 = vld [vmem:[%s9024_s23 + $0x6c] sm:$0xe]  ;;  %v5312_v41 = vmul.f32 %v5184_v29, %v5120_v60  ;;  %v10939_v2 = vrot.slane %v4089_v25, 4  ;;  %v5122_v62 = vld [vmem:[%s10723_s20 + $0x20] sm:$0xff] }
 0x11a   : > { %14103 = vst [vmem:[#allocation27_spill] sm:$0xff] %v10892_v36  ;;  %14104 = vst [vmem:[#allocation28_spill] sm:$0xff] %v10918_v20  ;;  %v10937_v20 = vpop.f32.mrf.mxu0  ;;  %v10943_v48 = vsel %vm9366_vm5, %v7756_v52, %v4728_v58  ;;  %v4730_v0 = vrot.slane %v4728_v58, 4  ;;  %v4735_v55 = vrot.slane %v10830_v11, 5  ;;  %v5186_v60 = vld [vmem:[%s13940_s4 + $0x20] sm:$0xff]  ;;  %v4731_v25 = vrot.slane %v10838_v23, 5 }
 0x11b   : > { %14105 = vst [vmem:[#allocation29_spill] sm:$0xff] %v10937_v20  ;;  %5378 = vrot.lane.b32.xlu1 %v5312_v41, %s8912_s22  ;;  %v5311_v52 = vmul.f32 %v5183_v51, %v5119_v34  ;;  %v10957_v58 = vld [vmem:[%s9024_s23 + $0x7c] sm:$0xf]  ;;  %v4107_v11 = vshrl.u32 %v7670_v42, 16  ;;  %v7673_v29 = vld [vmem:[%s9024_s23 + $0x84] sm:$0xf]  ;;  %v5313_v20 = vmul.f32 %v5185_v6, %v5121_v16  ;;  %v14106_v34 = vcombine.low %v10427_v4, %v10431_v13  ;;  %v10973_v51 = vpop.f32.mrf.mxu1 }
 0x11c   : > { %8362 = vmatmul.mubr.bf16.gmra.mxu0 %v8644_v3  ;;  %v10964_v30 = vrot.slane %v4099_v19, 4  ;;  %v7757_v3 = vrot.slane %v10931_v45, 9  ;;  %v10968_v23 = vld [vmem:[%s9024_s23 + $0x88] sm:$0xf]  ;;  %14107 = vst [vmem:[#allocation30_spill] sm:$0xff] %v10973_v51  ;;  %v4738_v41 = vrot.slane %v10846_v43, 5  ;;  %v5314_v24 = vmul.f32 %v5186_v60, %v5122_v62  ;;  %v10980_v45 = vpop.f32.mrf.mxu0 }
 0x11d   : > { %8365 = vmatprep.mubr.bf16.mxu0 %v8647_v9  ;;  %5376 = vrot.lane.b32.xlu0 %v5311_v52, %s8912_s22  ;;  %v4109_v19 = vrot.slane %v4107_v11, 4  ;;  %v4110_v9 = vshll.u32 %v7670_v42, 16  ;;  %14108 = vst [vmem:[#allocation31_spill] sm:$0xff] %v10980_v45  ;;  %v14109_v16 = vcombine.low %v10462_v26, %v10466_v35  ;;  %v8648_v4 = vld [vmem:[%s9024_s23 + $0xcc] sm:$0xff]   ;;  %v4737_v13 = vrot.slane %v4735_v55, 4  ;;  %v10997_v45 = vpop.f32.mrf.mxu1 }
 0x11e   : > { %v4116_v6 = vshll.u32 %v10957_v58, 16  ;;  %v4120_v43 = vshrl.u32 %v10957_v58, 16  ;;  %v4134_v60 = vshll.u32 %v7673_v29, 16  ;;  %v4140_v42 = vshll.u32 %v10968_v23, 16  ;;  %14110 = vst [vmem:[#allocation32_spill] sm:$0xff] %v10997_v45 }
 0x11f   : > { %8314 = vmatmul.mubr.bf16.gmra.mxu1 %v14106_v34  ;;  %v4131_v34 = vshrl.u32 %v7673_v29, 16  ;;  %5380 = vrot.lane.b32.xlu1 %v5313_v20, %s8912_s22  ;;  %v4112_v62 = vrot.slane %v4110_v9, 5  ;;  %v4144_v52 = vshrl.u32 %v10968_v23, 16  ;;  %v4126_v35 = vshll.u32 %v10978_v17, 16 }
 0x120   : > { %8317 = vmatprep.mubr.bf16.mxu1 %v14109_v16  ;;  %v10991_v11 = vrot.slane %v4116_v6, 5  ;;  %v4122_v26 = vrot.slane %v4120_v43, 4  ;;  %v10995_v16 = vld [vmem:[%s9024_s23 + $0x8c] sm:$0x1]  ;;  %v4136_v1 = vrot.slane %v4134_v60, 5  ;;  %v11000_v9 = vrot.slane %v4140_v42, 5 }
 0x121   : > { %v4133_v51 = vrot.slane %v4131_v34, 4  ;;  %5382 = vrot.lane.b32.xlu0 %v5314_v24, %s8912_s22  ;;  %v4113_v20 = vor.u32 %v4112_v62, %v4109_v19  ;;  %v4146_v29 = vrot.slane %v4144_v52, 4  ;;  %v4095_v6 = vsel %vm9055_vm2, %v10939_v2, %v10860_v59  ;;  %v14166_v27 = vld [vmem:[#allocation28_spill] sm:$0xff] }
 0x122   : > { %v11011_v43 = vsel %vm9366_vm5, %v4730_v0, %v4731_v25  ;;  %v4123_v24 = vor.u32 %v4122_v26, %v10991_v11  ;;  %v4742_v19 = vrot.slane %v10957_v58, 5  ;;  %v14111_v34 = vcombine.low %v10561_v57, %v10565_v40  ;;  %v5124_v26 = vld [vmem:[%s10723_s20 + $0x30] sm:$0xff] }
 0x123   : > { %v11003_v36 = vpop.f32.mrf.mxu0  ;;  %v11024_v59 = vsel %vm9366_vm5, %v7757_v3, %v4735_v55  ;;  %v11028_v2 = vsel %vm9366_vm5, %v4737_v13, %v4738_v41  ;;  %v4150_v0 = vshll.u32 %v10995_v16, 16  ;;  %v11033_v57 = vrot.slane %v4113_v20, 4  ;;  %v5123_v41 = vld [vmem:[%s10723_s20 + $0x28] sm:$0xff] }
 0x124   : > { %8366 = vmatmul.mubr.bf16.gmra.mxu0 %v8648_v4  ;;  %v4105_v4 = vsel %vm9055_vm2, %v10964_v30, %v10928_v50  ;;  %v4137_v40 = vor.u32 %v4136_v1, %v4133_v51  ;;  %v4147_v58 = vor.u32 %v4146_v29, %v11000_v9  ;;  %v7758_v62 = vrot.slane %v7742_v53, 9  ;;  %v5126_v29 = vld [vmem:[%s10723_s20 + $0x40] sm:$0xff] }
 0x125   : > { %8433 = vmatprep.mubr.bf16.mxu0 %v14111_v34  ;;  %v11031_v25 = vpop.f32.mrf.mxu0  ;;  %v14113_v50 = vcombine.low %v10475_v15, %v10480_v8  ;;  %v14114_v55 = vsel %vm9055_vm2, %v10851_v10, %v10810_v44  ;;  %v14115_v1 = vsel %vm9055_vm2, %v10849_v7, %v10768_v14  ;;  %v11055_v51 = vrot.slane %v4123_v24, 4  ;;  %v11060_v8 = vld [vmem:[%s9024_s23 + $0x84] sm:$0xe]  ;;  %v5187_v10 = vld [vmem:[%s13940_s4 + $0x28] sm:$0xff]  ;;  %v7679_v14 = vld [vmem:[%s9024_s23 + $0x9c] sm:$0xf] }
 0x126   : > { %v11051_v3 = vcombine.low %v14115_v1, %v14114_v55  ;;  %v11057_v15 = vrot.slane %v4126_v35, 5  ;;  %v14116_v7 = vsel %vm9055_vm2, %v10908_v18, %v10910_v28  ;;  %v14117_v13 = vsel %vm9055_vm2, %v10902_v12, %v10840_v47  ;;  %v5125_v35 = vld [vmem:[%s10723_s20 + $0x38] sm:$0xff]  ;;  %v7676_v55 = vld [vmem:[%s9024_s23 + $0x90] sm:$0xf]  ;;  %v11122_v1 = vld [vmem:[%s9024_s23 + $0x94] sm:$0xf] }
 0x127   : > { %v11036_v30 = vpop.f32.mrf.mxu1  ;;  %8318 = vmatmul.mubr.bf16.gmra.mxu1 %v14113_v50  ;;  %v11066_v44 = vpop.f32.mrf.mxu0  ;;  %v11081_v60 = vcombine.low %v14117_v13, %v14116_v7  ;;  %v4744_v42 = vrot.slane %v4742_v19, 4  ;;  %v4745_v52 = vrot.slane %v10978_v17, 5  ;;  %v11091_v18 = vcombine.low %v4095_v6, %v4105_v4  ;;  %v5189_v17 = vld [vmem:[%s13940_s4 + $0x38] sm:$0xff]  ;;  %v5190_v6 = vld [vmem:[%s13940_s4 + $0x40] sm:$0xff] }
 0x128   : > { %14112 = vst [vmem:[#allocation33_spill] sm:$0xff] %v11036_v30  ;;  %8385 = vmatprep.mubr.bf16.mxu1 %v10646_v31  ;;  %v5188_v31 = vld [vmem:[%s13940_s4 + $0x30] sm:$0xff]  ;;  %v11097_v28 = vrot.slane %v4150_v0, 5  ;;  %v11112_v4 = vrot.slane %v4137_v40, 4  ;;  %v11114_v0 = vrot.slane %v4147_v58, 4  ;;  %v11118_v50 = vsel %vm9366_vm5, %v7758_v62, %v4742_v19 }
 0x129   : > { %v11089_v20 = vpop.f32.mrf.mxu1  ;;  %v11106_v24 = vpop.f32.mrf.mxu0  ;;  %v5315_v12 = vmul.f32 %v5187_v10, %v5123_v41  ;;  %v5316_v58 = vmul.f32 %v5188_v31, %v5124_v26  ;;  %v11132_v47 = vld [vmem:[%s9024_s23 + $0x98] sm:$0x1]  ;;  %v14120_v62 = vcombine.low %v10611_v37, %v10615_v63  ;;  %v11140_v34 = vsel %vm9366_vm5, %v4744_v42, %v4745_v52  ;;  %v11145_v40 = vld [vmem:[%s9024_s23 + $0xa0] sm:$0xf] }
 0x12a   : > { %14118 = vst [vmem:[#allocation34_spill] sm:$0xff] %v11089_v20  ;;  %v4749_v53 = vrot.slane %v10968_v23, 5  ;;  %v14122_v10 = vcombine.low %v10733_v46, %v10745_v21  ;;  %v5318_v37 = vmul.f32 %v5190_v6, %v5126_v29  ;;  %v4155_v63 = vshrl.u32 %v7676_v55, 16  ;;  %v14123_v6 = vld [vmem:[#allocation8_spill] sm:$0xff] }
 0x12b   : > { %v11124_v7 = vpop.f32.mrf.mxu1  ;;  %v8147_v19 = vpop.f32.mrf.mxu0  ;;  %5384 = vrot.lane.b32.xlu1 %v5315_v12, %s8912_s22  ;;  %v4158_v26 = vshll.u32 %v7676_v55, 16  ;;  %v4164_v42 = vshll.u32 %v11122_v1, 16  ;;  %5386 = vrot.lane.b32.xlu0 %v5316_v58, %s8912_s22  ;;  %v4168_v23 = vshrl.u32 %v11122_v1, 16  ;;  %v4174_v31 = vshll.u32 %v11132_v47, 16 }
 0x12c   : > { %14119 = vst [vmem:[#allocation35_spill] sm:$0xff] %v11124_v7  ;;  %8434 = vmatmul.mubr.bf16.vlgmr.msra.gmra.mxu0 %v14120_v62  ;;  %v5317_v7 = vmul.f32 %v5189_v17, %v5125_v35  ;;  %v4179_v35 = vshrl.u32 %v7679_v14, 16  ;;  %v4182_v17 = vshll.u32 %v7679_v14, 16  ;;  %v4157_v46 = vrot.slane %v4155_v63, 4 }
 0x12d   : > { %v11147_v41 = vpop.f32.mrf.mxu1  ;;  %8437 = vmatprep.mubr.bf16.mxu0 %v14122_v10  ;;  %v1681_v52 = vpop.f32.mrf.mxu0  ;;  %v4160_v21 = vrot.slane %v4158_v26, 5  ;;  %v11158_v12 = vrot.slane %v4164_v42, 5  ;;  %v4188_v29 = vshll.u32 %v11145_v40, 16  ;;  %v4143_v14 = vsel %vm9055_vm2, %v11112_v4, %v11000_v9  ;;  %v11177_v4 = vld [vmem:[%s9024_s23 + $0xa4] sm:$0x1] }
 0x12e   : > { %14121 = vst [vmem:[#allocation36_spill] sm:$0xff] %v11147_v41  ;;  %v4170_v58 = vrot.slane %v4168_v23, 4  ;;  %v4181_v13 = vrot.slane %v4179_v35, 4  ;;  %v4184_v26 = vrot.slane %v4182_v17, 5  ;;  %v4751_v30 = vrot.slane %v4749_v53, 4 }
 0x12f   : > { %v8099_v62 = vpop.f32.mrf.mxu1  ;;  %8386 = vmatmul.mubr.bf16.vlgmr.msra.gmra.mxu1 %v10783_v49  ;;  %v8148_v10 = vpop.f32.mrf.mxu0  ;;  %5388 = vrot.lane.b32.xlu1 %v5317_v7, %s8912_s22  ;;  %v4161_v63 = vor.u32 %v4160_v21, %v4157_v46  ;;  %v11168_v42 = vrot.slane %v4188_v29, 5  ;;  %v4153_v23 = vsel %vm9055_vm2, %v11114_v0, %v11097_v28  ;;  %v4176_v35 = vrot.slane %v4174_v31, 5  ;;  %v14126_v21 = vld [vmem:[#allocation12_spill] sm:$0xff]  ;;  %v11346_v31 = vld [vmem:[%s9024_s23 + $0xbc] sm:$0x1] }
 0x130   : > { %v1237_v55 = vadd.f32 %v8099_v62, %v14123_v6  ;;  %8389 = vmatprep.mubr.bf16.mxu1 %v10785_v39  ;;  %v4192_v62 = vshrl.u32 %v11145_v40, 16  ;;  %v14125_v39 = vld [vmem:[#allocation10_spill] sm:$0xff]  ;;  %5390 = vrot.lane.b32.xlu0 %v5318_v37, %s8912_s22  ;;  %v4171_v9 = vor.u32 %v4170_v58, %v11158_v12  ;;  %v14127_v37 = vcombine.low %v10749_v54, %v10755_v38 }
 0x131   : > { %v1228_v49 = vpop.f32.mrf.mxu1  ;;  %v1684_v20 = vpop.f32.mrf.mxu0  ;;  %v4162_v58 = vrot.slane %v4161_v63, 4  ;;  %v14128_v45 = vcombine.low %v10879_v5, %v10900_v33  ;;  %v14129_v28 = vsel %vm9055_vm2, %v11055_v51, %v11057_v15  ;;  %v14130_v0 = vsel %vm9055_vm2, %v11033_v57, %v10991_v11  ;;  %v14132_v51 = vld [vmem:[#allocation14_spill] sm:$0xff] }
 0x132   : > { %v11171_v6 = vadd.f32 %v8147_v19, %v1237_v55  ;;  %v1229_v41 = vadd.f32 %v1228_v49, %v14125_v39  ;;  %v4185_v19 = vor.u32 %v4184_v26, %v4181_v13  ;;  %v4194_v17 = vrot.slane %v4192_v62, 4  ;;  %v7744_v39 = vld [vmem:[%s9024_s23 + $0x90] sm:$0xe]  ;;  %v14134_v26 = vld [vmem:[#allocation16_spill] sm:$0xff] }
 0x133   : > { %v8100_v7 = vpop.f32.mrf.mxu1  ;;  %v8151_v55 = vpop.f32.mrf.mxu0  ;;  %v4172_v49 = vrot.slane %v4171_v9, 4  ;;  %v11203_v54 = vcombine.low %v14130_v0, %v14129_v28  ;;  %v14131_v38 = vrot.slane %v11060_v8, 9  ;;  %v4198_v33 = vshll.u32 %v11177_v4, 16  ;;  %v11243_v9 = vld [vmem:[%s10723_s20 + $0x48] sm:$0xff]  ;;  %v11266_v0 = vld [vmem:[%s10723_s20 + $0x58] sm:$0xff] }
 0x134   : > { %14124 = vst [vmem:[#allocation8_spill] sm:$0xff] %v11171_v6  ;;  %v11183_v46 = vadd.f32 %v1681_v52, %v1229_v41  ;;  %v1240_v29 = vadd.f32 %v8100_v7, %v14126_v21  ;;  %8438 = vmatmul.mubr.bf16.gmra.mxu0 %v14127_v37  ;;  %v4195_v5 = vor.u32 %v4194_v17, %v11168_v42  ;;  %v14133_v11 = vrot.slane %v10995_v16, 5  ;;  %v11256_v17 = vld [vmem:[%s10723_s20 + $0x50] sm:$0xff] }
 0x135   : > { %v1231_v6 = vpop.f32.mrf.mxu1  ;;  %8441 = vmatprep.mubr.bf16.mxu0 %v14128_v45  ;;  %v11209_v13 = vsel %vm9366_vm5, %v14131_v38, %v4749_v53  ;;  %v1697_v41 = vpop.f32.mrf.mxu0  ;;  %v4756_v53 = vrot.slane %v11122_v1, 5  ;;  %v11224_v52 = vcombine.low %v4143_v14, %v4153_v23  ;;  %v7760_v63 = vrot.slane %v7744_v39, 9  ;;  %v11240_v14 = vld [vmem:[%s9024_s23 + $0x9c] sm:$0xe]  ;;  %14136 = vst [vmem:[#allocation10_spill] sm:$0xff] %v11256_v17  ;;  %v5192_v21 = vld [vmem:[%s13940_s4 + $0x50] sm:$0xff] }
 0x136   : > { %v11213_v45 = vadd.f32 %v8148_v10, %v1240_v29  ;;  %v1232_v15 = vadd.f32 %v1231_v6, %v14132_v51  ;;  %v11220_v57 = vsel %vm9366_vm5, %v4751_v30, %v14133_v11  ;;  %v11228_v10 = vrot.slane %v4185_v19, 4  ;;  %v14135_v6 = vld [vmem:[#allocation27_spill] sm:$0xff]  ;;  %v14137_v37 = vld [vmem:[#allocation18_spill] sm:$0xff]  ;;  %14138 = vst [vmem:[#allocation12_spill] sm:$0xff] %v11266_v0  ;;  %v7682_v38 = vld [vmem:[%s9024_s23 + $0xa8] sm:$0xf] }
 0x137   : > { %v8103_v8 = vpop.f32.mrf.mxu1  ;;  %8390 = vmatmul.mubr.bf16.gmra.mxu1 %v10791_v61  ;;  %v8152_v30 = vpop.f32.mrf.mxu0  ;;  %v4167_v61 = vsel %vm9055_vm2, %v4162_v58, %v11158_v12  ;;  %v4177_v1 = vsel %vm9055_vm2, %v4172_v49, %v4176_v35  ;;  %v11250_v19 = vrot.slane %v4195_v5, 4  ;;  %v11252_v12 = vrot.slane %v4198_v33, 5 }
 0x138   : > { %v11230_v16 = vadd.f32 %v1684_v20, %v1232_v15  ;;  %v1253_v62 = vadd.f32 %v8103_v8, %v14134_v26  ;;  %8393 = vmatprep.mubr.bf16.mxu1 %v14135_v6  ;;  %v5191_v20 = vld [vmem:[%s13940_s4 + $0x48] sm:$0xff]  ;;  %v4759_v35 = vrot.slane %v11132_v47, 5  ;;  %v4758_v39 = vrot.slane %v4756_v53, 4  ;;  %v5193_v47 = vld [vmem:[%s13940_s4 + $0x58] sm:$0xff]  ;;  %v14139_v8 = vld [vmem:[#allocation20_spill] sm:$0xff] }
 0x139   : > { %v1244_v7 = vpop.f32.mrf.mxu1  ;;  %v1700_v49 = vpop.f32.mrf.mxu0  ;;  %v13969_v28 = vrot.slane %v11145_v40, 5  ;;  %v11272_v33 = vcombine.low %v4167_v61, %v4177_v1  ;;  %v11280_v51 = vsel %vm9366_vm5, %v7760_v63, %v4756_v53  ;;  %v5319_v15 = vmul.f32 %v5191_v20, %v11243_v9  ;;  %v5194_v53 = vld [vmem:[%s13940_s4 + $0x60] sm:$0xff] }
 0x13a   : > { %v11261_v29 = vadd.f32 %v8151_v55, %v1253_v62  ;;  %v1245_v58 = vadd.f32 %v1244_v7, %v14137_v37  ;;  %v14140_v6 = vcombine.low %v10922_v32, %v10926_v22  ;;  %v5320_v1 = vmul.f32 %v5192_v21, %v11256_v17  ;;  %v11292_v7 = vld [vmem:[%s10723_s20 + $0x60] sm:$0xff]  ;;  %v11311_v37 = vld [vmem:[%s9024_s23 + $0xb0] sm:$0x1]  ;;  %v11334_v22 = vld [vmem:[%s9024_s23 + $0xb8] sm:$0xf] }
 0x13b   : > { %v8104_v5 = vpop.f32.mrf.mxu1  ;;  %v8155_v62 = vpop.f32.mrf.mxu0  ;;  %14141 = vst [vmem:[#allocation14_spill] sm:$0xff] %v11292_v7  ;;  %v14142_v20 = vcombine.low %v10943_v48, %v11011_v43  ;;  %5392 = vrot.lane.b32.xlu1 %v5319_v15, %s8912_s22  ;;  %v5321_v21 = vmul.f32 %v5193_v47, %v11266_v0  ;;  %v11318_v43 = vsel %vm9366_vm5, %v4758_v39, %v4759_v35  ;;  %v7685_v15 = vld [vmem:[%s9024_s23 + $0xb4] sm:$0xf]  ;;  %v4206_v55 = vshll.u32 %v7682_v38, 16  ;;  %v14144_v35 = vld [vmem:[#allocation24_spill] sm:$0xff] }
 0x13c   : > { %v11283_v11 = vadd.f32 %v1697_v41, %v1245_v58  ;;  %v1256_v26 = vadd.f32 %v8104_v5, %v14139_v8  ;;  %8442 = vmatmul.mubr.bf16.gmra.mxu0 %v14140_v6  ;;  %v11298_v41 = vld [vmem:[%s9024_s23 + $0xac] sm:$0xf]  ;;  %v4203_v58 = vshrl.u32 %v7682_v38, 16  ;;  %v14143_v8 = vld [vmem:[#allocation22_spill] sm:$0xff]  ;;  %5394 = vrot.lane.b32.xlu0 %v5320_v1, %s8912_s22  ;;  %v4222_v23 = vshll.u32 %v11311_v37, 16 }
 0x13d   : > { %v1247_v63 = vpop.f32.mrf.mxu1  ;;  %8445 = vmatprep.mubr.bf16.mxu0 %v14142_v20  ;;  %v1713_v48 = vpop.f32.mrf.mxu0  ;;  %v4765_v20 = vrot.slane %v13969_v28, 4  ;;  %v4216_v1 = vshrl.u32 %v11298_v41, 16  ;;  %v4208_v38 = vrot.slane %v4206_v55, 5 }
 0x13e   : > { %v11313_v5 = vadd.f32 %v8152_v30, %v1256_v26  ;;  %v1248_v6 = vadd.f32 %v1247_v63, %v14143_v8  ;;  %v5322_v30 = vmul.f32 %v5194_v53, %v11292_v7  ;;  %v4205_v26 = vrot.slane %v4203_v58, 4 }
 0x13f   : > { %v8107_v47 = vpop.f32.mrf.mxu1  ;;  %8394 = vmatmul.mubr.bf16.gmra.mxu1 %v11051_v3  ;;  %v4212_v63 = vshll.u32 %v11298_v41, 16  ;;  %v8156_v32 = vpop.f32.mrf.mxu0  ;;  %5396 = vrot.lane.b32.xlu1 %v5321_v21, %s8912_s22  ;;  %v4230_v58 = vshll.u32 %v7685_v15, 16  ;;  %v4218_v61 = vrot.slane %v4216_v1, 4  ;;  %v11343_v28 = vrot.slane %v4222_v23, 5 }
 0x140   : > { %v11327_v8 = vadd.f32 %v1700_v49, %v1248_v6  ;;  %v1269_v39 = vadd.f32 %v8107_v47, %v14144_v35  ;;  %8397 = vmatprep.mubr.bf16.mxu1 %v11081_v60  ;;  %v4227_v49 = vshrl.u32 %v7685_v15, 16  ;;  %v14145_v47 = vld [vmem:[#allocation26_spill] sm:$0xff]  ;;  %5398 = vrot.lane.b32.xlu0 %v5322_v30, %s8912_s22  ;;  %v4209_v0 = vor.u32 %v4208_v38, %v4205_v26 }
 0x141   : > { %v1260_v3 = vpop.f32.mrf.mxu1  ;;  %v11337_v53 = vrot.slane %v4212_v63, 5  ;;  %v1716_v60 = vpop.f32.mrf.mxu0  ;;  %v4232_v55 = vrot.slane %v4230_v58, 5  ;;  %v4236_v63 = vshll.u32 %v11334_v22, 16  ;;  %v14147_v30 = vcombine.low %v11024_v59, %v11028_v2  ;;  %v14149_v59 = vld [vmem:[#allocation31_spill] sm:$0xff] }
 0x142   : > { %v11339_v6 = vadd.f32 %v8155_v62, %v1269_v39  ;;  %v1261_v35 = vadd.f32 %v1260_v3, %v14145_v47  ;;  %v4229_v21 = vrot.slane %v4227_v49, 4  ;;  %v14146_v62 = vld [vmem:[#allocation29_spill] sm:$0xff]  ;;  %v4240_v1 = vshrl.u32 %v11334_v22, 16 }
 0x143   : > { %v8108_v7 = vpop.f32.mrf.mxu1  ;;  %v8159_v39 = vpop.f32.mrf.mxu0  ;;  %v4219_v23 = vor.u32 %v4218_v61, %v11337_v53  ;;  %v14148_v26 = vcombine.low %v11118_v50, %v11140_v34  ;;  %v4210_v38 = vrot.slane %v4209_v0, 4  ;;  %v11360_v49 = vrot.slane %v4236_v63, 5  ;;  %v7747_v63 = vld [vmem:[%s9024_s23 + $0xb4] sm:$0xe] }
 0x144   : > { %v11349_v17 = vadd.f32 %v1713_v48, %v1261_v35  ;;  %v1272_v15 = vadd.f32 %v8108_v7, %v14146_v62  ;;  %8446 = vmatmul.mubr.bf16.gmra.mxu0 %v14147_v30  ;;  %v4233_v48 = vor.u32 %v4232_v55, %v4229_v21  ;;  %v4246_v7 = vshll.u32 %v11346_v31, 16  ;;  %v7746_v62 = vld [vmem:[%s9024_s23 + $0xa8] sm:$0xe] }
 0x145   : > { %v1263_v3 = vpop.f32.mrf.mxu1  ;;  %8449 = vmatprep.mubr.bf16.mxu0 %v14148_v26  ;;  %v1729_v47 = vpop.f32.mrf.mxu0  ;;  %v4220_v61 = vrot.slane %v4219_v23, 4  ;;  %v4242_v35 = vrot.slane %v4240_v1, 4  ;;  %v7792_v34 = vcombine.low %v11280_v51, %v11318_v43  ;;  %v14150_v50 = vrot.slane %v11145_v40, 5 }
 0x146   : > { %v11363_v58 = vadd.f32 %v8156_v32, %v1272_v15  ;;  %v1264_v2 = vadd.f32 %v1263_v3, %v14149_v59  ;;  %v14151_v0 = vrot.slane %v11240_v14, 9  ;;  %v14152_v21 = vrot.slane %v11177_v4, 5 }
 0x147   : > { %v8111_v30 = vpop.f32.mrf.mxu1  ;;  %8398 = vmatmul.mubr.bf16.gmra.mxu1 %v11091_v18  ;;  %v4215_v18 = vsel %vm9055_vm2, %v4210_v38, %v11337_v53  ;;  %v8160_v14 = vpop.f32.mrf.mxu0  ;;  %v11392_v43 = vrot.slane %v4233_v48, 4  ;;  %v4243_v4 = vor.u32 %v4242_v35, %v11360_v49  ;;  %v7762_v23 = vrot.slane %v7746_v62, 9  ;;  %v11448_v62 = vld [vmem:[%s10723_s20 + $0x78] sm:$0xff] }
 0x148   : > { %v11376_v32 = vsel %vm9366_vm5, %v14151_v0, %v14150_v50  ;;  %v11382_v55 = vsel %vm9366_vm5, %v4765_v20, %v14152_v21  ;;  %v11388_v51 = vadd.f32 %v1716_v60, %v1264_v2  ;;  %v1285_v40 = vadd.f32 %v8111_v30, %v11003_v36  ;;  %8401 = vmatprep.mubr.bf16.mxu1 %v11203_v54  ;;  %v7688_v30 = vld [vmem:[%s9024_s23 + $0xc0] sm:$0xf] }
 0x149   : > { %v1276_v15 = vpop.f32.mrf.mxu1  ;;  %v11395_v20 = vrot.slane %v4246_v7, 5  ;;  %v4770_v1 = vrot.slane %v11298_v41, 5  ;;  %v4773_v53 = vrot.slane %v11311_v37, 5  ;;  %v1732_v3 = vpop.f32.mrf.mxu0  ;;  %v4225_v54 = vsel %vm9055_vm2, %v4220_v61, %v11343_v28  ;;  %v11410_v37 = vld [vmem:[%s10723_s20 + $0x68] sm:$0xff] }
 0x14a   : > { %v11399_v60 = vadd.f32 %v8159_v39, %v1285_v40  ;;  %v1277_v36 = vadd.f32 %v1276_v15, %v11031_v25  ;;  %v7763_v26 = vrot.slane %v7747_v63, 9  ;;  %v11405_v48 = vrot.slane %v4243_v4, 4  ;;  %v5195_v25 = vld [vmem:[%s13940_s4 + $0x68] sm:$0xff]  ;;  %v5198_v63 = vld [vmem:[%s13940_s4 + $0x80] sm:$0xff] }
 0x14b   : > { %v8112_v38 = vpop.f32.mrf.mxu1  ;;  %v4772_v7 = vrot.slane %v4770_v1, 4  ;;  %v4777_v59 = vrot.slane %v11334_v22, 5  ;;  %v4780_v41 = vrot.slane %v11346_v31, 5  ;;  %v8163_v2 = vpop.f32.mrf.mxu0  ;;  %v14153_v61 = vcombine.low %v11209_v13, %v11220_v57  ;;  %v5196_v13 = vld [vmem:[%s13940_s4 + $0x70] sm:$0xff] }
 0x14c   : > { %v11415_v39 = vadd.f32 %v1729_v47, %v1277_v36  ;;  %v1288_v28 = vadd.f32 %v8112_v38, %v11066_v44  ;;  %v14154_v31 = vsel %vm9055_vm2, %v11250_v19, %v11252_v12  ;;  %v14155_v22 = vsel %vm9055_vm2, %v11228_v10, %v11168_v42  ;;  %v11436_v47 = vld [vmem:[%s10723_s20 + $0x70] sm:$0xff] }
 0x14d   : > { %8450 = vmatmul.mubr.bf16.gmra.mxu0 %v14153_v61  ;;  %v11431_v35 = vcombine.low %v14155_v22, %v14154_v31  ;;  %v7793_v44 = vcombine.low %v11376_v32, %v11382_v55  ;;  %v1279_v57 = vpop.f32.mrf.mxu1  ;;  %v11441_v19 = vcombine.low %v4215_v18, %v4225_v54  ;;  %v4771_v12 = vsel %vm9366_vm5, %v7762_v23, %v4770_v1  ;;  %v1745_v32 = vpop.f32.mrf.mxu0  ;;  %v5197_v55 = vld [vmem:[%s13940_s4 + $0x78] sm:$0xff]  ;;  %v11463_v18 = vld [vmem:[%s10723_s20 + $0x80] sm:$0xff]  ;;  %v14157_v61 = vld [vmem:[#allocation9_spill] sm:$0xff] }
 0x14e   : > { %8453 = vmatprep.mubr.bf16.mxu0 %v7792_v34  ;;  %v4774_v42 = vsel %vm9366_vm5, %v4772_v7, %v4773_v53  ;;  %v4779_v10 = vrot.slane %v4777_v59, 4  ;;  %v11451_v50 = vadd.f32 %v8160_v14, %v1288_v28  ;;  %v1280_v0 = vadd.f32 %v1279_v57, %v11106_v24  ;;  %v11483_v23 = vld [vmem:[%s9024_s23 + $0xc4] sm:$0xf]  ;;  %v7691_v7 = vld [vmem:[%s9024_s23 + $0xcc] sm:$0xf] }
 0x14f   : > { %v11456_v34 = vsel %vm9366_vm5, %v7763_v26, %v4777_v59  ;;  %v5323_v21 = vmul.f32 %v5195_v25, %v11410_v37  ;;  %v8115_v24 = vpop.f32.mrf.mxu1  ;;  %8402 = vmatmul.mubr.bf16.gmra.mxu1 %v11224_v52  ;;  %v4239_v40 = vsel %vm9055_vm2, %v11392_v43, %v11360_v49  ;;  %v4249_v14 = vsel %vm9055_vm2, %v11405_v48, %v11395_v20  ;;  %v14156_v52 = vld [vmem:[#allocation11_spill] sm:$0xff]  ;;  %v8164_v36 = vpop.f32.mrf.mxu0  ;;  %v11491_v26 = vld [vmem:[%s9024_s23 + $0xc8] sm:$0x1]  ;;  %v7749_v20 = vld [vmem:[%s9024_s23 + $0xcc] sm:$0xe] }
 0x150   : > { %v11479_v4 = vsel %vm9366_vm5, %v4779_v10, %v4780_v41  ;;  %v5324_v15 = vmul.f32 %v5196_v13, %v11436_v47  ;;  %v11485_v1 = vadd.f32 %v1732_v3, %v1280_v0  ;;  %v1301_v53 = vadd.f32 %v8115_v24, %v14156_v52  ;;  %8405 = vmatprep.mubr.bf16.mxu1 %v11272_v33  ;;  %v11513_v52 = vld [vmem:[%s9024_s23 + $0xd4] sm:$0x1] }
 0x151   : > { %v7794_v54 = vcombine.low %v4771_v12, %v4774_v42  ;;  %5400 = vrot.lane.b32.xlu1 %v5323_v21, %s8912_s22  ;;  %v4251_v38 = vshrl.u32 %v7688_v30, 16  ;;  %v1292_v59 = vpop.f32.mrf.mxu1  ;;  %v5325_v3 = vmul.f32 %v5197_v55, %v11448_v62  ;;  %v5326_v25 = vmul.f32 %v5198_v63, %v11463_v18  ;;  %v1748_v22 = vpop.f32.mrf.mxu0  ;;  %v11506_v21 = vld [vmem:[%s9024_s23 + $0xd0] sm:$0xf] }
 0x152   : > { %5402 = vrot.lane.b32.xlu0 %v5324_v15, %s8912_s22  ;;  %v4254_v28 = vshll.u32 %v7688_v30, 16  ;;  %v11499_v33 = vadd.f32 %v8163_v2, %v1301_v53  ;;  %v1293_v31 = vadd.f32 %v1292_v59, %v14157_v61  ;;  %v4260_v57 = vshll.u32 %v11483_v23, 16  ;;  %v14158_v2 = vld [vmem:[#allocation13_spill] sm:$0xff] }
 0x153   : > { %v4253_v13 = vrot.slane %v4251_v38, 4  ;;  %v8116_v12 = vpop.f32.mrf.mxu1  ;;  %v4264_v10 = vshrl.u32 %v11483_v23, 16  ;;  %v4270_v0 = vshll.u32 %v11491_v26, 16  ;;  %v4275_v55 = vshrl.u32 %v7691_v7, 16 }
 0x154   : > { %v4256_v42 = vrot.slane %v4254_v28, 5  ;;  %v11508_v63 = vadd.f32 %v1745_v32, %v1293_v31  ;;  %v1304_v30 = vadd.f32 %v8116_v12, %v14158_v2  ;;  %v8167_v24 = vpop.f32.mrf.mxu0  ;;  %v4262_v15 = vrot.slane %v4260_v57, 5  ;;  %v14159_v12 = vld [vmem:[#allocation15_spill] sm:$0xff] }
 0x155   : > { %8454 = vmatmul.mubr.bf16.gmra.mxu0 %v7793_v44  ;;  %5404 = vrot.lane.b32.xlu1 %v5325_v3, %s8912_s22  ;;  %v4278_v53 = vshll.u32 %v7691_v7, 16  ;;  %v1295_v38 = vpop.f32.mrf.mxu1  ;;  %v4266_v28 = vrot.slane %v4264_v10, 4  ;;  %v4272_v61 = vrot.slane %v4270_v0, 5  ;;  %v4277_v32 = vrot.slane %v4275_v55, 4 }
 0x156   : > { %8457 = vmatprep.mubr.bf16.mxu0 %v7794_v54  ;;  %5406 = vrot.lane.b32.xlu0 %v5326_v25, %s8912_s22  ;;  %v4257_v59 = vor.u32 %v4256_v42, %v4253_v13  ;;  %v11516_v31 = vadd.f32 %v8164_v36, %v1304_v30  ;;  %v1296_v2 = vadd.f32 %v1295_v38, %v14159_v12  ;;  %v1761_v44 = vpop.f32.mrf.mxu0  ;;  %v4284_v3 = vshll.u32 %v11506_v21, 16  ;;  %v7748_v42 = vld [vmem:[%s9024_s23 + $0xc0] sm:$0xe]  ;;  %v14160_v36 = vld [vmem:[#allocation17_spill] sm:$0xff] }
 0x157   : > { %v4280_v41 = vrot.slane %v4278_v53, 5  ;;  %v8119_v57 = vpop.f32.mrf.mxu1  ;;  %8406 = vmatmul.mubr.bf16.gmra.mxu1 %v11431_v35  ;;  %v4267_v54 = vor.u32 %v4266_v28, %v4262_v15  ;;  %v4288_v25 = vshrl.u32 %v11506_v21, 16  ;;  %v4294_v13 = vshll.u32 %v11513_v52, 16  ;;  %v14161_v28 = vld [vmem:[#allocation19_spill] sm:$0xff] }
 0x158   : > { %v4258_v7 = vrot.slane %v4257_v59, 4  ;;  %v11524_v10 = vadd.f32 %v1748_v22, %v1296_v2  ;;  %v1317_v0 = vadd.f32 %v8119_v57, %v14160_v36  ;;  %v8168_v55 = vpop.f32.mrf.mxu0  ;;  %8409 = vmatprep.mubr.bf16.mxu1 %v11441_v19  ;;  %v11528_v53 = vrot.slane %v4284_v3, 5  ;;  %v11558_v36 = vld [vmem:[%s10723_s20 + $0x88] sm:$0xff] }
 0x159   : > { %v4281_v30 = vor.u32 %v4280_v41, %v4277_v32  ;;  %v1308_v38 = vpop.f32.mrf.mxu1  ;;  %v7723_v35 = vcombine.low %v4239_v40, %v4249_v14  ;;  %v4268_v59 = vrot.slane %v4267_v54, 4  ;;  %v4290_v19 = vrot.slane %v4288_v25, 4 }
 0x15a   : > { %v4263_v22 = vsel %vm9055_vm2, %v4258_v7, %v4262_v15  ;;  %v11542_v41 = vadd.f32 %v8167_v24, %v1317_v0  ;;  %v1309_v32 = vadd.f32 %v1308_v38, %v14161_v28  ;;  %v1764_v12 = vpop.f32.mrf.mxu0  ;;  %v7764_v3 = vrot.slane %v7748_v42, 9  ;;  %v14162_v24 = vld [vmem:[#allocation21_spill] sm:$0xff] }
 0x15b   : > { %v4282_v2 = vrot.slane %v4281_v30, 4  ;;  %v8120_v48 = vpop.f32.mrf.mxu1  ;;  %v4273_v57 = vsel %vm9055_vm2, %v4268_v59, %v4272_v61  ;;  %v4291_v49 = vor.u32 %v4290_v19, %v11528_v53  ;;  %v4784_v43 = vrot.slane %v11483_v23, 5  ;;  %v5199_v23 = vld [vmem:[%s13940_s4 + $0x88] sm:$0xff]  ;;  %v11570_v59 = vld [vmem:[%s10723_s20 + $0x90] sm:$0xff] }
 0x15c   : > { %v4787_v40 = vrot.slane %v11491_v26, 5  ;;  %v11551_v14 = vadd.f32 %v1761_v44, %v1309_v32  ;;  %v1320_v15 = vadd.f32 %v8120_v48, %v14162_v24  ;;  %v8171_v7 = vpop.f32.mrf.mxu0  ;;  %v14163_v54 = vcombine.low %v11456_v34, %v11479_v4  ;;  %v14164_v34 = vld [vmem:[#allocation23_spill] sm:$0xff]  ;;  %v5200_v19 = vld [vmem:[%s13940_s4 + $0x90] sm:$0xff] }
 0x15d   : > { %v7724_v25 = vcombine.low %v4263_v22, %v4273_v57  ;;  %v4296_v42 = vrot.slane %v4294_v13, 5  ;;  %v1311_v61 = vpop.f32.mrf.mxu1  ;;  %v4292_v26 = vrot.slane %v4291_v49, 4  ;;  %v4785_v44 = vsel %vm9366_vm5, %v7764_v3, %v4784_v43  ;;  %v5201_v48 = vld [vmem:[%s13940_s4 + $0x98] sm:$0xff] }
 0x15e   : > { %8458 = vmatmul.mubr.bf16.gmra.mxu0 %v14163_v54  ;;  %v4786_v0 = vrot.slane %v4784_v43, 4  ;;  %v7765_v30 = vrot.slane %v7749_v20, 9  ;;  %v11565_v38 = vadd.f32 %v8168_v55, %v1320_v15  ;;  %v1312_v4 = vadd.f32 %v1311_v61, %v14164_v34  ;;  %v1777_v22 = vpop.f32.mrf.mxu0  ;;  %v11583_v20 = vld [vmem:[%s10723_s20 + $0x98] sm:$0xff] }
 0x15f   : > { %v4791_v13 = vrot.slane %v11506_v21, 5  ;;  %v8123_v28 = vpop.f32.mrf.mxu1  ;;  %8410 = vmatmul.mubr.bf16.gmra.mxu1 %v7723_v35  ;;  %v4287_v32 = vsel %vm9055_vm2, %v4282_v2, %v11528_v53  ;;  %v4794_v3 = vrot.slane %v11513_v52, 5  ;;  %v5327_v21 = vmul.f32 %v5199_v23, %v11558_v36  ;;  %v14165_v35 = vld [vmem:[#allocation25_spill] sm:$0xff]  ;;  %v11594_v52 = vld [vmem:[%s10723_s20 + $0xa0] sm:$0xff] }
 0x160   : > { %v4788_v55 = vsel %vm9366_vm5, %v4786_v0, %v4787_v40  ;;  %v11588_v57 = vadd.f32 %v1764_v12, %v1312_v4  ;;  %v1333_v49 = vadd.f32 %v8123_v28, %v14165_v35  ;;  %v8172_v43 = vpop.f32.mrf.mxu0  ;;  %8413 = vmatprep.mubr.bf16.mxu1 %v7724_v25  ;;  %v4297_v53 = vsel %vm9055_vm2, %v4292_v26, %v4296_v42  ;;  %v5202_v40 = vld [vmem:[%s13940_s4 + $0xa0] sm:$0xff]  ;;  %v11608_v26 = vld [vmem:[%s10723_s20 + $0xa8] sm:$0xff] }
 0x161   : > { %v7796_v2 = vcombine.low %v4785_v44, %v4788_v55  ;;  %v1324_v24 = vpop.f32.mrf.mxu1  ;;  %v4792_v12 = vsel %vm9366_vm5, %v7765_v30, %v4791_v13  ;;  %v4793_v15 = vrot.slane %v4791_v13, 4  ;;  %5408 = vrot.lane.b32.xlu1 %v5327_v21, %s8912_s22  ;;  %v5328_v54 = vmul.f32 %v5200_v19, %v11570_v59  ;;  %v5203_v44 = vld [vmem:[%s13940_s4 + $0xa8] sm:$0xff]  ;;  %v14167_v13 = vld [vmem:[#allocation30_spill] sm:$0xff] }
 0x162   : > { %v11603_v25 = vadd.f32 %v8171_v7, %v1333_v49  ;;  %v1325_v42 = vadd.f32 %v1324_v24, %v14166_v27  ;;  %v1780_v23 = vpop.f32.mrf.mxu0  ;;  %v5329_v61 = vmul.f32 %v5201_v48, %v11583_v20  ;;  %v7725_v30 = vcombine.low %v4287_v32, %v4297_v53  ;;  %v11621_v21 = vld [vmem:[%s10723_s20 + $0xb0] sm:$0xff]  ;;  %v11632_v53 = vld [vmem:[%s10723_s20 + $0xb8] sm:$0xff]  ;;  %v11643_v27 = vld [vmem:[%s10723_s20 + $0xc0] sm:$0xff] }
 0x163   : > { %8461 = vmatprep.mubr.bf16.mxu0 %v7796_v2  ;;  %v8124_v0 = vpop.f32.mrf.mxu1  ;;  %v4795_v34 = vsel %vm9366_vm5, %v4793_v15, %v4794_v3  ;;  %5410 = vrot.lane.b32.xlu0 %v5328_v54, %s8912_s22  ;;  %v5330_v7 = vmul.f32 %v5202_v40, %v11594_v52  ;;  %v5204_v32 = vld [vmem:[%s13940_s4 + $0xb0] sm:$0xff]  ;;  %v5331_v56 = vmul.f32 %v5203_v44, %v11608_v26  ;;  %v5205_v2 = vld [vmem:[%s13940_s4 + $0xb8] sm:$0xff] }
 0x164   : > { %v11617_v4 = vadd.f32 %v1777_v22, %v1325_v42  ;;  %v1336_v19 = vadd.f32 %v8124_v0, %v14167_v13  ;;  %v8175_v28 = vpop.f32.mrf.mxu0  ;;  %v7797_v55 = vcombine.low %v4792_v12, %v4795_v34  ;;  %v14168_v22 = vld [vmem:[#allocation32_spill] sm:$0xff]  ;;  %v5332_v24 = vmul.f32 %v5204_v32, %v11621_v21  ;;  %v5207_v13 = vld [vmem:[%s13940_s4 + $0xc8] sm:$0xff] }
 0x165   : > { %v1327_v48 = vpop.f32.mrf.mxu1  ;;  %5412 = vrot.lane.b32.xlu1 %v5329_v61, %s8912_s22  ;;  %v5206_v42 = vld [vmem:[%s13940_s4 + $0xc0] sm:$0xff]  ;;  %v5333_v44 = vmul.f32 %v5205_v2, %v11632_v53 }
 0x166   : > { %v11628_v3 = vadd.f32 %v8172_v43, %v1336_v19  ;;  %v1328_v35 = vadd.f32 %v1327_v48, %v14168_v22  ;;  %v1793_v49 = vpop.f32.mrf.mxu0  ;;  %8462 = vmatmul.mubr.bf16.gmra.mxu0 %v7797_v55  ;;  %v14169_v43 = vld [vmem:[#allocation33_spill] sm:$0xff]  ;;  %v5334_v55 = vmul.f32 %v5206_v42, %v11643_v27  ;;  %v14171_v48 = vld [vmem:[#allocation35_spill] sm:$0xff]  ;;  %v11665_v22 = vld [vmem:[%s10723_s20 + $0xd0] sm:$0xff] }
 0x167   : > { %v8127_v40 = vpop.f32.mrf.mxu1  ;;  %8414 = vmatmul.mubr.bf16.gmra.mxu1 %v7725_v30  ;;  %5414 = vrot.lane.b32.xlu0 %v5330_v7, %s8912_s22  ;;  %v14170_v30 = vld [vmem:[#allocation34_spill] sm:$0xff]  ;;  %v11654_v7 = vld [vmem:[%s10723_s20 + $0xc8] sm:$0xff]  ;;  %14172 = vst [vmem:[#allocation16_spill] sm:$0xff] %v11665_v22  ;;  %v11676_v42 = vld [vmem:[%s10723_s20 + $0xd8] sm:$0xff] }
 0x168   : > { %v11639_v12 = vadd.f32 %v1780_v23, %v1328_v35  ;;  %v1349_v15 = vadd.f32 %v8127_v40, %v14169_v43  ;;  %v8176_v54 = vpop.f32.mrf.mxu0  ;;  %v5208_v35 = vld [vmem:[%s13940_s4 + $0xd0] sm:$0xff]  ;;  %v5335_v40 = vmul.f32 %v5207_v13, %v11654_v7  ;;  %v14173_v43 = vld [vmem:[#allocation36_spill] sm:$0xff]  ;;  %14174 = vst [vmem:[#allocation27_spill] sm:$0xff] %v11676_v42 }
 0x169   : > { %v1340_v61 = vpop.f32.mrf.mxu1  ;;  %5416 = vrot.lane.b32.xlu1 %v5331_v56, %s8912_s22  ;;  %v14175_v13 = vld [vmem:[#allocation8_spill] sm:$0xff] }
 0x16a   : > { %v11650_v0 = vadd.f32 %v8175_v28, %v1349_v15  ;;  %v1341_v23 = vadd.f32 %v1340_v61, %v14170_v30  ;;  %v1796_v34 = vpop.f32.mrf.mxu0  ;;  %v5209_v61 = vld [vmem:[%s13940_s4 + $0xd8] sm:$0xff] }
 0x16b   : > { %v8128_v19 = vpop.f32.mrf.mxu1  ;;  %5418 = vrot.lane.b32.xlu0 %v5332_v24, %s8912_s22 }
 0x16c   : > { %v11661_v32 = vadd.f32 %v1793_v49, %v1341_v23  ;;  %v1352_v28 = vadd.f32 %v8128_v19, %v14171_v48  ;;  %v8243_v56 = vpop.f32.mrf.mxu0  ;;  %v5336_v23 = vmul.f32 %v5208_v35, %v11665_v22  ;;  %v11687_v48 = vld [vmem:[%s10723_s20 + $0xe0] sm:$0xff] }
 0x16d   : > { %v1343_v2 = vpop.f32.mrf.mxu1  ;;  %5420 = vrot.lane.b32.xlu1 %v5333_v44, %s8912_s22 }
 0x16e   : > { %v11672_v24 = vadd.f32 %v8176_v54, %v1352_v28  ;;  %v1344_v49 = vadd.f32 %v1343_v2, %v14173_v43  ;;  %v2822_v15 = vpop.f32.mrf.mxu0  ;;  %v5210_v28 = vld [vmem:[%s13940_s4 + $0xe0] sm:$0xff]  ;;  %v5337_v43 = vmul.f32 %v5209_v61, %v11676_v42 }
 0x16f   : > { %v8195_v30 = vpop.f32.mrf.mxu1  ;;  %5422 = vrot.lane.b32.xlu0 %v5334_v55, %s8912_s22  ;;  %v5338_v22 = vmul.f32 %v5210_v28, %v11687_v48  ;;  %v11720_v28 = vld [vmem:[%s10723_s20 + $0xf8] sm:$0xff] }
 0x170   : > { %v11683_v44 = vadd.f32 %v1796_v34, %v1344_v49  ;;  %v2197_v54 = vadd.f32 %v8195_v30, %v14175_v13  ;;  %v8244_v19 = vpop.f32.mrf.mxu0  ;;  %v11698_v49 = vld [vmem:[%s10723_s20 + $0xe8] sm:$0xff] }
 0x171   : > { %v2068_v2 = vpop.f32.mrf.mxu1  ;;  %5424 = vrot.lane.b32.xlu1 %v5335_v40, %s8912_s22  ;;  %14177 = vst [vmem:[#allocation20_spill] sm:$0xff] %v11698_v49  ;;  %v5211_v30 = vld [vmem:[%s13940_s4 + $0xe8] sm:$0xff] }
 0x172   : > { %v11694_v55 = vadd.f32 %v8243_v56, %v2197_v54  ;;  %v2195_v34 = vadd.f32 %v2068_v2, %v11183_v46  ;;  %v2825_v35 = vpop.f32.mrf.mxu0  ;;  %v11709_v54 = vld [vmem:[%s10723_s20 + $0xf0] sm:$0xff] }
 0x173   : > { %v8196_v13 = vpop.f32.mrf.mxu1  ;;  %5426 = vrot.lane.b32.xlu0 %v5336_v23, %s8912_s22  ;;  %v5212_v46 = vld [vmem:[%s13940_s4 + $0xf0] sm:$0xff] }
 0x174   : > { %14176 = vst [vmem:[#allocation18_spill] sm:$0xff] %v11694_v55  ;;  %v11705_v40 = vadd.f32 %v2822_v15, %v2195_v34  ;;  %v2198_v56 = vadd.f32 %v8196_v13, %v11213_v45  ;;  %v8247_v61 = vpop.f32.mrf.mxu0  ;;  %v5339_v55 = vmul.f32 %v5211_v30, %v11698_v49  ;;  %v5213_v45 = vld [vmem:[%s13940_s4 + $0xf8] sm:$0xff]  ;;  %v5340_v13 = vmul.f32 %v5212_v46, %v11709_v54 }
 0x175   : > { %v2071_v2 = vpop.f32.mrf.mxu1  ;;  %5428 = vrot.lane.b32.xlu1 %v5337_v43, %s8912_s22 }
 0x176   : > { %14178 = vst [vmem:[#allocation22_spill] sm:$0xff] %v11705_v40  ;;  %v11716_v42 = vadd.f32 %v8244_v19, %v2198_v56  ;;  %v2196_v23 = vadd.f32 %v2071_v2, %v11230_v16  ;;  %v2838_v15 = vpop.f32.mrf.mxu0  ;;  %v5341_v16 = vmul.f32 %v5213_v45, %v11720_v28  ;;  %v11744_v45 = vld [vmem:[%s10723_s20] sm:$0xff] }
 0x177   : > { %v8199_v34 = vpop.f32.mrf.mxu1  ;;  %5430 = vrot.lane.b32.xlu0 %v5338_v22, %s8912_s22 }
 0x178   : > { %14179 = vst [vmem:[#allocation24_spill] sm:$0xff] %v11716_v42  ;;  %v11727_v40 = vadd.f32 %v2825_v35, %v2196_v23  ;;  %v2201_v43 = vadd.f32 %v8199_v34, %v11261_v29  ;;  %v8248_v19 = vpop.f32.mrf.mxu0 }
 0x179   : > { %v2084_v30 = vpop.f32.mrf.mxu1  ;;  %5432 = vrot.lane.b32.xlu1 %v5339_v55, %s8912_s22 }
 0x17a   : > { %v11732_v56 = vadd.f32 %v8247_v61, %v2201_v43  ;;  %v2199_v2 = vadd.f32 %v2084_v30, %v11283_v11  ;;  %v2841_v42 = vpop.f32.mrf.mxu0 }
 0x17b   : > { %v8200_v49 = vpop.f32.mrf.mxu1  ;;  %5434 = vrot.lane.b32.xlu0 %v5340_v13, %s8912_s22  ;;  %v11752_v13 = vld [vmem:[%s10723_s20 + $0x8] sm:$0xff] }
 0x17c   : > { %v11736_v22 = vadd.f32 %v2838_v15, %v2199_v2  ;;  %v2202_v29 = vadd.f32 %v8200_v49, %v11313_v5  ;;  %v8251_v35 = vpop.f32.mrf.mxu0 }
 0x17d   : > { %v2087_v46 = vpop.f32.mrf.mxu1  ;;  %5436 = vrot.lane.b32.xlu1 %v5341_v16, %s8912_s22  ;;  %v11760_v16 = vld [vmem:[%s10723_s20 + $0x10] sm:$0xff] }
 0x17e   : > { %v11740_v55 = vadd.f32 %v8248_v19, %v2202_v29  ;;  %v2200_v61 = vadd.f32 %v2087_v46, %v11327_v8  ;;  %v2854_v23 = vpop.f32.mrf.mxu0  ;;  %v11768_v46 = vld [vmem:[%s10723_s20 + $0x18] sm:$0xff] }
 0x17f   : > { %v8203_v11 = vpop.f32.mrf.mxu1  ;;  %5696 = vrot.lane.b32.xlu0 %v11744_v45, %s8912_s22 }
 0x180   : > { %v11748_v15 = vadd.f32 %v2841_v42, %v2200_v61  ;;  %v2205_v5 = vadd.f32 %v8203_v11, %v11339_v6  ;;  %v8252_v49 = vpop.f32.mrf.mxu0 }
 0x181   : > { %v2100_v34 = vpop.f32.mrf.mxu1  ;;  %5698 = vrot.lane.b32.xlu1 %v11752_v13, %s8912_s22 }
 0x182   : > { %14180 = vst [vmem:[#allocation26_spill] sm:$0xff] %v11748_v15  ;;  %v11756_v8 = vadd.f32 %v8251_v35, %v2205_v5  ;;  %v2203_v43 = vadd.f32 %v2100_v34, %v11349_v17  ;;  %v2857_v19 = vpop.f32.mrf.mxu0  ;;  %v11776_v5 = vld [vmem:[%s10723_s20 + $0x20] sm:$0xff] }
 0x183   : > { %v8204_v30 = vpop.f32.mrf.mxu1  ;;  %5700 = vrot.lane.b32.xlu0 %v11760_v16, %s8912_s22 }
 0x184   : > { %14181 = vst [vmem:[#allocation29_spill] sm:$0xff] %v11756_v8  ;;  %v11764_v6 = vadd.f32 %v2854_v23, %v2203_v43  ;;  %v2206_v42 = vadd.f32 %v8204_v30, %v11363_v58  ;;  %v8255_v2 = vpop.f32.mrf.mxu0  ;;  %v11784_v30 = vld [vmem:[%s10723_s20 + $0x28] sm:$0xff] }
 0x185   : > { %v2103_v29 = vpop.f32.mrf.mxu1  ;;  %5702 = vrot.lane.b32.xlu1 %v11768_v46, %s8912_s22 }
 0x186   : > { %14182 = vst [vmem:[#allocation31_spill] sm:$0xff] %v11764_v6  ;;  %v11772_v17 = vadd.f32 %v8252_v49, %v2206_v42  ;;  %v2204_v35 = vadd.f32 %v2103_v29, %v11388_v51  ;;  %v2870_v61 = vpop.f32.mrf.mxu0  ;;  %v11808_v6 = vld [vmem:[%s10723_s20 + $0x40] sm:$0xff] }
 0x187   : > { %v8207_v11 = vpop.f32.mrf.mxu1  ;;  %5704 = vrot.lane.b32.xlu0 %v11776_v5, %s8912_s22 }
 0x188   : > { %14183 = vst [vmem:[#allocation11_spill] sm:$0xff] %v11772_v17  ;;  %v11780_v58 = vadd.f32 %v2857_v19, %v2204_v35  ;;  %v2209_v23 = vadd.f32 %v8207_v11, %v11399_v60  ;;  %v8256_v34 = vpop.f32.mrf.mxu0  ;;  %v11792_v17 = vld [vmem:[%s10723_s20 + $0x30] sm:$0xff] }
 0x189   : > { %v2116_v43 = vpop.f32.mrf.mxu1  ;;  %5706 = vrot.lane.b32.xlu1 %v11784_v30, %s8912_s22 }
 0x18a   : > { %14184 = vst [vmem:[#allocation9_spill] sm:$0xff] %v11780_v58  ;;  %v11788_v51 = vadd.f32 %v8255_v2, %v2209_v23  ;;  %v2207_v49 = vadd.f32 %v2116_v43, %v11415_v39  ;;  %v2873_v42 = vpop.f32.mrf.mxu0  ;;  %v11800_v58 = vld [vmem:[%s10723_s20 + $0x38] sm:$0xff] }
 0x18b   : > { %v8208_v29 = vpop.f32.mrf.mxu1  ;;  %5708 = vrot.lane.b32.xlu0 %v11792_v17, %s8912_s22 }
 0x18c   : > { %v11796_v60 = vadd.f32 %v2870_v61, %v2207_v49  ;;  %v2210_v19 = vadd.f32 %v8208_v29, %v11451_v50  ;;  %v8259_v35 = vpop.f32.mrf.mxu0 }
 0x18d   : > { %v2119_v11 = vpop.f32.mrf.mxu1  ;;  %5710 = vrot.lane.b32.xlu1 %v11800_v58, %s8912_s22 }
 0x18e   : > { %v11804_v2 = vadd.f32 %v8256_v34, %v2210_v19  ;;  %v2208_v39 = vadd.f32 %v2119_v11, %v11485_v1  ;;  %v2886_v23 = vpop.f32.mrf.mxu0 }
 0x18f   : > { %v8211_v43 = vpop.f32.mrf.mxu1  ;;  %5712 = vrot.lane.b32.xlu0 %v11808_v6, %s8912_s22 }
 0x190   : > { %14185 = vst [vmem:[#allocation13_spill] sm:$0xff] %v11804_v2  ;;  %v11812_v61 = vadd.f32 %v2873_v42, %v2208_v39  ;;  %v2213_v50 = vadd.f32 %v8211_v43, %v11499_v33  ;;  %v8260_v49 = vpop.f32.mrf.mxu0  ;;  %v14186_v2 = vld [vmem:[#allocation10_spill] sm:$0xff]  ;;  %v14187_v43 = vld [vmem:[#allocation12_spill] sm:$0xff] }
 0x191   : > { %v2132_v29 = vpop.f32.mrf.mxu1  ;;  %5714 = vrot.lane.b32.xlu1 %v11243_v9, %s8912_s22 }
 0x192   : > { %v11817_v34 = vadd.f32 %v8259_v35, %v2213_v50  ;;  %v2211_v1 = vadd.f32 %v2132_v29, %v11508_v63  ;;  %v2889_v19 = vpop.f32.mrf.mxu0  ;;  %v14188_v50 = vld [vmem:[#allocation14_spill] sm:$0xff] }
 0x193   : > { %v8212_v11 = vpop.f32.mrf.mxu1  ;;  %5716 = vrot.lane.b32.xlu0 %v14186_v2, %s8912_s22 }
 0x194   : > { %v11822_v8 = vadd.f32 %v2886_v23, %v2211_v1  ;;  %v2214_v42 = vadd.f32 %v8212_v11, %v11516_v31  ;;  %v8263_v39 = vpop.f32.mrf.mxu0 }
 0x195   : > { %v2135_v33 = vpop.f32.mrf.mxu1  ;;  %5718 = vrot.lane.b32.xlu1 %v14187_v43, %s8912_s22 }
 0x196   : > { %v11827_v15 = vadd.f32 %v8260_v49, %v2214_v42  ;;  %v2212_v9 = vadd.f32 %v2135_v33, %v11524_v10  ;;  %v2902_v35 = vpop.f32.mrf.mxu0 }
 0x197   : > { %v8215_v63 = vpop.f32.mrf.mxu1  ;;  %5720 = vrot.lane.b32.xlu0 %v14188_v50, %s8912_s22 }
 0x198   : > { %v11832_v29 = vadd.f32 %v2889_v19, %v2212_v9  ;;  %v2217_v2 = vadd.f32 %v8215_v63, %v11542_v41  ;;  %v8264_v23 = vpop.f32.mrf.mxu0  ;;  %v11852_v9 = vpop.permute.xlu0 %5374 }
 0x199   : > { %v2148_v31 = vpop.f32.mrf.mxu1  ;;  %5722 = vrot.lane.b32.xlu1 %v11410_v37, %s8912_s22 }
 0x19a   : > { %v11837_v1 = vadd.f32 %v8263_v39, %v2217_v2  ;;  %v2215_v49 = vadd.f32 %v2148_v31, %v11551_v14  ;;  %v2905_v11 = vpop.f32.mrf.mxu0 }
 0x19b   : > { %v8216_v10 = vpop.f32.mrf.mxu1  ;;  %5724 = vrot.lane.b32.xlu0 %v11436_v47, %s8912_s22 }
 0x19c   : > { %v11842_v42 = vadd.f32 %v2902_v35, %v2215_v49  ;;  %v2218_v19 = vadd.f32 %v8216_v10, %v11565_v38  ;;  %v8267_v33 = vpop.f32.mrf.mxu0 }
 0x19d   : > { %v2151_v41 = vpop.f32.mrf.mxu1  ;;  %5726 = vrot.lane.b32.xlu1 %v11448_v62, %s8912_s22 }
 0x19e   : > { %v11847_v43 = vadd.f32 %v8264_v23, %v2218_v19  ;;  %v2216_v37 = vadd.f32 %v2151_v41, %v11588_v57  ;;  %v2918_v39 = vpop.f32.mrf.mxu0 }
 0x19f   : > { %v8219_v14 = vpop.f32.mrf.mxu1  ;;  %5728 = vrot.lane.b32.xlu0 %v11463_v18, %s8912_s22  ;;  %v11864_v18 = vpop.permute.xlu1 %5378 }
 0x1a0   : > { %v11854_v47 = vadd.f32 %v2905_v11, %v2216_v37  ;;  %v2221_v38 = vadd.f32 %v8219_v14, %v11603_v25  ;;  %v8268_v35 = vpop.f32.mrf.mxu0 }
 0x1a1   : > { %v2164_v63 = vpop.f32.mrf.mxu1  ;;  %5730 = vrot.lane.b32.xlu1 %v11558_v36, %s8912_s22  ;;  %v11871_v36 = vpop.permute.xlu0 %5376 }
 0x1a2   : > { %v11859_v62 = vadd.f32 %v8267_v33, %v2221_v38  ;;  %v2219_v57 = vadd.f32 %v2164_v63, %v11617_v4  ;;  %v2921_v50 = vpop.f32.mrf.mxu0  ;;  %14189 = vst [vmem:[#allocation15_spill] sm:$0xff] %v11871_v36 }
 0x1a3   : > { %v8220_v2 = vpop.f32.mrf.mxu1  ;;  %5732 = vrot.lane.b32.xlu0 %v11570_v59, %s8912_s22 }
 0x1a4   : > { %v11866_v23 = vadd.f32 %v2918_v39, %v2219_v57  ;;  %v2222_v25 = vadd.f32 %v8220_v2, %v11628_v3  ;;  %v8271_v31 = vpop.f32.mrf.mxu0 }
 0x1a5   : > { %v2167_v49 = vpop.f32.mrf.mxu1  ;;  %5734 = vrot.lane.b32.xlu1 %v11583_v20, %s8912_s22  ;;  %v11883_v20 = vpop.permute.xlu1 %5380 }
 0x1a6   : > { %v11873_v11 = vadd.f32 %v8268_v35, %v2222_v25  ;;  %v2220_v4 = vadd.f32 %v2167_v49, %v11639_v12  ;;  %v2934_v10 = vpop.f32.mrf.mxu0  ;;  %14190 = vst [vmem:[#allocation17_spill] sm:$0xff] %v11883_v20  ;;  %v14194_v49 = vld [vmem:[#allocation16_spill] sm:$0xff] }
 0x1a7   : > { %v8223_v19 = vpop.f32.mrf.mxu1  ;;  %5736 = vrot.lane.b32.xlu0 %v11594_v52, %s8912_s22  ;;  %v11890_v52 = vpop.permute.xlu0 %5382 }
 0x1a8   : > { %v11878_v59 = vadd.f32 %v2921_v50, %v2220_v4  ;;  %v2225_v3 = vadd.f32 %v8223_v19, %v11650_v0  ;;  %v8272_v33 = vpop.f32.mrf.mxu0  ;;  %14191 = vst [vmem:[#allocation19_spill] sm:$0xff] %v11890_v52  ;;  %v5217_v52 = vld [vmem:[%s13941_s5 + $0x18] sm:$0xff] }
 0x1a9   : > { %v2180_v41 = vpop.f32.mrf.mxu1  ;;  %5738 = vrot.lane.b32.xlu1 %v11608_v26, %s8912_s22 }
 0x1aa   : > { %v11885_v37 = vadd.f32 %v8271_v31, %v2225_v3  ;;  %v2223_v12 = vadd.f32 %v2180_v41, %v11661_v32  ;;  %v2937_v39 = vpop.f32.mrf.mxu0 }
 0x1ab   : > { %v8224_v14 = vpop.f32.mrf.mxu1  ;;  %5740 = vrot.lane.b32.xlu0 %v11621_v21, %s8912_s22  ;;  %v11908_v21 = vpop.permute.xlu1 %5384 }
 0x1ac   : > { %v11892_v38 = vadd.f32 %v2934_v10, %v2223_v12  ;;  %v2226_v0 = vadd.f32 %v8224_v14, %v11672_v24  ;;  %v11895_v35 = vpop.f32.mrf.mxu0  ;;  %14192 = vst [vmem:[#allocation21_spill] sm:$0xff] %v11908_v21  ;;  %v14195_v10 = vld [vmem:[#allocation27_spill] sm:$0xff]  ;;  %v5216_v21 = vld [vmem:[%s13941_s5 + $0x10] sm:$0xff] }
 0x1ad   : > { %v2183_v26 = vpop.f32.mrf.mxu1  ;;  %5742 = vrot.lane.b32.xlu1 %v11632_v53, %s8912_s22  ;;  %v11918_v53 = vpop.permute.xlu0 %5386 }
 0x1ae   : > { %v11899_v63 = vadd.f32 %v8272_v33, %v2226_v0  ;;  %v2224_v32 = vadd.f32 %v2183_v26, %v11683_v44  ;;  %v11902_v57 = vpop.f32.mrf.mxu0  ;;  %14193 = vst [vmem:[#allocation23_spill] sm:$0xff] %v11918_v53 }
 0x1af   : > { %v11904_v50 = vpop.f32.mrf.mxu1  ;;  %5744 = vrot.lane.b32.xlu0 %v11643_v27, %s8912_s22  ;;  %v11932_v19 = vpop.permute.xlu1 %5388 }
 0x1b0   : > { %v11910_v24 = vadd.f32 %v2937_v39, %v2224_v32  ;;  %v11912_v2 = vpop.f32.mrf.mxu0  ;;  %14196 = vst [vmem:[#allocation25_spill] sm:$0xff] %v11932_v19  ;;  %v14198_v39 = vld [vmem:[#allocation20_spill] sm:$0xff] }
 0x1b1   : > { %v11914_v25 = vpop.f32.mrf.mxu1  ;;  %5746 = vrot.lane.b32.xlu1 %v11654_v7, %s8912_s22  ;;  %v11940_v33 = vpop.permute.xlu0 %5390 }
 0x1b2   : > { %v11920_v44 = vpop.f32.mrf.mxu0  ;;  %14197 = vst [vmem:[#allocation28_spill] sm:$0xff] %v11940_v33 }
 0x1b3   : > { %v11922_v31 = vpop.f32.mrf.mxu1  ;;  %5748 = vrot.lane.b32.xlu0 %v14194_v49, %s8912_s22  ;;  %v11954_v26 = vpop.permute.xlu1 %5392 }
 0x1b4   : > { %v11926_v27 = vpop.f32.mrf.mxu0  ;;  %14200 = vst [vmem:[#allocation32_spill] sm:$0xff] %v11954_v26 }
 0x1b5   : > { %v11928_v4 = vpop.f32.mrf.mxu1  ;;  %5750 = vrot.lane.b32.xlu1 %v14195_v10, %s8912_s22  ;;  %v11965_v10 = vpop.permute.xlu0 %5394 }
 0x1b6   : > { %v11934_v3 = vpop.f32.mrf.mxu0  ;;  %14202 = vst [vmem:[#allocation34_spill] sm:$0xff] %v11965_v10 }
 0x1b7   : > { %v11936_v7 = vpop.f32.mrf.mxu1  ;;  %5752 = vrot.lane.b32.xlu0 %v11687_v48, %s8912_s22  ;;  %v5214_v48 = vld [vmem:[%s13941_s5] sm:$0xff] }
 0x1b8   : > { %v11942_v41 = vpop.f32.mrf.mxu0 }
 0x1b9   : > { %v11944_v12 = vpop.f32.mrf.mxu1  ;;  %5754 = vrot.lane.b32.xlu1 %v14198_v39, %s8912_s22 }
 0x1ba   : > { %v11948_v14 = vpop.f32.mrf.mxu0 }
 0x1bb   : > { %14199 = vst [vmem:[#allocation30_spill] sm:$0xff] %v11948_v14  ;;  %v11950_v0 = vpop.f32.mrf.mxu1  ;;  %5756 = vrot.lane.b32.xlu0 %v11709_v54, %s8912_s22  ;;  %v5215_v54 = vld [vmem:[%s13941_s5 + $0x8] sm:$0xff] }
 0x1bc   : > { %v11956_v32 = vpop.f32.mrf.mxu0 }
 0x1bd   : > { %14201 = vst [vmem:[#allocation33_spill] sm:$0xff] %v11956_v32  ;;  %v11961_v49 = vpop.f32.mrf.mxu1  ;;  %5758 = vrot.lane.b32.xlu1 %v11720_v28, %s8912_s22  ;;  %v11983_v28 = vpop.permute.xlu1 %5396 }
 0x1be   : > { %v11967_v39 = vpop.f32.mrf.mxu0  ;;  %14205 = vst [vmem:[#allocation8_spill] sm:$0xff] %v11983_v28 }
 0x1bf   : > { %14203 = vst [vmem:[#allocation35_spill] sm:$0xff] %v11967_v39  ;;  %v11972_v26 = vpop.f32.mrf.mxu1  ;;  %6176 = vrot.lane.b32.xlu0 %v5214_v48, %s8912_s22  ;;  %v11993_v48 = vpop.permute.xlu0 %5398  ;;  %v5218_v39 = vld [vmem:[%s13941_s5 + $0x20] sm:$0xff] }
 0x1c0   : > { %v11975_v33 = vpop.f32.mrf.mxu0  ;;  %14208 = vst [vmem:[#allocation14_spill] sm:$0xff] %v11993_v48 }
 0x1c1   : > { %14204 = vst [vmem:[#allocation36_spill] sm:$0xff] %v11975_v33  ;;  %v11980_v19 = vpop.f32.mrf.mxu1  ;;  %6178 = vrot.lane.b32.xlu1 %v5215_v54, %s8912_s22 }
 0x1c2   : > { %v11985_v10 = vpop.f32.mrf.mxu0 }
 0x1c3   : > { %14206 = vst [vmem:[#allocation10_spill] sm:$0xff] %v11985_v10  ;;  %v11990_v53 = vpop.f32.mrf.mxu1  ;;  %6180 = vrot.lane.b32.xlu0 %v5216_v21, %s8912_s22  ;;  %v5219_v10 = vld [vmem:[%s13941_s5 + $0x28] sm:$0xff]  ;;  %v12005_v21 = vpop.permute.xlu1 %5400 }
 0x1c4   : > { %14207 = vst [vmem:[#allocation12_spill] sm:$0xff] %v11990_v53  ;;  %v8351_v33 = vpop.f32.mrf.mxu0  ;;  %14210 = vst [vmem:[#allocation27_spill] sm:$0xff] %v12005_v21 }
 0x1c5   : > { %v11998_v54 = vpop.f32.mrf.mxu1  ;;  %6182 = vrot.lane.b32.xlu1 %v5217_v52, %s8912_s22  ;;  %v12014_v52 = vpop.permute.xlu0 %5402 }
 0x1c6   : > { %14209 = vst [vmem:[#allocation16_spill] sm:$0xff] %v11998_v54  ;;  %v3755_v28 = vpop.f32.mrf.mxu0  ;;  %v5220_v54 = vld [vmem:[%s13941_s5 + $0x30] sm:$0xff]  ;;  %14212 = vst [vmem:[#allocation37_spill] sm:$0xff] %v12014_v52  ;;  %v5223_v52 = vld [vmem:[%s13941_s5 + $0x48] sm:$0xff] }
 0x1c7   : > { %v8303_v36 = vpop.f32.mrf.mxu1  ;;  %6184 = vrot.lane.b32.xlu0 %v5218_v39, %s8912_s22 }
 0x1c8   : > { %v3461_v48 = vadd.f32 %v8303_v36, %v11788_v51  ;;  %v12008_v53 = vpop.f32.mrf.mxu0  ;;  %v5221_v51 = vld [vmem:[%s13941_s5 + $0x38] sm:$0xff] }
 0x1c9   : > { %14211 = vst [vmem:[#allocation20_spill] sm:$0xff] %v12008_v53  ;;  %v3368_v32 = vpop.f32.mrf.mxu1  ;;  %6186 = vrot.lane.b32.xlu1 %v5219_v10, %s8912_s22  ;;  %v5222_v10 = vld [vmem:[%s13941_s5 + $0x40] sm:$0xff] }
 0x1ca   : > { %v12016_v14 = vadd.f32 %v8351_v33, %v3461_v48  ;;  %v3459_v20 = vadd.f32 %v3368_v32, %v11796_v60  ;;  %v3758_v39 = vpop.f32.mrf.mxu0  ;;  %v12031_v60 = vpop.permute.xlu1 %5404 }
 0x1cb   : > { %v12022_v36 = vpop.f32.mrf.mxu1  ;;  %6188 = vrot.lane.b32.xlu0 %v5220_v54, %s8912_s22  ;;  %14216 = vst [vmem:[#allocation41_spill] sm:$0xff] %v12031_v60 }
 0x1cc   : > { %14213 = vst [vmem:[#allocation38_spill] sm:$0xff] %v12016_v14  ;;  %14214 = vst [vmem:[#allocation39_spill] sm:$0xff] %v12022_v36  ;;  %v12025_v21 = vadd.f32 %v3755_v28, %v3459_v20  ;;  %v8355_v53 = vpop.f32.mrf.mxu0  ;;  %v12038_v20 = vpop.permute.xlu0 %5406 }
 0x1cd   : > { %v3371_v33 = vpop.f32.mrf.mxu1  ;;  %6190 = vrot.lane.b32.xlu1 %v5221_v51, %s8912_s22  ;;  %14217 = vst [vmem:[#allocation42_spill] sm:$0xff] %v12038_v20  ;;  %v5224_v51 = vld [vmem:[%s13941_s5 + $0x50] sm:$0xff] }
 0x1ce   : > { %14215 = vst [vmem:[#allocation40_spill] sm:$0xff] %v12025_v21  ;;  %v3460_v32 = vadd.f32 %v3371_v33, %v11812_v61  ;;  %v3771_v48 = vpop.f32.mrf.mxu0 }
 0x1cf   : > { %v8307_v54 = vpop.f32.mrf.mxu1  ;;  %6192 = vrot.lane.b32.xlu0 %v5222_v10, %s8912_s22 }
 0x1d0   : > { %v12040_v28 = vadd.f32 %v3758_v39, %v3460_v32  ;;  %v3465_v21 = vadd.f32 %v8307_v54, %v11817_v34  ;;  %v8356_v14 = vpop.f32.mrf.mxu0  ;;  %v5225_v39 = vld [vmem:[%s13941_s5 + $0x58] sm:$0xff] }
 0x1d1   : > { %v3384_v61 = vpop.f32.mrf.mxu1  ;;  %6194 = vrot.lane.b32.xlu1 %v5223_v52, %s8912_s22 }
 0x1d2   : > { %v12047_v33 = vadd.f32 %v8355_v53, %v3465_v21  ;;  %v3463_v60 = vadd.f32 %v3384_v61, %v11822_v8  ;;  %v3774_v36 = vpop.f32.mrf.mxu0  ;;  %v5226_v53 = vld [vmem:[%s13941_s5 + $0x60] sm:$0xff] }
 0x1d3   : > { %v8308_v10 = vpop.f32.mrf.mxu1  ;;  %6196 = vrot.lane.b32.xlu0 %v5224_v51, %s8912_s22  ;;  %v12054_v34 = vpop.permute.xlu1 %5408 }
 0x1d4   : > { %14218 = vst [vmem:[#allocation43_spill] sm:$0xff] %v12054_v34  ;;  %v12056_v32 = vadd.f32 %v3771_v48, %v3463_v60  ;;  %v3466_v54 = vadd.f32 %v8308_v10, %v11827_v15  ;;  %v8359_v20 = vpop.f32.mrf.mxu0  ;;  %v5227_v60 = vld [vmem:[%s13941_s5 + $0x68] sm:$0xff] }
 0x1d5   : > { %v3387_v8 = vpop.f32.mrf.mxu1  ;;  %v12062_v21 = vpop.permute.xlu0 %5410  ;;  %6198 = vrot.lane.b32.xlu1 %v5225_v39, %s8912_s22 }
 0x1d6   : > { %14219 = vst [vmem:[#allocation44_spill] sm:$0xff] %v12062_v21  ;;  %v12065_v52 = vadd.f32 %v8356_v14, %v3466_v54  ;;  %v3464_v51 = vadd.f32 %v3387_v8, %v11832_v29  ;;  %v3787_v61 = vpop.f32.mrf.mxu0  ;;  %v5228_v14 = vld [vmem:[%s13941_s5 + $0x70] sm:$0xff] }
 0x1d7   : > { %v8311_v15 = vpop.f32.mrf.mxu1  ;;  %6200 = vrot.lane.b32.xlu0 %v5226_v53, %s8912_s22  ;;  %v12072_v48 = vpop.permute.xlu1 %5412 }
 0x1d8   : > { %14220 = vst [vmem:[#allocation45_spill] sm:$0xff] %v12072_v48  ;;  %v12074_v10 = vadd.f32 %v3774_v36, %v3464_v51  ;;  %v3469_v34 = vadd.f32 %v8311_v15, %v11837_v1  ;;  %v8360_v21 = vpop.f32.mrf.mxu0  ;;  %v5229_v36 = vld [vmem:[%s13941_s5 + $0x78] sm:$0xff] }
 0x1d9   : > { %v3400_v29 = vpop.f32.mrf.mxu1  ;;  %v12080_v39 = vpop.permute.xlu0 %5414  ;;  %6202 = vrot.lane.b32.xlu1 %v5227_v60, %s8912_s22 }
 0x1da   : > { %14221 = vst [vmem:[#allocation46_spill] sm:$0xff] %v12080_v39  ;;  %v12083_v54 = vadd.f32 %v8359_v20, %v3469_v34  ;;  %v3467_v53 = vadd.f32 %v3400_v29, %v11842_v42  ;;  %v3790_v8 = vpop.f32.mrf.mxu0  ;;  %v5230_v20 = vld [vmem:[%s13941_s5 + $0x80] sm:$0xff] }
 0x1db   : > { %v8312_v1 = vpop.f32.mrf.mxu1  ;;  %6204 = vrot.lane.b32.xlu0 %v5228_v14, %s8912_s22  ;;  %v12090_v51 = vpop.permute.xlu1 %5416 }
 0x1dc   : > { %14222 = vst [vmem:[#allocation47_spill] sm:$0xff] %v12090_v51  ;;  %v12092_v15 = vadd.f32 %v3787_v61, %v3467_v53  ;;  %v3470_v39 = vadd.f32 %v8312_v1, %v11847_v43  ;;  %v8363_v48 = vpop.f32.mrf.mxu0  ;;  %v5231_v61 = vld [vmem:[%s13941_s5 + $0x88] sm:$0xff] }
 0x1dd   : > { %v3403_v42 = vpop.f32.mrf.mxu1  ;;  %v12098_v34 = vpop.permute.xlu0 %5418  ;;  %6206 = vrot.lane.b32.xlu1 %v5229_v36, %s8912_s22 }
 0x1de   : > { %14223 = vst [vmem:[#allocation48_spill] sm:$0xff] %v12098_v34  ;;  %v12101_v60 = vadd.f32 %v8360_v21, %v3470_v39  ;;  %v3468_v14 = vadd.f32 %v3403_v42, %v11854_v47  ;;  %v3803_v29 = vpop.f32.mrf.mxu0  ;;  %v5232_v21 = vld [vmem:[%s13941_s5 + $0x90] sm:$0xff] }
 0x1df   : > { %v8315_v43 = vpop.f32.mrf.mxu1  ;;  %6208 = vrot.lane.b32.xlu0 %v5230_v20, %s8912_s22  ;;  %v12108_v53 = vpop.permute.xlu1 %5420 }
 0x1e0   : > { %14224 = vst [vmem:[#allocation49_spill] sm:$0xff] %v12101_v60  ;;  %14225 = vst [vmem:[#allocation50_spill] sm:$0xff] %v12108_v53  ;;  %v12110_v1 = vadd.f32 %v3790_v8, %v3468_v14  ;;  %v3473_v51 = vadd.f32 %v8315_v43, %v11859_v62  ;;  %v8364_v34 = vpop.f32.mrf.mxu0  ;;  %v5233_v8 = vld [vmem:[%s13941_s5 + $0x98] sm:$0xff] }
 0x1e1   : > { %v3416_v47 = vpop.f32.mrf.mxu1  ;;  %v12116_v39 = vpop.permute.xlu0 %5422  ;;  %6210 = vrot.lane.b32.xlu1 %v5231_v61, %s8912_s22 }
 0x1e2   : > { %14226 = vst [vmem:[#allocation51_spill] sm:$0xff] %v12110_v1  ;;  %14227 = vst [vmem:[#allocation52_spill] sm:$0xff] %v12116_v39  ;;  %v12119_v36 = vadd.f32 %v8363_v48, %v3473_v51  ;;  %v3471_v20 = vadd.f32 %v3416_v47, %v11866_v23  ;;  %v3806_v42 = vpop.f32.mrf.mxu0  ;;  %v5234_v48 = vld [vmem:[%s13941_s5 + $0xa0] sm:$0xff] }
 0x1e3   : > { %v8316_v62 = vpop.f32.mrf.mxu1  ;;  %6212 = vrot.lane.b32.xlu0 %v5232_v21, %s8912_s22  ;;  %v12126_v14 = vpop.permute.xlu1 %5424 }
 0x1e4   : > { %14228 = vst [vmem:[#allocation53_spill] sm:$0xff] %v12119_v36  ;;  %14229 = vst [vmem:[#allocation54_spill] sm:$0xff] %v12126_v14  ;;  %v12128_v43 = vadd.f32 %v3803_v29, %v3471_v20  ;;  %v3474_v39 = vadd.f32 %v8316_v62, %v11873_v11  ;;  %v8367_v53 = vpop.f32.mrf.mxu0  ;;  %v5235_v29 = vld [vmem:[%s13941_s5 + $0xa8] sm:$0xff] }
 0x1e5   : > { %v3419_v23 = vpop.f32.mrf.mxu1  ;;  %v12134_v51 = vpop.permute.xlu0 %5426  ;;  %6214 = vrot.lane.b32.xlu1 %v5233_v8, %s8912_s22 }
 0x1e6   : > { %14230 = vst [vmem:[#allocation55_spill] sm:$0xff] %v12128_v43  ;;  %14231 = vst [vmem:[#allocation56_spill] sm:$0xff] %v12134_v51  ;;  %v12137_v61 = vadd.f32 %v8364_v34, %v3474_v39  ;;  %v3472_v21 = vadd.f32 %v3419_v23, %v11878_v59  ;;  %v3819_v47 = vpop.f32.mrf.mxu0  ;;  %v5236_v34 = vld [vmem:[%s13941_s5 + $0xb0] sm:$0xff]  ;;  %v5150_v59 = vld [vmem:[%s13939_s3] sm:$0xff] }
 0x1e7   : > { %v8319_v11 = vpop.f32.mrf.mxu1  ;;  %6216 = vrot.lane.b32.xlu0 %v5234_v48, %s8912_s22  ;;  %v12144_v20 = vpop.permute.xlu1 %5428  ;;  %v5152_v39 = vld [vmem:[%s13939_s3 + $0x10] sm:$0xff] }
 0x1e8   : > { %14232 = vst [vmem:[#allocation57_spill] sm:$0xff] %v12137_v61  ;;  %14233 = vst [vmem:[#allocation58_spill] sm:$0xff] %v12144_v20  ;;  %v12146_v62 = vadd.f32 %v3806_v42, %v3472_v21  ;;  %v3477_v14 = vadd.f32 %v8319_v11, %v11885_v37  ;;  %v8368_v51 = vpop.f32.mrf.mxu0  ;;  %v5151_v37 = vld [vmem:[%s13939_s3 + $0x8] sm:$0xff]  ;;  %v5153_v42 = vld [vmem:[%s13939_s3 + $0x18] sm:$0xff]  ;;  %v5248_v36 = vmul.f32 %v11760_v16, %v5152_v39 }
 0x1e9   : > { %v3432_v8 = vpop.f32.mrf.mxu1  ;;  %v12158_v48 = vpop.permute.xlu0 %5430  ;;  %6218 = vrot.lane.b32.xlu1 %v5235_v29, %s8912_s22  ;;  %v14236_v23 = vld [vmem:[#allocation18_spill] sm:$0xff]  ;;  %v5237_v29 = vld [vmem:[%s13941_s5 + $0xb8] sm:$0xff]  ;;  %v12200_v1 = vmul.f32 %v11752_v13, %v5151_v37  ;;  %v12203_v60 = vmul.f32 %v11768_v46, %v5153_v42  ;;  %v14240_v46 = vld [vmem:[#allocation24_spill] sm:$0xff] }
 0x1ea   : > { %14234 = vst [vmem:[#allocation59_spill] sm:$0xff] %v12146_v62  ;;  %14235 = vst [vmem:[#allocation60_spill] sm:$0xff] %v12158_v48  ;;  %v3449_v21 = vadd.f32 %v11904_v50, %v14236_v23  ;;  %v12169_v11 = vadd.f32 %v8367_v53, %v3477_v14  ;;  %v3475_v20 = vadd.f32 %v3432_v8, %v11892_v38  ;;  %v3822_v62 = vpop.f32.mrf.mxu0  ;;  %v5154_v48 = vld [vmem:[%s13939_s3 + $0x20] sm:$0xff]  ;;  %v5155_v50 = vld [vmem:[%s13939_s3 + $0x28] sm:$0xff] }
 0x1eb   : > { %v8320_v61 = vpop.f32.mrf.mxu1  ;;  %6220 = vrot.lane.b32.xlu0 %v5236_v34, %s8912_s22  ;;  %v12179_v43 = vpop.permute.xlu1 %5432  ;;  %v5156_v38 = vld [vmem:[%s13939_s3 + $0x30] sm:$0xff]  ;;  %v5238_v34 = vld [vmem:[%s13941_s5 + $0xc0] sm:$0xff]  ;;  %v5239_v37 = vld [vmem:[%s13941_s5 + $0xc8] sm:$0xff]  ;;  %v12227_v42 = vmul.f32 %v11776_v5, %v5154_v48 }
 0x1ec   : > { %14237 = vst [vmem:[#allocation18_spill] sm:$0xff] %v12169_v11  ;;  %14238 = vst [vmem:[#allocation61_spill] sm:$0xff] %v12179_v43  ;;  %v14239_v53 = vld [vmem:[#allocation22_spill] sm:$0xff]  ;;  %v12189_v8 = vadd.f32 %v3819_v47, %v3475_v20  ;;  %v3478_v23 = vadd.f32 %v8320_v61, %v11899_v63  ;;  %v8435_v11 = vpop.f32.mrf.mxu0  ;;  %v12196_v43 = vmul.f32 %v11744_v45, %v5150_v59  ;;  %v5157_v63 = vld [vmem:[%s13939_s3 + $0x38] sm:$0xff] }
 0x1ed   : > { %v3447_v14 = vadd.f32 %v11914_v25, %v14239_v53  ;;  %v3435_v25 = vpop.f32.mrf.mxu1  ;;  %v12208_v61 = vpop.permute.xlu0 %5434  ;;  %6222 = vrot.lane.b32.xlu1 %v5237_v29, %s8912_s22  ;;  %v5158_v45 = vld [vmem:[%s13939_s3 + $0x40] sm:$0xff]  ;;  %v5160_v13 = vld [vmem:[%s13939_s3 + $0x50] sm:$0xff]  ;;  %v3836_v16 = vadd.f32 %v11895_v35, %v3449_v21  ;;  %v3450_v47 = vadd.f32 %v11922_v31, %v14240_v46  ;;  %v12230_v29 = vmul.f32 %v11784_v30, %v5155_v50  ;;  %v5161_v31 = vld [vmem:[%s13939_s3 + $0x58] sm:$0xff] }
 0x1ee   : > { %v12220_v20 = vadd.f32 %v8368_v51, %v3478_v23  ;;  %v3476_v59 = vadd.f32 %v3435_v25, %v11910_v24  ;;  %v4959_v39 = vpop.f32.mrf.mxu0  ;;  %v12233_v35 = vmul.f32 %v11792_v17, %v5156_v38  ;;  %v3448_v24 = vadd.f32 %v11928_v4, %v11727_v40  ;;  %v5240_v38 = vld [vmem:[%s13941_s5 + $0xd0] sm:$0xff]  ;;  %v8798_v23 = vld [vmem:[%s10723_s20 + $0x58] sm:$0xff] }
 0x1ef   : > { %v8387_v51 = vpop.f32.mrf.mxu1  ;;  %6224 = vrot.lane.b32.xlu0 %v5238_v34, %s8912_s22  ;;  %v12241_v21 = vpop.permute.xlu1 %5436  ;;  %v12244_v5 = vmul.f32 %v11800_v58, %v5157_v63  ;;  %v3834_v30 = vadd.f32 %v11902_v57, %v3447_v14  ;;  %v12253_v40 = vmul.f32 %v11808_v6, %v5158_v45  ;;  %v8797_v4 = vld [vmem:[%s10723_s20 + $0x50] sm:$0xff]  ;;  %v3453_v58 = vadd.f32 %v11936_v7, %v11732_v56  ;;  %v5241_v56 = vld [vmem:[%s13941_s5 + $0xd8] sm:$0xff] }
 0x1f0   : > { %v12247_v17 = vadd.f32 %v3822_v62, %v3476_v59  ;;  %v4590_v48 = vadd.f32 %v8387_v51, %v3836_v16  ;;  %v8436_v50 = vpop.f32.mrf.mxu0  ;;  %v12256_v53 = vmul.f32 %v8797_v4, %v5160_v13  ;;  %v3451_v57 = vadd.f32 %v11944_v12, %v11736_v22  ;;  %v14243_v59 = vld [vmem:[#allocation26_spill] sm:$0xff] }
 0x1f1   : > { %v4461_v62 = vpop.f32.mrf.mxu1  ;;  %v12262_v14 = vpop.permute.xlu0 %5696  ;;  %6226 = vrot.lane.b32.xlu1 %v5239_v37, %s8912_s22  ;;  %v12266_v34 = vmul.f32 %v8798_v23, %v5161_v31  ;;  %v3837_v6 = vadd.f32 %v11912_v2, %v3450_v47  ;;  %v3835_v22 = vadd.f32 %v11920_v44, %v3448_v24  ;;  %v3454_v7 = vadd.f32 %v11950_v0, %v11740_v55  ;;  %v5242_v55 = vld [vmem:[%s13941_s5 + $0xe0] sm:$0xff]  ;;  %v14244_v31 = vld [vmem:[#allocation29_spill] sm:$0xff] }
 0x1f2   : > { %v12269_v63 = vadd.f32 %v8435_v11, %v4590_v48  ;;  %v4588_v25 = vadd.f32 %v4461_v62, %v3834_v30  ;;  %v4962_v45 = vpop.f32.mrf.mxu0  ;;  %v3840_v44 = vadd.f32 %v11926_v27, %v3453_v58  ;;  %v3838_v0 = vadd.f32 %v11934_v3, %v3451_v57  ;;  %v14246_v48 = vld [vmem:[#allocation31_spill] sm:$0xff] }
 0x1f3   : > { %v8388_v12 = vpop.f32.mrf.mxu1  ;;  %6228 = vrot.lane.b32.xlu0 %v5240_v38, %s8912_s22  ;;  %v12278_v13 = vpop.permute.xlu1 %5698  ;;  %v3452_v37 = vadd.f32 %v11961_v49, %v14243_v59  ;;  %v3841_v49 = vadd.f32 %v11942_v41, %v3454_v7  ;;  %v3455_v38 = vadd.f32 %v11980_v19, %v14246_v48  ;;  %v14247_v41 = vld [vmem:[#allocation17_spill] sm:$0xff]  ;;  %v5244_v19 = vld [vmem:[%s13941_s5 + $0xf0] sm:$0xff] }
 0x1f4   : > { %14241 = vst [vmem:[#allocation22_spill] sm:$0xff] %v12269_v63  ;;  %v5280_v2 = vadd.f32 %v5248_v36, %v12269_v63  ;;  %v5472_v11 = vadd.f32 %v11864_v18, %v12269_v63  ;;  %v12283_v16 = vadd.f32 %v4959_v39, %v4588_v25  ;;  %v4591_v46 = vadd.f32 %v8388_v12, %v3837_v6  ;;  %v8439_v47 = vpop.f32.mrf.mxu0  ;;  %v14248_v6 = vld [vmem:[#allocation30_spill] sm:$0xff] }
 0x1f5   : > { %v3457_v36 = vadd.f32 %v11972_v26, %v14244_v31  ;;  %v4464_v24 = vpop.f32.mrf.mxu1  ;;  %v12294_v18 = vpop.permute.xlu0 %5700  ;;  %6230 = vrot.lane.b32.xlu1 %v5241_v56, %s8912_s22  ;;  %v5243_v26 = vld [vmem:[%s13941_s5 + $0xe8] sm:$0xff]  ;;  %v3839_v25 = vadd.f32 %v14248_v6, %v3452_v37  ;;  %v5245_v37 = vld [vmem:[%s13941_s5 + $0xf8] sm:$0xff] }
 0x1f6   : > { %14242 = vst [vmem:[#allocation24_spill] sm:$0xff] %v12283_v16  ;;  %v5505_v39 = vsel %vm5502_vm6, %v5280_v2, %v5472_v11  ;;  %v5278_v51 = vadd.f32 %v12196_v43, %v12283_v16  ;;  %v5470_v27 = vadd.f32 %v11852_v9, %v12283_v16  ;;  %v12302_v3 = vadd.f32 %v8436_v50, %v4591_v46  ;;  %v4975_v30 = vpop.f32.mrf.mxu0  ;;  %v14251_v31 = vld [vmem:[#allocation15_spill] sm:$0xff] }
 0x1f7   : > { %v5538_v4 = vsel %vm5535_vm7, %v5505_v39, %v12269_v63  ;;  %v4589_v58 = vadd.f32 %v4464_v24, %v3835_v22  ;;  %v8391_v43 = vpop.f32.mrf.mxu1  ;;  %6232 = vrot.lane.b32.xlu0 %v5242_v55, %s8912_s22  ;;  %v12313_v9 = vpop.permute.xlu1 %5702 }
 0x1f8   : > { %14245 = vst [vmem:[#allocation26_spill] sm:$0xff] %v12302_v3  ;;  %8651 = vtanh.f32 %v5538_v4  ;;  %v5503_v50 = vsel %vm5502_vm6, %v5278_v51, %v5470_v27  ;;  %v5281_v57 = vadd.f32 %v12203_v60, %v12302_v3  ;;  %v5473_v62 = vadd.f32 %v14247_v41, %v12302_v3  ;;  %v8440_v23 = vpop.f32.mrf.mxu0  ;;  %v14250_v60 = vld [vmem:[#allocation33_spill] sm:$0xff]  ;;  %v14253_v51 = vld [vmem:[#allocation35_spill] sm:$0xff] }
 0x1f9   : > { %v5536_v56 = vsel %vm5535_vm7, %v5503_v50, %v12283_v16  ;;  %v12326_v22 = vadd.f32 %v4962_v45, %v4589_v58  ;;  %v4594_v7 = vadd.f32 %v8391_v43, %v3840_v44  ;;  %v4477_v12 = vpop.f32.mrf.mxu1  ;;  %v12328_v2 = vpop.permute.xlu0 %5704  ;;  %6234 = vrot.lane.b32.xlu1 %v5243_v26, %s8912_s22  ;;  %v3844_v11 = vadd.f32 %v14250_v60, %v3457_v36  ;;  %v14255_v58 = vld [vmem:[#allocation11_spill] sm:$0xff]  ;;  %v14256_v43 = vld [vmem:[#allocation12_spill] sm:$0xff] }
 0x1fa   : > { %8653 = vtanh.f32 %v5536_v56  ;;  %v5506_v46 = vsel %vm5502_vm6, %v5281_v57, %v5473_v62  ;;  %v4592_v55 = vadd.f32 %v4477_v12, %v3838_v0  ;;  %v4978_v59 = vpop.f32.mrf.mxu0  ;;  %v3842_v27 = vadd.f32 %v14253_v51, %v3455_v38  ;;  %v14257_v57 = vld [vmem:[#allocation23_spill] sm:$0xff]  ;;  %v14260_v12 = vld [vmem:[#allocation16_spill] sm:$0xff]  ;;  %v14263_v51 = vld [vmem:[#allocation25_spill] sm:$0xff] }
 0x1fb   : > { %14249 = vst [vmem:[#allocation29_spill] sm:$0xff] %v12326_v22  ;;  %v5539_v45 = vsel %vm5535_vm7, %v5506_v46, %v12302_v3  ;;  %v5279_v44 = vadd.f32 %v12200_v1, %v12326_v22  ;;  %v5471_v24 = vadd.f32 %v14251_v31, %v12326_v22  ;;  %v12342_v39 = vadd.f32 %v8439_v47, %v4594_v7  ;;  %v8392_v36 = vpop.f32.mrf.mxu1  ;;  %v12345_v0 = vpop.permute.xlu1 %5706  ;;  %v14258_v38 = vld [vmem:[#allocation19_spill] sm:$0xff] }
 0x1fc   : > { %6236 = vrot.lane.b32.xlu0 %v5244_v19, %s8912_s22  ;;  %8655 = vtanh.f32 %v5539_v45  ;;  %v4595_v26 = vadd.f32 %v8392_v36, %v3841_v49  ;;  %v12348_v48 = vadd.f32 %v4975_v30, %v4592_v55  ;;  %v8443_v4 = vpop.f32.mrf.mxu0  ;;  %v3458_v1 = vadd.f32 %v14256_v43, %v14255_v58 }
 0x1fd   : > { %14252 = vst [vmem:[#allocation31_spill] sm:$0xff] %v12342_v39  ;;  %v5504_v50 = vsel %vm5502_vm6, %v5279_v44, %v5471_v24  ;;  %v5284_v47 = vadd.f32 %v12233_v35, %v12342_v39  ;;  %v5476_v41 = vadd.f32 %v14257_v57, %v12342_v39  ;;  %v4480_v62 = vpop.f32.mrf.mxu1  ;;  %v12357_v19 = vpop.permute.xlu0 %5708  ;;  %6238 = vrot.lane.b32.xlu1 %v5245_v37, %s8912_s22  ;;  %v14259_v35 = vld [vmem:[#allocation9_spill] sm:$0xff] }
 0x1fe   : > { %14254 = vst [vmem:[#allocation17_spill] sm:$0xff] %v12348_v48  ;;  %v5537_v30 = vsel %vm5535_vm7, %v5504_v50, %v12326_v22  ;;  %v5282_v49 = vadd.f32 %v12227_v42, %v12348_v48  ;;  %v5474_v6 = vadd.f32 %v14258_v38, %v12348_v48  ;;  %v4593_v56 = vadd.f32 %v4480_v62, %v3839_v25  ;;  %v4991_v7 = vpop.f32.mrf.mxu0  ;;  %v14264_v50 = vld [vmem:[#allocation36_spill] sm:$0xff] }
 0x1ff   : > { %v3456_v60 = vadd.f32 %v14260_v12, %v14259_v35  ;;  %8657 = vtanh.f32 %v5537_v30  ;;  %v5509_v46 = vsel %vm5502_vm6, %v5284_v47, %v5476_v41  ;;  %v12369_v55 = vadd.f32 %v8440_v23, %v4595_v26  ;;  %v8395_v37 = vpop.f32.mrf.mxu1  ;;  %v12371_v45 = vpop.permute.xlu1 %5710  ;;  %v14266_v30 = vld [vmem:[#allocation10_spill] sm:$0xff] }
 0x200   : > { %v5542_v44 = vsel %vm5535_vm7, %v5509_v46, %v12342_v39  ;;  %v5507_v42 = vsel %vm5502_vm6, %v5282_v49, %v5474_v6  ;;  %v4598_v31 = vadd.f32 %v8395_v37, %v3844_v11  ;;  %v12376_v24 = vadd.f32 %v4978_v59, %v4593_v56  ;;  %v8444_v25 = vpop.f32.mrf.mxu0  ;;  %v14265_v59 = vld [vmem:[#allocation21_spill] sm:$0xff] }
 0x201   : > { %14261 = vst [vmem:[#allocation30_spill] sm:$0xff] %v12369_v55  ;;  %8659 = vtanh.f32 %v5542_v44  ;;  %v5540_v36 = vsel %vm5535_vm7, %v5507_v42, %v12348_v48  ;;  %v5285_v23 = vadd.f32 %v12244_v5, %v12369_v55  ;;  %v5477_v26 = vadd.f32 %v14263_v51, %v12369_v55  ;;  %v4493_v58 = vpop.f32.mrf.mxu1  ;;  %v12384_v43 = vpop.permute.xlu0 %5712  ;;  %v14270_v44 = vld [vmem:[#allocation34_spill] sm:$0xff] }
 0x202   : > { %14262 = vst [vmem:[#allocation33_spill] sm:$0xff] %v12376_v24  ;;  %v3845_v47 = vadd.f32 %v14264_v50, %v3458_v1  ;;  %v5283_v11 = vadd.f32 %v12230_v29, %v12376_v24  ;;  %v5475_v57 = vadd.f32 %v14265_v59, %v12376_v24  ;;  %v4596_v41 = vadd.f32 %v4493_v58, %v3842_v27  ;;  %v4994_v62 = vpop.f32.mrf.mxu0  ;;  %v14273_v58 = vld [vmem:[#allocation28_spill] sm:$0xff] }
 0x203   : > { %v3843_v49 = vadd.f32 %v14266_v30, %v3456_v60  ;;  %8661 = vtanh.f32 %v5540_v36  ;;  %v5510_v5 = vsel %vm5502_vm6, %v5285_v23, %v5477_v26  ;;  %v12393_v38 = vadd.f32 %v8443_v4, %v4598_v31  ;;  %v8396_v6 = vpop.f32.mrf.mxu1  ;;  %v12395_v56 = vpop.permute.xlu1 %5714  ;;  %v5159_v4 = vld [vmem:[%s13939_s3 + $0x48] sm:$0xff]  ;;  %v14272_v23 = vld [vmem:[#allocation39_spill] sm:$0xff] }
 0x204   : > { %14268 = vst [vmem:[#allocation35_spill] sm:$0xff] %v12395_v56  ;;  %v5543_v1 = vsel %vm5535_vm7, %v5510_v5, %v12369_v55  ;;  %v5508_v29 = vsel %vm5502_vm6, %v5283_v11, %v5475_v57  ;;  %v4599_v35 = vadd.f32 %v8396_v6, %v3845_v47  ;;  %v12400_v12 = vadd.f32 %v4991_v7, %v4596_v41  ;;  %v12402_v27 = vpop.f32.mrf.mxu0  ;;  %v14271_v36 = vld [vmem:[#allocation13_spill] sm:$0xff] }
 0x205   : > { %14267 = vst [vmem:[#allocation15_spill] sm:$0xff] %v12393_v38  ;;  %v12404_v46 = vpop.eup %8651  ;;  %8663 = vtanh.f32 %v5543_v1  ;;  %v5541_v60 = vsel %vm5535_vm7, %v5508_v29, %v12376_v24  ;;  %v5288_v37 = vadd.f32 %v12256_v53, %v12393_v38  ;;  %v5480_v7 = vadd.f32 %v14270_v44, %v12393_v38  ;;  %v4496_v42 = vpop.f32.mrf.mxu1  ;;  %v8799_v5 = vld [vmem:[%s10723_s20 + $0x48] sm:$0xff] }
 0x206   : > { %14269 = vst [vmem:[#allocation11_spill] sm:$0xff] %v12400_v12  ;;  %v12415_v31 = vpop.permute.xlu0 %5716  ;;  %v3462_v51 = vadd.f32 %v14272_v23, %v14271_v36  ;;  %v5286_v26 = vadd.f32 %v12253_v40, %v12400_v12  ;;  %v5478_v50 = vadd.f32 %v14273_v58, %v12400_v12  ;;  %5860 = vrot.lane.b32.xlu0 %v12404_v46, %s8913_s19  ;;  %v5007_v53 = vpop.f32.mrf.mxu0  ;;  %8665 = vtanh.f32 %v5541_v60  ;;  %v14277_v36 = vld [vmem:[#allocation20_spill] sm:$0xff] }
 0x207   : > { %v12425_v47 = vpop.eup %8653  ;;  %v5513_v11 = vsel %vm5502_vm6, %v5288_v37, %v5480_v7  ;;  %v4597_v59 = vadd.f32 %v4496_v42, %v3843_v49  ;;  %v12428_v57 = vadd.f32 %v8444_v25, %v4599_v35  ;;  %v8399_v41 = vpop.f32.mrf.mxu1  ;;  %v5255_v40 = vmul.f32 %v8799_v5, %v5159_v4  ;;  %v5164_v49 = vld [vmem:[%s13939_s3 + $0x70] sm:$0xff]  ;;  %v14275_v4 = vld [vmem:[#allocation8_spill] sm:$0xff] }
 0x208   : > { %v12430_v30 = vpop.permute.xlu1 %5718  ;;  %v5546_v6 = vsel %vm5535_vm7, %v5513_v11, %v12393_v38  ;;  %v5511_v1 = vsel %vm5502_vm6, %v5286_v26, %v5478_v50  ;;  %v8448_v29 = vpop.f32.mrf.mxu0  ;;  %v5162_v42 = vld [vmem:[%s13939_s3 + $0x60] sm:$0xff]  ;;  %v3849_v23 = vadd.f32 %v14277_v36, %v3462_v51  ;;  %v5165_v26 = vld [vmem:[%s13939_s3 + $0x78] sm:$0xff]  ;;  %v14278_v50 = vld [vmem:[#allocation38_spill] sm:$0xff] }
 0x209   : > { %14274 = vst [vmem:[#allocation12_spill] sm:$0xff] %v12428_v57  ;;  %v12436_v44 = vpop.eup %8655  ;;  %8667 = vtanh.f32 %v5546_v6  ;;  %v5544_v25 = vsel %vm5535_vm7, %v5511_v1, %v12400_v12  ;;  %v5289_v35 = vadd.f32 %v12266_v34, %v12428_v57  ;;  %v5481_v60 = vadd.f32 %v14275_v4, %v12428_v57  ;;  %v4509_v37 = vpop.f32.mrf.mxu1  ;;  %v14280_v51 = vld [vmem:[#allocation40_spill] sm:$0xff]  ;;  %v8800_v12 = vld [vmem:[%s10723_s20 + $0x70] sm:$0xff] }
 0x20a   : > { %v12447_v7 = vpop.permute.xlu0 %5720  ;;  %5856 = vrot.lane.b32.xlu0 %v12425_v47, %s8913_s19  ;;  %5862 = vrot.lane.b32.xlu1 %v12436_v44, %s8913_s19  ;;  %v12457_v34 = vpop.f32.mrf.mxu0  ;;  %v4602_v11 = vadd.f32 %v8399_v41, %v14278_v50  ;;  %v12464_v5 = vadd.f32 %v4994_v62, %v4597_v59  ;;  %v4600_v6 = vadd.f32 %v4509_v37, %v14280_v51  ;;  %8669 = vtanh.f32 %v5544_v25  ;;  %v8801_v41 = vld [vmem:[%s10723_s20 + $0x60] sm:$0xff] }
 0x20b   : > { %14276 = vst [vmem:[#allocation23_spill] sm:$0xff] %v12447_v7  ;;  %v5514_v58 = vsel %vm5502_vm6, %v5289_v35, %v5481_v60  ;;  %v8400_v1 = vpop.f32.mrf.mxu1  ;;  %v5260_v38 = vmul.f32 %v8800_v12, %v5164_v49  ;;  %v5258_v62 = vmul.f32 %v8801_v41, %v5162_v42  ;;  %v14282_v60 = vld [vmem:[#allocation32_spill] sm:$0xff]  ;;  %v8802_v12 = vld [vmem:[%s10723_s20 + $0x78] sm:$0xff]  ;;  %v5176_v7 = vld [vmem:[%s13939_s3 + $0xd0] sm:$0xff] }
 0x20c   : > { %14279 = vst [vmem:[#allocation19_spill] sm:$0xff] %v12464_v5  ;;  %v12467_v4 = vpop.permute.xlu1 %5722  ;;  %v12469_v36 = vpop.eup %8657  ;;  %v5547_v24 = vsel %vm5535_vm7, %v5514_v58, %v12428_v57  ;;  %v4603_v48 = vadd.f32 %v8400_v1, %v3849_v23  ;;  %v5287_v59 = vadd.f32 %v5255_v40, %v12464_v5  ;;  %v5479_v37 = vadd.f32 %v14282_v60, %v12464_v5 }
 0x20d   : > { %14281 = vst [vmem:[#allocation9_spill] sm:$0xff] %v12467_v4  ;;  %v12474_v35 = vpop.f32.mrf.mxu0  ;;  %8671 = vtanh.f32 %v5547_v24  ;;  %v4512_v50 = vpop.f32.mrf.mxu1  ;;  %v5261_v49 = vmul.f32 %v8802_v12, %v5165_v26  ;;  %v12486_v25 = vadd.f32 %v12402_v27, %v4602_v11  ;;  %v12488_v23 = vadd.f32 %v5007_v53, %v4600_v6  ;;  %v14288_v11 = vld [vmem:[#allocation37_spill] sm:$0xff]  ;;  %v14290_v12 = vld [vmem:[#allocation14_spill] sm:$0xff] }
 0x20e   : > { %v12480_v51 = vpop.permute.xlu0 %5724  ;;  %v12482_v55 = vpop.eup %8659  ;;  %5858 = vrot.lane.b32.xlu1 %v12469_v36, %s8913_s19  ;;  %v5512_v40 = vsel %vm5502_vm6, %v5287_v59, %v5479_v37  ;;  %v12495_v42 = vadd.f32 %v8448_v29, %v4603_v48  ;;  %v5163_v48 = vld [vmem:[%s13939_s3 + $0x68] sm:$0xff] }
 0x20f   : > { %14283 = vst [vmem:[#allocation16_spill] sm:$0xff] %v12480_v51  ;;  %14284 = vst [vmem:[#allocation25_spill] sm:$0xff] %v12486_v25  ;;  %v12492_v24 = vpop.f32.mrf.mxu0  ;;  %5868 = vrot.lane.b32.xlu0 %v12482_v55, %s8913_s19  ;;  %v8403_v58 = vpop.f32.mrf.mxu1  ;;  %v5545_v27 = vsel %vm5535_vm7, %v5512_v40, %v12464_v5  ;;  %v5292_v53 = vadd.f32 %v5260_v38, %v12486_v25  ;;  %v5484_v6 = vadd.f32 %v14288_v11, %v12486_v25 }
 0x210   : > { %14285 = vst [vmem:[#allocation36_spill] sm:$0xff] %v12488_v23  ;;  %14286 = vst [vmem:[#allocation21_spill] sm:$0xff] %v12495_v42  ;;  %v12499_v1 = vpop.permute.xlu1 %5726  ;;  %v12501_v26 = vpop.eup %8661  ;;  %8673 = vtanh.f32 %v5545_v27  ;;  %v5290_v29 = vadd.f32 %v5258_v62, %v12488_v23  ;;  %v5482_v40 = vadd.f32 %v14290_v12, %v12488_v23  ;;  %v4601_v11 = vadd.f32 %v4512_v50, %v12040_v28  ;;  %v14291_v62 = vld [vmem:[#allocation41_spill] sm:$0xff] }
 0x211   : > { %14287 = vst [vmem:[#allocation10_spill] sm:$0xff] %v12499_v1  ;;  %v12508_v41 = vpop.f32.mrf.mxu0  ;;  %v4525_v59 = vpop.f32.mrf.mxu1  ;;  %v5517_v38 = vsel %vm5502_vm6, %v5292_v53, %v5484_v6  ;;  %v5293_v5 = vadd.f32 %v5261_v49, %v12495_v42  ;;  %v5485_v39 = vadd.f32 %v14291_v62, %v12495_v42  ;;  %v8803_v28 = vld [vmem:[%s10723_s20 + $0x68] sm:$0xff]  ;;  %v5168_v49 = vld [vmem:[%s13939_s3 + $0x90] sm:$0xff]  ;;  %v14321_v1 = vld [vmem:[#allocation55_spill] sm:$0xff] }
 0x212   : > { %v12514_v60 = vpop.permute.xlu0 %5728  ;;  %v12516_v37 = vpop.eup %8663  ;;  %v5550_v27 = vsel %vm5535_vm7, %v5517_v38, %v12486_v25  ;;  %v5259_v50 = vmul.f32 %v8803_v28, %v5163_v48  ;;  %v5515_v38 = vsel %vm5502_vm6, %v5290_v29, %v5482_v40  ;;  %v5166_v25 = vld [vmem:[%s13939_s3 + $0x80] sm:$0xff]  ;;  %v4606_v28 = vadd.f32 %v8403_v58, %v12047_v33 }
 0x213   : > { %14289 = vst [vmem:[#allocation34_spill] sm:$0xff] %v12514_v60  ;;  %v12523_v57 = vpop.f32.mrf.mxu0  ;;  %5864 = vrot.lane.b32.xlu0 %v12501_v26, %s8913_s19  ;;  %5870 = vrot.lane.b32.xlu1 %v12516_v37, %s8913_s19  ;;  %v8404_v53 = vpop.f32.mrf.mxu1  ;;  %8675 = vtanh.f32 %v5550_v27  ;;  %v5548_v22 = vsel %vm5535_vm7, %v5515_v38, %v12488_v23  ;;  %v5518_v48 = vsel %vm5502_vm6, %v5293_v5, %v5485_v39  ;;  %v8805_v58 = vld [vmem:[%s10723_s20 + $0x80] sm:$0xff]  ;;  %v14302_v60 = vld [vmem:[#allocation42_spill] sm:$0xff] }
 0x214   : > { %v12533_v6 = vpop.permute.xlu1 %5730  ;;  %v12542_v62 = vpop.eup %8665  ;;  %v5551_v40 = vsel %vm5535_vm7, %v5518_v48, %v12495_v42  ;;  %v12558_v3 = vadd.f32 %v12457_v34, %v4601_v11  ;;  %v4604_v39 = vadd.f32 %v4525_v59, %v12056_v32  ;;  %v5262_v48 = vmul.f32 %v8805_v58, %v5166_v25  ;;  %v14296_v11 = vld [vmem:[#allocation27_spill] sm:$0xff] }
 0x215   : > { %14292 = vst [vmem:[#allocation13_spill] sm:$0xff] %v12533_v6  ;;  %v12540_v12 = vpop.f32.mrf.mxu0  ;;  %v4528_v16 = vpop.f32.mrf.mxu1  ;;  %v8804_v6 = vld [vmem:[%s10723_s20 + $0x90] sm:$0xff]  ;;  %8677 = vtanh.f32 %v5551_v40  ;;  %v5169_v59 = vld [vmem:[%s13939_s3 + $0x98] sm:$0xff]  ;;  %v12582_v40 = vadd.f32 %v12474_v35, %v4606_v28  ;;  %v4607_v23 = vadd.f32 %v8404_v53, %v12065_v52 }
 0x216   : > { %v12551_v27 = vpop.permute.xlu0 %5732  ;;  %v12553_v29 = vpop.eup %8667  ;;  %14294 = vst [vmem:[#allocation28_spill] sm:$0xff] %v12558_v3  ;;  %v5264_v38 = vmul.f32 %v8804_v6, %v5168_v49  ;;  %8679 = vtanh.f32 %v5548_v22  ;;  %v5291_v34 = vadd.f32 %v5259_v50, %v12558_v3  ;;  %v5483_v6 = vadd.f32 %v14296_v11, %v12558_v3  ;;  %v5167_v11 = vld [vmem:[%s13939_s3 + $0x88] sm:$0xff] }
 0x217   : > { %14293 = vst [vmem:[#allocation39_spill] sm:$0xff] %v12551_v27  ;;  %v12560_v63 = vpop.f32.mrf.mxu0  ;;  %5866 = vrot.lane.b32.xlu1 %v12542_v62, %s8913_s19  ;;  %5876 = vrot.lane.b32.xlu0 %v12553_v29, %s8913_s19  ;;  %v8407_v33 = vpop.f32.mrf.mxu1  ;;  %14297 = vst [vmem:[#allocation20_spill] sm:$0xff] %v12582_v40  ;;  %v12586_v22 = vadd.f32 %v12492_v24, %v4604_v39  ;;  %v4605_v35 = vadd.f32 %v4528_v16, %v12074_v10  ;;  %v5172_v24 = vld [vmem:[%s13939_s3 + $0xb0] sm:$0xff] }
 0x218   : > { %v12568_v5 = vpop.permute.xlu1 %5734  ;;  %v12576_v32 = vpop.eup %8669  ;;  %v5516_v42 = vsel %vm5502_vm6, %v5291_v34, %v5483_v6  ;;  %v4610_v52 = vadd.f32 %v8407_v33, %v12083_v54  ;;  %v5296_v39 = vadd.f32 %v5264_v38, %v12582_v40  ;;  %v8806_v54 = vld [vmem:[%s10723_s20 + $0x98] sm:$0xff]  ;;  %v14301_v34 = vld [vmem:[#allocation44_spill] sm:$0xff]  ;;  %v8807_v38 = vld [vmem:[%s10723_s20 + $0x88] sm:$0xff]  ;;  %v12622_v27 = vadd.f32 %v12508_v41, %v4607_v23 }
 0x219   : > { %14295 = vst [vmem:[#allocation8_spill] sm:$0xff] %v12568_v5  ;;  %v12574_v49 = vpop.f32.mrf.mxu0  ;;  %14298 = vst [vmem:[#allocation38_spill] sm:$0xff] %v12586_v22  ;;  %v4541_v25 = vpop.f32.mrf.mxu1  ;;  %v5549_v28 = vsel %vm5535_vm7, %v5516_v42, %v12558_v3  ;;  %v5265_v33 = vmul.f32 %v8806_v54, %v5169_v59  ;;  %v5488_v6 = vadd.f32 %v14301_v34, %v12582_v40  ;;  %v8808_v34 = vld [vmem:[%s10723_s20 + $0xb0] sm:$0xff] }
 0x21a   : > { %v12588_v50 = vpop.permute.xlu0 %5736  ;;  %v12590_v58 = vpop.eup %8671  ;;  %8681 = vtanh.f32 %v5549_v28  ;;  %v5294_v42 = vadd.f32 %v5262_v48, %v12586_v22  ;;  %v5486_v5 = vadd.f32 %v14302_v60, %v12586_v22  ;;  %14303 = vst [vmem:[#allocation37_spill] sm:$0xff] %v12622_v27  ;;  %v5170_v48 = vld [vmem:[%s13939_s3 + $0xa0] sm:$0xff]  ;;  %v12637_v23 = vadd.f32 %v12540_v12, %v4610_v52  ;;  %v14308_v52 = vld [vmem:[#allocation45_spill] sm:$0xff] }
 0x21b   : > { %14299 = vst [vmem:[#allocation40_spill] sm:$0xff] %v12588_v50  ;;  %v12598_v53 = vpop.f32.mrf.mxu0  ;;  %5872 = vrot.lane.b32.xlu0 %v12576_v32, %s8913_s19  ;;  %5878 = vrot.lane.b32.xlu1 %v12590_v58, %s8913_s19  ;;  %v8408_v10 = vpop.f32.mrf.mxu1  ;;  %v5263_v50 = vmul.f32 %v8807_v38, %v5167_v11  ;;  %v5268_v11 = vmul.f32 %v8808_v34, %v5172_v24  ;;  %v14309_v34 = vld [vmem:[#allocation43_spill] sm:$0xff] }
 0x21c   : > { %v12610_v16 = vpop.permute.xlu1 %5738  ;;  %v5521_v60 = vsel %vm5502_vm6, %v5296_v39, %v5488_v6  ;;  %14306 = vst [vmem:[#allocation27_spill] sm:$0xff] %v12637_v23  ;;  %v5519_v41 = vsel %vm5502_vm6, %v5294_v42, %v5486_v5  ;;  %v5297_v12 = vadd.f32 %v5265_v33, %v12622_v27  ;;  %v5489_v39 = vadd.f32 %v14308_v52, %v12622_v27  ;;  %v5173_v33 = vld [vmem:[%s13939_s3 + $0xb8] sm:$0xff] }
 0x21d   : > { %14300 = vst [vmem:[#allocation32_spill] sm:$0xff] %v12610_v16  ;;  %v12625_v16 = vadd.f32 %v12523_v57, %v4605_v35  ;;  %v4544_v59 = vpop.f32.mrf.mxu1  ;;  %v12629_v54 = vpop.eup %8673  ;;  %v5554_v57 = vsel %vm5535_vm7, %v5521_v60, %v12582_v40  ;;  %v4608_v35 = vadd.f32 %v4541_v25, %v12092_v15  ;;  %v5552_v24 = vsel %vm5535_vm7, %v5519_v41, %v12586_v22  ;;  %v8809_v15 = vld [vmem:[%s10723_s20 + $0xa0] sm:$0xff] }
 0x21e   : > { %v12616_v3 = vpop.f32.mrf.mxu0  ;;  %v12627_v28 = vpop.permute.xlu0 %5740  ;;  %8683 = vtanh.f32 %v5554_v57  ;;  %v5266_v25 = vmul.f32 %v8809_v15, %v5170_v48  ;;  %v5522_v41 = vsel %vm5502_vm6, %v5297_v12, %v5489_v39  ;;  %v5300_v52 = vadd.f32 %v5268_v11, %v12637_v23  ;;  %v14311_v22 = vld [vmem:[#allocation48_spill] sm:$0xff]  ;;  %v14312_v15 = vld [vmem:[#allocation49_spill] sm:$0xff] }
 0x21f   : > { %14304 = vst [vmem:[#allocation14_spill] sm:$0xff] %v12625_v16  ;;  %14305 = vst [vmem:[#allocation41_spill] sm:$0xff] %v12627_v28  ;;  %5874 = vrot.lane.b32.xlu1 %v12629_v54, %s8913_s19  ;;  %v8411_v38 = vpop.f32.mrf.mxu1  ;;  %v5295_v42 = vadd.f32 %v5263_v50, %v12625_v16  ;;  %v5487_v60 = vadd.f32 %v14309_v34, %v12625_v16  ;;  %v5492_v48 = vadd.f32 %v14311_v22, %v12637_v23  ;;  %v5171_v34 = vld [vmem:[%s13939_s3 + $0xa8] sm:$0xff] }
 0x220   : > { %v12645_v28 = vpop.permute.xlu1 %5742  ;;  %v12652_v6 = vpop.f32.mrf.mxu0  ;;  %v4611_v50 = vadd.f32 %v8408_v10, %v14312_v15  ;;  %8685 = vtanh.f32 %v5552_v24  ;;  %v12679_v11 = vadd.f32 %v12560_v63, %v4608_v35  ;;  %v5174_v15 = vld [vmem:[%s13939_s3 + $0xc0] sm:$0xff] }
 0x221   : > { %14307 = vst [vmem:[#allocation44_spill] sm:$0xff] %v12645_v28  ;;  %v12654_v5 = vpop.eup %8675  ;;  %v4557_v57 = vpop.f32.mrf.mxu1  ;;  %v5520_v12 = vsel %vm5502_vm6, %v5295_v42, %v5487_v60  ;;  %v8810_v42 = vld [vmem:[%s10723_s20 + $0xb8] sm:$0xff]  ;;  %v5525_v35 = vsel %vm5502_vm6, %v5300_v52, %v5492_v48 }
 0x222   : > { %v12660_v40 = vpop.permute.xlu0 %5744  ;;  %5884 = vrot.lane.b32.xlu0 %v12654_v5, %s8913_s19  ;;  %14313 = vst [vmem:[#allocation45_spill] sm:$0xff] %v12679_v11  ;;  %v12683_v10 = vpop.eup %8677  ;;  %v5269_v60 = vmul.f32 %v8810_v42, %v5173_v33  ;;  %v5553_v63 = vsel %vm5535_vm7, %v5520_v12, %v12625_v16  ;;  %v5558_v33 = vsel %vm5535_vm7, %v5525_v35, %v12637_v23  ;;  %v14316_v12 = vld [vmem:[#allocation46_spill] sm:$0xff]  ;;  %v14317_v42 = vld [vmem:[#allocation51_spill] sm:$0xff]  ;;  %v14320_v23 = vld [vmem:[#allocation53_spill] sm:$0xff] }
 0x223   : > { %14310 = vst [vmem:[#allocation42_spill] sm:$0xff] %v12660_v40  ;;  %v5555_v40 = vsel %vm5535_vm7, %v5522_v41, %v12622_v27  ;;  %v8412_v22 = vpop.f32.mrf.mxu1  ;;  %v12688_v24 = vpop.f32.mrf.mxu0  ;;  %v5298_v27 = vadd.f32 %v5266_v25, %v12679_v11  ;;  %5886 = vrot.lane.b32.xlu1 %v12683_v10, %s8913_s19  ;;  %v5490_v52 = vadd.f32 %v14316_v12, %v12679_v11  ;;  %v8812_v25 = vld [vmem:[%s10723_s20 + $0xc0] sm:$0xff]  ;;  %v5177_v35 = vld [vmem:[%s13939_s3 + $0xd8] sm:$0xff] }
 0x224   : > { %v12681_v39 = vpop.permute.xlu1 %5746  ;;  %8687 = vtanh.f32 %v5555_v40  ;;  %v12690_v41 = vpop.eup %8679  ;;  %v8811_v40 = vld [vmem:[%s10723_s20 + $0xa8] sm:$0xff]  ;;  %v5270_v48 = vmul.f32 %v8812_v25, %v5174_v15  ;;  %v4609_v16 = vadd.f32 %v4544_v59, %v14317_v42  ;;  %v4612_v15 = vadd.f32 %v4557_v57, %v14321_v1 }
 0x225   : > { %14314 = vst [vmem:[#allocation43_spill] sm:$0xff] %v12681_v39  ;;  %v4560_v39 = vpop.f32.mrf.mxu1  ;;  %v5267_v4 = vmul.f32 %v8811_v40, %v5171_v34  ;;  %8689 = vtanh.f32 %v5558_v33  ;;  %v12714_v34 = vadd.f32 %v12574_v49, %v4611_v50  ;;  %v5523_v12 = vsel %vm5502_vm6, %v5298_v27, %v5490_v52  ;;  %v5058_v25 = vpop.f32.mrf.mxu0  ;;  %v8813_v49 = vld [vmem:[%s10723_s20 + $0xd0] sm:$0xff]  ;;  %v14326_v57 = vld [vmem:[#allocation57_spill] sm:$0xff] }
 0x226   : > { %v12699_v28 = vpop.permute.xlu0 %5748  ;;  %5880 = vrot.lane.b32.xlu0 %v12690_v41, %s8913_s19  ;;  %8691 = vtanh.f32 %v5553_v63  ;;  %v5272_v50 = vmul.f32 %v8813_v49, %v5176_v7  ;;  %v5556_v42 = vsel %vm5535_vm7, %v5523_v12, %v12679_v11  ;;  %v14322_v63 = vld [vmem:[#allocation50_spill] sm:$0xff]  ;;  %v12735_v27 = vadd.f32 %v12598_v53, %v4609_v16  ;;  %v8814_v7 = vld [vmem:[%s10723_s20 + $0xd8] sm:$0xff] }
 0x227   : > { %14315 = vst [vmem:[#allocation48_spill] sm:$0xff] %v12699_v28  ;;  %14318 = vst [vmem:[#allocation49_spill] sm:$0xff] %v12714_v34  ;;  %v4614_v28 = vadd.f32 %v8411_v38, %v14320_v23  ;;  %v8415_v33 = vpop.f32.mrf.mxu1  ;;  %v12724_v59 = vpop.eup %8681  ;;  %v5493_v51 = vadd.f32 %v14322_v63, %v12714_v34  ;;  %v5273_v23 = vmul.f32 %v8814_v7, %v5177_v35  ;;  %8693 = vtanh.f32 %v5556_v42  ;;  %v14329_v16 = vld [vmem:[#allocation47_spill] sm:$0xff]  ;;  %v14332_v7 = vld [vmem:[#allocation52_spill] sm:$0xff] }
 0x228   : > { %v12716_v40 = vpop.permute.xlu1 %5750  ;;  %14324 = vst [vmem:[#allocation53_spill] sm:$0xff] %v12735_v27  ;;  %5882 = vrot.lane.b32.xlu1 %v12724_v59, %s8913_s19  ;;  %v12746_v52 = vadd.f32 %v12652_v6, %v4612_v15  ;;  %v8463_v35 = vpop.f32.mrf.mxu0  ;;  %v14330_v6 = vld [vmem:[#allocation56_spill] sm:$0xff] }
 0x229   : > { %14319 = vst [vmem:[#allocation46_spill] sm:$0xff] %v12716_v40  ;;  %v5301_v40 = vadd.f32 %v5269_v60, %v12714_v34  ;;  %v12738_v1 = vadd.f32 %v12616_v3, %v4614_v28  ;;  %v4615_v60 = vadd.f32 %v8412_v22, %v14326_v57  ;;  %v5299_v3 = vadd.f32 %v5267_v4, %v12735_v27  ;;  %v4573_v49 = vpop.f32.mrf.mxu1  ;;  %v5175_v4 = vld [vmem:[%s13939_s3 + $0xc8] sm:$0xff]  ;;  %v14333_v57 = vld [vmem:[#allocation59_spill] sm:$0xff] }
 0x22a   : > { %v12732_v56 = vpop.permute.xlu0 %5752  ;;  %14327 = vst [vmem:[#allocation50_spill] sm:$0xff] %v12746_v52  ;;  %v5491_v28 = vadd.f32 %v14329_v16, %v12735_v27 }
 0x22b   : > { %14323 = vst [vmem:[#allocation51_spill] sm:$0xff] %v12732_v56  ;;  %14325 = vst [vmem:[#allocation55_spill] sm:$0xff] %v12738_v1  ;;  %v5526_v38 = vsel %vm5502_vm6, %v5301_v40, %v5493_v51  ;;  %v12755_v63 = vpop.eup %8683  ;;  %v5304_v51 = vadd.f32 %v5272_v50, %v12738_v1  ;;  %v5496_v22 = vadd.f32 %v14330_v6, %v12738_v1  ;;  %v8817_v56 = vld [vmem:[%s10723_s20 + $0xe0] sm:$0xff] }
 0x22c   : > { %v12748_v12 = vpop.permute.xlu1 %5754  ;;  %v5559_v53 = vsel %vm5535_vm7, %v5526_v38, %v12714_v34  ;;  %v5302_v40 = vadd.f32 %v5270_v48, %v12746_v52  ;;  %v5524_v42 = vsel %vm5502_vm6, %v5299_v3, %v5491_v28  ;;  %v5494_v38 = vadd.f32 %v14332_v7, %v12746_v52  ;;  %5892 = vrot.lane.b32.xlu0 %v12755_v63, %s8913_s19  ;;  %v8416_v7 = vpop.f32.mrf.mxu1 }
 0x22d   : > { %14328 = vst [vmem:[#allocation57_spill] sm:$0xff] %v12748_v12  ;;  %8695 = vtanh.f32 %v5559_v53  ;;  %v5557_v50 = vsel %vm5535_vm7, %v5524_v42, %v12735_v27  ;;  %v5529_v48 = vsel %vm5502_vm6, %v5304_v51, %v5496_v22  ;;  %v4613_v53 = vadd.f32 %v4560_v39, %v14333_v57  ;;  %v12780_v11 = vpop.eup %8685  ;;  %v5071_v34 = vpop.f32.mrf.mxu0  ;;  %v8815_v51 = vld [vmem:[%s10723_s20 + $0xc8] sm:$0xff]  ;;  %v8816_v27 = vld [vmem:[%s10723_s20 + $0xf0] sm:$0xff] }
 0x22e   : > { %v12761_v15 = vpop.permute.xlu0 %5756  ;;  %v12776_v16 = vadd.f32 %v12688_v24, %v4615_v60  ;;  %8697 = vtanh.f32 %v5557_v50  ;;  %v5562_v3 = vsel %vm5535_vm7, %v5529_v48, %v12738_v1  ;;  %v5527_v28 = vsel %vm5502_vm6, %v5302_v40, %v5494_v38  ;;  %v5180_v24 = vld [vmem:[%s13939_s3 + $0xf0] sm:$0xff]  ;;  %v5178_v40 = vld [vmem:[%s13939_s3 + $0xe0] sm:$0xff] }
 0x22f   : > { %14331 = vst [vmem:[#allocation47_spill] sm:$0xff] %v12761_v15  ;;  %v5271_v39 = vmul.f32 %v8815_v51, %v5175_v4  ;;  %8699 = vtanh.f32 %v5562_v3  ;;  %v5560_v38 = vsel %vm5535_vm7, %v5527_v28, %v12746_v52  ;;  %v14336_v50 = vld [vmem:[#allocation58_spill] sm:$0xff]  ;;  %v12806_v57 = vadd.f32 %v5058_v25, %v4613_v53  ;;  %v4576_v52 = vpop.f32.mrf.mxu1  ;;  %v8464_v12 = vpop.f32.mrf.mxu0 }
 0x230   : > { %14334 = vst [vmem:[#allocation56_spill] sm:$0xff] %v12776_v16  ;;  %v12778_v6 = vpop.permute.xlu1 %5758  ;;  %v5305_v60 = vadd.f32 %v5273_v23, %v12776_v16  ;;  %v5497_v4 = vadd.f32 %v14336_v50, %v12776_v16  ;;  %5888 = vrot.lane.b32.xlu0 %v12780_v11, %s8913_s19  ;;  %v14337_v23 = vld [vmem:[#allocation18_spill] sm:$0xff]  ;;  %v5276_v1 = vmul.f32 %v8816_v27, %v5180_v24  ;;  %8701 = vtanh.f32 %v5560_v38 }
 0x231   : > { %14335 = vst [vmem:[#allocation52_spill] sm:$0xff] %v12778_v6  ;;  %v12785_v42 = vpop.eup %8687  ;;  %v4618_v48 = vadd.f32 %v8415_v33, %v14337_v23  ;;  %14338 = vst [vmem:[#allocation59_spill] sm:$0xff] %v12806_v57  ;;  %v4616_v50 = vadd.f32 %v4573_v49, %v12189_v8  ;;  %v5274_v15 = vmul.f32 %v8817_v56, %v5178_v40  ;;  %v5181_v33 = vld [vmem:[%s13939_s3 + $0xf8] sm:$0xff]  ;;  %v5179_v8 = vld [vmem:[%s13939_s3 + $0xe8] sm:$0xff] }
 0x232   : > { %v12792_v22 = vpop.permute.xlu0 %6176  ;;  %5894 = vrot.lane.b32.xlu1 %v12785_v42, %s8913_s19  ;;  %v12810_v51 = vpop.eup %8689  ;;  %v5530_v28 = vsel %vm5502_vm6, %v5305_v60, %v5497_v4  ;;  %v5303_v27 = vadd.f32 %v5271_v39, %v12806_v57  ;;  %v14339_v56 = vld [vmem:[#allocation54_spill] sm:$0xff]  ;;  %v4619_v60 = vadd.f32 %v8416_v7, %v12220_v20  ;;  %v4617_v40 = vadd.f32 %v4576_v52, %v12247_v17  ;;  %v8818_v4 = vld [vmem:[%s10723_s20 + $0xf8] sm:$0xff]  ;;  %v14342_v52 = vld [vmem:[#allocation60_spill] sm:$0xff] }
 0x233   : > { %v12815_v6 = vpop.eup %8691  ;;  %v5563_v25 = vsel %vm5535_vm7, %v5530_v28, %v12776_v16  ;;  %v5495_v49 = vadd.f32 %v14339_v56, %v12806_v57  ;;  %v12831_v24 = vadd.f32 %v8463_v35, %v4618_v48  ;;  %v12838_v39 = vadd.f32 %v5071_v34, %v4616_v50  ;;  %v5074_v7 = vpop.f32.mrf.mxu0 }
 0x234   : > { %v12808_v3 = vpop.permute.xlu1 %6178  ;;  %8703 = vtanh.f32 %v5563_v25  ;;  %5900 = vrot.lane.b32.xlu0 %v12810_v51, %s8913_s19  ;;  %v5277_v23 = vmul.f32 %v8818_v4, %v5181_v33  ;;  %v12848_v48 = vpop.eup %8693  ;;  %v8819_v25 = vld [vmem:[%s10723_s20 + $0xe8] sm:$0xff]  ;;  %s8914_s20 = smov 96  }
 0x235   : > { %14340 = vst [vmem:[#allocation58_spill] sm:$0xff] %v12831_v24  ;;  %14341 = vst [vmem:[#allocation18_spill] sm:$0xff] %v12838_v39  ;;  %v5528_v28 = vsel %vm5502_vm6, %v5303_v27, %v5495_v49  ;;  %v5308_v35 = vadd.f32 %v5276_v1, %v12831_v24  ;;  %v5500_v20 = vadd.f32 %v12208_v61, %v12831_v24 }
 0x236   : > { %v12824_v53 = vpop.permute.xlu0 %6180  ;;  %5890 = vrot.lane.b32.xlu1 %v12815_v6, %s8913_s19  ;;  %v5275_v56 = vmul.f32 %v8819_v25, %v5179_v8  ;;  %v5561_v34 = vsel %vm5535_vm7, %v5528_v28, %v12806_v57  ;;  %v5306_v17 = vadd.f32 %v5274_v15, %v12838_v39  ;;  %v5498_v50 = vadd.f32 %v14342_v52, %v12838_v39  ;;  %v14345_v25 = vld [vmem:[#allocation61_spill] sm:$0xff] }
 0x237   : > { %8705 = vtanh.f32 %v5561_v34  ;;  %v5533_v61 = vsel %vm5502_vm6, %v5308_v35, %v5500_v20  ;;  %v12861_v1 = vadd.f32 %v8464_v12, %v4619_v60  ;;  %v12868_v49 = vadd.f32 %v5074_v7, %v4617_v40 }
 0x238   : > { %v12841_v38 = vpop.permute.xlu1 %6182  ;;  %5896 = vrot.lane.b32.xlu0 %v12848_v48, %s8913_s19  ;;  %v5566_v8 = vsel %vm5535_vm7, %v5533_v61, %v12831_v24  ;;  %v5531_v15 = vsel %vm5502_vm6, %v5306_v17, %v5498_v50 }
 0x239   : > { %14343 = vst [vmem:[#allocation54_spill] sm:$0xff] %v12861_v1  ;;  %14344 = vst [vmem:[#allocation60_spill] sm:$0xff] %v12868_v49  ;;  %8707 = vtanh.f32 %v5566_v8  ;;  %v5309_v28 = vadd.f32 %v5277_v23, %v12861_v1  ;;  %v5564_v60 = vsel %vm5535_vm7, %v5531_v15, %v12838_v39  ;;  %v5501_v35 = vadd.f32 %v12241_v21, %v12861_v1 }
 0x23a   : > { %v12856_v33 = vpop.permute.xlu0 %6184  ;;  %v12858_v27 = vpop.eup %8695  ;;  %v5307_v20 = vadd.f32 %v5275_v56, %v12868_v49  ;;  %v5499_v34 = vadd.f32 %v14345_v25, %v12868_v49  ;;  %8709 = vtanh.f32 %v5564_v60 }
 0x23b   : > { %5902 = vrot.lane.b32.xlu1 %v12858_v27, %s8913_s19  ;;  %v12875_v12 = vpop.eup %8697  ;;  %v5534_v17 = vsel %vm5502_vm6, %v5309_v28, %v5501_v35 }
 0x23c   : > { %v12872_v4 = vpop.permute.xlu1 %6186  ;;  %v12884_v7 = vpop.eup %8699  ;;  %v5567_v21 = vsel %vm5535_vm7, %v5534_v17, %v12861_v1  ;;  %v5532_v56 = vsel %vm5502_vm6, %v5307_v20, %v5499_v34 }
 0x23d   : > { %5908 = vrot.lane.b32.xlu0 %v12884_v7, %s8913_s19  ;;  %8711 = vtanh.f32 %v5567_v21  ;;  %v12900_v50 = vpop.eup %8701  ;;  %v5565_v61 = vsel %vm5535_vm7, %v5532_v56, %v12868_v49 }
 0x23e   : > { %v12882_v40 = vpop.permute.xlu0 %6188  ;;  %8713 = vtanh.f32 %v5565_v61 }
 0x23f   : > { %5898 = vrot.lane.b32.xlu1 %v12875_v12, %s8913_s19 }
 0x240   : > { %v12893_v23 = vpop.permute.xlu1 %6190 }
 0x241   : > { %v12904_v8 = vpop.eup %8703  ;;  %5904 = vrot.lane.b32.xlu0 %v12900_v50, %s8913_s19 }
 0x242   : > { %v12898_v52 = vpop.permute.xlu0 %6192 }
 0x243   : > { %14346 = vst [vmem:[#allocation61_spill] sm:$0xff] %v12898_v52  ;;  %5910 = vrot.lane.b32.xlu1 %v12904_v8, %s8913_s19 }
 0x244   : > { %v12908_v15 = vpop.permute.xlu1 %6194  ;;  %v12914_v60 = vpop.eup %8705 }
 0x245   : > { %14347 = vst [vmem:[#allocation62_spill] sm:$0xff] %v12908_v15 }
 0x246   : > { %v12912_v28 = vpop.permute.xlu0 %6196  ;;  %v12920_v20 = vpop.eup %8707 }
 0x247   : > { %5906 = vrot.lane.b32.xlu1 %v12914_v60, %s8913_s19  ;;  %5916 = vrot.lane.b32.xlu0 %v12920_v20, %s8913_s19  ;;  %v12928_v17 = vpop.eup %8709 }
 0x248   : > { %v12916_v35 = vpop.permute.xlu1 %6198 }
 0x249   : > { %14348 = vst [vmem:[#allocation63_spill] sm:$0xff] %v12916_v35 }
 0x24a   : > { %v12922_v25 = vpop.permute.xlu0 %6200  ;;  %v12932_v56 = vpop.eup %8711 }
 0x24b   : > { %14349 = vst [vmem:[#allocation64_spill] sm:$0xff] %v12922_v25  ;;  %5912 = vrot.lane.b32.xlu0 %v12928_v17, %s8913_s19  ;;  %5918 = vrot.lane.b32.xlu1 %v12932_v56, %s8913_s19  ;;  %v12942_v1 = vpop.eup %8713 }
 0x24c   : > { %v12926_v34 = vpop.permute.xlu1 %6202 }
 0x24d   : > { %14350 = vst [vmem:[#allocation65_spill] sm:$0xff] %v12926_v34 }
 0x24e   : > { %v12930_v21 = vpop.permute.xlu0 %6204 }
 0x24f   : > { %14351 = vst [vmem:[#allocation66_spill] sm:$0xff] %v12930_v21  ;;  %5914 = vrot.lane.b32.xlu1 %v12942_v1, %s8913_s19 }
 0x250   : > { %v12938_v61 = vpop.permute.xlu1 %6206 }
 0x251   : > { %14352 = vst [vmem:[#allocation67_spill] sm:$0xff] %v12938_v61 }
 0x252   : > { %v12940_v49 = vpop.permute.xlu0 %6208 }
 0x253   : > { %14353 = vst [vmem:[#allocation68_spill] sm:$0xff] %v12940_v49 }
 0x254   : > { %v12946_v39 = vpop.permute.xlu1 %6210 }
 0x255   : > { %14354 = vst [vmem:[#allocation69_spill] sm:$0xff] %v12946_v39 }
 0x256   : > { %v12948_v57 = vpop.permute.xlu0 %6212 }
 0x257   : > { %14355 = vst [vmem:[#allocation70_spill] sm:$0xff] %v12948_v57 }
 0x258   : > { %v12950_v24 = vpop.permute.xlu1 %6214 }
 0x259   : > { %14356 = vst [vmem:[#allocation71_spill] sm:$0xff] %v12950_v24 }
 0x25a   : > { %v12952_v16 = vpop.permute.xlu0 %6216 }
 0x25b   : > { %14357 = vst [vmem:[#allocation72_spill] sm:$0xff] %v12952_v16 }
 0x25c   : > { %v12954_v34 = vpop.permute.xlu1 %6218 }
 0x25d   : > { %14358 = vst [vmem:[#allocation73_spill] sm:$0xff] %v12954_v34  ;;  %v5602_v34 = vmul.f32 0.5, %v12404_v46  ;;  %v5606_v46 = vmul.f32 0.5, %v12482_v55 }
 0x25e   : > { %v12956_v25 = vpop.permute.xlu0 %6220 }
 0x25f   : > { %14359 = vst [vmem:[#allocation74_spill] sm:$0xff] %v12956_v25  ;;  %v12978_v25 = vadd.f32 0.5, %v5602_v34 }
 0x260   : > { %v12958_v61 = vpop.permute.xlu1 %6222 }
 0x261   : > { %14360 = vst [vmem:[#allocation75_spill] sm:$0xff] %v12958_v61  ;;  %v5600_v61 = vmul.f32 0.5, %v12425_v47 }
 0x262   : > { %v12960_v49 = vpop.permute.xlu0 %6224 }
 0x263   : > { %14361 = vst [vmem:[#allocation76_spill] sm:$0xff] %v12960_v49 }
 0x264   : > { %v12962_v21 = vpop.permute.xlu1 %6226 }
 0x265   : > { %14362 = vst [vmem:[#allocation77_spill] sm:$0xff] %v12962_v21  ;;  %v5603_v21 = vmul.f32 0.5, %v12436_v44 }
 0x266   : > { %v12964_v15 = vpop.permute.xlu0 %6228 }
 0x267   : > { %14363 = vst [vmem:[#allocation78_spill] sm:$0xff] %v12964_v15 }
 0x268   : > { %v12966_v52 = vpop.permute.xlu1 %6230 }
 0x269   : > { %14364 = vst [vmem:[#allocation79_spill] sm:$0xff] %v12966_v52  ;;  %v12982_v52 = vadd.f32 0.5, %v5600_v61 }
 0x26a   : > { %v12968_v39 = vpop.permute.xlu0 %6232 }
 0x26b   : > { %14365 = vst [vmem:[#allocation80_spill] sm:$0xff] %v12968_v39  ;;  %v5601_v39 = vmul.f32 0.5, %v12469_v36  ;;  %v5604_v36 = vmul.f32 0.5, %v12501_v26  ;;  %v5610_v26 = vmul.f32 0.5, %v12553_v29 }
 0x26c   : > { %v12970_v57 = vpop.permute.xlu1 %6234 }
 0x26d   : > { %14366 = vst [vmem:[#allocation81_spill] sm:$0xff] %v12970_v57  ;;  %v12985_v57 = vadd.f32 0.5, %v5603_v21  ;;  %v12991_v44 = vadd.f32 0.5, %v5601_v39  ;;  %v5605_v39 = vmul.f32 0.5, %v12542_v62  ;;  %v5611_v62 = vmul.f32 0.5, %v12590_v58 }
 0x26e   : > { %v12972_v24 = vpop.permute.xlu0 %6236 }
 0x26f   : > { %14367 = vst [vmem:[#allocation82_spill] sm:$0xff] %v12972_v24  ;;  %v13011_v35 = vadd.f32 0.5, %v5605_v39  ;;  %v5609_v39 = vmul.f32 0.5, %v12629_v54 }
 0x270   : > { %v12975_v16 = vpop.permute.xlu1 %6238 }
 0x271   : > { %14368 = vst [vmem:[#allocation83_spill] sm:$0xff] %v12975_v16 }
 0x278   : > { %v5861_v49 = vpop.permute.xlu0 %5860 }
 0x279   : > { %v5954_v15 = vmul.f32 %v5861_v49, %v12978_v25  ;;  %v12996_v49 = vadd.f32 0.5, %v5606_v46 }
 0x27b   : > { %6020 = vrot.lane.b32.xlu0 %v5954_v15, %s8912_s22  ;;  %v5607_v15 = vmul.f32 0.5, %v12516_v37 }
 0x27c   : > { %v5857_v16 = vpop.permute.xlu0 %5856  ;;  %v5863_v24 = vpop.permute.xlu1 %5862 }
 0x27d   : > { %v5952_v47 = vmul.f32 %v5857_v16, %v12982_v52  ;;  %v5955_v34 = vmul.f32 %v5863_v24, %v12985_v57  ;;  %v13002_v24 = vadd.f32 0.5, %v5604_v36  ;;  %v13014_v36 = vadd.f32 0.5, %v5610_v26 }
 0x27f   : > { %6016 = vrot.lane.b32.xlu0 %v5952_v47, %s8912_s22  ;;  %6022 = vrot.lane.b32.xlu1 %v5955_v34, %s8912_s22  ;;  %v13005_v47 = vadd.f32 0.5, %v5607_v15 }
 0x280   : > { %v5859_v21 = vpop.permute.xlu1 %5858 }
 0x281   : > { %v5953_v55 = vmul.f32 %v5859_v21, %v12991_v44  ;;  %v5869_v61 = vpop.permute.xlu0 %5868 }
 0x282   : > { %v5958_v16 = vmul.f32 %v5869_v61, %v12996_v49 }
 0x283   : > { %6018 = vrot.lane.b32.xlu1 %v5953_v55, %s8912_s22  ;;  %v5608_v55 = vmul.f32 0.5, %v12576_v32 }
 0x284   : > { %6028 = vrot.lane.b32.xlu0 %v5958_v16, %s8912_s22 }
 0x285   : > { %v5865_v46 = vpop.permute.xlu0 %5864  ;;  %v5871_v37 = vpop.permute.xlu1 %5870 }
 0x286   : > { %v5956_v34 = vmul.f32 %v5865_v46, %v13002_v24  ;;  %v5959_v21 = vmul.f32 %v5871_v37, %v13005_v47  ;;  %v13021_v46 = vadd.f32 0.5, %v5608_v55  ;;  %v13024_v37 = vadd.f32 0.5, %v5611_v62 }
 0x287   : > { %v5615_v55 = vmul.f32 0.5, %v12683_v10 }
 0x288   : > { %6024 = vrot.lane.b32.xlu0 %v5956_v34, %s8912_s22  ;;  %6030 = vrot.lane.b32.xlu1 %v5959_v21, %s8912_s22  ;;  %v5614_v21 = vmul.f32 0.5, %v12654_v5 }
 0x289   : > { %v5867_v29 = vpop.permute.xlu1 %5866  ;;  %v5877_v15 = vpop.permute.xlu0 %5876 }
 0x28a   : > { %v5957_v61 = vmul.f32 %v5867_v29, %v13011_v35  ;;  %v5962_v16 = vmul.f32 %v5877_v15, %v13014_v36  ;;  %v13031_v29 = vadd.f32 0.5, %v5609_v39  ;;  %v5612_v15 = vmul.f32 0.5, %v12690_v41 }
 0x28b   : > { %v13042_v39 = vadd.f32 0.5, %v5615_v55 }
 0x28c   : > { %6036 = vrot.lane.b32.xlu0 %v5962_v16, %s8912_s22  ;;  %6026 = vrot.lane.b32.xlu1 %v5957_v61, %s8912_s22  ;;  %v13038_v61 = vadd.f32 0.5, %v5614_v21 }
 0x28d   : > { %v5873_v32 = vpop.permute.xlu0 %5872  ;;  %v5879_v58 = vpop.permute.xlu1 %5878 }
 0x28e   : > { %v5960_v26 = vmul.f32 %v5873_v32, %v13021_v46  ;;  %v5963_v34 = vmul.f32 %v5879_v58, %v13024_v37  ;;  %v13044_v32 = vadd.f32 0.5, %v5612_v15  ;;  %v5613_v58 = vmul.f32 0.5, %v12724_v59 }
 0x28f   : > { %v5616_v59 = vmul.f32 0.5, %v12780_v11 }
 0x290   : > { %6032 = vrot.lane.b32.xlu0 %v5960_v26, %s8912_s22  ;;  %6038 = vrot.lane.b32.xlu1 %v5963_v34, %s8912_s22  ;;  %v13051_v21 = vadd.f32 0.5, %v5613_v58 }
 0x291   : > { %v5875_v54 = vpop.permute.xlu1 %5874  ;;  %v13062_v58 = vadd.f32 0.5, %v5616_v59 }
 0x292   : > { %v5961_v62 = vmul.f32 %v5875_v54, %v13031_v29  ;;  %v5618_v54 = vmul.f32 0.5, %v12755_v63  ;;  %v5617_v63 = vmul.f32 0.5, %v12815_v6  ;;  %v5623_v6 = vmul.f32 0.5, %v12858_v27 }
 0x294   : > { %v5885_v16 = vpop.permute.xlu0 %5884  ;;  %6034 = vrot.lane.b32.xlu1 %v5961_v62, %s8912_s22  ;;  %v13057_v15 = vadd.f32 0.5, %v5618_v54 }
 0x295   : > { %v5966_v5 = vmul.f32 %v5885_v16, %v13038_v61  ;;  %v5887_v10 = vpop.permute.xlu1 %5886  ;;  %v5619_v16 = vmul.f32 0.5, %v12785_v42 }
 0x296   : > { %v5967_v34 = vmul.f32 %v5887_v10, %v13042_v39 }
 0x297   : > { %6044 = vrot.lane.b32.xlu0 %v5966_v5, %s8912_s22 }
 0x298   : > { %v5881_v26 = vpop.permute.xlu0 %5880  ;;  %6046 = vrot.lane.b32.xlu1 %v5967_v34, %s8912_s22  ;;  %v5622_v34 = vmul.f32 0.5, %v12810_v51 }
 0x299   : > { %v5964_v41 = vmul.f32 %v5881_v26, %v13044_v32  ;;  %v13065_v26 = vadd.f32 0.5, %v5619_v16 }
 0x29a   : > { %v5883_v55 = vpop.permute.xlu1 %5882  ;;  %v13074_v59 = vadd.f32 0.5, %v5622_v34  ;;  %v5626_v34 = vmul.f32 0.5, %v12884_v7 }
 0x29b   : > { %6040 = vrot.lane.b32.xlu0 %v5964_v41, %s8912_s22  ;;  %v5965_v62 = vmul.f32 %v5883_v55, %v13051_v21  ;;  %v13071_v55 = vadd.f32 0.5, %v5617_v63  ;;  %v13086_v63 = vadd.f32 0.5, %v5623_v6 }
 0x29d   : > { %6042 = vrot.lane.b32.xlu1 %v5965_v62, %s8912_s22  ;;  %v5620_v62 = vmul.f32 0.5, %v12848_v48  ;;  %v5621_v48 = vmul.f32 0.5, %v12875_v12  ;;  %v5627_v12 = vmul.f32 0.5, %v12904_v8 }
 0x29e   : > { %v5893_v5 = vpop.permute.xlu0 %5892 }
 0x29f   : > { %v5970_v10 = vmul.f32 %v5893_v5, %v13057_v15 }
 0x2a1   : > { %6052 = vrot.lane.b32.xlu0 %v5970_v10, %s8912_s22 }
 0x2a2   : > { %v5889_v11 = vpop.permute.xlu0 %5888 }
 0x2a3   : > { %v5968_v54 = vmul.f32 %v5889_v11, %v13062_v58  ;;  %v13081_v11 = vadd.f32 0.5, %v5620_v62  ;;  %v13092_v62 = vadd.f32 0.5, %v5621_v48  ;;  %v13106_v48 = vadd.f32 0.5, %v5627_v12 }
 0x2a4   : > { %v5895_v41 = vpop.permute.xlu1 %5894 }
 0x2a5   : > { %v5971_v42 = vmul.f32 %v5895_v41, %v13065_v26  ;;  %6048 = vrot.lane.b32.xlu0 %v5968_v54, %s8912_s22 }
 0x2a6   : > { %v5901_v51 = vpop.permute.xlu0 %5900 }
 0x2a7   : > { %6054 = vrot.lane.b32.xlu1 %v5971_v42, %s8912_s22  ;;  %v5974_v5 = vmul.f32 %v5901_v51, %v13074_v59  ;;  %v5624_v51 = vmul.f32 0.5, %v12900_v50  ;;  %v5625_v50 = vmul.f32 0.5, %v12914_v60 }
 0x2a8   : > { %v5891_v16 = vpop.permute.xlu1 %5890 }
 0x2a9   : > { %v5969_v10 = vmul.f32 %v5891_v16, %v13071_v55  ;;  %6060 = vrot.lane.b32.xlu0 %v5974_v5, %s8912_s22  ;;  %v13095_v16 = vadd.f32 0.5, %v5626_v34 }
 0x2aa   : > { %v5897_v41 = vpop.permute.xlu0 %5896 }
 0x2ab   : > { %6050 = vrot.lane.b32.xlu1 %v5969_v10, %s8912_s22  ;;  %v5972_v27 = vmul.f32 %v5897_v41, %v13081_v11  ;;  %v13101_v41 = vadd.f32 0.5, %v5624_v51  ;;  %v13112_v51 = vadd.f32 0.5, %v5625_v50  ;;  %v5629_v50 = vmul.f32 0.5, %v12942_v1 }
 0x2ac   : > { %v5794_v1 = vmul.f32 %v12294_v18, %v12978_v25  ;;  %v5792_v18 = vmul.f32 %v12262_v14, %v12982_v52 }
 0x2ad   : > { %v5903_v54 = vpop.permute.xlu1 %5902  ;;  %6056 = vrot.lane.b32.xlu0 %v5972_v27, %s8912_s22 }
 0x2ae   : > { %v5975_v42 = vmul.f32 %v5903_v54, %v13086_v63  ;;  %v5630_v54 = vmul.f32 0.5, %v12920_v20 }
 0x2af   : > { %v5909_v6 = vpop.permute.xlu0 %5908 }
 0x2b0   : > { %6062 = vrot.lane.b32.xlu1 %v5975_v42, %s8912_s22  ;;  %v5978_v5 = vmul.f32 %v5909_v6, %v13095_v16  ;;  %v13116_v60 = vadd.f32 0.5, %v5630_v54 }
 0x2b1   : > { %v5899_v7 = vpop.permute.xlu1 %5898 }
 0x2b2   : > { %v5973_v10 = vmul.f32 %v5899_v7, %v13092_v62  ;;  %6068 = vrot.lane.b32.xlu0 %v5978_v5, %s8912_s22  ;;  %v5628_v7 = vmul.f32 0.5, %v12928_v17  ;;  %v5631_v5 = vmul.f32 0.5, %v12932_v56  ;;  %v13131_v56 = vadd.f32 0.5, %v5629_v50 }
 0x2b3   : > { %v5905_v34 = vpop.permute.xlu0 %5904 }
 0x2b4   : > { %6058 = vrot.lane.b32.xlu1 %v5973_v10, %s8912_s22  ;;  %v5976_v27 = vmul.f32 %v5905_v34, %v13101_v41  ;;  %v13122_v34 = vadd.f32 0.5, %v5628_v7 }
 0x2b5   : > { %v5911_v8 = vpop.permute.xlu1 %5910 }
 0x2b6   : > { %v5979_v42 = vmul.f32 %v5911_v8, %v13106_v48  ;;  %6064 = vrot.lane.b32.xlu0 %v5976_v27, %s8912_s22  ;;  %v13126_v27 = vadd.f32 0.5, %v5631_v5 }
 0x2b8   : > { %6070 = vrot.lane.b32.xlu1 %v5979_v42, %s8912_s22 }
 0x2b9   : > { %v5907_v6 = vpop.permute.xlu1 %5906  ;;  %v5917_v10 = vpop.permute.xlu0 %5916 }
 0x2ba   : > { %v5977_v12 = vmul.f32 %v5907_v6, %v13112_v51  ;;  %v5982_v20 = vmul.f32 %v5917_v10, %v13116_v60  ;;  %v5795_v10 = vmul.f32 %v12313_v9, %v12985_v57 }
 0x2bc   : > { %6066 = vrot.lane.b32.xlu1 %v5977_v12, %s8912_s22  ;;  %6076 = vrot.lane.b32.xlu0 %v5982_v20, %s8912_s22 }
 0x2bd   : > { %v5913_v17 = vpop.permute.xlu0 %5912  ;;  %v5919_v54 = vpop.permute.xlu1 %5918 }
 0x2be   : > { %v5980_v8 = vmul.f32 %v5913_v17, %v13122_v34  ;;  %v5983_v42 = vmul.f32 %v5919_v54, %v13126_v27 }
 0x2c0   : > { %6072 = vrot.lane.b32.xlu0 %v5980_v8, %s8912_s22  ;;  %6078 = vrot.lane.b32.xlu1 %v5983_v42, %s8912_s22  ;;  %v5798_v42 = vmul.f32 %v12357_v19, %v12996_v49 }
 0x2c1   : > { %v5915_v6 = vpop.permute.xlu1 %5914 }
 0x2c2   : > { %v5981_v7 = vmul.f32 %v5915_v6, %v13131_v56 }
 0x2c4   : > { %6074 = vrot.lane.b32.xlu1 %v5981_v7, %s8912_s22  ;;  %v5796_v7 = vmul.f32 %v12328_v2, %v13002_v24 }
 0x2ed   : > { %v6021_v12 = vpop.permute.xlu0 %6020 }
 0x2ee   : > { %v13138_v5 = vadd.f32 %v6021_v12, %v5794_v1  ;;  %v5802_v12 = vmul.f32 %v12415_v31, %v13014_v36 }
 0x2f0   : > { %6948 = vrot.lane.b32.xlu0 %v13138_v5, %s8914_s20  ;;  %v6274_v50 = vmul.f32 %v12824_v53, %v13138_v5  ;;  %v5793_v53 = vmul.f32 %v12278_v13, %v12991_v44 }
 0x2f1   : > { %v6023_v20 = vpop.permute.xlu1 %6022  ;;  %v6017_v8 = vpop.permute.xlu0 %6016 }
 0x2f2   : > { %v13146_v17 = vadd.f32 %v6023_v20, %v5795_v10  ;;  %v13153_v9 = vadd.f32 %v6017_v8, %v5792_v18  ;;  %v5800_v20 = vmul.f32 %v12384_v43, %v13021_v46  ;;  %v14370_v8 = vld [vmem:[#allocation35_spill] sm:$0xff]  ;;  %v14371_v43 = vld [vmem:[#allocation61_spill] sm:$0xff] }
 0x2f4   : > { %6340 = vrot.lane.b32.xlu0 %v6274_v50, %s8913_s19  ;;  %6950 = vrot.lane.b32.xlu1 %v13146_v17, %s8914_s20  ;;  %v6275_v57 = vmul.f32 %v12841_v38, %v13146_v17  ;;  %v6272_v14 = vmul.f32 %v12792_v22, %v13153_v9  ;;  %v5799_v22 = vmul.f32 %v12371_v45, %v13005_v47 }
 0x2f5   : > { %v6019_v25 = vpop.permute.xlu1 %6018 }
 0x2f6   : > { %v13164_v52 = vadd.f32 %v6019_v25, %v5793_v53  ;;  %v6029_v54 = vpop.permute.xlu0 %6028  ;;  %v14372_v25 = vld [vmem:[#allocation16_spill] sm:$0xff] }
 0x2f7   : > { %v13171_v13 = vadd.f32 %v6029_v54, %v5798_v42  ;;  %v5806_v53 = vmul.f32 %v14372_v25, %v13038_v61  ;;  %v14375_v61 = vld [vmem:[#allocation66_spill] sm:$0xff] }
 0x2f8   : > { %6944 = vrot.lane.b32.xlu0 %v13153_v9, %s8914_s20  ;;  %6342 = vrot.lane.b32.xlu1 %v6275_v57, %s8913_s19  ;;  %v6273_v38 = vmul.f32 %v12808_v3, %v13164_v52 }
 0x2f9   : > { %v6278_v19 = vmul.f32 %v12882_v40, %v13171_v13  ;;  %v5797_v40 = vmul.f32 %v12345_v0, %v13011_v35 }
 0x2fa   : > { %v6031_v44 = vpop.permute.xlu1 %6030  ;;  %v6025_v6 = vpop.permute.xlu0 %6024 }
 0x2fb   : > { %v13182_v49 = vadd.f32 %v6031_v44, %v5799_v22  ;;  %v13189_v45 = vadd.f32 %v6025_v6, %v5796_v7  ;;  %v14376_v7 = vld [vmem:[#allocation23_spill] sm:$0xff] }
 0x2fc   : > { %6336 = vrot.lane.b32.xlu0 %v6272_v14, %s8913_s19  ;;  %6946 = vrot.lane.b32.xlu1 %v13164_v52, %s8914_s20  ;;  %v14373_v14 = vld [vmem:[#allocation62_spill] sm:$0xff] }
 0x2fd   : > { %v6279_v3 = vmul.f32 %v12893_v23, %v13182_v49  ;;  %v6276_v2 = vmul.f32 %v12856_v33, %v13189_v45  ;;  %v5803_v33 = vmul.f32 %v12430_v30, %v13024_v37 }
 0x2fe   : > { %v6027_v47 = vpop.permute.xlu1 %6026  ;;  %v6037_v1 = vpop.permute.xlu0 %6036 }
 0x2ff   : > { %v13200_v24 = vadd.f32 %v6027_v47, %v5797_v40  ;;  %v13207_v0 = vadd.f32 %v6037_v1, %v5802_v12  ;;  %v14377_v47 = vld [vmem:[#allocation67_spill] sm:$0xff]  ;;  %v14378_v1 = vld [vmem:[#allocation9_spill] sm:$0xff] }
 0x300   : > { %6956 = vrot.lane.b32.xlu0 %v13171_v13, %s8914_s20  ;;  %6338 = vrot.lane.b32.xlu1 %v6273_v38, %s8913_s19  ;;  %v14374_v38 = vld [vmem:[#allocation10_spill] sm:$0xff]  ;;  %v5805_v12 = vmul.f32 %v14378_v1, %v13051_v21  ;;  %v14390_v1 = vld [vmem:[#allocation44_spill] sm:$0xff] }
 0x301   : > { %v6277_v23 = vmul.f32 %v12872_v4, %v13200_v24  ;;  %v6282_v31 = vmul.f32 %v12912_v28, %v13207_v0  ;;  %v14369_v4 = vld [vmem:[#allocation63_spill] sm:$0xff]  ;;  %v5801_v28 = vmul.f32 %v14370_v8, %v13031_v29  ;;  %v5807_v44 = vmul.f32 %v14374_v38, %v13042_v39 }
 0x302   : > { %v6039_v35 = vpop.permute.xlu1 %6038  ;;  %v6033_v10 = vpop.permute.xlu0 %6032 }
 0x303   : > { %v13218_v36 = vadd.f32 %v6039_v35, %v5803_v33  ;;  %v13225_v30 = vadd.f32 %v6033_v10, %v5800_v20  ;;  %v14381_v20 = vld [vmem:[#allocation65_spill] sm:$0xff] }
 0x304   : > { %6348 = vrot.lane.b32.xlu0 %v6278_v19, %s8913_s19  ;;  %6958 = vrot.lane.b32.xlu1 %v13182_v49, %s8914_s20 }
 0x305   : > { %v6283_v37 = vmul.f32 %v14369_v4, %v13218_v36  ;;  %v6280_v46 = vmul.f32 %v14371_v43, %v13225_v30 }
 0x306   : > { %v6035_v50 = vpop.permute.xlu1 %6034 }
 0x307   : > { %v13236_v18 = vadd.f32 %v6035_v50, %v5801_v28  ;;  %v14382_v50 = vld [vmem:[#allocation8_spill] sm:$0xff] }
 0x308   : > { %6952 = vrot.lane.b32.xlu0 %v13189_v45, %s8914_s20  ;;  %6350 = vrot.lane.b32.xlu1 %v6279_v3, %s8913_s19  ;;  %v5804_v3 = vmul.f32 %v14376_v7, %v13044_v32  ;;  %v14379_v32 = vld [vmem:[#allocation64_spill] sm:$0xff]  ;;  %v5811_v8 = vmul.f32 %v14382_v50, %v13065_v26 }
 0x309   : > { %v6045_v57 = vpop.permute.xlu0 %6044  ;;  %v6281_v54 = vmul.f32 %v14373_v14, %v13236_v18  ;;  %v14394_v50 = vld [vmem:[#allocation32_spill] sm:$0xff] }
 0x30a   : > { %v13243_v29 = vadd.f32 %v6045_v57, %v5806_v53  ;;  %v6047_v42 = vpop.permute.xlu1 %6046  ;;  %v14384_v57 = vld [vmem:[#allocation34_spill] sm:$0xff]  ;;  %v14385_v53 = vld [vmem:[#allocation71_spill] sm:$0xff] }
 0x30b   : > { %v13254_v19 = vadd.f32 %v6047_v42, %v5807_v44  ;;  %v5808_v25 = vmul.f32 %v14384_v57, %v13062_v58  ;;  %v14386_v42 = vld [vmem:[#allocation13_spill] sm:$0xff]  ;;  %v14387_v44 = vld [vmem:[#allocation68_spill] sm:$0xff] }
 0x30c   : > { %6344 = vrot.lane.b32.xlu0 %v6276_v2, %s8913_s19  ;;  %6954 = vrot.lane.b32.xlu1 %v13200_v24, %s8914_s20  ;;  %v6286_v22 = vmul.f32 %v14375_v61, %v13243_v29  ;;  %v5809_v38 = vmul.f32 %v14386_v42, %v13071_v55 }
 0x30d   : > { %v6041_v6 = vpop.permute.xlu0 %6040  ;;  %v6287_v40 = vmul.f32 %v14377_v47, %v13254_v19  ;;  %v14389_v47 = vld [vmem:[#allocation69_spill] sm:$0xff] }
 0x30e   : > { %v13261_v39 = vadd.f32 %v6041_v6, %v5804_v3  ;;  %v14388_v6 = vld [vmem:[#allocation41_spill] sm:$0xff] }
 0x30f   : > { %v6043_v2 = vpop.permute.xlu1 %6042  ;;  %v5814_v7 = vmul.f32 %v14388_v6, %v13074_v59  ;;  %v14391_v59 = vld [vmem:[#allocation74_spill] sm:$0xff] }
 0x310   : > { %6964 = vrot.lane.b32.xlu0 %v13207_v0, %s8914_s20  ;;  %6346 = vrot.lane.b32.xlu1 %v6277_v23, %s8913_s19  ;;  %v6284_v23 = vmul.f32 %v14379_v32, %v13261_v39  ;;  %v13272_v35 = vadd.f32 %v6043_v2, %v5805_v12  ;;  %v5815_v12 = vmul.f32 %v14390_v1, %v13086_v63  ;;  %v14400_v6 = vld [vmem:[#allocation42_spill] sm:$0xff] }
 0x312   : > { %v6285_v4 = vmul.f32 %v14381_v20, %v13272_v35 }
 0x313   : > { %v6053_v33 = vpop.permute.xlu0 %6052 }
 0x314   : > { %6356 = vrot.lane.b32.xlu0 %v6282_v31, %s8913_s19  ;;  %6966 = vrot.lane.b32.xlu1 %v13218_v36, %s8914_s20  ;;  %v14380_v31 = vld [vmem:[#allocation39_spill] sm:$0xff] }
 0x315   : > { %v5810_v10 = vmul.f32 %v14380_v31, %v13057_v15  ;;  %v14383_v15 = vld [vmem:[#allocation70_spill] sm:$0xff]  ;;  %v14392_v31 = vld [vmem:[#allocation40_spill] sm:$0xff] }
 0x317   : > { %v13279_v21 = vadd.f32 %v6053_v33, %v5810_v10  ;;  %v5812_v10 = vmul.f32 %v14392_v31, %v13081_v11 }
 0x318   : > { %6960 = vrot.lane.b32.xlu0 %v13225_v30, %s8914_s20  ;;  %6358 = vrot.lane.b32.xlu1 %v6283_v37, %s8913_s19 }
 0x319   : > { %v6055_v37 = vpop.permute.xlu1 %6054  ;;  %v6290_v28 = vmul.f32 %v14383_v15, %v13279_v21  ;;  %v14395_v15 = vld [vmem:[#allocation48_spill] sm:$0xff] }
 0x31a   : > { %v13290_v43 = vadd.f32 %v6055_v37, %v5811_v8  ;;  %v5813_v8 = vmul.f32 %v14394_v50, %v13092_v62  ;;  %v14407_v50 = vld [vmem:[#allocation82_spill] sm:$0xff] }
 0x31c   : > { %6352 = vrot.lane.b32.xlu0 %v6280_v46, %s8913_s19  ;;  %6962 = vrot.lane.b32.xlu1 %v13236_v18, %s8914_s20  ;;  %v6049_v46 = vpop.permute.xlu0 %6048  ;;  %v6291_v14 = vmul.f32 %v14385_v53, %v13290_v43 }
 0x31d   : > { %v13297_v26 = vadd.f32 %v6049_v46, %v5808_v25  ;;  %v14396_v46 = vld [vmem:[#allocation72_spill] sm:$0xff] }
 0x31f   : > { %v6288_v61 = vmul.f32 %v14387_v44, %v13297_v26 }
 0x320   : > { %6972 = vrot.lane.b32.xlu0 %v13243_v29, %s8914_s20  ;;  %6354 = vrot.lane.b32.xlu1 %v6281_v54, %s8913_s19  ;;  %v6051_v54 = vpop.permute.xlu1 %6050  ;;  %v6061_v58 = vpop.permute.xlu0 %6060 }
 0x321   : > { %v13315_v3 = vadd.f32 %v6061_v58, %v5814_v7  ;;  %v5816_v7 = vmul.f32 %v14400_v6, %v13101_v41 }
 0x323   : > { %v6294_v32 = vmul.f32 %v14391_v59, %v13315_v3 }
 0x324   : > { %6364 = vrot.lane.b32.xlu0 %v6286_v22, %s8913_s19  ;;  %6974 = vrot.lane.b32.xlu1 %v13254_v19, %s8914_s20  ;;  %v13308_v22 = vadd.f32 %v6051_v54, %v5809_v38  ;;  %v6063_v55 = vpop.permute.xlu1 %6062  ;;  %v6057_v2 = vpop.permute.xlu0 %6056  ;;  %v14397_v54 = vld [vmem:[#allocation46_spill] sm:$0xff]  ;;  %v14399_v38 = vld [vmem:[#allocation73_spill] sm:$0xff] }
 0x325   : > { %v13333_v20 = vadd.f32 %v6057_v2, %v5812_v10  ;;  %v5819_v62 = vmul.f32 %v14397_v54, %v13106_v48  ;;  %v14402_v2 = vld [vmem:[#allocation43_spill] sm:$0xff] }
 0x326   : > { %v5817_v1 = vmul.f32 %v14402_v2, %v13112_v51  ;;  %v14405_v51 = vld [vmem:[#allocation51_spill] sm:$0xff]  ;;  %v14414_v2 = vld [vmem:[#allocation26_spill] sm:$0xff] }
 0x327   : > { %v6292_v57 = vmul.f32 %v14396_v46, %v13333_v20 }
 0x328   : > { %6968 = vrot.lane.b32.xlu0 %v13261_v39, %s8914_s20  ;;  %6366 = vrot.lane.b32.xlu1 %v6287_v40, %s8913_s19  ;;  %v6289_v40 = vmul.f32 %v14389_v47, %v13308_v22  ;;  %v6059_v33 = vpop.permute.xlu1 %6058  ;;  %v6069_v63 = vpop.permute.xlu0 %6068  ;;  %v14401_v47 = vld [vmem:[#allocation79_spill] sm:$0xff] }
 0x329   : > { %v13348_v53 = vadd.f32 %v6059_v33, %v5813_v8 }
 0x32b   : > { %v6293_v58 = vmul.f32 %v14399_v38, %v13348_v53  ;;  %v14412_v38 = vld [vmem:[#allocation81_spill] sm:$0xff] }
 0x32c   : > { %6360 = vrot.lane.b32.xlu0 %v6284_v23, %s8913_s19  ;;  %6970 = vrot.lane.b32.xlu1 %v13272_v35, %s8914_s20  ;;  %v13326_v23 = vadd.f32 %v6063_v55, %v5815_v12  ;;  %v6071_v11 = vpop.permute.xlu1 %6070  ;;  %v14403_v12 = vld [vmem:[#allocation47_spill] sm:$0xff] }
 0x32d   : > { %v13359_v44 = vadd.f32 %v6071_v11, %v5819_v62  ;;  %v5822_v59 = vmul.f32 %v14403_v12, %v13116_v60  ;;  %v14406_v60 = vld [vmem:[#allocation52_spill] sm:$0xff]  ;;  %v14411_v62 = vld [vmem:[#allocation83_spill] sm:$0xff] }
 0x330   : > { %6980 = vrot.lane.b32.xlu0 %v13279_v21, %s8914_s20  ;;  %6362 = vrot.lane.b32.xlu1 %v6285_v4, %s8913_s19  ;;  %v14393_v4 = vld [vmem:[#allocation75_spill] sm:$0xff] }
 0x331   : > { %v6295_v37 = vmul.f32 %v14393_v4, %v13326_v23  ;;  %v5820_v4 = vmul.f32 %v14405_v51, %v13122_v34  ;;  %v14416_v51 = vld [vmem:[#allocation29_spill] sm:$0xff] }
 0x334   : > { %6372 = vrot.lane.b32.xlu0 %v6290_v28, %s8913_s19  ;;  %6982 = vrot.lane.b32.xlu1 %v13290_v43, %s8914_s20  ;;  %v5818_v28 = vmul.f32 %v14395_v15, %v13095_v16  ;;  %v14398_v16 = vld [vmem:[#allocation78_spill] sm:$0xff]  ;;  %v14408_v15 = vld [vmem:[#allocation77_spill] sm:$0xff] }
 0x336   : > { %v13346_v25 = vadd.f32 %v6069_v63, %v5818_v28 }
 0x338   : > { %6976 = vrot.lane.b32.xlu0 %v13297_v26, %s8914_s20  ;;  %6374 = vrot.lane.b32.xlu1 %v6291_v14, %s8913_s19  ;;  %v6065_v14 = vpop.permute.xlu0 %6064  ;;  %v6298_v42 = vmul.f32 %v14398_v16, %v13346_v25 }
 0x339   : > { %v13365_v55 = vadd.f32 %v6065_v14, %v5816_v7  ;;  %v14410_v14 = vld [vmem:[#allocation80_spill] sm:$0xff]  ;;  %v14413_v7 = vld [vmem:[#allocation22_spill] sm:$0xff] }
 0x33c   : > { %6368 = vrot.lane.b32.xlu0 %v6288_v61, %s8913_s19  ;;  %6978 = vrot.lane.b32.xlu1 %v13308_v22, %s8914_s20  ;;  %v6067_v61 = vpop.permute.xlu1 %6066  ;;  %v6077_v48 = vpop.permute.xlu0 %6076 }
 0x33d   : > { %v13378_v31 = vadd.f32 %v6077_v48, %v5822_v59  ;;  %v13380_v10 = vadd.f32 %v6067_v61, %v5817_v1 }
 0x33f   : > { %v6302_v8 = vmul.f32 %v14407_v50, %v13378_v31  ;;  %v6297_v28 = vmul.f32 %v14408_v15, %v13380_v10  ;;  %v14417_v50 = vld [vmem:[#allocation31_spill] sm:$0xff] }
 0x340   : > { %6988 = vrot.lane.b32.xlu0 %v13315_v3, %s8914_s20  ;;  %6370 = vrot.lane.b32.xlu1 %v6289_v40, %s8913_s19  ;;  %v6299_v40 = vmul.f32 %v14401_v47, %v13359_v44  ;;  %v6079_v41 = vpop.permute.xlu1 %6078  ;;  %v6073_v63 = vpop.permute.xlu0 %6072 }
 0x341   : > { %v13393_v11 = vadd.f32 %v6073_v63, %v5820_v4 }
 0x343   : > { %v6300_v54 = vmul.f32 %v14410_v14, %v13393_v11 }
 0x344   : > { %6380 = vrot.lane.b32.xlu0 %v6294_v32, %s8913_s19  ;;  %6990 = vrot.lane.b32.xlu1 %v13326_v23, %s8914_s20  ;;  %v14404_v32 = vld [vmem:[#allocation76_spill] sm:$0xff]  ;;  %v6075_v34 = vpop.permute.xlu1 %6074 }
 0x345   : > { %v6296_v33 = vmul.f32 %v14404_v32, %v13365_v55 }
 0x348   : > { %6984 = vrot.lane.b32.xlu0 %v13333_v20, %s8914_s20  ;;  %6382 = vrot.lane.b32.xlu1 %v6295_v37, %s8913_s19  ;;  %v5823_v37 = vmul.f32 %v14406_v60, %v13126_v27  ;;  %v14409_v27 = vld [vmem:[#allocation57_spill] sm:$0xff] }
 0x34a   : > { %v13395_v46 = vadd.f32 %v6079_v41, %v5823_v37  ;;  %v14415_v41 = vld [vmem:[#allocation24_spill] sm:$0xff] }
 0x34c   : > { %6376 = vrot.lane.b32.xlu0 %v6292_v57, %s8913_s19  ;;  %6986 = vrot.lane.b32.xlu1 %v13348_v53, %s8914_s20  ;;  %v5821_v57 = vmul.f32 %v14409_v27, %v13131_v56  ;;  %v6303_v16 = vmul.f32 %v14411_v62, %v13395_v46 }
 0x350   : > { %6388 = vrot.lane.b32.xlu0 %v6298_v42, %s8913_s19  ;;  %6378 = vrot.lane.b32.xlu1 %v6293_v58, %s8913_s19  ;;  %v13409_v42 = vadd.f32 %v6075_v34, %v5821_v57  ;;  %v14418_v34 = vld [vmem:[#allocation30_spill] sm:$0xff] }
 0x352   : > { %v6301_v56 = vmul.f32 %v14412_v38, %v13409_v42 }
 0x354   : > { %6992 = vrot.lane.b32.xlu0 %v13365_v55, %s8914_s20  ;;  %6390 = vrot.lane.b32.xlu1 %v6299_v40, %s8913_s19 }
 0x358   : > { %6384 = vrot.lane.b32.xlu0 %v6296_v33, %s8913_s19  ;;  %6994 = vrot.lane.b32.xlu1 %v13380_v10, %s8914_s20 }
 0x35c   : > { %6396 = vrot.lane.b32.xlu0 %v6302_v8, %s8913_s19  ;;  %6386 = vrot.lane.b32.xlu1 %v6297_v28, %s8913_s19 }
 0x360   : > { %6392 = vrot.lane.b32.xlu0 %v6300_v54, %s8913_s19  ;;  %6398 = vrot.lane.b32.xlu1 %v6303_v16, %s8913_s19  ;;  %v14419_v54 = vld [vmem:[#allocation17_spill] sm:$0xff] }
 0x362   : > { %v6949_v58 = vpop.permute.xlu0 %6948 }
 0x363   : > { %7042 = vst.msk [vmem:[%s13417_s16 + $0x10] sm:$0xff] %vm5502_vm6, %v6949_v58 }
 0x364   : > { %6394 = vrot.lane.b32.xlu1 %v6301_v56, %s8913_s19  ;;  %v14420_v56 = vld [vmem:[#allocation33_spill] sm:$0xff]  ;;  %s7815_s19 = sshll.u32 %s8980_s28, 12  ;;  %s7107_s28 = sshll.u32 %s13417_s16, 4  ;;  %s13865_s28 = int_to_ptr.vmem [resolvable:$true] %s7107_s28 }
 0x365   : > { %s13851_s21 = scalar_lea.hbm %s13942_s6, %s7815_s19  ;;  %s13863_s9 = scalar_lea.hbm %s13943_s7, %s7815_s19 }
 0x366   : > { %v6341_v61 = vpop.permute.xlu0 %6340  ;;  %v6951_v6 = vpop.permute.xlu1 %6950 }
 0x367   : > { %v6434_v48 = vadd.f32 %v6341_v61, %v14413_v7  ;;  %7043 = vst.msk [vmem:[%s13417_s16 + $0x18] sm:$0xff] %vm5502_vm6, %v6951_v6  ;;  %v14421_v7 = vld [vmem:[#allocation15_spill] sm:$0xff] }
 0x369   : > { %6500 = vrot.lane.b32.xlu0 %v6434_v48, %s8912_s22 }
 0x36a   : > { %v6945_v47 = vpop.permute.xlu0 %6944  ;;  %v6343_v40 = vpop.permute.xlu1 %6342 }
 0x36b   : > { %7040 = vst.msk [vmem:[%s13417_s16] sm:$0xff] %vm5502_vm6, %v6945_v47  ;;  %v6435_v1 = vadd.f32 %v6343_v40, %v14414_v2  ;;  %v14422_v2 = vld [vmem:[#allocation12_spill] sm:$0xff] }
 0x36d   : > { %6502 = vrot.lane.b32.xlu1 %v6435_v1, %s8912_s22 }
 0x36e   : > { %v6337_v12 = vpop.permute.xlu0 %6336  ;;  %v6947_v59 = vpop.permute.xlu1 %6946 }
 0x36f   : > { %v6432_v32 = vadd.f32 %v6337_v12, %v14415_v41  ;;  %7041 = vst.msk [vmem:[%s13417_s16 + $0x8] sm:$0xff] %vm5502_vm6, %v6947_v59  ;;  %v14423_v41 = vld [vmem:[#allocation11_spill] sm:$0xff] }
 0x371   : > { %6496 = vrot.lane.b32.xlu0 %v6432_v32, %s8912_s22 }
 0x372   : > { %v6957_v33 = vpop.permute.xlu0 %6956  ;;  %v6339_v63 = vpop.permute.xlu1 %6338 }
 0x373   : > { %7046 = vst.msk [vmem:[%s13417_s16 + $0x30] sm:$0xff] %vm5502_vm6, %v6957_v33  ;;  %v6433_v4 = vadd.f32 %v6339_v63, %v14416_v51  ;;  %v14424_v51 = vld [vmem:[#allocation19_spill] sm:$0xff] }
 0x375   : > { %6498 = vrot.lane.b32.xlu1 %v6433_v4, %s8912_s22 }
 0x376   : > { %v6349_v60 = vpop.permute.xlu0 %6348  ;;  %v6959_v37 = vpop.permute.xlu1 %6958 }
 0x377   : > { %v6438_v8 = vadd.f32 %v6349_v60, %v14417_v50  ;;  %7047 = vst.msk [vmem:[%s13417_s16 + $0x38] sm:$0xff] %vm5502_vm6, %v6959_v37  ;;  %v14425_v50 = vld [vmem:[#allocation25_spill] sm:$0xff] }
 0x379   : > { %6508 = vrot.lane.b32.xlu0 %v6438_v8, %s8912_s22 }
 0x37a   : > { %v6953_v15 = vpop.permute.xlu0 %6952  ;;  %v6351_v28 = vpop.permute.xlu1 %6350 }
 0x37b   : > { %7044 = vst.msk [vmem:[%s13417_s16 + $0x20] sm:$0xff] %vm5502_vm6, %v6953_v15  ;;  %v6439_v27 = vadd.f32 %v6351_v28, %v14418_v34  ;;  %v14426_v34 = vld [vmem:[#allocation21_spill] sm:$0xff] }
 0x37d   : > { %6510 = vrot.lane.b32.xlu1 %v6439_v27, %s8912_s22 }
 0x37e   : > { %v6345_v57 = vpop.permute.xlu0 %6344  ;;  %v6955_v14 = vpop.permute.xlu1 %6954 }
 0x37f   : > { %v6436_v62 = vadd.f32 %v6345_v57, %v14419_v54  ;;  %7045 = vst.msk [vmem:[%s13417_s16 + $0x28] sm:$0xff] %vm5502_vm6, %v6955_v14  ;;  %v14427_v54 = vld [vmem:[#allocation36_spill] sm:$0xff] }
 0x381   : > { %6504 = vrot.lane.b32.xlu0 %v6436_v62, %s8912_s22 }
 0x382   : > { %v6965_v16 = vpop.permute.xlu0 %6964  ;;  %v6347_v38 = vpop.permute.xlu1 %6346 }
 0x383   : > { %7050 = vst.msk [vmem:[%s13417_s16 + $0x50] sm:$0xff] %vm5502_vm6, %v6965_v16  ;;  %v6437_v58 = vadd.f32 %v6347_v38, %v14420_v56  ;;  %v14428_v56 = vld [vmem:[#allocation28_spill] sm:$0xff] }
 0x385   : > { %6506 = vrot.lane.b32.xlu1 %v6437_v58, %s8912_s22 }
 0x386   : > { %v6357_v61 = vpop.permute.xlu0 %6356  ;;  %v6967_v6 = vpop.permute.xlu1 %6966 }
 0x387   : > { %v6442_v48 = vadd.f32 %v6357_v61, %v14421_v7  ;;  %7051 = vst.msk [vmem:[%s13417_s16 + $0x58] sm:$0xff] %vm5502_vm6, %v6967_v6  ;;  %v14429_v7 = vld [vmem:[#allocation20_spill] sm:$0xff] }
 0x389   : > { %6516 = vrot.lane.b32.xlu0 %v6442_v48, %s8912_s22 }
 0x38a   : > { %v6961_v47 = vpop.permute.xlu0 %6960  ;;  %v6359_v40 = vpop.permute.xlu1 %6358 }
 0x38b   : > { %7048 = vst.msk [vmem:[%s13417_s16 + $0x40] sm:$0xff] %vm5502_vm6, %v6961_v47  ;;  %v6443_v1 = vadd.f32 %v6359_v40, %v14422_v2  ;;  %v14430_v2 = vld [vmem:[#allocation37_spill] sm:$0xff] }
 0x38d   : > { %6518 = vrot.lane.b32.xlu1 %v6443_v1, %s8912_s22 }
 0x38e   : > { %v6353_v12 = vpop.permute.xlu0 %6352  ;;  %v6963_v59 = vpop.permute.xlu1 %6962 }
 0x38f   : > { %v6440_v32 = vadd.f32 %v6353_v12, %v14423_v41  ;;  %7049 = vst.msk [vmem:[%s13417_s16 + $0x48] sm:$0xff] %vm5502_vm6, %v6963_v59  ;;  %v14431_v41 = vld [vmem:[#allocation38_spill] sm:$0xff] }
 0x391   : > { %6512 = vrot.lane.b32.xlu0 %v6440_v32, %s8912_s22 }
 0x392   : > { %v6973_v33 = vpop.permute.xlu0 %6972  ;;  %v6355_v63 = vpop.permute.xlu1 %6354 }
 0x393   : > { %7054 = vst.msk [vmem:[%s13417_s16 + $0x70] sm:$0xff] %vm5502_vm6, %v6973_v33  ;;  %v6441_v4 = vadd.f32 %v6355_v63, %v14424_v51  ;;  %v14432_v51 = vld [vmem:[#allocation14_spill] sm:$0xff] }
 0x395   : > { %6514 = vrot.lane.b32.xlu1 %v6441_v4, %s8912_s22 }
 0x396   : > { %v6365_v60 = vpop.permute.xlu0 %6364  ;;  %v6975_v37 = vpop.permute.xlu1 %6974 }
 0x397   : > { %v6446_v8 = vadd.f32 %v6365_v60, %v14425_v50  ;;  %7055 = vst.msk [vmem:[%s13417_s16 + $0x78] sm:$0xff] %vm5502_vm6, %v6975_v37  ;;  %v14433_v50 = vld [vmem:[#allocation27_spill] sm:$0xff] }
 0x399   : > { %6524 = vrot.lane.b32.xlu0 %v6446_v8, %s8912_s22 }
 0x39a   : > { %v6969_v15 = vpop.permute.xlu0 %6968  ;;  %v6367_v28 = vpop.permute.xlu1 %6366 }
 0x39b   : > { %7052 = vst.msk [vmem:[%s13417_s16 + $0x60] sm:$0xff] %vm5502_vm6, %v6969_v15  ;;  %v6447_v27 = vadd.f32 %v6367_v28, %v14426_v34  ;;  %v14434_v34 = vld [vmem:[#allocation49_spill] sm:$0xff] }
 0x39d   : > { %6526 = vrot.lane.b32.xlu1 %v6447_v27, %s8912_s22 }
 0x39e   : > { %v6361_v57 = vpop.permute.xlu0 %6360  ;;  %v6971_v14 = vpop.permute.xlu1 %6970 }
 0x39f   : > { %v6444_v62 = vadd.f32 %v6361_v57, %v14427_v54  ;;  %7053 = vst.msk [vmem:[%s13417_s16 + $0x68] sm:$0xff] %vm5502_vm6, %v6971_v14  ;;  %v14435_v54 = vld [vmem:[#allocation45_spill] sm:$0xff] }
 0x3a1   : > { %6520 = vrot.lane.b32.xlu0 %v6444_v62, %s8912_s22 }
 0x3a2   : > { %v6981_v16 = vpop.permute.xlu0 %6980  ;;  %v6363_v38 = vpop.permute.xlu1 %6362 }
 0x3a3   : > { %7058 = vst.msk [vmem:[%s13417_s16 + $0x90] sm:$0xff] %vm5502_vm6, %v6981_v16  ;;  %v6445_v58 = vadd.f32 %v6363_v38, %v14428_v56  ;;  %v14436_v56 = vld [vmem:[#allocation55_spill] sm:$0xff] }
 0x3a5   : > { %6522 = vrot.lane.b32.xlu1 %v6445_v58, %s8912_s22 }
 0x3a6   : > { %v6373_v61 = vpop.permute.xlu0 %6372  ;;  %v6983_v6 = vpop.permute.xlu1 %6982 }
 0x3a7   : > { %v6450_v48 = vadd.f32 %v6373_v61, %v14429_v7  ;;  %7059 = vst.msk [vmem:[%s13417_s16 + $0x98] sm:$0xff] %vm5502_vm6, %v6983_v6  ;;  %v14437_v61 = vld [vmem:[#allocation53_spill] sm:$0xff] }
 0x3a9   : > { %6532 = vrot.lane.b32.xlu0 %v6450_v48, %s8912_s22 }
 0x3aa   : > { %v6977_v47 = vpop.permute.xlu0 %6976  ;;  %v6375_v40 = vpop.permute.xlu1 %6374 }
 0x3ab   : > { %7056 = vst.msk [vmem:[%s13417_s16 + $0x80] sm:$0xff] %vm5502_vm6, %v6977_v47  ;;  %v6451_v1 = vadd.f32 %v6375_v40, %v14430_v2  ;;  %v14438_v47 = vld [vmem:[#allocation56_spill] sm:$0xff] }
 0x3ad   : > { %6534 = vrot.lane.b32.xlu1 %v6451_v1, %s8912_s22 }
 0x3ae   : > { %v6369_v12 = vpop.permute.xlu0 %6368  ;;  %v6979_v59 = vpop.permute.xlu1 %6978 }
 0x3af   : > { %v6448_v32 = vadd.f32 %v6369_v12, %v14431_v41  ;;  %7057 = vst.msk [vmem:[%s13417_s16 + $0x88] sm:$0xff] %vm5502_vm6, %v6979_v59  ;;  %v14439_v12 = vld [vmem:[#allocation50_spill] sm:$0xff] }
 0x3b1   : > { %6528 = vrot.lane.b32.xlu0 %v6448_v32, %s8912_s22 }
 0x3b2   : > { %v6989_v33 = vpop.permute.xlu0 %6988  ;;  %v6371_v63 = vpop.permute.xlu1 %6370 }
 0x3b3   : > { %7062 = vst.msk [vmem:[%s13417_s16 + $0xb0] sm:$0xff] %vm5502_vm6, %v6989_v33  ;;  %v6449_v4 = vadd.f32 %v6371_v63, %v14432_v51  ;;  %v14440_v33 = vld [vmem:[#allocation58_spill] sm:$0xff]  ;;  %v14441_v51 = vld [vmem:[#allocation59_spill] sm:$0xff] }
 0x3b5   : > { %6530 = vrot.lane.b32.xlu1 %v6449_v4, %s8912_s22 }
 0x3b6   : > { %v6381_v60 = vpop.permute.xlu0 %6380  ;;  %v6991_v37 = vpop.permute.xlu1 %6990 }
 0x3b7   : > { %v6454_v8 = vadd.f32 %v6381_v60, %v14433_v50  ;;  %7063 = vst.msk [vmem:[%s13417_s16 + $0xb8] sm:$0xff] %vm5502_vm6, %v6991_v37  ;;  %v14442_v50 = vld [vmem:[#allocation18_spill] sm:$0xff] }
 0x3b9   : > { %6540 = vrot.lane.b32.xlu0 %v6454_v8, %s8912_s22 }
 0x3ba   : > { %v6985_v15 = vpop.permute.xlu0 %6984  ;;  %v6383_v28 = vpop.permute.xlu1 %6382 }
 0x3bb   : > { %7060 = vst.msk [vmem:[%s13417_s16 + $0xa0] sm:$0xff] %vm5502_vm6, %v6985_v15  ;;  %v6455_v27 = vadd.f32 %v6383_v28, %v14434_v34  ;;  %v14443_v15 = vld [vmem:[#allocation54_spill] sm:$0xff] }
 0x3bd   : > { %6542 = vrot.lane.b32.xlu1 %v6455_v27, %s8912_s22  ;;  %v14444_v27 = vld [vmem:[#allocation60_spill] sm:$0xff] }
 0x3be   : > { %v6377_v57 = vpop.permute.xlu0 %6376  ;;  %v6987_v14 = vpop.permute.xlu1 %6986 }
 0x3bf   : > { %v6452_v62 = vadd.f32 %v6377_v57, %v14435_v54  ;;  %7061 = vst.msk [vmem:[%s13417_s16 + $0xa8] sm:$0xff] %vm5502_vm6, %v6987_v14 }
 0x3c1   : > { %6536 = vrot.lane.b32.xlu0 %v6452_v62, %s8912_s22 }
 0x3c2   : > { %v6389_v16 = vpop.permute.xlu0 %6388  ;;  %v6379_v38 = vpop.permute.xlu1 %6378 }
 0x3c3   : > { %v6458_v58 = vadd.f32 %v6389_v16, %v14436_v56  ;;  %v6453_v6 = vadd.f32 %v6379_v38, %v14437_v61 }
 0x3c5   : > { %6548 = vrot.lane.b32.xlu0 %v6458_v58, %s8912_s22  ;;  %6538 = vrot.lane.b32.xlu1 %v6453_v6, %s8912_s22 }
 0x3c6   : > { %v6993_v7 = vpop.permute.xlu0 %6992  ;;  %v6391_v48 = vpop.permute.xlu1 %6390 }
 0x3c7   : > { %7064 = vst.msk [vmem:[%s13417_s16 + $0xc0] sm:$0xff] %vm5502_vm6, %v6993_v7  ;;  %v6459_v40 = vadd.f32 %v6391_v48, %v14438_v47 }
 0x3c9   : > { %6550 = vrot.lane.b32.xlu1 %v6459_v40, %s8912_s22 }
 0x3ca   : > { %v6385_v2 = vpop.permute.xlu0 %6384  ;;  %v6995_v1 = vpop.permute.xlu1 %6994 }
 0x3cb   : > { %v6456_v59 = vadd.f32 %v6385_v2, %v14439_v12  ;;  %7065 = vst.msk [vmem:[%s13417_s16 + $0xc8] sm:$0xff] %vm5502_vm6, %v6995_v1 }
 0x3cd   : > { %6544 = vrot.lane.b32.xlu0 %v6456_v59, %s8912_s22 }
 0x3ce   : > { %v6397_v41 = vpop.permute.xlu0 %6396  ;;  %v6387_v32 = vpop.permute.xlu1 %6386 }
 0x3cf   : > { %v6462_v63 = vadd.f32 %v6397_v41, %v14440_v33  ;;  %v6457_v4 = vadd.f32 %v6387_v32, %v14441_v51 }
 0x3d1   : > { %6556 = vrot.lane.b32.xlu0 %v6462_v63, %s8912_s22  ;;  %6546 = vrot.lane.b32.xlu1 %v6457_v4, %s8912_s22 }
 0x3d2   : > { %v6393_v60 = vpop.permute.xlu0 %6392  ;;  %v6399_v37 = vpop.permute.xlu1 %6398 }
 0x3d3   : > { %v6460_v8 = vadd.f32 %v6393_v60, %v14442_v50  ;;  %v6463_v28 = vadd.f32 %v6399_v37, %v14443_v15 }
 0x3d5   : > { %6552 = vrot.lane.b32.xlu0 %v6460_v8, %s8912_s22  ;;  %6558 = vrot.lane.b32.xlu1 %v6463_v28, %s8912_s22 }
 0x3d6   : > { %v6395_v34 = vpop.permute.xlu1 %6394 }
 0x3d7   : > { %v6461_v57 = vadd.f32 %v6395_v34, %v14444_v27 }
 0x3d9   : > { %6996 = vrot.lane.b32.xlu0 %v13346_v25, %s8914_s20  ;;  %6554 = vrot.lane.b32.xlu1 %v6461_v57, %s8912_s22  ;;  %s13750_s22 = scalar_lea.vmem [#allocation2], %s7217_s15  ;;  %s8915_s15 = smov [#allocation2]  }
 0x3da   : > { %s7091_s18 = sshll.u32 %s13750_s22, 4  ;;  %s8824_s17 = sshll.u32 %s8915_s15, 4  ;;  %s13855_s18 = int_to_ptr.vmem [resolvable:$true] %s7091_s18  ;;  %s8825_s17 = int_to_ptr.vmem [resolvable:$false] %s8824_s17 }
 0x3db   : > { %v6501_v14 = vpop.permute.xlu0 %6500  ;;  %s8826_s23 = scalar_lea.vmem %s8825_s17, 8192  ;;  %p8827_p0 = scmp.lt.s32.totalorder %s13855_s18, %s8825_s17 }
 0x3dc   : > { %v6594_v54 = vsel %vm5502_vm6, %v6501_v14, %v13138_v5 }
 0x3dd   : > { %8715 = vtanh.f32 %v6594_v54  ;;  %7000 = vrot.lane.b32.xlu0 %v13393_v11, %s8914_s20  ;;  %6998 = vrot.lane.b32.xlu1 %v13359_v44, %s8914_s20 }
 0x3df   : > { %v6503_v62 = vpop.permute.xlu1 %6502 }
 0x3e0   : > { %v6595_v16 = vsel %vm5502_vm6, %v6503_v62, %v13146_v17 }
 0x3e1   : > { %8717 = vtanh.f32 %v6595_v16  ;;  %7002 = vrot.lane.b32.xlu1 %v13409_v42, %s8914_s20 }
 0x3e3   : > { %v6497_v38 = vpop.permute.xlu0 %6496 }
 0x3e4   : > { %v6592_v56 = vsel %vm5502_vm6, %v6497_v38, %v13153_v9 }
 0x3e5   : > { %8719 = vtanh.f32 %v6592_v56 }
 0x3e7   : > { %v6499_v5 = vpop.permute.xlu1 %6498 }
 0x3e8   : > { %v6593_v58 = vsel %vm5502_vm6, %v6499_v5, %v13164_v52 }
 0x3e9   : > { %8721 = vtanh.f32 %v6593_v58 }
 0x3ea   : > { %v13552_v61 = vpop.eup %8715 }
 0x3eb   : > { %6756 = vrot.lane.b32.xlu0 %v13552_v61, %s8914_s20  ;;  %v6509_v17 = vpop.permute.xlu0 %6508 }
 0x3ec   : > { %v6598_v6 = vsel %vm5502_vm6, %v6509_v17, %v13171_v13 }
 0x3ed   : > { %8723 = vtanh.f32 %v6598_v6 }
 0x3ee   : > { %v13558_v7 = vpop.eup %8717 }
 0x3ef   : > { %6758 = vrot.lane.b32.xlu1 %v13558_v7, %s8914_s20  ;;  %v6511_v9 = vpop.permute.xlu1 %6510 }
 0x3f0   : > { %v6599_v52 = vsel %vm5502_vm6, %v6511_v9, %v13182_v49 }
 0x3f1   : > { %8725 = vtanh.f32 %v6599_v52 }
 0x3f2   : > { %v13564_v48 = vpop.eup %8719 }
 0x3f3   : > { %6752 = vrot.lane.b32.xlu0 %v13564_v48, %s8914_s20  ;;  %v6505_v47 = vpop.permute.xlu0 %6504 }
 0x3f4   : > { %v6596_v13 = vsel %vm5502_vm6, %v6505_v47, %v13189_v45 }
 0x3f5   : > { %8727 = vtanh.f32 %v6596_v13 }
 0x3f6   : > { %v13570_v40 = vpop.eup %8721 }
 0x3f7   : > { %6754 = vrot.lane.b32.xlu1 %v13570_v40, %s8914_s20  ;;  %v6507_v2 = vpop.permute.xlu1 %6506 }
 0x3f8   : > { %v6597_v49 = vsel %vm5502_vm6, %v6507_v2, %v13200_v24 }
 0x3f9   : > { %8729 = vtanh.f32 %v6597_v49 }
 0x3fa   : > { %v13576_v1 = vpop.eup %8723 }
 0x3fb   : > { %6764 = vrot.lane.b32.xlu0 %v13576_v1, %s8914_s20  ;;  %v6517_v12 = vpop.permute.xlu0 %6516 }
 0x3fc   : > { %v6602_v45 = vsel %vm5502_vm6, %v6517_v12, %v13207_v0 }
 0x3fd   : > { %8731 = vtanh.f32 %v6602_v45 }
 0x3fe   : > { %v13582_v59 = vpop.eup %8725 }
 0x3ff   : > { %6766 = vrot.lane.b32.xlu1 %v13582_v59, %s8914_s20  ;;  %v6519_v41 = vpop.permute.xlu1 %6518 }
 0x400   : > { %v6603_v24 = vsel %vm5502_vm6, %v6519_v41, %v13218_v36 }
 0x401   : > { %8733 = vtanh.f32 %v6603_v24 }
 0x402   : > { %v13588_v32 = vpop.eup %8727 }
 0x403   : > { %6760 = vrot.lane.b32.xlu0 %v13588_v32, %s8914_s20  ;;  %v6513_v33 = vpop.permute.xlu0 %6512 }
 0x404   : > { %v6600_v0 = vsel %vm5502_vm6, %v6513_v33, %v13225_v30 }
 0x405   : > { %8735 = vtanh.f32 %v6600_v0 }
 0x406   : > { %v13594_v63 = vpop.eup %8729 }
 0x407   : > { %6762 = vrot.lane.b32.xlu1 %v13594_v63, %s8914_s20  ;;  %v6515_v51 = vpop.permute.xlu1 %6514 }
 0x408   : > { %v6601_v36 = vsel %vm5502_vm6, %v6515_v51, %v13236_v18 }
 0x409   : > { %8737 = vtanh.f32 %v6601_v36 }
 0x40a   : > { %v13600_v4 = vpop.eup %8731 }
 0x40b   : > { %6772 = vrot.lane.b32.xlu0 %v13600_v4, %s8914_s20  ;;  %v6525_v60 = vpop.permute.xlu0 %6524 }
 0x40c   : > { %v6606_v30 = vsel %vm5502_vm6, %v6525_v60, %v13243_v29 }
 0x40d   : > { %8739 = vtanh.f32 %v6606_v30 }
 0x40e   : > { %v13606_v37 = vpop.eup %8733 }
 0x40f   : > { %6774 = vrot.lane.b32.xlu1 %v13606_v37, %s8914_s20  ;;  %v6527_v50 = vpop.permute.xlu1 %6526 }
 0x410   : > { %v6607_v18 = vsel %vm5502_vm6, %v6527_v50, %v13254_v19 }
 0x411   : > { %8741 = vtanh.f32 %v6607_v18 }
 0x412   : > { %v13612_v8 = vpop.eup %8735 }
 0x413   : > { %6768 = vrot.lane.b32.xlu0 %v13612_v8, %s8914_s20  ;;  %v6521_v15 = vpop.permute.xlu0 %6520 }
 0x414   : > { %v6604_v29 = vsel %vm5502_vm6, %v6521_v15, %v13261_v39 }
 0x415   : > { %8743 = vtanh.f32 %v6604_v29 }
 0x416   : > { %v13618_v28 = vpop.eup %8737 }
 0x417   : > { %6770 = vrot.lane.b32.xlu1 %v13618_v28, %s8914_s20  ;;  %v6523_v34 = vpop.permute.xlu1 %6522 }
 0x418   : > { %v6605_v19 = vsel %vm5502_vm6, %v6523_v34, %v13272_v35 }
 0x419   : > { %8745 = vtanh.f32 %v6605_v19 }
 0x41a   : > { %v13624_v27 = vpop.eup %8739 }
 0x41b   : > { %6780 = vrot.lane.b32.xlu0 %v13624_v27, %s8914_s20  ;;  %v6533_v57 = vpop.permute.xlu0 %6532 }
 0x41c   : > { %v6610_v39 = vsel %vm5502_vm6, %v6533_v57, %v13279_v21 }
 0x41d   : > { %8747 = vtanh.f32 %v6610_v39 }
 0x41e   : > { %v13630_v14 = vpop.eup %8741 }
 0x41f   : > { %6782 = vrot.lane.b32.xlu1 %v13630_v14, %s8914_s20  ;;  %v6535_v54 = vpop.permute.xlu1 %6534 }
 0x420   : > { %v6611_v35 = vsel %vm5502_vm6, %v6535_v54, %v13290_v43 }
 0x421   : > { %8749 = vtanh.f32 %v6611_v35 }
 0x422   : > { %v13636_v62 = vpop.eup %8743 }
 0x423   : > { %6776 = vrot.lane.b32.xlu0 %v13636_v62, %s8914_s20  ;;  %v6529_v16 = vpop.permute.xlu0 %6528 }
 0x424   : > { %v6608_v21 = vsel %vm5502_vm6, %v6529_v16, %v13297_v26 }
 0x425   : > { %8751 = vtanh.f32 %v6608_v21  ;;  %v6658_v21 = vmul.f32 0.5, %v13552_v61  ;;  %v6656_v61 = vmul.f32 0.5, %v13564_v48 }
 0x426   : > { %v13642_v38 = vpop.eup %8745 }
 0x427   : > { %6778 = vrot.lane.b32.xlu1 %v13642_v38, %s8914_s20  ;;  %v6531_v56 = vpop.permute.xlu1 %6530 }
 0x428   : > { %v6609_v43 = vsel %vm5502_vm6, %v6531_v56, %v13308_v22 }
 0x429   : > { %8753 = vtanh.f32 %v6609_v43  ;;  %v6690_v43 = vadd.f32 0.5, %v6658_v21 }
 0x42a   : > { %v13648_v5 = vpop.eup %8747 }
 0x42b   : > { %6788 = vrot.lane.b32.xlu0 %v13648_v5, %s8914_s20  ;;  %v6541_v58 = vpop.permute.xlu0 %6540 }
 0x42c   : > { %v6614_v26 = vsel %vm5502_vm6, %v6541_v58, %v13315_v3  ;;  %v6659_v58 = vmul.f32 0.5, %v13558_v7  ;;  %v6688_v7 = vadd.f32 0.5, %v6656_v61 }
 0x42d   : > { %8755 = vtanh.f32 %v6614_v26 }
 0x42e   : > { %v13654_v17 = vpop.eup %8749 }
 0x42f   : > { %6790 = vrot.lane.b32.xlu1 %v13654_v17, %s8914_s20  ;;  %v6543_v6 = vpop.permute.xlu1 %6542 }
 0x430   : > { %v6615_v22 = vsel %vm5502_vm6, %v6543_v6, %v13326_v23 }
 0x431   : > { %8757 = vtanh.f32 %v6615_v22 }
 0x432   : > { %v13660_v9 = vpop.eup %8751 }
 0x433   : > { %6784 = vrot.lane.b32.xlu0 %v13660_v9, %s8914_s20  ;;  %v6537_v52 = vpop.permute.xlu0 %6536 }
 0x434   : > { %v6612_v3 = vsel %vm5502_vm6, %v6537_v52, %v13333_v20 }
 0x435   : > { %8759 = vtanh.f32 %v6612_v3  ;;  %v6657_v3 = vmul.f32 0.5, %v13570_v40 }
 0x436   : > { %v13666_v47 = vpop.eup %8753 }
 0x437   : > { %v6549_v13 = vpop.permute.xlu0 %6548  ;;  %6786 = vrot.lane.b32.xlu1 %v13666_v47, %s8914_s20  ;;  %v6539_v2 = vpop.permute.xlu1 %6538 }
 0x438   : > { %v6618_v23 = vsel %vm5502_vm6, %v6549_v13, %v13346_v25  ;;  %v6613_v49 = vsel %vm5502_vm6, %v6539_v2, %v13348_v53 }
 0x439   : > { %8761 = vtanh.f32 %v6618_v23  ;;  %v6689_v23 = vadd.f32 0.5, %v6657_v3  ;;  %v6668_v3 = vmul.f32 0.5, %v13636_v62 }
 0x43a   : > { %v13674_v12 = vpop.eup %8755  ;;  %8763 = vtanh.f32 %v6613_v49  ;;  %v6662_v49 = vmul.f32 0.5, %v13576_v1 }
 0x43b   : > { %6796 = vrot.lane.b32.xlu0 %v13674_v12, %s8914_s20  ;;  %v6551_v20 = vpop.permute.xlu1 %6550 }
 0x43c   : > { %v6619_v45 = vsel %vm5502_vm6, %v6551_v20, %v13359_v44  ;;  %v6694_v48 = vadd.f32 0.5, %v6662_v49 }
 0x43d   : > { %8765 = vtanh.f32 %v6619_v45  ;;  %v6663_v45 = vmul.f32 0.5, %v13582_v59 }
 0x43e   : > { %v13680_v41 = vpop.eup %8757 }
 0x43f   : > { %v6545_v24 = vpop.permute.xlu0 %6544  ;;  %6798 = vrot.lane.b32.xlu1 %v13680_v41, %s8914_s20  ;;  %v6695_v40 = vadd.f32 0.5, %v6663_v45 }
 0x440   : > { %v6616_v25 = vsel %vm5502_vm6, %v6545_v24, %v13365_v55 }
 0x441   : > { %8767 = vtanh.f32 %v6616_v25 }
 0x442   : > { %v13686_v53 = vpop.eup %8759 }
 0x443   : > { %6792 = vrot.lane.b32.xlu0 %v13686_v53, %s8914_s20  ;;  %v6557_v33 = vpop.permute.xlu0 %6556  ;;  %v6547_v0 = vpop.permute.xlu1 %6546 }
 0x444   : > { %v6622_v44 = vsel %vm5502_vm6, %v6557_v33, %v13378_v31  ;;  %v6617_v51 = vsel %vm5502_vm6, %v6547_v0, %v13380_v10  ;;  %v6660_v33 = vmul.f32 0.5, %v13588_v32 }
 0x445   : > { %8769 = vtanh.f32 %v6622_v44 }
 0x446   : > { %v13694_v36 = vpop.eup %8761  ;;  %8771 = vtanh.f32 %v6617_v51  ;;  %v6692_v1 = vadd.f32 0.5, %v6660_v33  ;;  %v6661_v51 = vmul.f32 0.5, %v13594_v63  ;;  %v6672_v33 = vmul.f32 0.5, %v13660_v9 }
 0x447   : > { %v13696_v55 = vpop.eup %8763  ;;  %6804 = vrot.lane.b32.xlu0 %v13694_v36, %s8914_s20  ;;  %v6553_v60 = vpop.permute.xlu0 %6552 }
 0x448   : > { %v6559_v30 = vpop.permute.xlu1 %6558  ;;  %v6620_v50 = vsel %vm5502_vm6, %v6553_v60, %v13393_v11  ;;  %6794 = vrot.lane.b32.xlu1 %v13696_v55, %s8914_s20  ;;  %v6693_v59 = vadd.f32 0.5, %v6661_v51 }
 0x449   : > { %v6623_v10 = vsel %vm5502_vm6, %v6559_v30, %v13395_v46  ;;  %8773 = vtanh.f32 %v6620_v50  ;;  %v6666_v50 = vmul.f32 0.5, %v13600_v4 }
 0x44a   : > { %v13706_v18 = vpop.eup %8765  ;;  %8775 = vtanh.f32 %v6623_v10 }
 0x44b   : > { %v6997_v15 = vpop.permute.xlu0 %6996  ;;  %v6698_v32 = vadd.f32 0.5, %v6666_v50 }
 0x44c   : > { %v6555_v29 = vpop.permute.xlu1 %6554  ;;  %7066 = vst.msk [vmem:[%s13417_s16 + $0xd0] sm:$0xff] %vm5502_vm6, %v6997_v15  ;;  %6806 = vrot.lane.b32.xlu1 %v13706_v18, %s8914_s20 }
 0x44d   : > { %v6621_v11 = vsel %vm5502_vm6, %v6555_v29, %v13409_v42  ;;  %v6667_v29 = vmul.f32 0.5, %v13606_v37 }
 0x44e   : > { %8777 = vtanh.f32 %v6621_v11  ;;  %v13714_v34 = vpop.eup %8767 }
 0x44f   : > { %6800 = vrot.lane.b32.xlu0 %v13714_v34, %s8914_s20  ;;  %v7001_v19 = vpop.permute.xlu0 %7000  ;;  %v6699_v63 = vadd.f32 0.5, %v6667_v29  ;;  %v6676_v29 = vmul.f32 0.5, %v13686_v53  ;;  %v6683_v53 = vmul.f32 0.5, %v13706_v18 }
 0x450   : > { %v6999_v57 = vpop.permute.xlu1 %6998  ;;  %7068 = vst.msk [vmem:[%s13417_s16 + $0xe0] sm:$0xff] %vm5502_vm6, %v7001_v19 }
 0x451   : > { %7067 = vst.msk [vmem:[%s13417_s16 + $0xd8] sm:$0xff] %vm5502_vm6, %v6999_v57  ;;  %v6664_v57 = vmul.f32 0.5, %v13612_v8 }
 0x452   : > { %v13722_v39 = vpop.eup %8769 }
 0x453   : > { %v13724_v54 = vpop.eup %8771  ;;  %6812 = vrot.lane.b32.xlu0 %v13722_v39, %s8914_s20  ;;  %v6696_v4 = vadd.f32 0.5, %v6664_v57 }
 0x454   : > { %v7003_v42 = vpop.permute.xlu1 %7002  ;;  %6802 = vrot.lane.b32.xlu1 %v13724_v54, %s8914_s20 }
 0x455   : > { %7069 = vst.msk [vmem:[%s13417_s16 + $0xe8] sm:$0xff] %vm5502_vm6, %v7003_v42 }
 0x456   : > { %v13732_v35 = vpop.eup %8773 }
 0x457   : > { %v13734_v16 = vpop.eup %8775  ;;  %6808 = vrot.lane.b32.xlu0 %v13732_v35, %s8914_s20 }
 0x458   : > { %6814 = vrot.lane.b32.xlu1 %v13734_v16, %s8914_s20 }
 0x45b   : > { %v13741_v56 = vpop.eup %8777  ;;  %7004 = vrot.lane.b32.xlu0 %v13378_v31, %s8914_s20  ;;  %v6691_v31 = vadd.f32 0.5, %v6659_v58 }
 0x45c   : > { %6810 = vrot.lane.b32.xlu1 %v13741_v56, %s8914_s20 }
 0x45d   : > { %v6757_v26 = vpop.permute.xlu0 %6756 }
 0x45e   : > { %v6850_v6 = vmul.f32 %v6757_v26, %v6690_v43  ;;  %v6665_v43 = vmul.f32 0.5, %v13618_v28 }
 0x460   : > { %6882 = vst.msk [vmem:[%s13750_s22 + $0x10] sm:$0xff] %vm5502_vm6, %v6850_v6  ;;  %7006 = vrot.lane.b32.xlu1 %v13395_v46, %s8914_s20  ;;  %v6697_v37 = vadd.f32 0.5, %v6665_v43  ;;  %v6670_v6 = vmul.f32 0.5, %v13624_v27  ;;  %v6700_v27 = vadd.f32 0.5, %v6668_v3  ;;  %s8820_s20 = scalar_lea.vmem %s13855_s18, 4096 }
 0x461   : > { %v6759_v22 = vpop.permute.xlu1 %6758  ;;  %p8821_p11 = scmp.ne.s32.totalorder %s13855_s18, %s8820_s20  ;;  %p8828_p1 = scmp.lt.s32.totalorder %s8826_s23, %s8820_s20 }
 0x462   : > { %v6851_v52 = vmul.f32 %v6759_v22, %v6691_v31  ;;  %v6702_v8 = vadd.f32 0.5, %v6670_v6  ;;  %v6671_v22 = vmul.f32 0.5, %v13630_v14 }
 0x463   : > { %p8822_p12 = pnand %p8821_p11, %p8997_p5  ;;  %p8829_p2 = por %p8828_p1, %p8827_p0 }
 0x464   : > { %6883 = vst.msk [vmem:[%s13750_s22 + $0x18] sm:$0xff] %vm5502_vm6, %v6851_v52  ;;  %v6703_v28 = vadd.f32 0.5, %v6671_v22  ;;  %v6681_v22 = vmul.f32 0.5, %v13724_v54 }
 0x465   : > { %v6753_v13 = vpop.permute.xlu0 %6752  ;;  %p8823_p13 = pneg %p8822_p12 }
 0x466   : > { %v6848_v2 = vmul.f32 %v6753_v13, %v6688_v7  ;;  %v6713_v3 = vadd.f32 0.5, %v6681_v22 }
 0x467   : > { %p8830_p3 = pnand %p8829_p2, %p8823_p13 }
 0x468   : > { %6880 = vst.msk [vmem:[%s13750_s22] sm:$0xff] %vm5502_vm6, %v6848_v2 }
 0x469   : > { %v6755_v46 = vpop.permute.xlu1 %6754 }
 0x46a   : > { %v6849_v20 = vmul.f32 %v6755_v46, %v6689_v23  ;;  %v6669_v23 = vmul.f32 0.5, %v13642_v38 }
 0x46c   : > { %6881 = vst.msk [vmem:[%s13750_s22 + $0x8] sm:$0xff] %vm5502_vm6, %v6849_v20  ;;  %v6701_v14 = vadd.f32 0.5, %v6669_v23  ;;  %v6674_v20 = vmul.f32 0.5, %v13648_v5  ;;  %v6704_v5 = vadd.f32 0.5, %v6672_v33 }
 0x46d   : > { %v6765_v24 = vpop.permute.xlu0 %6764 }
 0x46e   : > { %v6854_v25 = vmul.f32 %v6765_v24, %v6694_v48  ;;  %v6706_v62 = vadd.f32 0.5, %v6674_v20  ;;  %v6675_v24 = vmul.f32 0.5, %v13654_v17 }
 0x470   : > { %6886 = vst.msk [vmem:[%s13750_s22 + $0x30] sm:$0xff] %vm5502_vm6, %v6854_v25  ;;  %v6707_v38 = vadd.f32 0.5, %v6675_v24 }
 0x471   : > { %v6767_v0 = vpop.permute.xlu1 %6766 }
 0x472   : > { %v6855_v44 = vmul.f32 %v6767_v0, %v6695_v40 }
 0x474   : > { %6887 = vst.msk [vmem:[%s13750_s22 + $0x38] sm:$0xff] %vm5502_vm6, %v6855_v44 }
 0x475   : > { %v6761_v60 = vpop.permute.xlu0 %6760 }
 0x476   : > { %v6852_v30 = vmul.f32 %v6761_v60, %v6692_v1  ;;  %v6673_v1 = vmul.f32 0.5, %v13666_v47 }
 0x478   : > { %6884 = vst.msk [vmem:[%s13750_s22 + $0x20] sm:$0xff] %vm5502_vm6, %v6852_v30  ;;  %v6705_v17 = vadd.f32 0.5, %v6673_v1  ;;  %v6678_v30 = vmul.f32 0.5, %v13674_v12  ;;  %v6708_v12 = vadd.f32 0.5, %v6676_v29 }
 0x479   : > { %v6763_v10 = vpop.permute.xlu1 %6762 }
 0x47a   : > { %v6853_v15 = vmul.f32 %v6763_v10, %v6693_v59  ;;  %v6710_v9 = vadd.f32 0.5, %v6678_v30  ;;  %v6679_v10 = vmul.f32 0.5, %v13680_v41 }
 0x47c   : > { %6885 = vst.msk [vmem:[%s13750_s22 + $0x28] sm:$0xff] %vm5502_vm6, %v6853_v15  ;;  %v6711_v47 = vadd.f32 0.5, %v6679_v10 }
 0x47d   : > { %v6773_v11 = vpop.permute.xlu0 %6772 }
 0x47e   : > { %v6858_v19 = vmul.f32 %v6773_v11, %v6698_v32 }
 0x480   : > { %6890 = vst.msk [vmem:[%s13750_s22 + $0x50] sm:$0xff] %vm5502_vm6, %v6858_v19 }
 0x481   : > { %v6775_v42 = vpop.permute.xlu1 %6774 }
 0x482   : > { %v6859_v21 = vmul.f32 %v6775_v42, %v6699_v63  ;;  %v6682_v63 = vmul.f32 0.5, %v13694_v36  ;;  %v6677_v42 = vmul.f32 0.5, %v13696_v55  ;;  %v6680_v36 = vmul.f32 0.5, %v13714_v34 }
 0x483   : > { %v6715_v55 = vadd.f32 0.5, %v6683_v53  ;;  %v6684_v34 = vmul.f32 0.5, %v13732_v35  ;;  %v6685_v35 = vmul.f32 0.5, %v13741_v56 }
 0x484   : > { %6891 = vst.msk [vmem:[%s13750_s22 + $0x58] sm:$0xff] %vm5502_vm6, %v6859_v21  ;;  %v6714_v21 = vadd.f32 0.5, %v6682_v63  ;;  %v6709_v43 = vadd.f32 0.5, %v6677_v42 }
 0x485   : > { %v6769_v58 = vpop.permute.xlu0 %6768  ;;  %v6716_v54 = vadd.f32 0.5, %v6684_v34 }
 0x486   : > { %v6856_v26 = vmul.f32 %v6769_v58, %v6696_v4 }
 0x488   : > { %6888 = vst.msk [vmem:[%s13750_s22 + $0x40] sm:$0xff] %vm5502_vm6, %v6856_v26 }
 0x489   : > { %v6771_v31 = vpop.permute.xlu1 %6770 }
 0x48a   : > { %v6857_v61 = vmul.f32 %v6771_v31, %v6697_v37 }
 0x48c   : > { %6889 = vst.msk [vmem:[%s13750_s22 + $0x48] sm:$0xff] %vm5502_vm6, %v6857_v61  ;;  %v6712_v61 = vadd.f32 0.5, %v6680_v36 }
 0x48d   : > { %v6781_v52 = vpop.permute.xlu0 %6780 }
 0x48e   : > { %v6862_v7 = vmul.f32 %v6781_v52, %v6702_v8  ;;  %v6686_v8 = vmul.f32 0.5, %v13722_v39 }
 0x490   : > { %6894 = vst.msk [vmem:[%s13750_s22 + $0x70] sm:$0xff] %vm5502_vm6, %v6862_v7  ;;  %v6718_v7 = vadd.f32 0.5, %v6686_v8 }
 0x491   : > { %v6783_v13 = vpop.permute.xlu1 %6782 }
 0x492   : > { %v6863_v2 = vmul.f32 %v6783_v13, %v6703_v28  ;;  %v6687_v13 = vmul.f32 0.5, %v13734_v16 }
 0x494   : > { %6895 = vst.msk [vmem:[%s13750_s22 + $0x78] sm:$0xff] %vm5502_vm6, %v6863_v2 }
 0x495   : > { %v6777_v49 = vpop.permute.xlu0 %6776 }
 0x496   : > { %v6860_v46 = vmul.f32 %v6777_v49, %v6700_v27  ;;  %v6719_v49 = vadd.f32 0.5, %v6687_v13 }
 0x498   : > { %6892 = vst.msk [vmem:[%s13750_s22 + $0x60] sm:$0xff] %vm5502_vm6, %v6860_v46 }
 0x499   : > { %v6779_v48 = vpop.permute.xlu1 %6778 }
 0x49a   : > { %v6861_v45 = vmul.f32 %v6779_v48, %v6701_v14  ;;  %v6717_v48 = vadd.f32 0.5, %v6685_v35 }
 0x49c   : > { %6893 = vst.msk [vmem:[%s13750_s22 + $0x68] sm:$0xff] %vm5502_vm6, %v6861_v45 }
 0x49d   : > { %v6789_v25 = vpop.permute.xlu0 %6788 }
 0x49e   : > { %v6866_v40 = vmul.f32 %v6789_v25, %v6706_v62 }
 0x4a0   : > { %6898 = vst.msk [vmem:[%s13750_s22 + $0x90] sm:$0xff] %vm5502_vm6, %v6866_v40 }
 0x4a1   : > { %v6791_v0 = vpop.permute.xlu1 %6790 }
 0x4a2   : > { %v6867_v44 = vmul.f32 %v6791_v0, %v6707_v38 }
 0x4a4   : > { %6899 = vst.msk [vmem:[%s13750_s22 + $0x98] sm:$0xff] %vm5502_vm6, %v6867_v44 }
 0x4a5   : > { %v6785_v51 = vpop.permute.xlu0 %6784 }
 0x4a6   : > { %v6864_v60 = vmul.f32 %v6785_v51, %v6704_v5 }
 0x4a8   : > { %6896 = vst.msk [vmem:[%s13750_s22 + $0x80] sm:$0xff] %vm5502_vm6, %v6864_v60 }
 0x4a9   : > { %v6787_v59 = vpop.permute.xlu1 %6786 }
 0x4aa   : > { %v6865_v50 = vmul.f32 %v6787_v59, %v6705_v17 }
 0x4ac   : > { %6897 = vst.msk [vmem:[%s13750_s22 + $0x88] sm:$0xff] %vm5502_vm6, %v6865_v50 }
 0x4ad   : > { %v6797_v15 = vpop.permute.xlu0 %6796 }
 0x4ae   : > { %v6870_v32 = vmul.f32 %v6797_v15, %v6710_v9 }
 0x4b0   : > { %6902 = vst.msk [vmem:[%s13750_s22 + $0xb0] sm:$0xff] %vm5502_vm6, %v6870_v32 }
 0x4b1   : > { %v6799_v11 = vpop.permute.xlu1 %6798 }
 0x4b2   : > { %v6871_v19 = vmul.f32 %v6799_v11, %v6711_v47 }
 0x4b4   : > { %6903 = vst.msk [vmem:[%s13750_s22 + $0xb8] sm:$0xff] %vm5502_vm6, %v6871_v19 }
 0x4b5   : > { %v6793_v57 = vpop.permute.xlu0 %6792 }
 0x4b6   : > { %v6868_v41 = vmul.f32 %v6793_v57, %v6708_v12 }
 0x4b8   : > { %6900 = vst.msk [vmem:[%s13750_s22 + $0xa0] sm:$0xff] %vm5502_vm6, %v6868_v41 }
 0x4b9   : > { %v6805_v4 = vpop.permute.xlu0 %6804 }
 0x4ba   : > { %v6874_v58 = vmul.f32 %v6805_v4, %v6714_v21  ;;  %v6795_v26 = vpop.permute.xlu1 %6794 }
 0x4bb   : > { %v6869_v37 = vmul.f32 %v6795_v26, %v6709_v43 }
 0x4bc   : > { %6906 = vst.msk [vmem:[%s13750_s22 + $0xd0] sm:$0xff] %vm5502_vm6, %v6874_v58 }
 0x4bd   : > { %6901 = vst.msk [vmem:[%s13750_s22 + $0xa8] sm:$0xff] %vm5502_vm6, %v6869_v37 }
 0x4be   : > { %v6807_v6 = vpop.permute.xlu1 %6806 }
 0x4bf   : > { %v6875_v31 = vmul.f32 %v6807_v6, %v6715_v55 }
 0x4c1   : > { %6907 = vst.msk [vmem:[%s13750_s22 + $0xd8] sm:$0xff] %vm5502_vm6, %v6875_v31  ;;  %v6801_v18 = vpop.permute.xlu0 %6800 }
 0x4c2   : > { %v6872_v52 = vmul.f32 %v6801_v18, %v6712_v61 }
 0x4c4   : > { %6904 = vst.msk [vmem:[%s13750_s22 + $0xc0] sm:$0xff] %vm5502_vm6, %v6872_v52 }
 0x4c5   : > { %v6813_v28 = vpop.permute.xlu0 %6812 }
 0x4c6   : > { %v6878_v39 = vmul.f32 %v6813_v28, %v6718_v7  ;;  %v6803_v2 = vpop.permute.xlu1 %6802 }
 0x4c7   : > { %v6873_v27 = vmul.f32 %v6803_v2, %v6713_v3 }
 0x4c8   : > { %6910 = vst.msk [vmem:[%s13750_s22 + $0xf0] sm:$0xff] %vm5502_vm6, %v6878_v39 }
 0x4c9   : > { %6905 = vst.msk [vmem:[%s13750_s22 + $0xc8] sm:$0xff] %vm5502_vm6, %v6873_v27  ;;  %v6809_v23 = vpop.permute.xlu0 %6808 }
 0x4ca   : > { %v6876_v46 = vmul.f32 %v6809_v23, %v6716_v54  ;;  %v6815_v14 = vpop.permute.xlu1 %6814 }
 0x4cb   : > { %v6879_v16 = vmul.f32 %v6815_v14, %v6719_v49 }
 0x4cc   : > { %6908 = vst.msk [vmem:[%s13750_s22 + $0xe0] sm:$0xff] %vm5502_vm6, %v6876_v46 }
 0x4cd   : > { %6911 = vst.msk [vmem:[%s13750_s22 + $0xf8] sm:$0xff] %vm5502_vm6, %v6879_v16  ;;  %v7005_v20 = vpop.permute.xlu0 %7004 }
 0x4ce   : > { %7070 = vst.msk [vmem:[%s13417_s16 + $0xf0] sm:$0xff] %vm5502_vm6, %v7005_v20  ;;  %v6811_v56 = vpop.permute.xlu1 %6810 }
 0x4cf   : > { %v6877_v45 = vmul.f32 %v6811_v56, %v6717_v48 }
 0x4d1   : > { %6909 = vst.msk [vmem:[%s13750_s22 + $0xe8] sm:$0xff] %vm5502_vm6, %v6877_v45 }
 0x4d2   : > { %v7007_v62 = vpop.permute.xlu1 %7006 }
 0x4d3   : > { %8833 = shalt.err (!%p8830_p3)
}
 0x4d4   : > { %s8834_s22 = scalar_lea.hbm %s13851_s21, 4096  ;;  %s8838_s8 = scalar_lea.hbm %s13942_s6, 8192 }
 0x4d5   : > { %p8835_p4 = scmp.ne.s32.totalorder %s13851_s21, %s8834_s22  ;;  %p8839_p9 = scmp.lt.s32.totalorder %s13851_s21, %s13942_s6 }
 0x4d6   : > { %p8840_p10 = scmp.lt.s32.totalorder %s8838_s8, %s8834_s22 }
 0x4d7   : > { %p8836_p7 = pnand %p8835_p4, %p8997_p5 }
 0x4d8   : > { %p8841_p11 = por %p8840_p10, %p8839_p9 }
 0x4d9   : > { %p8837_p8 = pneg %p8836_p7 }
 0x4db   : > { %p8842_p12 = pnand %p8841_p11, %p8837_p8 }
 0x4dd   : > { %8845 = shalt.err (!%p8842_p12)
}
 0x4de   : > { %s8916_s20 = smov 128   ;;  %s8917_s17 = smov 8   ;;  %7071 = vst.msk [vmem:[%s13417_s16 + $0xf8] sm:$0xff] %vm5502_vm6, %v7007_v62 }
 0x4df   : > { %s14445_s13 = scalar_lea.sflag [#allocation3], %s13398_s14  ;;  %s7078_s23 = scalar_lea.sflag [#allocation5], %s13398_s14 }
 0x4e0   : > { %8482 = dma.vmem_to_hbm [thread:$0]  (%p8997_p5), %s13855_s18, 4096, %s13851_s21, %s14445_s13, %s8916_s20, %s8916_s20, %s8917_s17  }
 0x4e1   : > { %s8846_s22 = scalar_lea.vmem %s13865_s28, 4096  ;;  %s8918_s19 = smov [#allocation4]  }
 0x4e2   : > { %p8847_p13 = scmp.ne.s32.totalorder %s13865_s28, %s8846_s22  ;;  %s8850_s29 = sshll.u32 %s8918_s19, 4  ;;  %s8851_s29 = int_to_ptr.vmem [resolvable:$false] %s8850_s29 }
 0x4e3   : > { %s8852_s8 = scalar_lea.vmem %s8851_s29, 8192  ;;  %p8853_p2 = scmp.lt.s32.totalorder %s13865_s28, %s8851_s29 }
 0x4e4   : > { %p8848_p0 = pnand %p8847_p13, %p8997_p5  ;;  %p8854_p3 = scmp.lt.s32.totalorder %s8852_s8, %s8846_s22 }
 0x4e6   : > { %p8849_p1 = pneg %p8848_p0  ;;  %p8855_p4 = por %p8854_p3, %p8853_p2 }
 0x4e8   : > { %p8856_p7 = pnand %p8855_p4, %p8849_p1 }
 0x4ea   : > { %8859 = shalt.err (!%p8856_p7)
}
 0x4eb   : > { %s8860_s16 = scalar_lea.hbm %s13863_s9, 4096  ;;  %s8864_s21 = scalar_lea.hbm %s13943_s7, 8192 }
 0x4ec   : > { %p8861_p8 = scmp.ne.s32.totalorder %s13863_s9, %s8860_s16  ;;  %p8865_p11 = scmp.lt.s32.totalorder %s13863_s9, %s13943_s7 }
 0x4ed   : > { %p8866_p12 = scmp.lt.s32.totalorder %s8864_s21, %s8860_s16 }
 0x4ee   : > { %p8862_p9 = pnand %p8861_p8, %p8997_p5 }
 0x4ef   : > { %p8867_p13 = por %p8866_p12, %p8865_p11 }
 0x4f0   : > { %p8863_p10 = pneg %p8862_p9 }
 0x4f2   : > { %p8868_p0 = pnand %p8867_p13, %p8863_p10 }
 0x4f4   : > { %8871 = shalt.err (!%p8868_p0)
}
 0x4f5   : > { %8483 = dma.vmem_to_hbm [thread:$0]  (%p8997_p5), %s13865_s28, 4096, %s13863_s9, %s7078_s23, %s8916_s20, %s8916_s20, %s8917_s17  }
 0x4f6 PF: > { %p8493_p1 = scmp.ge.s32.totalorder %s8910_s27, 2  ;;  %s7122_s22 = sand.u32 1, %s8898_s24  }
 0x4f7   : > { %s7123_s19 = scalar_lea.sflag [#allocation3], %s7122_s22 }
 0x4f8   : > { %p8487_p2 = pnand %p8493_p1, %p9001_p6 }
 0x4fa   : > { %p8488_p3 = pneg %p8487_p2 }
 0x4fc   : > { %8889 = dma.done.wait (%p8488_p3), %s7123_s19, 4096  }
 0x4fd   : > { %8891 = vsyncadd (%p8488_p3), %s7123_s19, 4294963200  ;;  %s7132_s29 = scalar_lea.sflag [#allocation5], %s7122_s22 }
 0x4fe   : > { %8893 = dma.done.wait (%p8488_p3), %s7132_s29, 4096  }
 0x4ff   : > { %8895 = vsyncadd (%p8488_p3), %s7132_s29, 4294963200  ;;  %p21_p5 = scmp.ge.s32.totalorder %s8984_s30, 4   ;;  %s14446_s24 = smov %s8902_s25 }
 0x500   : > { %s14447_s25 = smov %s8906_s26  ;;  %s14448_s26 = smov %s8995_s10 }
 0x501   : > { %s14449_s27 = smov %s8984_s30  ;;  %23 = sbr.rel (!%p21_p5) target bundleno = 5 (0x5), region = 109 }
 0x506   :  { %7137 = vsyncpa [#allocation3], 1 }
 0x507   :  { %7139 = vsyncpa [#allocation3 + $0x1], 1 }
 0x508   :  { %7140 = vsyncpa [#allocation5], 1 }
 0x509   :  { %7142 = vsyncpa [#allocation5 + $0x1], 1 }

</bundles_post_ra>
